<compile_context>
chip_gen: v5e
topology: v5e:2x2
jax: 0.10.0
libtpu: 0.0.40
codegen_flags: <defaults>
</compile_context>

<pallas_src>
import jax
import jax.numpy as jnp
from jax.experimental import pallas as pl
from jax.experimental.pallas import tpu as pltpu

_NPARAMS = 11   # prepared params per module
_K1, _K2, _K3 = 7, 5, 3
_MAXPAD = (_K1 - 1) // 2


def _make_block_kernel(L: int, module_cfgs):
    """Fused kernel for the whole ResidualBlock. module_cfgs = [(cin, cout), ...]."""

    def kernel(*refs):
        x_ref = refs[0]
        out_ref = refs[-1]
        param_refs = refs[1:-1]

        x = x_ref[...]                       # (Cin0, B*L), f32
        BL = x.shape[1]

        # within-sequence position (lane axis) -- computed once, reused everywhere
        t_idx = jax.lax.broadcasted_iota(jnp.int32, (1, BL), 1) % L
        # validity masks for every shift used by any conv (k=7 -> |s| <= 3),
        # shared across all convs / modules (prevents taps leaking across the
        # sequence edge, across batch boundaries and across the B*L wraparound).
        masks = {s: (t_idx + s >= 0) & (t_idx + s < L)
                 for s in range(-_MAXPAD, _MAXPAD + 1) if s != 0}

        def stack_shifts(h, K):
            # im2col operand: (K*Cin, BL); tap k occupies rows [k*Cin, (k+1)*Cin).
            pad = (K - 1) // 2
            parts = []
            for k in range(K):
                s = k - pad
                if s == 0:
                    parts.append(h)
                else:
                    shifted = pltpu.roll(h, shift=(-s) % BL, axis=1)  # [:, t] = h[:, (t+s)%BL]
                    parts.append(jnp.where(masks[s], shifted, 0.0))
            return jnp.concatenate(parts, axis=0)

        def batchnorm(h, g, b):
            # one-pass batch statistics over (N, L) == lane axis, biased variance
            inv_n = 1.0 / h.shape[1]
            mean = jnp.sum(h, axis=1, keepdims=True) * inv_n
            msq = jnp.sum(h * h, axis=1, keepdims=True) * inv_n
            var = jnp.maximum(msq - mean * mean, 0.0)
            return (h - mean) * jax.lax.rsqrt(var + 1e-5) * g + b

        def leaky_sinelu(h):
            s = jnp.sin(h)
            s = s * s + h
            return jnp.maximum(0.1 * s, s)

        h = x
        for m, (cin, cout) in enumerate(module_cfgs):
            (w1s_ref, g1_ref, b1_ref, gs_ref, bs_ref,
             w2_ref, g2_ref, b2_ref,
             w3_ref, g3_ref, b3_ref) = param_refs[m * _NPARAMS:(m + 1) * _NPARAMS]

            x_in = h

            # conv1 (k=7) and the 1x1 shortcut fused into a single MXU matmul
            y1 = stack_shifts(x_in, _K1)                                   # (7*cin, BL)
            z = jnp.dot(w1s_ref[...], y1,
                        preferred_element_type=jnp.float32)                # (2*cout, BL)
            h1 = leaky_sinelu(batchnorm(z[:cout, :], g1_ref[...], b1_ref[...]))
            sc = batchnorm(z[cout:, :], gs_ref[...], bs_ref[...])

            # conv2 (k=5)
            y2 = stack_shifts(h1, _K2)                                     # (5*cout, BL)
            h2 = jnp.dot(w2_ref[...], y2, preferred_element_type=jnp.float32)
            h2 = leaky_sinelu(batchnorm(h2, g2_ref[...], b2_ref[...]))

            # conv3 (k=3)
            y3 = stack_shifts(h2, _K3)                                     # (3*cout, BL)
            h3 = jnp.dot(w3_ref[...], y3, preferred_element_type=jnp.float32)
            h3 = batchnorm(h3, g3_ref[...], b3_ref[...])

            h = leaky_sinelu(h3 + sc)

        out_ref[...] = h

    return kernel


# ------------------------- parameter preparation (done once, at init) -------

def _conv_to_im2col(w):
    # Conv1d weight (Cout, Cin, K) -> lane-dense (Cout, K*Cin); tap k in cols [k*Cin,(k+1)*Cin)
    cout, cin, K = w.shape
    return jnp.transpose(w, (0, 2, 1)).reshape(cout, K * cin).astype(jnp.float32)


def prepare_module_params(p):
    """PyTorch-shaped params -> pre-stacked lane-dense kernel params (11-tuple)."""
    w1, g1, b1, w2, g2, b2, w3, g3, b3, ws, gs, bs = p
    cout, cin, K1 = w1.shape
    w1_flat = _conv_to_im2col(w1)                                  # (cout, 7*cin)
    # embed the 1x1 shortcut at the s=0 tap of a k=7 im2col weight, zeros elsewhere
    ws_emb = jnp.zeros((cout, K1, cin), jnp.float32).at[:, K1 // 2, :].set(ws[:, :, 0])
    ws_flat = ws_emb.reshape(cout, K1 * cin)
    w1s = jnp.concatenate([w1_flat, ws_flat], axis=0)              # (2*cout, 7*cin)
    col = lambda v: v.reshape(-1, 1).astype(jnp.float32)
    return (w1s, col(g1), col(b1), col(gs), col(bs),
            _conv_to_im2col(w2), col(g2), col(b2),
            _conv_to_im2col(w3), col(g3), col(b3))


# ------------------------- block forward (single pallas_call) ---------------

def residual_block_pallas(x_ncl, prepared_params, module_cfgs):
    """ResidualBlock forward. x_ncl: (B, Cin, L) -> (B, Cout_last, L)."""
    B, C, L = x_ncl.shape
    x2 = jnp.transpose(x_ncl, (1, 0, 2)).reshape(C, B * L)         # (C, B*L), lane-dense
    cout_last = module_cfgs[-1][1]

    flat_args = [x2]
    for p in prepared_params:
        flat_args.extend(p)

    vm = pl.BlockSpec(memory_space=pltpu.MemorySpace.VMEM)
    out = pl.pallas_call(
        _make_block_kernel(L, module_cfgs),
        out_shape=jax.ShapeDtypeStruct((cout_last, B * L), jnp.float32),
        in_specs=[vm] * len(flat_args),
        out_specs=vm,
    )(*flat_args)
    return jnp.transpose(out.reshape(cout_last, B, L), (1, 0, 2))  # back to (B, Cout, L)


# ------------------------- init + pure-JAX reference ------------------------

def init_module_params(key, cin, cout):
    k1, k2, k3, k4 = jax.random.split(key, 4)
    w1 = 0.2 * jax.random.normal(k1, (cout, cin, 7), jnp.float32)   # Conv1d k=7
    w2 = 0.2 * jax.random.normal(k2, (cout, cout, 5), jnp.float32)  # Conv1d k=5
    w3 = 0.2 * jax.random.normal(k3, (cout, cout, 3), jnp.float32)  # Conv1d k=3
    ws = 0.2 * jax.random.normal(k4, (cout, cin, 1), jnp.float32)   # shortcut Conv1d k=1
    ones = lambda: jnp.ones((cout,), jnp.float32)                   # BN gamma init
    zeros = lambda: jnp.zeros((cout,), jnp.float32)                 # BN beta init
    return (w1, ones(), zeros(), w2, ones(), zeros(), w3, ones(), zeros(),
            ws, ones(), zeros())


def _ref_module(x, p):
    w1, g1, b1, w2, g2, b2, w3, g3, b3, ws, gs, bs = p

    def conv(h, w):
        return jax.lax.conv_general_dilated(
            h, w, window_strides=(1,), padding='SAME',
            dimension_numbers=('NCH', 'OIH', 'NCH'),
            precision=jax.lax.Precision.HIGHEST)

    def bn(h, g, b):
        mean = jnp.mean(h, axis=(0, 2), keepdims=True)
        var = jnp.mean((h - mean) ** 2, axis=(0, 2), keepdims=True)
        return ((h - mean) * jax.lax.rsqrt(var + 1e-5)
                * g.reshape(1, -1, 1) + b.reshape(1, -1, 1))

    act = lambda h: jnp.maximum(0.1 * (jnp.sin(h) ** 2 + h), jnp.sin(h) ** 2 + h)

    h = act(bn(conv(x, w1), g1, b1))
    h = act(bn(conv(h, w2), g2, b2))
    h = bn(conv(h, w3), g3, b3)
    sc = bn(conv(x, ws), gs, bs)
    return act(h + sc)


def _ref_block(x, raw_params):
    for p in raw_params:
        x = _ref_module(x, p)
    return x


if __name__ == "__main__":
    key = jax.random.PRNGKey(0)

    # Block config: ResidualBlock(in_channels=4, out_channels=8, num_modules=2)
    # -> modules (4 -> 8) then (8 -> 16).  batch=2, length=128 (B*L=256 lanes).
    B, L = 2, 128
    in_channels, out_channels, num_modules = 4, 8, 2
    module_cfgs = [(in_channels, out_channels)]
    c_in, c_out = out_channels, out_channels * 2
    for _ in range(num_modules - 1):
        module_cfgs.append((c_in, c_out))
        c_in = c_out

    key, xk = jax.random.split(key)
    x = jax.random.normal(xk, (B, in_channels, L), jnp.float32)

    raw_params, prepared = [], []
    for cin, cout in module_cfgs:
        key, pk = jax.random.split(key)
        p = init_module_params(pk, cin, cout)
        raw_params.append(p)
        prepared.append(prepare_module_params(p))   # lane-dense, pre-stacked, done once

    out = residual_block_pallas(x, prepared, module_cfgs)
    out = jax.block_until_ready(out)

    assert out.shape == (B, module_cfgs[-1][1], L)
    assert bool(jnp.all(jnp.isfinite(out)))

    # pure-JAX reference (same training-mode BN semantics) for correctness
    ref = jax.block_until_ready(_ref_block(x, raw_params))
    max_err = float(jnp.max(jnp.abs(out - ref)))
    assert max_err < 2e-3, f"mismatch vs reference: {max_err}"

    print("KERNEL_OK")
</pallas_src>

<mosaic_0001>
module attributes {stable_mosaic.version = 11 : i64} {
  func.func @kernel(%arg0: memref<4x256xf32, #tpu.memory_space<vmem>>, %arg1: memref<16x28xf32, #tpu.memory_space<vmem>>, %arg2: memref<8x1xf32, #tpu.memory_space<vmem>>, %arg3: memref<8x1xf32, #tpu.memory_space<vmem>>, %arg4: memref<8x1xf32, #tpu.memory_space<vmem>>, %arg5: memref<8x1xf32, #tpu.memory_space<vmem>>, %arg6: memref<8x40xf32, #tpu.memory_space<vmem>>, %arg7: memref<8x1xf32, #tpu.memory_space<vmem>>, %arg8: memref<8x1xf32, #tpu.memory_space<vmem>>, %arg9: memref<8x24xf32, #tpu.memory_space<vmem>>, %arg10: memref<8x1xf32, #tpu.memory_space<vmem>>, %arg11: memref<8x1xf32, #tpu.memory_space<vmem>>, %arg12: memref<32x56xf32, #tpu.memory_space<vmem>>, %arg13: memref<16x1xf32, #tpu.memory_space<vmem>>, %arg14: memref<16x1xf32, #tpu.memory_space<vmem>>, %arg15: memref<16x1xf32, #tpu.memory_space<vmem>>, %arg16: memref<16x1xf32, #tpu.memory_space<vmem>>, %arg17: memref<16x80xf32, #tpu.memory_space<vmem>>, %arg18: memref<16x1xf32, #tpu.memory_space<vmem>>, %arg19: memref<16x1xf32, #tpu.memory_space<vmem>>, %arg20: memref<16x48xf32, #tpu.memory_space<vmem>>, %arg21: memref<16x1xf32, #tpu.memory_space<vmem>>, %arg22: memref<16x1xf32, #tpu.memory_space<vmem>>, %arg23: memref<16x256xf32, #tpu.memory_space<vmem>>) attributes {dimension_semantics = [], scalar_prefetch = 0 : i64, scratch_operands = 0 : i64, tpu.core_type = #tpu.core_type<tc>} {
    %c0 = arith.constant 0 : index
    %c0_0 = arith.constant 0 : index
    %0 = vector.load %arg0[%c0, %c0_0] : memref<4x256xf32, #tpu.memory_space<vmem>>, vector<4x256xf32>
    %1 = tpu.iota {dimensions = array<i32: 1>} : vector<1x256xi32>
    %c128_i32 = arith.constant 128 : i32
    %c0_i32 = arith.constant 0 : i32
    %2 = arith.cmpi eq, %c128_i32, %c0_i32 : i32
    %c1_i32 = arith.constant 1 : i32
    %3 = arith.select %2, %c1_i32, %c128_i32 : i32
    %4 = vector.broadcast %3 : i32 to vector<1x256xi32>
    %5 = arith.remsi %1, %4 : vector<1x256xi32>
    %c0_i32_1 = arith.constant 0 : i32
    %6 = vector.broadcast %c0_i32_1 : i32 to vector<1x256xi32>
    %7 = arith.cmpi ne, %5, %6 : vector<1x256xi32>
    %c0_i32_2 = arith.constant 0 : i32
    %8 = vector.broadcast %c0_i32_2 : i32 to vector<1x256xi32>
    %9 = arith.cmpi slt, %5, %8 : vector<1x256xi32>
    %c0_i32_3 = arith.constant 0 : i32
    %10 = arith.cmpi slt, %3, %c0_i32_3 : i32
    %11 = vector.broadcast %10 : i1 to vector<1x256xi1>
    %12 = vector.broadcast %11 : vector<1x256xi1> to vector<1x256xi1>
    %13 = arith.xori %9, %12 : vector<1x256xi1>
    %14 = arith.andi %13, %7 : vector<1x256xi1>
    %15 = vector.broadcast %3 : i32 to vector<1x256xi32>
    %16 = arith.addi %5, %15 : vector<1x256xi32>
    %17 = arith.select %14, %16, %5 : vector<1x256xi1>, vector<1x256xi32>
    %c-3_i32 = arith.constant -3 : i32
    %18 = vector.broadcast %c-3_i32 : i32 to vector<1x256xi32>
    %19 = arith.addi %17, %18 : vector<1x256xi32>
    %c0_i32_4 = arith.constant 0 : i32
    %20 = vector.broadcast %c0_i32_4 : i32 to vector<1x256xi32>
    %21 = arith.cmpi sge, %19, %20 : vector<1x256xi32>
    %c-3_i32_5 = arith.constant -3 : i32
    %22 = vector.broadcast %c-3_i32_5 : i32 to vector<1x256xi32>
    %23 = arith.addi %17, %22 : vector<1x256xi32>
    %c128_i32_6 = arith.constant 128 : i32
    %24 = vector.broadcast %c128_i32_6 : i32 to vector<1x256xi32>
    %25 = arith.cmpi slt, %23, %24 : vector<1x256xi32>
    %26 = arith.andi %21, %25 : vector<1x256xi1>
    %c-2_i32 = arith.constant -2 : i32
    %27 = vector.broadcast %c-2_i32 : i32 to vector<1x256xi32>
    %28 = arith.addi %17, %27 : vector<1x256xi32>
    %c0_i32_7 = arith.constant 0 : i32
    %29 = vector.broadcast %c0_i32_7 : i32 to vector<1x256xi32>
    %30 = arith.cmpi sge, %28, %29 : vector<1x256xi32>
    %c-2_i32_8 = arith.constant -2 : i32
    %31 = vector.broadcast %c-2_i32_8 : i32 to vector<1x256xi32>
    %32 = arith.addi %17, %31 : vector<1x256xi32>
    %c128_i32_9 = arith.constant 128 : i32
    %33 = vector.broadcast %c128_i32_9 : i32 to vector<1x256xi32>
    %34 = arith.cmpi slt, %32, %33 : vector<1x256xi32>
    %35 = arith.andi %30, %34 : vector<1x256xi1>
    %c-1_i32 = arith.constant -1 : i32
    %36 = vector.broadcast %c-1_i32 : i32 to vector<1x256xi32>
    %37 = arith.addi %17, %36 : vector<1x256xi32>
    %c0_i32_10 = arith.constant 0 : i32
    %38 = vector.broadcast %c0_i32_10 : i32 to vector<1x256xi32>
    %39 = arith.cmpi sge, %37, %38 : vector<1x256xi32>
    %c-1_i32_11 = arith.constant -1 : i32
    %40 = vector.broadcast %c-1_i32_11 : i32 to vector<1x256xi32>
    %41 = arith.addi %17, %40 : vector<1x256xi32>
    %c128_i32_12 = arith.constant 128 : i32
    %42 = vector.broadcast %c128_i32_12 : i32 to vector<1x256xi32>
    %43 = arith.cmpi slt, %41, %42 : vector<1x256xi32>
    %44 = arith.andi %39, %43 : vector<1x256xi1>
    %c1_i32_13 = arith.constant 1 : i32
    %45 = vector.broadcast %c1_i32_13 : i32 to vector<1x256xi32>
    %46 = arith.addi %17, %45 : vector<1x256xi32>
    %c0_i32_14 = arith.constant 0 : i32
    %47 = vector.broadcast %c0_i32_14 : i32 to vector<1x256xi32>
    %48 = arith.cmpi sge, %46, %47 : vector<1x256xi32>
    %c1_i32_15 = arith.constant 1 : i32
    %49 = vector.broadcast %c1_i32_15 : i32 to vector<1x256xi32>
    %50 = arith.addi %17, %49 : vector<1x256xi32>
    %c128_i32_16 = arith.constant 128 : i32
    %51 = vector.broadcast %c128_i32_16 : i32 to vector<1x256xi32>
    %52 = arith.cmpi slt, %50, %51 : vector<1x256xi32>
    %53 = arith.andi %48, %52 : vector<1x256xi1>
    %c2_i32 = arith.constant 2 : i32
    %54 = vector.broadcast %c2_i32 : i32 to vector<1x256xi32>
    %55 = arith.addi %17, %54 : vector<1x256xi32>
    %c0_i32_17 = arith.constant 0 : i32
    %56 = vector.broadcast %c0_i32_17 : i32 to vector<1x256xi32>
    %57 = arith.cmpi sge, %55, %56 : vector<1x256xi32>
    %c2_i32_18 = arith.constant 2 : i32
    %58 = vector.broadcast %c2_i32_18 : i32 to vector<1x256xi32>
    %59 = arith.addi %17, %58 : vector<1x256xi32>
    %c128_i32_19 = arith.constant 128 : i32
    %60 = vector.broadcast %c128_i32_19 : i32 to vector<1x256xi32>
    %61 = arith.cmpi slt, %59, %60 : vector<1x256xi32>
    %62 = arith.andi %57, %61 : vector<1x256xi1>
    %c3_i32 = arith.constant 3 : i32
    %63 = vector.broadcast %c3_i32 : i32 to vector<1x256xi32>
    %64 = arith.addi %17, %63 : vector<1x256xi32>
    %c0_i32_20 = arith.constant 0 : i32
    %65 = vector.broadcast %c0_i32_20 : i32 to vector<1x256xi32>
    %66 = arith.cmpi sge, %64, %65 : vector<1x256xi32>
    %c3_i32_21 = arith.constant 3 : i32
    %67 = vector.broadcast %c3_i32_21 : i32 to vector<1x256xi32>
    %68 = arith.addi %17, %67 : vector<1x256xi32>
    %c128_i32_22 = arith.constant 128 : i32
    %69 = vector.broadcast %c128_i32_22 : i32 to vector<1x256xi32>
    %70 = arith.cmpi slt, %68, %69 : vector<1x256xi32>
    %71 = arith.andi %66, %70 : vector<1x256xi1>
    %c3_i32_23 = arith.constant 3 : i32
    %72 = tpu.dynamic_rotate %0 by %c3_i32_23 dim 1 : vector<4x256xf32>, i32 -> vector<4x256xf32>
    %cst = arith.constant 0.000000e+00 : f32
    %73 = vector.shape_cast %26 : vector<1x256xi1> to vector<1x256xi1>
    %74 = vector.broadcast %73 : vector<1x256xi1> to vector<4x256xi1>
    %75 = vector.broadcast %cst : f32 to vector<4x256xf32>
    %76 = arith.select %74, %72, %75 : vector<4x256xi1>, vector<4x256xf32>
    %c2_i32_24 = arith.constant 2 : i32
    %77 = tpu.dynamic_rotate %0 by %c2_i32_24 dim 1 : vector<4x256xf32>, i32 -> vector<4x256xf32>
    %cst_25 = arith.constant 0.000000e+00 : f32
    %78 = vector.shape_cast %35 : vector<1x256xi1> to vector<1x256xi1>
    %79 = vector.broadcast %78 : vector<1x256xi1> to vector<4x256xi1>
    %80 = vector.broadcast %cst_25 : f32 to vector<4x256xf32>
    %81 = arith.select %79, %77, %80 : vector<4x256xi1>, vector<4x256xf32>
    %c1_i32_26 = arith.constant 1 : i32
    %82 = tpu.dynamic_rotate %0 by %c1_i32_26 dim 1 : vector<4x256xf32>, i32 -> vector<4x256xf32>
    %cst_27 = arith.constant 0.000000e+00 : f32
    %83 = vector.shape_cast %44 : vector<1x256xi1> to vector<1x256xi1>
    %84 = vector.broadcast %83 : vector<1x256xi1> to vector<4x256xi1>
    %85 = vector.broadcast %cst_27 : f32 to vector<4x256xf32>
    %86 = arith.select %84, %82, %85 : vector<4x256xi1>, vector<4x256xf32>
    %c255_i32 = arith.constant 255 : i32
    %87 = tpu.dynamic_rotate %0 by %c255_i32 dim 1 : vector<4x256xf32>, i32 -> vector<4x256xf32>
    %cst_28 = arith.constant 0.000000e+00 : f32
    %88 = vector.shape_cast %53 : vector<1x256xi1> to vector<1x256xi1>
    %89 = vector.broadcast %88 : vector<1x256xi1> to vector<4x256xi1>
    %90 = vector.broadcast %cst_28 : f32 to vector<4x256xf32>
    %91 = arith.select %89, %87, %90 : vector<4x256xi1>, vector<4x256xf32>
    %c254_i32 = arith.constant 254 : i32
    %92 = tpu.dynamic_rotate %0 by %c254_i32 dim 1 : vector<4x256xf32>, i32 -> vector<4x256xf32>
    %cst_29 = arith.constant 0.000000e+00 : f32
    %93 = vector.shape_cast %62 : vector<1x256xi1> to vector<1x256xi1>
    %94 = vector.broadcast %93 : vector<1x256xi1> to vector<4x256xi1>
    %95 = vector.broadcast %cst_29 : f32 to vector<4x256xf32>
    %96 = arith.select %94, %92, %95 : vector<4x256xi1>, vector<4x256xf32>
    %c253_i32 = arith.constant 253 : i32
    %97 = tpu.dynamic_rotate %0 by %c253_i32 dim 1 : vector<4x256xf32>, i32 -> vector<4x256xf32>
    %cst_30 = arith.constant 0.000000e+00 : f32
    %98 = vector.shape_cast %71 : vector<1x256xi1> to vector<1x256xi1>
    %99 = vector.broadcast %98 : vector<1x256xi1> to vector<4x256xi1>
    %100 = vector.broadcast %cst_30 : f32 to vector<4x256xf32>
    %101 = arith.select %99, %97, %100 : vector<4x256xi1>, vector<4x256xf32>
    %102 = tpu.concatenate %76, %81, %86, %0, %91, %96, %101 in 0 : vector<4x256xf32>, vector<4x256xf32>, vector<4x256xf32>, vector<4x256xf32>, vector<4x256xf32>, vector<4x256xf32>, vector<4x256xf32> -> vector<28x256xf32>
    %c0_31 = arith.constant 0 : index
    %c0_32 = arith.constant 0 : index
    %103 = vector.load %arg1[%c0_31, %c0_32] : memref<16x28xf32, #tpu.memory_space<vmem>>, vector<16x28xf32>
    %cst_33 = arith.constant dense<0.000000e+00> : vector<16x256xf32>
    %104 = tpu.matmul %103, %102, %cst_33 {dimension_numbers = #tpu.dot_dimension_numbers<[1], [0], [0], [1], [0, 0, 1, 1], [], []>} : vector<16x28xf32>, vector<28x256xf32>, vector<16x256xf32> -> vector<16x256xf32>
    %105 = vector.extract_strided_slice %104 {offsets = [0, 0], sizes = [8, 256], strides = [1, 1]} : vector<16x256xf32> to vector<8x256xf32>
    %c0_34 = arith.constant 0 : index
    %c0_35 = arith.constant 0 : index
    %106 = vector.load %arg2[%c0_34, %c0_35] : memref<8x1xf32, #tpu.memory_space<vmem>>, vector<8x1xf32>
    %c0_36 = arith.constant 0 : index
    %c0_37 = arith.constant 0 : index
    %107 = vector.load %arg3[%c0_36, %c0_37] : memref<8x1xf32, #tpu.memory_space<vmem>>, vector<8x1xf32>
    %cst_38 = arith.constant dense<0.000000e+00> : vector<8xf32>
    %108 = vector.multi_reduction <add>, %105, %cst_38 [1] : vector<8x256xf32> to vector<8xf32>
    %109 = vector.shape_cast %108 : vector<8xf32> to vector<8x1xf32>
    %cst_39 = arith.constant 3.906250e-03 : f32
    %110 = vector.broadcast %cst_39 : f32 to vector<8x1xf32>
    %111 = arith.mulf %109, %110 : vector<8x1xf32>
    %112 = arith.mulf %105, %105 : vector<8x256xf32>
    %cst_40 = arith.constant dense<0.000000e+00> : vector<8xf32>
    %113 = vector.multi_reduction <add>, %112, %cst_40 [1] : vector<8x256xf32> to vector<8xf32>
    %114 = vector.shape_cast %113 : vector<8xf32> to vector<8x1xf32>
    %cst_41 = arith.constant 3.906250e-03 : f32
    %115 = vector.broadcast %cst_41 : f32 to vector<8x1xf32>
    %116 = arith.mulf %114, %115 : vector<8x1xf32>
    %117 = arith.mulf %111, %111 : vector<8x1xf32>
    %118 = arith.subf %116, %117 : vector<8x1xf32>
    %cst_42 = arith.constant 0.000000e+00 : f32
    %119 = vector.broadcast %cst_42 : f32 to vector<8x1xf32>
    %120 = arith.maximumf %118, %119 : vector<8x1xf32>
    %121 = vector.broadcast %111 : vector<8x1xf32> to vector<8x256xf32>
    %122 = arith.subf %105, %121 : vector<8x256xf32>
    %cst_43 = arith.constant 9.99999974E-6 : f32
    %123 = vector.broadcast %cst_43 : f32 to vector<8x1xf32>
    %124 = arith.addf %120, %123 : vector<8x1xf32>
    %125 = math.rsqrt %124 : vector<8x1xf32>
    %126 = vector.broadcast %125 : vector<8x1xf32> to vector<8x256xf32>
    %127 = arith.mulf %122, %126 : vector<8x256xf32>
    %128 = vector.broadcast %106 : vector<8x1xf32> to vector<8x256xf32>
    %129 = arith.mulf %127, %128 : vector<8x256xf32>
    %130 = vector.broadcast %107 : vector<8x1xf32> to vector<8x256xf32>
    %131 = arith.addf %129, %130 : vector<8x256xf32>
    %132 = math.sin %131 : vector<8x256xf32>
    %133 = arith.mulf %132, %132 : vector<8x256xf32>
    %134 = arith.addf %133, %131 : vector<8x256xf32>
    %cst_44 = arith.constant 1.000000e-01 : f32
    %135 = vector.broadcast %cst_44 : f32 to vector<8x256xf32>
    %136 = arith.mulf %135, %134 : vector<8x256xf32>
    %137 = arith.maximumf %136, %134 : vector<8x256xf32>
    %138 = vector.extract_strided_slice %104 {offsets = [8, 0], sizes = [8, 256], strides = [1, 1]} : vector<16x256xf32> to vector<8x256xf32>
    %c0_45 = arith.constant 0 : index
    %c0_46 = arith.constant 0 : index
    %139 = vector.load %arg4[%c0_45, %c0_46] : memref<8x1xf32, #tpu.memory_space<vmem>>, vector<8x1xf32>
    %c0_47 = arith.constant 0 : index
    %c0_48 = arith.constant 0 : index
    %140 = vector.load %arg5[%c0_47, %c0_48] : memref<8x1xf32, #tpu.memory_space<vmem>>, vector<8x1xf32>
    %cst_49 = arith.constant dense<0.000000e+00> : vector<8xf32>
    %141 = vector.multi_reduction <add>, %138, %cst_49 [1] : vector<8x256xf32> to vector<8xf32>
    %142 = vector.shape_cast %141 : vector<8xf32> to vector<8x1xf32>
    %cst_50 = arith.constant 3.906250e-03 : f32
    %143 = vector.broadcast %cst_50 : f32 to vector<8x1xf32>
    %144 = arith.mulf %142, %143 : vector<8x1xf32>
    %145 = arith.mulf %138, %138 : vector<8x256xf32>
    %cst_51 = arith.constant dense<0.000000e+00> : vector<8xf32>
    %146 = vector.multi_reduction <add>, %145, %cst_51 [1] : vector<8x256xf32> to vector<8xf32>
    %147 = vector.shape_cast %146 : vector<8xf32> to vector<8x1xf32>
    %cst_52 = arith.constant 3.906250e-03 : f32
    %148 = vector.broadcast %cst_52 : f32 to vector<8x1xf32>
    %149 = arith.mulf %147, %148 : vector<8x1xf32>
    %150 = arith.mulf %144, %144 : vector<8x1xf32>
    %151 = arith.subf %149, %150 : vector<8x1xf32>
    %cst_53 = arith.constant 0.000000e+00 : f32
    %152 = vector.broadcast %cst_53 : f32 to vector<8x1xf32>
    %153 = arith.maximumf %151, %152 : vector<8x1xf32>
    %154 = vector.broadcast %144 : vector<8x1xf32> to vector<8x256xf32>
    %155 = arith.subf %138, %154 : vector<8x256xf32>
    %cst_54 = arith.constant 9.99999974E-6 : f32
    %156 = vector.broadcast %cst_54 : f32 to vector<8x1xf32>
    %157 = arith.addf %153, %156 : vector<8x1xf32>
    %158 = math.rsqrt %157 : vector<8x1xf32>
    %159 = vector.broadcast %158 : vector<8x1xf32> to vector<8x256xf32>
    %160 = arith.mulf %155, %159 : vector<8x256xf32>
    %161 = vector.broadcast %139 : vector<8x1xf32> to vector<8x256xf32>
    %162 = arith.mulf %160, %161 : vector<8x256xf32>
    %163 = vector.broadcast %140 : vector<8x1xf32> to vector<8x256xf32>
    %164 = arith.addf %162, %163 : vector<8x256xf32>
    %c2_i32_55 = arith.constant 2 : i32
    %165 = tpu.dynamic_rotate %137 by %c2_i32_55 dim 1 : vector<8x256xf32>, i32 -> vector<8x256xf32>
    %cst_56 = arith.constant 0.000000e+00 : f32
    %166 = vector.shape_cast %35 : vector<1x256xi1> to vector<1x256xi1>
    %167 = vector.broadcast %166 : vector<1x256xi1> to vector<8x256xi1>
    %168 = vector.broadcast %cst_56 : f32 to vector<8x256xf32>
    %169 = arith.select %167, %165, %168 : vector<8x256xi1>, vector<8x256xf32>
    %c1_i32_57 = arith.constant 1 : i32
    %170 = tpu.dynamic_rotate %137 by %c1_i32_57 dim 1 : vector<8x256xf32>, i32 -> vector<8x256xf32>
    %cst_58 = arith.constant 0.000000e+00 : f32
    %171 = vector.shape_cast %44 : vector<1x256xi1> to vector<1x256xi1>
    %172 = vector.broadcast %171 : vector<1x256xi1> to vector<8x256xi1>
    %173 = vector.broadcast %cst_58 : f32 to vector<8x256xf32>
    %174 = arith.select %172, %170, %173 : vector<8x256xi1>, vector<8x256xf32>
    %c255_i32_59 = arith.constant 255 : i32
    %175 = tpu.dynamic_rotate %137 by %c255_i32_59 dim 1 : vector<8x256xf32>, i32 -> vector<8x256xf32>
    %cst_60 = arith.constant 0.000000e+00 : f32
    %176 = vector.shape_cast %53 : vector<1x256xi1> to vector<1x256xi1>
    %177 = vector.broadcast %176 : vector<1x256xi1> to vector<8x256xi1>
    %178 = vector.broadcast %cst_60 : f32 to vector<8x256xf32>
    %179 = arith.select %177, %175, %178 : vector<8x256xi1>, vector<8x256xf32>
    %c254_i32_61 = arith.constant 254 : i32
    %180 = tpu.dynamic_rotate %137 by %c254_i32_61 dim 1 : vector<8x256xf32>, i32 -> vector<8x256xf32>
    %cst_62 = arith.constant 0.000000e+00 : f32
    %181 = vector.shape_cast %62 : vector<1x256xi1> to vector<1x256xi1>
    %182 = vector.broadcast %181 : vector<1x256xi1> to vector<8x256xi1>
    %183 = vector.broadcast %cst_62 : f32 to vector<8x256xf32>
    %184 = arith.select %182, %180, %183 : vector<8x256xi1>, vector<8x256xf32>
    %185 = tpu.concatenate %169, %174, %137, %179, %184 in 0 : vector<8x256xf32>, vector<8x256xf32>, vector<8x256xf32>, vector<8x256xf32>, vector<8x256xf32> -> vector<40x256xf32>
    %c0_63 = arith.constant 0 : index
    %c0_64 = arith.constant 0 : index
    %186 = vector.load %arg6[%c0_63, %c0_64] : memref<8x40xf32, #tpu.memory_space<vmem>>, vector<8x40xf32>
    %cst_65 = arith.constant dense<0.000000e+00> : vector<8x256xf32>
    %187 = tpu.matmul %186, %185, %cst_65 {dimension_numbers = #tpu.dot_dimension_numbers<[1], [0], [0], [1], [0, 0, 1, 1], [], []>} : vector<8x40xf32>, vector<40x256xf32>, vector<8x256xf32> -> vector<8x256xf32>
    %c0_66 = arith.constant 0 : index
    %c0_67 = arith.constant 0 : index
    %188 = vector.load %arg7[%c0_66, %c0_67] : memref<8x1xf32, #tpu.memory_space<vmem>>, vector<8x1xf32>
    %c0_68 = arith.constant 0 : index
    %c0_69 = arith.constant 0 : index
    %189 = vector.load %arg8[%c0_68, %c0_69] : memref<8x1xf32, #tpu.memory_space<vmem>>, vector<8x1xf32>
    %cst_70 = arith.constant dense<0.000000e+00> : vector<8xf32>
    %190 = vector.multi_reduction <add>, %187, %cst_70 [1] : vector<8x256xf32> to vector<8xf32>
    %191 = vector.shape_cast %190 : vector<8xf32> to vector<8x1xf32>
    %cst_71 = arith.constant 3.906250e-03 : f32
    %192 = vector.broadcast %cst_71 : f32 to vector<8x1xf32>
    %193 = arith.mulf %191, %192 : vector<8x1xf32>
    %194 = arith.mulf %187, %187 : vector<8x256xf32>
    %cst_72 = arith.constant dense<0.000000e+00> : vector<8xf32>
    %195 = vector.multi_reduction <add>, %194, %cst_72 [1] : vector<8x256xf32> to vector<8xf32>
    %196 = vector.shape_cast %195 : vector<8xf32> to vector<8x1xf32>
    %cst_73 = arith.constant 3.906250e-03 : f32
    %197 = vector.broadcast %cst_73 : f32 to vector<8x1xf32>
    %198 = arith.mulf %196, %197 : vector<8x1xf32>
    %199 = arith.mulf %193, %193 : vector<8x1xf32>
    %200 = arith.subf %198, %199 : vector<8x1xf32>
    %cst_74 = arith.constant 0.000000e+00 : f32
    %201 = vector.broadcast %cst_74 : f32 to vector<8x1xf32>
    %202 = arith.maximumf %200, %201 : vector<8x1xf32>
    %203 = vector.broadcast %193 : vector<8x1xf32> to vector<8x256xf32>
    %204 = arith.subf %187, %203 : vector<8x256xf32>
    %cst_75 = arith.constant 9.99999974E-6 : f32
    %205 = vector.broadcast %cst_75 : f32 to vector<8x1xf32>
    %206 = arith.addf %202, %205 : vector<8x1xf32>
    %207 = math.rsqrt %206 : vector<8x1xf32>
    %208 = vector.broadcast %207 : vector<8x1xf32> to vector<8x256xf32>
    %209 = arith.mulf %204, %208 : vector<8x256xf32>
    %210 = vector.broadcast %188 : vector<8x1xf32> to vector<8x256xf32>
    %211 = arith.mulf %209, %210 : vector<8x256xf32>
    %212 = vector.broadcast %189 : vector<8x1xf32> to vector<8x256xf32>
    %213 = arith.addf %211, %212 : vector<8x256xf32>
    %214 = math.sin %213 : vector<8x256xf32>
    %215 = arith.mulf %214, %214 : vector<8x256xf32>
    %216 = arith.addf %215, %213 : vector<8x256xf32>
    %cst_76 = arith.constant 1.000000e-01 : f32
    %217 = vector.broadcast %cst_76 : f32 to vector<8x256xf32>
    %218 = arith.mulf %217, %216 : vector<8x256xf32>
    %219 = arith.maximumf %218, %216 : vector<8x256xf32>
    %c1_i32_77 = arith.constant 1 : i32
    %220 = tpu.dynamic_rotate %219 by %c1_i32_77 dim 1 : vector<8x256xf32>, i32 -> vector<8x256xf32>
    %cst_78 = arith.constant 0.000000e+00 : f32
    %221 = vector.shape_cast %44 : vector<1x256xi1> to vector<1x256xi1>
    %222 = vector.broadcast %221 : vector<1x256xi1> to vector<8x256xi1>
    %223 = vector.broadcast %cst_78 : f32 to vector<8x256xf32>
    %224 = arith.select %222, %220, %223 : vector<8x256xi1>, vector<8x256xf32>
    %c255_i32_79 = arith.constant 255 : i32
    %225 = tpu.dynamic_rotate %219 by %c255_i32_79 dim 1 : vector<8x256xf32>, i32 -> vector<8x256xf32>
    %cst_80 = arith.constant 0.000000e+00 : f32
    %226 = vector.shape_cast %53 : vector<1x256xi1> to vector<1x256xi1>
    %227 = vector.broadcast %226 : vector<1x256xi1> to vector<8x256xi1>
    %228 = vector.broadcast %cst_80 : f32 to vector<8x256xf32>
    %229 = arith.select %227, %225, %228 : vector<8x256xi1>, vector<8x256xf32>
    %230 = tpu.concatenate %224, %219, %229 in 0 : vector<8x256xf32>, vector<8x256xf32>, vector<8x256xf32> -> vector<24x256xf32>
    %c0_81 = arith.constant 0 : index
    %c0_82 = arith.constant 0 : index
    %231 = vector.load %arg9[%c0_81, %c0_82] : memref<8x24xf32, #tpu.memory_space<vmem>>, vector<8x24xf32>
    %cst_83 = arith.constant dense<0.000000e+00> : vector<8x256xf32>
    %232 = tpu.matmul %231, %230, %cst_83 {dimension_numbers = #tpu.dot_dimension_numbers<[1], [0], [0], [1], [0, 0, 1, 1], [], []>} : vector<8x24xf32>, vector<24x256xf32>, vector<8x256xf32> -> vector<8x256xf32>
    %c0_84 = arith.constant 0 : index
    %c0_85 = arith.constant 0 : index
    %233 = vector.load %arg10[%c0_84, %c0_85] : memref<8x1xf32, #tpu.memory_space<vmem>>, vector<8x1xf32>
    %c0_86 = arith.constant 0 : index
    %c0_87 = arith.constant 0 : index
    %234 = vector.load %arg11[%c0_86, %c0_87] : memref<8x1xf32, #tpu.memory_space<vmem>>, vector<8x1xf32>
    %cst_88 = arith.constant dense<0.000000e+00> : vector<8xf32>
    %235 = vector.multi_reduction <add>, %232, %cst_88 [1] : vector<8x256xf32> to vector<8xf32>
    %236 = vector.shape_cast %235 : vector<8xf32> to vector<8x1xf32>
    %cst_89 = arith.constant 3.906250e-03 : f32
    %237 = vector.broadcast %cst_89 : f32 to vector<8x1xf32>
    %238 = arith.mulf %236, %237 : vector<8x1xf32>
    %239 = arith.mulf %232, %232 : vector<8x256xf32>
    %cst_90 = arith.constant dense<0.000000e+00> : vector<8xf32>
    %240 = vector.multi_reduction <add>, %239, %cst_90 [1] : vector<8x256xf32> to vector<8xf32>
    %241 = vector.shape_cast %240 : vector<8xf32> to vector<8x1xf32>
    %cst_91 = arith.constant 3.906250e-03 : f32
    %242 = vector.broadcast %cst_91 : f32 to vector<8x1xf32>
    %243 = arith.mulf %241, %242 : vector<8x1xf32>
    %244 = arith.mulf %238, %238 : vector<8x1xf32>
    %245 = arith.subf %243, %244 : vector<8x1xf32>
    %cst_92 = arith.constant 0.000000e+00 : f32
    %246 = vector.broadcast %cst_92 : f32 to vector<8x1xf32>
    %247 = arith.maximumf %245, %246 : vector<8x1xf32>
    %248 = vector.broadcast %238 : vector<8x1xf32> to vector<8x256xf32>
    %249 = arith.subf %232, %248 : vector<8x256xf32>
    %cst_93 = arith.constant 9.99999974E-6 : f32
    %250 = vector.broadcast %cst_93 : f32 to vector<8x1xf32>
    %251 = arith.addf %247, %250 : vector<8x1xf32>
    %252 = math.rsqrt %251 : vector<8x1xf32>
    %253 = vector.broadcast %252 : vector<8x1xf32> to vector<8x256xf32>
    %254 = arith.mulf %249, %253 : vector<8x256xf32>
    %255 = vector.broadcast %233 : vector<8x1xf32> to vector<8x256xf32>
    %256 = arith.mulf %254, %255 : vector<8x256xf32>
    %257 = vector.broadcast %234 : vector<8x1xf32> to vector<8x256xf32>
    %258 = arith.addf %256, %257 : vector<8x256xf32>
    %259 = arith.addf %258, %164 : vector<8x256xf32>
    %260 = math.sin %259 : vector<8x256xf32>
    %261 = arith.mulf %260, %260 : vector<8x256xf32>
    %262 = arith.addf %261, %259 : vector<8x256xf32>
    %cst_94 = arith.constant 1.000000e-01 : f32
    %263 = vector.broadcast %cst_94 : f32 to vector<8x256xf32>
    %264 = arith.mulf %263, %262 : vector<8x256xf32>
    %265 = arith.maximumf %264, %262 : vector<8x256xf32>
    %c3_i32_95 = arith.constant 3 : i32
    %266 = tpu.dynamic_rotate %265 by %c3_i32_95 dim 1 : vector<8x256xf32>, i32 -> vector<8x256xf32>
    %cst_96 = arith.constant 0.000000e+00 : f32
    %267 = vector.shape_cast %26 : vector<1x256xi1> to vector<1x256xi1>
    %268 = vector.broadcast %267 : vector<1x256xi1> to vector<8x256xi1>
    %269 = vector.broadcast %cst_96 : f32 to vector<8x256xf32>
    %270 = arith.select %268, %266, %269 : vector<8x256xi1>, vector<8x256xf32>
    %c2_i32_97 = arith.constant 2 : i32
    %271 = tpu.dynamic_rotate %265 by %c2_i32_97 dim 1 : vector<8x256xf32>, i32 -> vector<8x256xf32>
    %cst_98 = arith.constant 0.000000e+00 : f32
    %272 = vector.shape_cast %35 : vector<1x256xi1> to vector<1x256xi1>
    %273 = vector.broadcast %272 : vector<1x256xi1> to vector<8x256xi1>
    %274 = vector.broadcast %cst_98 : f32 to vector<8x256xf32>
    %275 = arith.select %273, %271, %274 : vector<8x256xi1>, vector<8x256xf32>
    %c1_i32_99 = arith.constant 1 : i32
    %276 = tpu.dynamic_rotate %265 by %c1_i32_99 dim 1 : vector<8x256xf32>, i32 -> vector<8x256xf32>
    %cst_100 = arith.constant 0.000000e+00 : f32
    %277 = vector.shape_cast %44 : vector<1x256xi1> to vector<1x256xi1>
    %278 = vector.broadcast %277 : vector<1x256xi1> to vector<8x256xi1>
    %279 = vector.broadcast %cst_100 : f32 to vector<8x256xf32>
    %280 = arith.select %278, %276, %279 : vector<8x256xi1>, vector<8x256xf32>
    %c255_i32_101 = arith.constant 255 : i32
    %281 = tpu.dynamic_rotate %265 by %c255_i32_101 dim 1 : vector<8x256xf32>, i32 -> vector<8x256xf32>
    %cst_102 = arith.constant 0.000000e+00 : f32
    %282 = vector.shape_cast %53 : vector<1x256xi1> to vector<1x256xi1>
    %283 = vector.broadcast %282 : vector<1x256xi1> to vector<8x256xi1>
    %284 = vector.broadcast %cst_102 : f32 to vector<8x256xf32>
    %285 = arith.select %283, %281, %284 : vector<8x256xi1>, vector<8x256xf32>
    %c254_i32_103 = arith.constant 254 : i32
    %286 = tpu.dynamic_rotate %265 by %c254_i32_103 dim 1 : vector<8x256xf32>, i32 -> vector<8x256xf32>
    %cst_104 = arith.constant 0.000000e+00 : f32
    %287 = vector.shape_cast %62 : vector<1x256xi1> to vector<1x256xi1>
    %288 = vector.broadcast %287 : vector<1x256xi1> to vector<8x256xi1>
    %289 = vector.broadcast %cst_104 : f32 to vector<8x256xf32>
    %290 = arith.select %288, %286, %289 : vector<8x256xi1>, vector<8x256xf32>
    %c253_i32_105 = arith.constant 253 : i32
    %291 = tpu.dynamic_rotate %265 by %c253_i32_105 dim 1 : vector<8x256xf32>, i32 -> vector<8x256xf32>
    %cst_106 = arith.constant 0.000000e+00 : f32
    %292 = vector.shape_cast %71 : vector<1x256xi1> to vector<1x256xi1>
    %293 = vector.broadcast %292 : vector<1x256xi1> to vector<8x256xi1>
    %294 = vector.broadcast %cst_106 : f32 to vector<8x256xf32>
    %295 = arith.select %293, %291, %294 : vector<8x256xi1>, vector<8x256xf32>
    %296 = tpu.concatenate %270, %275, %280, %265, %285, %290, %295 in 0 : vector<8x256xf32>, vector<8x256xf32>, vector<8x256xf32>, vector<8x256xf32>, vector<8x256xf32>, vector<8x256xf32>, vector<8x256xf32> -> vector<56x256xf32>
    %c0_107 = arith.constant 0 : index
    %c0_108 = arith.constant 0 : index
    %297 = vector.load %arg12[%c0_107, %c0_108] : memref<32x56xf32, #tpu.memory_space<vmem>>, vector<32x56xf32>
    %cst_109 = arith.constant dense<0.000000e+00> : vector<32x256xf32>
    %298 = tpu.matmul %297, %296, %cst_109 {dimension_numbers = #tpu.dot_dimension_numbers<[1], [0], [0], [1], [0, 0, 1, 1], [], []>} : vector<32x56xf32>, vector<56x256xf32>, vector<32x256xf32> -> vector<32x256xf32>
    %299 = vector.extract_strided_slice %298 {offsets = [0, 0], sizes = [16, 256], strides = [1, 1]} : vector<32x256xf32> to vector<16x256xf32>
    %c0_110 = arith.constant 0 : index
    %c0_111 = arith.constant 0 : index
    %300 = vector.load %arg13[%c0_110, %c0_111] : memref<16x1xf32, #tpu.memory_space<vmem>>, vector<16x1xf32>
    %c0_112 = arith.constant 0 : index
    %c0_113 = arith.constant 0 : index
    %301 = vector.load %arg14[%c0_112, %c0_113] : memref<16x1xf32, #tpu.memory_space<vmem>>, vector<16x1xf32>
    %cst_114 = arith.constant dense<0.000000e+00> : vector<16xf32>
    %302 = vector.multi_reduction <add>, %299, %cst_114 [1] : vector<16x256xf32> to vector<16xf32>
    %303 = vector.shape_cast %302 : vector<16xf32> to vector<16x1xf32>
    %cst_115 = arith.constant 3.906250e-03 : f32
    %304 = vector.broadcast %cst_115 : f32 to vector<16x1xf32>
    %305 = arith.mulf %303, %304 : vector<16x1xf32>
    %306 = arith.mulf %299, %299 : vector<16x256xf32>
    %cst_116 = arith.constant dense<0.000000e+00> : vector<16xf32>
    %307 = vector.multi_reduction <add>, %306, %cst_116 [1] : vector<16x256xf32> to vector<16xf32>
    %308 = vector.shape_cast %307 : vector<16xf32> to vector<16x1xf32>
    %cst_117 = arith.constant 3.906250e-03 : f32
    %309 = vector.broadcast %cst_117 : f32 to vector<16x1xf32>
    %310 = arith.mulf %308, %309 : vector<16x1xf32>
    %311 = arith.mulf %305, %305 : vector<16x1xf32>
    %312 = arith.subf %310, %311 : vector<16x1xf32>
    %cst_118 = arith.constant 0.000000e+00 : f32
    %313 = vector.broadcast %cst_118 : f32 to vector<16x1xf32>
    %314 = arith.maximumf %312, %313 : vector<16x1xf32>
    %315 = vector.broadcast %305 : vector<16x1xf32> to vector<16x256xf32>
    %316 = arith.subf %299, %315 : vector<16x256xf32>
    %cst_119 = arith.constant 9.99999974E-6 : f32
    %317 = vector.broadcast %cst_119 : f32 to vector<16x1xf32>
    %318 = arith.addf %314, %317 : vector<16x1xf32>
    %319 = math.rsqrt %318 : vector<16x1xf32>
    %320 = vector.broadcast %319 : vector<16x1xf32> to vector<16x256xf32>
    %321 = arith.mulf %316, %320 : vector<16x256xf32>
    %322 = vector.broadcast %300 : vector<16x1xf32> to vector<16x256xf32>
    %323 = arith.mulf %321, %322 : vector<16x256xf32>
    %324 = vector.broadcast %301 : vector<16x1xf32> to vector<16x256xf32>
    %325 = arith.addf %323, %324 : vector<16x256xf32>
    %326 = math.sin %325 : vector<16x256xf32>
    %327 = arith.mulf %326, %326 : vector<16x256xf32>
    %328 = arith.addf %327, %325 : vector<16x256xf32>
    %cst_120 = arith.constant 1.000000e-01 : f32
    %329 = vector.broadcast %cst_120 : f32 to vector<16x256xf32>
    %330 = arith.mulf %329, %328 : vector<16x256xf32>
    %331 = arith.maximumf %330, %328 : vector<16x256xf32>
    %332 = vector.extract_strided_slice %298 {offsets = [16, 0], sizes = [16, 256], strides = [1, 1]} : vector<32x256xf32> to vector<16x256xf32>
    %c0_121 = arith.constant 0 : index
    %c0_122 = arith.constant 0 : index
    %333 = vector.load %arg15[%c0_121, %c0_122] : memref<16x1xf32, #tpu.memory_space<vmem>>, vector<16x1xf32>
    %c0_123 = arith.constant 0 : index
    %c0_124 = arith.constant 0 : index
    %334 = vector.load %arg16[%c0_123, %c0_124] : memref<16x1xf32, #tpu.memory_space<vmem>>, vector<16x1xf32>
    %cst_125 = arith.constant dense<0.000000e+00> : vector<16xf32>
    %335 = vector.multi_reduction <add>, %332, %cst_125 [1] : vector<16x256xf32> to vector<16xf32>
    %336 = vector.shape_cast %335 : vector<16xf32> to vector<16x1xf32>
    %cst_126 = arith.constant 3.906250e-03 : f32
    %337 = vector.broadcast %cst_126 : f32 to vector<16x1xf32>
    %338 = arith.mulf %336, %337 : vector<16x1xf32>
    %339 = arith.mulf %332, %332 : vector<16x256xf32>
    %cst_127 = arith.constant dense<0.000000e+00> : vector<16xf32>
    %340 = vector.multi_reduction <add>, %339, %cst_127 [1] : vector<16x256xf32> to vector<16xf32>
    %341 = vector.shape_cast %340 : vector<16xf32> to vector<16x1xf32>
    %cst_128 = arith.constant 3.906250e-03 : f32
    %342 = vector.broadcast %cst_128 : f32 to vector<16x1xf32>
    %343 = arith.mulf %341, %342 : vector<16x1xf32>
    %344 = arith.mulf %338, %338 : vector<16x1xf32>
    %345 = arith.subf %343, %344 : vector<16x1xf32>
    %cst_129 = arith.constant 0.000000e+00 : f32
    %346 = vector.broadcast %cst_129 : f32 to vector<16x1xf32>
    %347 = arith.maximumf %345, %346 : vector<16x1xf32>
    %348 = vector.broadcast %338 : vector<16x1xf32> to vector<16x256xf32>
    %349 = arith.subf %332, %348 : vector<16x256xf32>
    %cst_130 = arith.constant 9.99999974E-6 : f32
    %350 = vector.broadcast %cst_130 : f32 to vector<16x1xf32>
    %351 = arith.addf %347, %350 : vector<16x1xf32>
    %352 = math.rsqrt %351 : vector<16x1xf32>
    %353 = vector.broadcast %352 : vector<16x1xf32> to vector<16x256xf32>
    %354 = arith.mulf %349, %353 : vector<16x256xf32>
    %355 = vector.broadcast %333 : vector<16x1xf32> to vector<16x256xf32>
    %356 = arith.mulf %354, %355 : vector<16x256xf32>
    %357 = vector.broadcast %334 : vector<16x1xf32> to vector<16x256xf32>
    %358 = arith.addf %356, %357 : vector<16x256xf32>
    %c2_i32_131 = arith.constant 2 : i32
    %359 = tpu.dynamic_rotate %331 by %c2_i32_131 dim 1 : vector<16x256xf32>, i32 -> vector<16x256xf32>
    %cst_132 = arith.constant 0.000000e+00 : f32
    %360 = vector.shape_cast %35 : vector<1x256xi1> to vector<1x256xi1>
    %361 = vector.broadcast %360 : vector<1x256xi1> to vector<16x256xi1>
    %362 = vector.broadcast %cst_132 : f32 to vector<16x256xf32>
    %363 = arith.select %361, %359, %362 : vector<16x256xi1>, vector<16x256xf32>
    %c1_i32_133 = arith.constant 1 : i32
    %364 = tpu.dynamic_rotate %331 by %c1_i32_133 dim 1 : vector<16x256xf32>, i32 -> vector<16x256xf32>
    %cst_134 = arith.constant 0.000000e+00 : f32
    %365 = vector.shape_cast %44 : vector<1x256xi1> to vector<1x256xi1>
    %366 = vector.broadcast %365 : vector<1x256xi1> to vector<16x256xi1>
    %367 = vector.broadcast %cst_134 : f32 to vector<16x256xf32>
    %368 = arith.select %366, %364, %367 : vector<16x256xi1>, vector<16x256xf32>
    %c255_i32_135 = arith.constant 255 : i32
    %369 = tpu.dynamic_rotate %331 by %c255_i32_135 dim 1 : vector<16x256xf32>, i32 -> vector<16x256xf32>
    %cst_136 = arith.constant 0.000000e+00 : f32
    %370 = vector.shape_cast %53 : vector<1x256xi1> to vector<1x256xi1>
    %371 = vector.broadcast %370 : vector<1x256xi1> to vector<16x256xi1>
    %372 = vector.broadcast %cst_136 : f32 to vector<16x256xf32>
    %373 = arith.select %371, %369, %372 : vector<16x256xi1>, vector<16x256xf32>
    %c254_i32_137 = arith.constant 254 : i32
    %374 = tpu.dynamic_rotate %331 by %c254_i32_137 dim 1 : vector<16x256xf32>, i32 -> vector<16x256xf32>
    %cst_138 = arith.constant 0.000000e+00 : f32
    %375 = vector.shape_cast %62 : vector<1x256xi1> to vector<1x256xi1>
    %376 = vector.broadcast %375 : vector<1x256xi1> to vector<16x256xi1>
    %377 = vector.broadcast %cst_138 : f32 to vector<16x256xf32>
    %378 = arith.select %376, %374, %377 : vector<16x256xi1>, vector<16x256xf32>
    %379 = tpu.concatenate %363, %368, %331, %373, %378 in 0 : vector<16x256xf32>, vector<16x256xf32>, vector<16x256xf32>, vector<16x256xf32>, vector<16x256xf32> -> vector<80x256xf32>
    %c0_139 = arith.constant 0 : index
    %c0_140 = arith.constant 0 : index
    %380 = vector.load %arg17[%c0_139, %c0_140] : memref<16x80xf32, #tpu.memory_space<vmem>>, vector<16x80xf32>
    %cst_141 = arith.constant dense<0.000000e+00> : vector<16x256xf32>
    %381 = tpu.matmul %380, %379, %cst_141 {dimension_numbers = #tpu.dot_dimension_numbers<[1], [0], [0], [1], [0, 0, 1, 1], [], []>} : vector<16x80xf32>, vector<80x256xf32>, vector<16x256xf32> -> vector<16x256xf32>
    %c0_142 = arith.constant 0 : index
    %c0_143 = arith.constant 0 : index
    %382 = vector.load %arg18[%c0_142, %c0_143] : memref<16x1xf32, #tpu.memory_space<vmem>>, vector<16x1xf32>
    %c0_144 = arith.constant 0 : index
    %c0_145 = arith.constant 0 : index
    %383 = vector.load %arg19[%c0_144, %c0_145] : memref<16x1xf32, #tpu.memory_space<vmem>>, vector<16x1xf32>
    %cst_146 = arith.constant dense<0.000000e+00> : vector<16xf32>
    %384 = vector.multi_reduction <add>, %381, %cst_146 [1] : vector<16x256xf32> to vector<16xf32>
    %385 = vector.shape_cast %384 : vector<16xf32> to vector<16x1xf32>
    %cst_147 = arith.constant 3.906250e-03 : f32
    %386 = vector.broadcast %cst_147 : f32 to vector<16x1xf32>
    %387 = arith.mulf %385, %386 : vector<16x1xf32>
    %388 = arith.mulf %381, %381 : vector<16x256xf32>
    %cst_148 = arith.constant dense<0.000000e+00> : vector<16xf32>
    %389 = vector.multi_reduction <add>, %388, %cst_148 [1] : vector<16x256xf32> to vector<16xf32>
    %390 = vector.shape_cast %389 : vector<16xf32> to vector<16x1xf32>
    %cst_149 = arith.constant 3.906250e-03 : f32
    %391 = vector.broadcast %cst_149 : f32 to vector<16x1xf32>
    %392 = arith.mulf %390, %391 : vector<16x1xf32>
    %393 = arith.mulf %387, %387 : vector<16x1xf32>
    %394 = arith.subf %392, %393 : vector<16x1xf32>
    %cst_150 = arith.constant 0.000000e+00 : f32
    %395 = vector.broadcast %cst_150 : f32 to vector<16x1xf32>
    %396 = arith.maximumf %394, %395 : vector<16x1xf32>
    %397 = vector.broadcast %387 : vector<16x1xf32> to vector<16x256xf32>
    %398 = arith.subf %381, %397 : vector<16x256xf32>
    %cst_151 = arith.constant 9.99999974E-6 : f32
    %399 = vector.broadcast %cst_151 : f32 to vector<16x1xf32>
    %400 = arith.addf %396, %399 : vector<16x1xf32>
    %401 = math.rsqrt %400 : vector<16x1xf32>
    %402 = vector.broadcast %401 : vector<16x1xf32> to vector<16x256xf32>
    %403 = arith.mulf %398, %402 : vector<16x256xf32>
    %404 = vector.broadcast %382 : vector<16x1xf32> to vector<16x256xf32>
    %405 = arith.mulf %403, %404 : vector<16x256xf32>
    %406 = vector.broadcast %383 : vector<16x1xf32> to vector<16x256xf32>
    %407 = arith.addf %405, %406 : vector<16x256xf32>
    %408 = math.sin %407 : vector<16x256xf32>
    %409 = arith.mulf %408, %408 : vector<16x256xf32>
    %410 = arith.addf %409, %407 : vector<16x256xf32>
    %cst_152 = arith.constant 1.000000e-01 : f32
    %411 = vector.broadcast %cst_152 : f32 to vector<16x256xf32>
    %412 = arith.mulf %411, %410 : vector<16x256xf32>
    %413 = arith.maximumf %412, %410 : vector<16x256xf32>
    %c1_i32_153 = arith.constant 1 : i32
    %414 = tpu.dynamic_rotate %413 by %c1_i32_153 dim 1 : vector<16x256xf32>, i32 -> vector<16x256xf32>
    %cst_154 = arith.constant 0.000000e+00 : f32
    %415 = vector.shape_cast %44 : vector<1x256xi1> to vector<1x256xi1>
    %416 = vector.broadcast %415 : vector<1x256xi1> to vector<16x256xi1>
    %417 = vector.broadcast %cst_154 : f32 to vector<16x256xf32>
    %418 = arith.select %416, %414, %417 : vector<16x256xi1>, vector<16x256xf32>
    %c255_i32_155 = arith.constant 255 : i32
    %419 = tpu.dynamic_rotate %413 by %c255_i32_155 dim 1 : vector<16x256xf32>, i32 -> vector<16x256xf32>
    %cst_156 = arith.constant 0.000000e+00 : f32
    %420 = vector.shape_cast %53 : vector<1x256xi1> to vector<1x256xi1>
    %421 = vector.broadcast %420 : vector<1x256xi1> to vector<16x256xi1>
    %422 = vector.broadcast %cst_156 : f32 to vector<16x256xf32>
    %423 = arith.select %421, %419, %422 : vector<16x256xi1>, vector<16x256xf32>
    %424 = tpu.concatenate %418, %413, %423 in 0 : vector<16x256xf32>, vector<16x256xf32>, vector<16x256xf32> -> vector<48x256xf32>
    %c0_157 = arith.constant 0 : index
    %c0_158 = arith.constant 0 : index
    %425 = vector.load %arg20[%c0_157, %c0_158] : memref<16x48xf32, #tpu.memory_space<vmem>>, vector<16x48xf32>
    %cst_159 = arith.constant dense<0.000000e+00> : vector<16x256xf32>
    %426 = tpu.matmul %425, %424, %cst_159 {dimension_numbers = #tpu.dot_dimension_numbers<[1], [0], [0], [1], [0, 0, 1, 1], [], []>} : vector<16x48xf32>, vector<48x256xf32>, vector<16x256xf32> -> vector<16x256xf32>
    %c0_160 = arith.constant 0 : index
    %c0_161 = arith.constant 0 : index
    %427 = vector.load %arg21[%c0_160, %c0_161] : memref<16x1xf32, #tpu.memory_space<vmem>>, vector<16x1xf32>
    %c0_162 = arith.constant 0 : index
    %c0_163 = arith.constant 0 : index
    %428 = vector.load %arg22[%c0_162, %c0_163] : memref<16x1xf32, #tpu.memory_space<vmem>>, vector<16x1xf32>
    %cst_164 = arith.constant dense<0.000000e+00> : vector<16xf32>
    %429 = vector.multi_reduction <add>, %426, %cst_164 [1] : vector<16x256xf32> to vector<16xf32>
    %430 = vector.shape_cast %429 : vector<16xf32> to vector<16x1xf32>
    %cst_165 = arith.constant 3.906250e-03 : f32
    %431 = vector.broadcast %cst_165 : f32 to vector<16x1xf32>
    %432 = arith.mulf %430, %431 : vector<16x1xf32>
    %433 = arith.mulf %426, %426 : vector<16x256xf32>
    %cst_166 = arith.constant dense<0.000000e+00> : vector<16xf32>
    %434 = vector.multi_reduction <add>, %433, %cst_166 [1] : vector<16x256xf32> to vector<16xf32>
    %435 = vector.shape_cast %434 : vector<16xf32> to vector<16x1xf32>
    %cst_167 = arith.constant 3.906250e-03 : f32
    %436 = vector.broadcast %cst_167 : f32 to vector<16x1xf32>
    %437 = arith.mulf %435, %436 : vector<16x1xf32>
    %438 = arith.mulf %432, %432 : vector<16x1xf32>
    %439 = arith.subf %437, %438 : vector<16x1xf32>
    %cst_168 = arith.constant 0.000000e+00 : f32
    %440 = vector.broadcast %cst_168 : f32 to vector<16x1xf32>
    %441 = arith.maximumf %439, %440 : vector<16x1xf32>
    %442 = vector.broadcast %432 : vector<16x1xf32> to vector<16x256xf32>
    %443 = arith.subf %426, %442 : vector<16x256xf32>
    %cst_169 = arith.constant 9.99999974E-6 : f32
    %444 = vector.broadcast %cst_169 : f32 to vector<16x1xf32>
    %445 = arith.addf %441, %444 : vector<16x1xf32>
    %446 = math.rsqrt %445 : vector<16x1xf32>
    %447 = vector.broadcast %446 : vector<16x1xf32> to vector<16x256xf32>
    %448 = arith.mulf %443, %447 : vector<16x256xf32>
    %449 = vector.broadcast %427 : vector<16x1xf32> to vector<16x256xf32>
    %450 = arith.mulf %448, %449 : vector<16x256xf32>
    %451 = vector.broadcast %428 : vector<16x1xf32> to vector<16x256xf32>
    %452 = arith.addf %450, %451 : vector<16x256xf32>
    %453 = arith.addf %452, %358 : vector<16x256xf32>
    %454 = math.sin %453 : vector<16x256xf32>
    %455 = arith.mulf %454, %454 : vector<16x256xf32>
    %456 = arith.addf %455, %453 : vector<16x256xf32>
    %cst_170 = arith.constant 1.000000e-01 : f32
    %457 = vector.broadcast %cst_170 : f32 to vector<16x256xf32>
    %458 = arith.mulf %457, %456 : vector<16x256xf32>
    %459 = arith.maximumf %458, %456 : vector<16x256xf32>
    %c0_171 = arith.constant 0 : index
    %c0_172 = arith.constant 0 : index
    %460 = vector.load %arg23[%c0_171, %c0_172] : memref<16x256xf32, #tpu.memory_space<vmem>>, vector<16x256xf32>
    tpu.vector_store %arg23[%c0_171, %c0_172], %459 {strides = array<i32>} : memref<16x256xf32, #tpu.memory_space<vmem>>, vector<16x256xf32>,
    return
  }
}

</mosaic_0001>

<bundles_post_ra>
// kernel: tpu_custom_call.1
= control target key start
LH: loop header
LB: loop body
LE: loop exit
PB: predicated region body
PF: predicated region fallthrough
CT: control target
= control target key end

     0   :  { %s7129_s0 = inlined_call_operand.vmem [shape: f32[4,256], index: 0, kind: input, shape index: {}]   ;;  %s7130_s1 = inlined_call_operand.vmem [shape: f32[16,28], index: 1, kind: input, shape index: {}]   ;;  %s7131_s2 = inlined_call_operand.vmem [shape: f32[8,1], index: 2, kind: input, shape index: {}]   ;;  %s7132_s3 = inlined_call_operand.vmem [shape: f32[8,1], index: 3, kind: input, shape index: {}]   ;;  %s7133_s4 = inlined_call_operand.vmem [shape: f32[8,1], index: 4, kind: input, shape index: {}]   ;;  %s7134_s5 = inlined_call_operand.vmem [shape: f32[8,1], index: 5, kind: input, shape index: {}]   ;;  %s7135_s6 = inlined_call_operand.vmem [shape: f32[8,40], index: 6, kind: input, shape index: {}]   ;;  %s7136_s7 = inlined_call_operand.vmem [shape: f32[8,1], index: 7, kind: input, shape index: {}]   ;;  %s7137_s8 = inlined_call_operand.vmem [shape: f32[8,1], index: 8, kind: input, shape index: {}]   ;;  %s7138_s9 = inlined_call_operand.vmem [shape: f32[8,24], index: 9, kind: input, shape index: {}]   ;;  %s7139_s10 = inlined_call_operand.vmem [shape: f32[8,1], index: 10, kind: input, shape index: {}]   ;;  %s7140_s11 = inlined_call_operand.vmem [shape: f32[8,1], index: 11, kind: input, shape index: {}]   ;;  %s7141_s12 = inlined_call_operand.vmem [shape: f32[32,56], index: 12, kind: input, shape index: {}]   ;;  %s7142_s13 = inlined_call_operand.vmem [shape: f32[16,1], index: 13, kind: input, shape index: {}]   ;;  %s7143_s14 = inlined_call_operand.vmem [shape: f32[16,1], index: 14, kind: input, shape index: {}]   ;;  %s7144_s15 = inlined_call_operand.vmem [shape: f32[16,1], index: 15, kind: input, shape index: {}]   ;;  %s7145_s16 = inlined_call_operand.vmem [shape: f32[16,1], index: 16, kind: input, shape index: {}]   ;;  %s7146_s17 = inlined_call_operand.vmem [shape: f32[16,80], index: 17, kind: input, shape index: {}]   ;;  %s7147_s18 = inlined_call_operand.vmem [shape: f32[16,1], index: 18, kind: input, shape index: {}]   ;;  %s7148_s19 = inlined_call_operand.vmem [shape: f32[16,1], index: 19, kind: input, shape index: {}]   ;;  %s7149_s20 = inlined_call_operand.vmem [shape: f32[16,48], index: 20, kind: input, shape index: {}]   ;;  %s7150_s21 = inlined_call_operand.vmem [shape: f32[16,1], index: 21, kind: input, shape index: {}]   ;;  %s7151_s22 = inlined_call_operand.vmem [shape: f32[16,1], index: 22, kind: input, shape index: {}]   ;;  %s7152_s23 = inlined_call_operand.hbm [shape: f32[16,256], index: 23, kind: output, shape index: {}]  }
   0x1   :  { %7173 = sst [smem:[#allocation5_spill]] %s7129_s0 }
   0x2   :  { %7174 = sst [smem:[#allocation6_spill]] %s7130_s1 }
   0x3   :  { %7175 = sst [smem:[#allocation7_spill]] %s7131_s2 }
   0x4   :  { %7176 = sst [smem:[#allocation8_spill]] %s7132_s3 }
   0x5   :  { %7177 = sst [smem:[#allocation9_spill]] %s7133_s4 }
   0x6   :  { %7178 = sst [smem:[#allocation10_spill]] %s7134_s5 }
   0x7   :  { %7179 = sst [smem:[#allocation11_spill]] %s7135_s6 }
   0x8   :  { %7180 = sst [smem:[#allocation12_spill]] %s7136_s7 }
   0x9   :  { %s7181_s24 = sld [smem:[#allocation5_spill]] }
   0xf   :  { %v75_v0 = vld [vmem:[%s7181_s24] sm:$0xff] }
  0x10   :  { %28 = vsyncpa [#allocation3], 0  ;;  %152 = vst [vmem:[#allocation1] ss:$2 sm:$0xff] %v75_v0  ;;  %s4465_s25 = smov 2   ;;  %s4466_s5 = smov 1   ;;  %v76_v18 = vlaneseq }
  0x11   :  { %s4467_s1 = smov 126   ;;  %s4468_s26 = smov 125   ;;  %vm278_vm7 = vcmask 1043456  }
  0x12   :  { %s4469_s2 = smov 127   ;;  %s4470_s6 = smov 3   ;;  %v4611_v19 = vand.u32 127, %v76_v18 }
  0x13   :  { %s7182_s28 = sld [smem:[#allocation6_spill]] }
  0x14   :  { %v78_v20 = vadd.s32 128, %v4611_v19  ;;  %v4615_v24 = vadd.s32 2, %v4611_v19  ;;  %v4618_v25 = vadd.s32 3, %v4611_v19  ;;  %v4625_v28 = vadd.s32 4294967294, %v4611_v19  ;;  %s7183_s0 = sld [smem:[#allocation7_spill]] }
  0x15   :  { %vm233_vm1 = vcmp.lt.s32.totalorder %v4611_v19, 126  ;;  %vm7163_vm2 = vcmp.lt.s32.totalorder %v4611_v19, 2  ;;  %vm7156_vm4 = vcmp.lt.s32.totalorder %v4611_v19, 125  ;;  %v4638_v36 = vadd.s32 1, %v4611_v19  ;;  %s7184_s24 = sld [smem:[#allocation8_spill]] }
  0x16   :  { %v90_v22 = vand.u32 127, %v78_v20  ;;  %vm139_vm0 = vcmp.lt.s32.totalorder %v4615_v24, 128  ;;  %vm7155_vm3 = vcmp.lt.s32.totalorder %v4618_v25, 128  ;;  %vm7162_vm8 = vcmp.ge.s32.totalorder %v4625_v28, 0  ;;  %s7190_s29 = sld [smem:[#allocation11_spill]] }
  0x17   :  { %v153_v1 = vld.sshfl [vmem:[#allocation1] sm:$0xff pattern:$0x75316420]  ;;  %v154_v2 = vld.sshfl [vmem:[#allocation1 + $0x8] sm:$0xff pattern:$0x75316420] }
  0x18   :  { %170 = vst [vmem:[#allocation1] ss:$2 sm:$0xff] %v75_v0  ;;  %v4407_v17 = vpack.i.bf16 %v154_v2, %v153_v1  ;;  %v4620_v26 = vadd.s32 3, %v90_v22  ;;  %v4622_v27 = vadd.s32 2, %v90_v22  ;;  %v4627_v31 = vadd.s32 4294967294, %v90_v22  ;;  %s7195_s4 = sld [smem:[#allocation12_spill]] }
  0x19   :  { %v4646_v42 = vadd.s32 4294967295, %v4611_v19  ;;  %v4648_v43 = vadd.s32 4294967295, %v90_v22  ;;  %v4654_v46 = vadd.s32 1, %v90_v22  ;;  %vm7169_vm10 = vcmp.lt.s32.totalorder %v4611_v19, 1 }
  0x1a   :  { %vm7154_vm5 = vcmp.lt.s32.totalorder %v4620_v26, 128  ;;  %vm140_vm6 = vcmp.lt.s32.totalorder %v4622_v27, 128  ;;  %vm7157_vm9 = vcmp.ge.s32.totalorder %v4627_v31, 0  ;;  %v4668_v51 = vadd.s32 4294967293, %v4611_v19 }
  0x1b   :  { %v4672_v53 = vadd.s32 4294967293, %v90_v22  ;;  %vm7168_vm11 = vcmp.ge.s32.totalorder %v4646_v42, 0  ;;  %vm7164_vm12 = vcmp.ge.s32.totalorder %v4648_v43, 0  ;;  %vm215_vm13 = vcmp.lt.s32.totalorder %v4611_v19, 127  ;;  %v285_v22 = vld [vmem:[%s7182_s28] sm:$0xff] }
  0x1c   :  { %vm131_vm14 = vcmp.lt.s32.totalorder %v4638_v36, 128  ;;  %vm7170_vm15 = vcmp.lt.s32.totalorder %v4654_v46, 128 }
  0x1f   :  { %v171_v3 = vld.sshfl [vmem:[#allocation1] sm:$0xff pattern:$0x75316420]  ;;  %v172_v4 = vld.sshfl [vmem:[#allocation1 + $0x8] sm:$0xff pattern:$0x75316420] }
  0x20   :  { %188 = vst [vmem:[#allocation1] ss:$2 sm:$0xff] %v75_v0  ;;  %v4397_v7 = vpack.i.bf16 %v172_v4, %v171_v3 }
  0x22   :  { %4398 = vrot.lane.b32.xlu2 %v4397_v7, %s4465_s25 }
  0x27   :  { %v189_v5 = vld.sshfl [vmem:[#allocation1] sm:$0xff pattern:$0x75316420]  ;;  %v190_v6 = vld.sshfl [vmem:[#allocation1 + $0x8] sm:$0xff pattern:$0x75316420] }
  0x28   :  { %206 = vst [vmem:[#allocation1] ss:$2 sm:$0xff] %v75_v0  ;;  %v4402_v10 = vpack.i.bf16 %v190_v6, %v189_v5 }
  0x2a   :  { %4403 = vrot.lane.b32.xlu2 %v4402_v10, %s4466_s5 }
  0x2f   :  { %v207_v8 = vld.sshfl [vmem:[#allocation1] sm:$0xff pattern:$0x75316420]  ;;  %v208_v9 = vld.sshfl [vmem:[#allocation1 + $0x8] sm:$0xff pattern:$0x75316420] }
  0x30   :  { %224 = vst [vmem:[#allocation1] ss:$2 sm:$0xff] %v75_v0  ;;  %v4392_v16 = vpack.i.bf16 %v208_v9, %v207_v8 }
  0x37   :  { %v225_v11 = vld.sshfl [vmem:[#allocation1] sm:$0xff pattern:$0x75316420]  ;;  %v226_v12 = vld.sshfl [vmem:[#allocation1 + $0x8] sm:$0xff pattern:$0x75316420] }
  0x38   :  { %v4387_v13 = vpack.i.bf16 %v226_v12, %v225_v11  ;;  %242 = vst [vmem:[#allocation1] ss:$2 sm:$0xff] %v75_v0 }
  0x3a   :  { %4388 = vrot.lane.b32.xlu0 %v4387_v13, %s4467_s1 }
  0x3f   :  { %v244_v14 = vld.sshfl [vmem:[#allocation1 + $0x8] sm:$0xff pattern:$0x75316420]  ;;  %v243_v15 = vld.sshfl [vmem:[#allocation1] sm:$0xff pattern:$0x75316420] }
  0x40   :  { %249 = vrot.lane.b32.xlu1 %v244_v14, %s4468_s26  ;;  %267 = vst [vmem:[#allocation1 + $0x1] ss:$2 sm:$0xff] %v75_v0 }
  0x42   :  { %247 = vrot.lane.b32.xlu0 %v243_v15, %s4468_s26 }
  0x47   :  { %v268_v60 = vld.sshfl [vmem:[#allocation1] sm:$0xff pattern:$0x75316420]  ;;  %v269_v1 = vld.sshfl [vmem:[#allocation1 + $0x8] sm:$0xff pattern:$0x75316420] }
  0x48   :  { %4393 = vrot.lane.b32.xlu1 %v4392_v16, %s4469_s2 }
  0x4a   :  { %4408 = vrot.lane.b32.xlu0 %v4407_v17, %s4470_s6 }
  0x7c   :  { %v4399_v21 = vpop.permute.xlu2 %4398 }
  0x7d   :  { %v4401_v29 = vunpack.i.h.bf16 %v4399_v21  ;;  %v4400_v30 = vunpack.i.l.bf16 %v4399_v21 }
  0x7f   :  { %v181_v37 = vsel %vm7163_vm2, %v4401_v29, %v4400_v30  ;;  %v180_v38 = vsel %vm7163_vm2, %v4400_v30, %v4401_v29  ;;  %v346_v30 = vld [vmem:[%s7183_s0] sm:$0xff] }
  0x80   :  { %v186_v52 = vsel %vm7162_vm8, %v181_v37, 0.0  ;;  %v187_v58 = vsel %vm7157_vm9, %v180_v38, 0.0  ;;  %vm7161_vm9 = vcmask 228352  }
  0x81   :  { %v262_v20 = vrot.slane %v186_v52, 4  ;;  %v263_v21 = vrot.slane %v187_v58, 4 }
  0x84   :  { %v4404_v32 = vpop.permute.xlu2 %4403 }
  0x85   :  { %v4406_v40 = vunpack.i.h.bf16 %v4404_v32  ;;  %v4405_v41 = vunpack.i.l.bf16 %v4404_v32  ;;  %v4471_v32 = vmov 0  }
  0x86   :  { %4412 = vset.pattern.permute.xlu0 %v4471_v32  ;;  %4413 = vset.pattern.permute.xlu2 %v4471_v32 }
  0x87   :  { %v199_v54 = vsel %vm7169_vm10, %v4406_v40, %v4405_v41  ;;  %v198_v55 = vsel %vm7169_vm10, %v4405_v41, %v4406_v40  ;;  %378 = vperm.xlu0 %4412, %v346_v30   ;;  %4414 = vset.pattern.permute.xlu1 %v4471_v32 }
  0x88   :  { %v204_v63 = vsel %vm7168_vm11, %v199_v54, 0.0  ;;  %v205_v0 = vsel %vm7164_vm12, %v198_v55, 0.0 }
  0x89   :  { %v281_v11 = vsel %vm278_vm7, %v204_v63, %v268_v60  ;;  %v282_v12 = vsel %vm278_vm7, %v205_v0, %v269_v1 }
  0xac   :  { %v4389_v23 = vpop.permute.xlu0 %4388 }
  0xad   :  { %v4391_v33 = vunpack.i.h.bf16 %v4389_v23  ;;  %v4390_v34 = vunpack.i.l.bf16 %v4389_v23 }
  0xaf   :  { %v234_v49 = vsel %vm233_vm1, %v4390_v34, %v4391_v33  ;;  %v235_v50 = vsel %vm233_vm1, %v4391_v33, %v4390_v34  ;;  %v347_v33 = vld [vmem:[%s7184_s24] sm:$0xff] }
  0xb0   :  { %v240_v56 = vsel %vm139_vm0, %v234_v49, 0.0  ;;  %v241_v57 = vsel %vm140_vm6, %v235_v50, 0.0  ;;  %385 = vperm.xlu0 %4412, %v347_v33  }
  0xb1   :  { %v274_v3 = vrot.slane %v240_v56, 4  ;;  %v275_v4 = vrot.slane %v241_v57, 4 }
  0xb2   :  { %v250_v35 = vpop.permute.xlu1 %249 }
  0xb4   :  { %v248_v39 = vpop.permute.xlu0 %247 }
  0xb5   :  { %v252_v44 = vsel %vm7156_vm4, %v248_v39, %v250_v35  ;;  %v253_v45 = vsel %vm7156_vm4, %v250_v35, %v248_v39  ;;  %vm7158_vm4 = vcmp.ge.s32.totalorder %v4672_v53, 0 }
  0xb6   :  { %v258_v47 = vsel %vm7155_vm3, %v252_v44, 0.0  ;;  %v259_v48 = vsel %vm7154_vm5, %v253_v45, 0.0  ;;  %vm7160_vm5 = vcmp.lt.s32.totalorder %v4611_v19, 3  ;;  %vm7159_vm3 = vcmp.ge.s32.totalorder %v4668_v51, 0 }
  0xb7   :  { %4231 = vmatpush.msk.msra.mxu0 %vm278_vm7, %v258_v47  ;;  %4234 = vmatpush.msk.msra.mxu1 %vm278_vm7, %v259_v48 }
  0xba   :  { %v4394_v59 = vpop.permute.xlu1 %4393 }
  0xbb   :  { %v4396_v61 = vunpack.i.h.bf16 %v4394_v59  ;;  %v4395_v62 = vunpack.i.l.bf16 %v4394_v59 }
  0xbc   :  { %v4409_v2 = vpop.permute.xlu0 %4408 }
  0xbd   :  { %v4411_v5 = vunpack.i.h.bf16 %v4409_v2  ;;  %v4410_v6 = vunpack.i.l.bf16 %v4409_v2  ;;  %v216_v7 = vsel %vm215_vm13, %v4395_v62, %v4396_v61  ;;  %v217_v8 = vsel %vm215_vm13, %v4396_v61, %v4395_v62 }
  0xbe   :  { %v222_v9 = vsel %vm131_vm14, %v216_v7, 0.0  ;;  %v223_v10 = vsel %vm7170_vm15, %v217_v8, 0.0 }
  0xbf   :  { %v283_v13 = vsel %vm278_vm7, %v222_v9, %v274_v3  ;;  %v284_v14 = vsel %vm278_vm7, %v223_v10, %v275_v4  ;;  %v163_v15 = vsel %vm7160_vm5, %v4411_v5, %v4410_v6  ;;  %v162_v16 = vsel %vm7160_vm5, %v4410_v6, %v4411_v5 }
  0xc0   :  { %313 = vmatpush.msra.mxu0 %v283_v13  ;;  %336 = vmatpush.msra.mxu1 %v284_v14  ;;  %v168_v17 = vsel %vm7159_vm3, %v163_v15, 0.0  ;;  %v169_v18 = vsel %vm7158_vm4, %v162_v16, 0.0 }
  0xc1   :  { %v279_v23 = vsel %vm278_vm7, %v168_v17, %v262_v20  ;;  %v280_v29 = vsel %vm278_vm7, %v169_v18, %v263_v21 }
  0xc2   :  { %314 = vmatpush.msra.mxu0 %v281_v11  ;;  %337 = vmatpush.msra.mxu1 %v282_v12 }
  0xc4   :  { %315 = vmatpush.msra.mxu0 %v279_v23  ;;  %338 = vmatpush.msra.mxu1 %v280_v29 }
  0xc5   :  { %4232 = vmatmul.msk.f32.vlgmr.msra.gmra.mxu0 %vm7161_vm9, %v285_v22  ;;  %4235 = vmatmul.msk.f32.vlgmr.msra.gmra.mxu1 %vm7161_vm9, %v285_v22 }
  0xf9   :  { %v379_v58 = vpop.permute.xlu0 %378 }
 0x122   :  { %v386_v4 = vpop.permute.xlu0 %385 }
 0x142   :  { %v317_v34 = vpop.f32.mrf.mxu0  ;;  %v340_v35 = vpop.f32.mrf.mxu1 }
 0x143   :  { %v348_v37 = vadd.f32 %v340_v35, %v317_v34  ;;  %v352_v38 = vmul.f32 %v317_v34, %v317_v34  ;;  %v353_v39 = vmul.f32 %v340_v35, %v340_v35 }
 0x145   :  { %349 = vadd.xlane.f32.xlu1 %v348_v37  ;;  %v354_v40 = vadd.f32 %v353_v39, %v352_v38  ;;  %v4472_v39 = vmov 683565275  }
 0x147   :  { %355 = vadd.xlane.f32.xlu2 %v354_v40 }
 0x1b8   :  { %v350_v41 = vpop.xlane.xlu1 %349 }
 0x1b9   :  { %v351_v44 = vmul.f32 0.00390625, %v350_v41  ;;  %v4473_v41 = vmov 2475754826  }
 0x1ba   :  { %v356_v45 = vpop.xlane.xlu2 %355 }
 0x1bb   :  { %v357_v47 = vmul.f32 0.00390625, %v356_v45  ;;  %v358_v48 = vmul.f32 %v351_v44, %v351_v44  ;;  %v361_v61 = vsub.f32 %v317_v34, %v351_v44  ;;  %v362_v62 = vsub.f32 %v340_v35, %v351_v44 }
 0x1bd   :  { %v359_v49 = vsub.f32 %v357_v47, %v358_v48  ;;  %v4474_v48 = vmov 2131351028  }
 0x1bf   :  { %v360_v50 = vmax.f32 %v359_v49, 0.0 }
 0x1c1   :  { %v363_v52 = vadd.f32 1e-05, %v360_v50 }
 0x1c3   :  { %4415 = vrsqrt.f32 %v363_v52  ;;  %vm370_vm4 = vweird.f32 %v363_v52 }
 0x1c9   :  { %v4416_v54 = vpop.eup %4415 }
 0x1ca   :  { %v365_v55 = vmul.f32 %v4416_v54, %v363_v52  ;;  %vm371_vm7 = vweird.f32 %v4416_v54  ;;  %v4475_v52 = vmov 2102212464  }
 0x1cb   :  { %vm372_vm3 = vmor %vm370_vm4, %vm371_vm7 }
 0x1cc   :  { %v366_v56 = vmul.f32 %v4416_v54, %v365_v55 }
 0x1ce   :  { %v367_v57 = vmul.f32 0.5, %v366_v56  ;;  %v4476_v56 = vmov 920167782  }
 0x1d0   :  { %v368_v59 = vsub.f32 1.5, %v367_v57 }
 0x1d2   :  { %v369_v60 = vmul.f32 %v4416_v54, %v368_v59  ;;  %v7171_v59 = vmov 1326507024  }
 0x1d4   :  { %v373_v63 = vsel %vm372_vm3, %v4416_v54, %v369_v60 }
 0x1d5   :  { %v374_v0 = vmul.f32 %v373_v63, %v361_v61  ;;  %v375_v1 = vmul.f32 %v373_v63, %v362_v62 }
 0x1d7   :  { %v381_v2 = vmul.f32 %v379_v58, %v374_v0  ;;  %v382_v3 = vmul.f32 %v379_v58, %v375_v1 }
 0x1d9   :  { %v4732_v5 = vadd.f32 %v386_v4, %v381_v2  ;;  %v4734_v6 = vadd.f32 %v386_v4, %v382_v3 }
 0x1db   :  { %v390_v7 = vand.u32 2147483647, %v4732_v5  ;;  %v393_v8 = vand.u32 2139095040, %v4732_v5  ;;  %v545_v9 = vand.u32 2147483647, %v4734_v6  ;;  %v548_v10 = vand.u32 2139095040, %v4734_v6 }
 0x1dd   :  { %v394_v11 = vshrl.u32 %v393_v8, 23  ;;  %v397_v12 = vand.u32 8388607, %v390_v7  ;;  %v549_v13 = vshrl.u32 %v548_v10, 23  ;;  %v552_v16 = vand.u32 8388607, %v545_v9 }
 0x1df   :  { %v4237_v14 = vadd.s32 4294967169, %v394_v11  ;;  %v398_v15 = vor.u32 8388608, %v397_v12  ;;  %v4240_v17 = vadd.s32 4294967169, %v549_v13  ;;  %v553_v22 = vor.u32 8388608, %v552_v16 }
 0x1e1   :  { %v400_v18 = vadd.s32 1, %v4237_v14  ;;  %v555_v20 = vadd.s32 1, %v4240_v17  ;;  %v4744_v21 = vshll.u32 %v398_v15, 8  ;;  %v4751_v37 = vshll.u32 %v553_v22, 8 }
 0x1e3   :  { %vm401_vm3 = vcmp.gt.s32.totalorder %v400_v18, 0  ;;  %vm556_vm4 = vcmp.gt.s32.totalorder %v555_v20, 0  ;;  %v4747_v34 = vand.u32 65535, %v4744_v21  ;;  %v440_v45 = vshrl.u32 %v4744_v21, 16 }
 0x1e4   :  { %v402_v23 = vsel %vm401_vm3, %v400_v18, 0  ;;  %v557_v30 = vsel %vm556_vm4, %v555_v20, 0 }
 0x1e5   :  { %v404_v29 = vand.u32 31, %v402_v23  ;;  %v4749_v35 = vand.u32 31, %v557_v30  ;;  %v4753_v38 = vshrl.u32 %v402_v23, 5 }
 0x1e7   :  { %v405_v33 = vsub.s32 32, %v404_v29  ;;  %v407_v40 = vshll.u32 %v4472_v39, %v404_v29  ;;  %v410_v44 = vshll.u32 %v4473_v41, %v404_v29  ;;  %v413_v50 = vshll.u32 %v4474_v48, %v404_v29 }
 0x1e8   :  { %v416_v55 = vshll.u32 %v4475_v52, %v404_v29  ;;  %v419_v58 = vshll.u32 %v4476_v56, %v404_v29  ;;  %v4767_v0 = vsub.s32 32, %v4749_v35  ;;  %vm422_vm7 = vcmp.lt.s32.totalorder %v4753_v38, 1 }
 0x1e9   :  { %v408_v47 = vshrl.u32 %v4473_v41, %v405_v33  ;;  %v411_v49 = vshrl.u32 %v4474_v48, %v405_v33  ;;  %v414_v54 = vshrl.u32 %v4475_v52, %v405_v33  ;;  %v417_v57 = vshrl.u32 %v4476_v56, %v405_v33 }
 0x1ea   :  { %v420_v60 = vshrl.u32 %v7171_v59, %v405_v33  ;;  %vm423_vm3 = vcmp.lt.s32.totalorder %v4753_v38, 2  ;;  %v406_v3 = vshrl.u32 %v4472_v39, %v405_v33  ;;  %vm425_vm4 = vcmp.lt.s32.totalorder %v4753_v38, 4 }
 0x1eb   :  { %v409_v61 = vor.u32 %v408_v47, %v407_v40  ;;  %v412_v62 = vor.u32 %v411_v49, %v410_v44  ;;  %v415_v63 = vor.u32 %v414_v54, %v413_v50  ;;  %v418_v1 = vor.u32 %v417_v57, %v416_v55 }
 0x1ec   :  { %v421_v2 = vor.u32 %v420_v60, %v419_v58  ;;  %vm424_vm5 = vcmp.lt.s32.totalorder %v4753_v38, 3  ;;  %v562_v12 = vshll.u32 %v4472_v39, %v4749_v35  ;;  %v563_v16 = vshrl.u32 %v4473_v41, %v4767_v0 }
 0x1ed   :  { %v430_v4 = vsel %vm422_vm7, %v409_v61, %v412_v62  ;;  %v434_v8 = vsel %vm422_vm7, %v412_v62, %v415_v63  ;;  %v431_v10 = vsel %vm425_vm4, %v418_v1, 920167782  ;;  %v427_v13 = vsel %vm425_vm4, %v415_v63, 2102212464 }
 0x1ee   :  { %v435_v11 = vsel %vm425_vm4, %v421_v2, 1326507024  ;;  %v432_v14 = vsel %vm424_vm5, %v415_v63, %v431_v10  ;;  %v565_v20 = vshll.u32 %v4473_v41, %v4749_v35  ;;  %v566_v22 = vshrl.u32 %v4474_v48, %v4767_v0 }
 0x1ef   :  { %v436_v15 = vsel %vm424_vm5, %v418_v1, %v435_v11  ;;  %v433_v17 = vsel %vm423_vm3, %v430_v4, %v432_v14  ;;  %v426_v44 = vsel %vm422_vm7, %v406_v3, %v409_v61  ;;  %v428_v47 = vsel %vm424_vm5, %v412_v62, %v427_v13 }
 0x1f0   :  { %v437_v18 = vsel %vm423_vm3, %v434_v8, %v436_v15  ;;  %v463_v33 = vand.u32 65535, %v433_v17  ;;  %v464_v40 = vshrl.u32 %v433_v17, 16  ;;  %v4798_v49 = vshrl.u32 %v557_v30, 5 }
 0x1f1   :  { %v441_v23 = vand.u32 65535, %v437_v18  ;;  %v442_v29 = vshrl.u32 %v437_v18, 16  ;;  %v4800_v50 = vor.u32 %v563_v16, %v562_v12  ;;  %v4803_v57 = vor.u32 %v566_v22, %v565_v20 }
 0x1f2   :  { %v569_v58 = vshrl.u32 %v4475_v52, %v4767_v0  ;;  %v466_v63 = vmul.u32 %v464_v40, %v4747_v34  ;;  %v467_v61 = vmul.u32 %v463_v33, %v440_v45  ;;  %v568_v62 = vshll.u32 %v4474_v48, %v4749_v35 }
 0x1f3   :  { %v444_v54 = vmul.u32 %v442_v29, %v4747_v34  ;;  %v445_v55 = vmul.u32 %v441_v23, %v440_v45  ;;  %v443_v60 = vmul.u32 %v441_v23, %v4747_v34  ;;  %v446_v30 = vmul.u32 %v442_v29, %v440_v45 }
 0x1f4   :  { %v465_v2 = vmul.u32 %v463_v33, %v4747_v34  ;;  %v468_v3 = vmul.u32 %v464_v40, %v440_v45  ;;  %v469_v11 = vshll.u32 %v466_v63, 16  ;;  %v471_v13 = vshll.u32 %v467_v61, 16 }
 0x1f5   :  { %v447_v1 = vshll.u32 %v444_v54, 16  ;;  %v448_v4 = vshrl.u32 %v444_v54, 16  ;;  %v449_v8 = vshll.u32 %v445_v55, 16  ;;  %v450_v10 = vshrl.u32 %v445_v55, 16 }
 0x1f6   :  { %v4812_v14 = vor.u32 %v569_v58, %v568_v62  ;;  %vm473_vm7 = vc.u32 %v465_v2, %v469_v11  ;;  %v475_v16 = vadd.s32 %v469_v11, %v465_v2  ;;  %v572_v17 = vshrl.u32 %v4476_v56, %v4767_v0 }
 0x1f7   :  { %vm451_vm5 = vc.u32 %v443_v60, %v447_v1  ;;  %v453_v12 = vadd.s32 %v447_v1, %v443_v60  ;;  %v474_v34 = vsel %vm473_vm7, 1, %v4471_v32  ;;  %v571_v45 = vshll.u32 %v4475_v52, %v4749_v35 }
 0x1f8   :  { %v452_v15 = vsel %vm451_vm5, 1, %v4471_v32  ;;  %v476_v22 = vadd.s32 %v474_v34, %v468_v3  ;;  %vm477_vm9 = vc.u32 %v475_v16, %v471_v13  ;;  %v574_v23 = vshll.u32 %v4476_v56, %v4749_v35 }
 0x1f9   :  { %v454_v18 = vadd.s32 %v452_v15, %v446_v30  ;;  %vm455_vm4 = vc.u32 %v453_v12, %v449_v8  ;;  %v478_v33 = vsel %vm477_vm9, 1, %v4471_v32  ;;  %v573_v40 = vor.u32 %v572_v17, %v571_v45 }
 0x1fa   :  { %v456_v20 = vsel %vm455_vm4, 1, %v4471_v32  ;;  %v575_v54 = vshrl.u32 %v7171_v59, %v4767_v0  ;;  %v470_v55 = vshrl.u32 %v466_v63, 16  ;;  %v472_v58 = vshrl.u32 %v467_v61, 16 }
 0x1fb   :  { %v458_v29 = vadd.s32 %v456_v20, %v454_v18  ;;  %v4826_v60 = vadd.s32 %v475_v16, %v471_v13  ;;  %v480_v62 = vadd.s32 %v478_v33, %v476_v22  ;;  %vm577_vm5 = vcmp.lt.s32.totalorder %v4798_v49, 1 }
 0x1fc   :  { %v576_v1 = vor.u32 %v575_v54, %v574_v23  ;;  %vm580_vm7 = vcmp.lt.s32.totalorder %v4798_v49, 4  ;;  %vm579_vm4 = vcmp.lt.s32.totalorder %v4798_v49, 3  ;;  %v585_v35 = vsel %vm577_vm5, %v4800_v50, %v4803_v57 }
 0x1fd   :  { %v459_v30 = vadd.s32 %v458_v29, %v448_v4  ;;  %v481_v2 = vadd.s32 %v480_v62, %v470_v55  ;;  %v586_v63 = vsel %vm580_vm7, %v573_v40, 920167782  ;;  %vm578_vm9 = vcmp.lt.s32.totalorder %v4798_v49, 2 }
 0x1fe   :  { %v587_v3 = vsel %vm579_vm4, %v4812_v14, %v586_v63  ;;  %v589_v4 = vsel %vm577_vm5, %v4803_v57, %v4812_v14  ;;  %v429_v8 = vsel %vm423_vm3, %v426_v44, %v428_v47  ;;  %v594_v15 = vand.u32 65535, %v4751_v37 }
 0x1ff   :  { %v4837_v61 = vadd.s32 %v459_v30, %v450_v10  ;;  %v482_v11 = vadd.s32 %v481_v2, %v472_v58  ;;  %v588_v12 = vsel %vm578_vm9, %v585_v35, %v587_v3  ;;  %v590_v10 = vsel %vm580_vm7, %v576_v1, 1326507024 }
 0x200   :  { %v591_v13 = vsel %vm579_vm4, %v573_v40, %v590_v10  ;;  %v618_v16 = vand.u32 65535, %v588_v12  ;;  %v595_v44 = vshrl.u32 %v4751_v37, 16  ;;  %v619_v47 = vshrl.u32 %v588_v12, 16 }
 0x201   :  { %vm485_vm8 = vc.u32 %v4837_v61, %v4826_v60  ;;  %v486_v17 = vadd.s32 1, %v482_v11  ;;  %v592_v38 = vsel %vm578_vm9, %v589_v4, %v591_v13  ;;  %v483_v18 = vmul.u32 %v4744_v21, %v429_v8 }
 0x202   :  { %v596_v34 = vand.u32 65535, %v592_v38  ;;  %v597_v45 = vshrl.u32 %v592_v38, 16  ;;  %v621_v22 = vmul.u32 %v619_v47, %v594_v15  ;;  %v622_v23 = vmul.u32 %v618_v16, %v595_v44 }
 0x203   :  { %v487_v20 = vsel %vm485_vm8, %v486_v17, %v482_v11  ;;  %v620_v54 = vmul.u32 %v618_v16, %v594_v15  ;;  %v623_v55 = vmul.u32 %v619_v47, %v595_v44  ;;  %v582_v13 = vsel %vm580_vm7, %v4812_v14, 2102212464 }
 0x204   :  { %v488_v29 = vadd.s32 %v487_v20, %v483_v18  ;;  %v599_v33 = vmul.u32 %v597_v45, %v594_v15  ;;  %v600_v40 = vmul.u32 %v596_v34, %v595_v44  ;;  %v624_v58 = vshll.u32 %v621_v22, 16 }
 0x205   :  { %v598_v30 = vmul.u32 %v596_v34, %v594_v15  ;;  %v601_v1 = vmul.u32 %v597_v45, %v595_v44  ;;  %v626_v63 = vshll.u32 %v622_v23, 16  ;;  %v561_v16 = vshrl.u32 %v4472_v39, %v4767_v0 }
 0x206   :  { %v489_v62 = vadd.s32 536870912, %v488_v29  ;;  %v602_v2 = vshll.u32 %v599_v33, 16  ;;  %v604_v35 = vshll.u32 %v600_v40, 16  ;;  %vm628_vm3 = vc.u32 %v620_v54, %v624_v58 }
 0x207   :  { %v630_v3 = vadd.s32 %v624_v58, %v620_v54  ;;  %v629_v8 = vsel %vm628_vm3, 1, %v4471_v32  ;;  %v603_v47 = vshrl.u32 %v599_v33, 16  ;;  %v581_v45 = vsel %vm577_vm5, %v561_v16, %v4800_v50 }
 0x208   :  { %v4862_v21 = vshrl.u32 %v489_v62, 30  ;;  %vm606_vm2 = vc.u32 %v598_v30, %v602_v2  ;;  %v608_v4 = vadd.s32 %v602_v2, %v598_v30  ;;  %v631_v12 = vadd.s32 %v629_v8, %v623_v55 }
 0x209   :  { %v607_v11 = vsel %vm606_vm2, 1, %v4471_v32  ;;  %vm632_vm8 = vc.u32 %v630_v3, %v626_v63  ;;  %v583_v14 = vsel %vm579_vm4, %v4803_v57, %v582_v13  ;;  %v625_v20 = vshrl.u32 %v621_v22, 16 }
 0x20a   :  { %v491_v10 = vshll.u32 %v4862_v21, 30  ;;  %v609_v15 = vadd.s32 %v607_v11, %v601_v1  ;;  %vm610_vm12 = vc.u32 %v608_v4, %v604_v35  ;;  %v633_v38 = vsel %vm632_vm8, 1, %v4471_v32 }
 0x20b   :  { %v611_v17 = vsel %vm610_vm12, 1, %v4471_v32  ;;  %v635_v34 = vadd.s32 %v633_v38, %v631_v12  ;;  %v605_v0 = vshrl.u32 %v600_v40, 16  ;;  %v627_v58 = vshrl.u32 %v622_v23, 16 }
 0x20c   :  { %v492_v44 = vsub.s32 %v488_v29, %v491_v10  ;;  %v613_v18 = vadd.s32 %v611_v17, %v609_v15  ;;  %v634_v33 = vadd.s32 %v630_v3, %v626_v63  ;;  %v584_v2 = vsel %vm578_vm9, %v581_v45, %v583_v14 }
 0x20d   :  { %v636_v62 = vadd.s32 %v635_v34, %v625_v20  ;;  %v638_v57 = vmul.u32 %v4751_v37, %v584_v2  ;;  %v484_v23 = vadd.s32 %v4826_v60, %v4837_v61  ;;  %vm392_vm4 = vcmp.lt.s32.totalorder %v4732_v5, 0 }
 0x20e   :  { %vm493_vm2 = vcmp.lt.s32.totalorder %v492_v44, 0  ;;  %v494_v54 = vsub.s32 0, %v492_v44  ;;  %v614_v55 = vadd.s32 %v613_v18, %v603_v47  ;;  %vm4891_vm9 = vcmp.le.f32.partialorder %v390_v7, 0.7853982 }
 0x20f   :  { %v637_v35 = vadd.s32 %v636_v62, %v627_v58  ;;  %vm547_vm8 = vcmp.lt.s32.totalorder %v4734_v6, 0 }
 0x210   :  { %v495_v30 = vsel %vm493_vm2, %v494_v54, %v492_v44  ;;  %v615_v29 = vadd.s32 %v614_v55, %v605_v0  ;;  %v514_v0 = vsub.s32 4, %v4862_v21  ;;  %vm4905_vm2 = vcmp.le.f32.partialorder %v545_v9, 0.7853982 }
 0x211   :  { %v496_v1 = vclz %v495_v30  ;;  %v641_v4 = vadd.s32 1, %v637_v35 }
 0x212   :  { %vm640_vm12 = vc.u32 %v615_v29, %v634_v33  ;;  %v515_v7 = vsel %vm392_vm4, %v514_v0, %v4862_v21 }
 0x213   :  { %v4238_v50 = vadd.s32 4294967294, %v496_v1  ;;  %v642_v22 = vsel %vm640_vm12, %v641_v4, %v637_v35  ;;  %v639_v1 = vadd.s32 %v634_v33, %v615_v29 }
 0x214   :  { %v643_v40 = vadd.s32 %v642_v22, %v638_v57 }
 0x215   :  { %vm4239_vm5 = vcmp.lt.s32.totalorder %v4238_v50, 0 }
 0x216   :  { %v499_v8 = vsel %vm4239_vm5, 0, %v4238_v50  ;;  %v644_v63 = vadd.s32 536870912, %v643_v40 }
 0x217   :  { %v500_v11 = vsub.s32 32, %v499_v8  ;;  %v504_v12 = vsub.s32 4294967266, %v499_v8  ;;  %v501_v3 = vshll.u32 %v492_v44, %v499_v8 }
 0x218   :  { %v4885_v13 = vshrl.u32 %v644_v63, 30 }
 0x219   :  { %v502_v10 = vshrl.u32 %v484_v23, %v500_v11  ;;  %v505_v49 = vadd.s32 127, %v504_v12  ;;  %v517_v23 = vsel %vm4891_vm9, 0, %v515_v7 }
 0x21a   :  { %v646_v17 = vshll.u32 %v4885_v13, 30  ;;  %v534_v29 = vadd.s32 3, %v517_v23 }
 0x21b   :  { %v503_v15 = vor.u32 %v502_v10, %v501_v3  ;;  %v506_v16 = vshll.u32 %v505_v49, 23 }
 0x21c   :  { %v647_v38 = vsub.s32 %v643_v40, %v646_v17 }
 0x21d   :  { %v507_v37 = vor.u32 4788187, %v506_v16  ;;  %v510_v18 = vcvt.s32.f32 %v503_v15 }
 0x21e   :  { %vm648_vm7 = vcmp.lt.s32.totalorder %v647_v38, 0  ;;  %v649_v34 = vsub.s32 0, %v647_v38 }
 0x21f   :  { %v508_v47 = vand.u32 2147483647, %v507_v37 }
 0x220   :  { %v650_v60 = vsel %vm648_vm7, %v649_v34, %v647_v38 }
 0x221   :  { %v511_v45 = vmul.f32 %v510_v18, %v508_v47  ;;  %v651_v14 = vclz %v650_v60  ;;  %v535_v47 = vand.u32 3, %v534_v29 }
 0x223   :  { %v512_v61 = vxor.u32 2147483648, %v511_v45  ;;  %v4241_v54 = vadd.s32 4294967294, %v651_v14  ;;  %vm537_vm12 = vcmp.eq.s32.totalorder %v535_v47, 0  ;;  %vm540_vm5 = vcmp.eq.s32.totalorder %v535_v47, 2 }
 0x224   :  { %vm536_vm7 = vcmp.lt.s32.totalorder %v535_v47, 2 }
 0x225   :  { %v513_v20 = vsel %vm392_vm4, %v512_v61, %v511_v45  ;;  %vm4242_vm3 = vcmp.lt.s32.totalorder %v4241_v54, 0  ;;  %vm533_vm4 = vweird.f32 %v4732_v5 }
 0x226   :  { %v516_v55 = vsel %vm4891_vm9, %v4732_v5, %v513_v20  ;;  %v654_v62 = vsel %vm4242_vm3, 0, %v4241_v54  ;;  %v669_v20 = vsub.s32 4, %v4885_v13 }
 0x227   :  { %v518_v58 = vmul.f32 %v516_v55, %v516_v55  ;;  %v655_v2 = vsub.s32 32, %v654_v62  ;;  %v659_v35 = vsub.s32 4294967266, %v654_v62  ;;  %v656_v57 = vshll.u32 %v647_v38, %v654_v62 }
 0x229   :  { %v526_v30 = vmul.f32 -0.00019511016, %v518_v58  ;;  %v519_v50 = vmul.f32 -0.001358992, %v518_v58  ;;  %v657_v22 = vshrl.u32 %v639_v1, %v655_v2  ;;  %v660_v8 = vadd.s32 127, %v659_v35 }
 0x22a   :  { %v670_v2 = vsel %vm547_vm8, %v669_v20, %v4885_v13 }
 0x22b   :  { %v527_v4 = vadd.f32 0.008332121, %v526_v30  ;;  %v520_v40 = vadd.f32 0.041655596, %v519_v50  ;;  %v658_v12 = vor.u32 %v657_v22, %v656_v57  ;;  %v661_v63 = vshll.u32 %v660_v8, 23 }
 0x22c   :  { %v672_v57 = vsel %vm4905_vm2, 0, %v670_v2 }
 0x22d   :  { %v528_v11 = vmul.f32 %v527_v4, %v518_v58  ;;  %v521_v3 = vmul.f32 %v520_v40, %v518_v58  ;;  %v662_v49 = vor.u32 4788187, %v661_v63  ;;  %v665_v21 = vcvt.s32.f32 %v658_v12 }
 0x22e   :  { %v689_v12 = vadd.s32 3, %v672_v57 }
 0x22f   :  { %v529_v10 = vadd.f32 -0.16666654, %v528_v11  ;;  %v522_v33 = vadd.f32 -0.4999988, %v521_v3  ;;  %v663_v16 = vand.u32 2147483647, %v662_v49 }
 0x230   :  { %v690_v29 = vand.u32 3, %v689_v12 }
 0x231   :  { %v530_v15 = vmul.f32 %v529_v10, %v518_v58  ;;  %v523_v17 = vmul.f32 %v522_v33, %v518_v58  ;;  %v666_v38 = vmul.f32 %v665_v21, %v663_v16 }
 0x232   :  { %vm692_vm9 = vcmp.eq.s32.totalorder %v690_v29, 0  ;;  %vm695_vm3 = vcmp.eq.s32.totalorder %v690_v29, 2 }
 0x233   :  { %v531_v37 = vadd.f32 1.0, %v530_v15  ;;  %v524_v18 = vadd.f32 1.0, %v523_v17  ;;  %v667_v45 = vxor.u32 2147483648, %v666_v38 }
 0x235   :  { %v532_v34 = vmul.f32 %v531_v37, %v516_v55  ;;  %v541_v60 = vxor.u32 2147483648, %v524_v18  ;;  %v668_v44 = vsel %vm547_vm8, %v667_v45, %v666_v38  ;;  %vm691_vm8 = vcmp.lt.s32.totalorder %v690_v29, 2 }
 0x236   :  { %v671_v54 = vsel %vm4905_vm2, %v4734_v6, %v668_v44  ;;  %vm688_vm2 = vweird.f32 %v4734_v6 }
 0x237   :  { %v538_v61 = vxor.u32 2147483648, %v532_v34  ;;  %v673_v0 = vmul.f32 %v671_v54, %v671_v54  ;;  %v542_v58 = vsel %vm540_vm5, %v541_v60, %v532_v34  ;;  %vm785_vm5 = vcmask 326656  }
 0x239   :  { %v539_v55 = vsel %vm537_vm12, %v524_v18, %v538_v61  ;;  %v681_v62 = vmul.f32 -0.00019511016, %v673_v0  ;;  %v674_v30 = vmul.f32 -0.001358992, %v673_v0  ;;  %vm7189_vm12 = vcmp.ge.s32.totalorder %v4648_v43, 0 }
 0x23a   :  { %v543_v9 = vsel %vm536_vm7, %v539_v55, %v542_v58  ;;  %vm7191_vm7 = vcmp.lt.s32.totalorder %v4611_v19, 2 }
 0x23b   :  { %v544_v1 = vsel %vm533_vm4, nan, %v543_v9  ;;  %v682_v7 = vadd.f32 0.008332121, %v681_v62  ;;  %v675_v50 = vadd.f32 0.041655596, %v674_v30  ;;  %vm7192_vm4 = vmmov %vm7191_vm7 }
 0x23c   :  { %v700_v35 = vmul.f32 %v544_v1, %v544_v1  ;;  %v784_v1 = vld [vmem:[%s7190_s29] sm:$0xff]  ;;  %s7202_s29 = sld [smem:[#allocation9_spill]] }
 0x23d   :  { %v683_v22 = vmul.f32 %v682_v7, %v673_v0  ;;  %v676_v8 = vmul.f32 %v675_v50, %v673_v0  ;;  %v829_v7 = vld [vmem:[%s7195_s4] sm:$0xff]  ;;  %s7203_s4 = sld [smem:[#allocation10_spill]] }
 0x23e   :  { %v702_v4 = vadd.f32 %v700_v35, %v4732_v5  ;;  %v830_v50 = vld [vmem:[%s7137_s8] sm:$0xff] }
 0x23f   :  { %v684_v23 = vadd.f32 -0.16666654, %v683_v22  ;;  %v677_v11 = vadd.f32 -0.4999988, %v676_v8 }
 0x240   :  { %v704_v40 = vmul.f32 0.1, %v702_v4 }
 0x241   :  { %v685_v3 = vmul.f32 %v684_v23, %v673_v0  ;;  %v678_v10 = vmul.f32 %v677_v11, %v673_v0 }
 0x242   :  { %v706_v63 = vmax.f32 %v704_v40, %v702_v4 }
 0x243   :  { %v686_v13 = vadd.f32 1.0, %v685_v3  ;;  %v679_v49 = vadd.f32 1.0, %v678_v10 }
 0x244   :  { %768 = vrot.lane.b32.xlu2 %v706_v63, %s4469_s2  ;;  %776 = vrot.lane.b32.xlu0 %v706_v63, %s4467_s1 }
 0x245   :  { %v687_v5 = vmul.f32 %v686_v13, %v671_v54  ;;  %v696_v33 = vxor.u32 2147483648, %v679_v49 }
 0x247   :  { %v693_v15 = vxor.u32 2147483648, %v687_v5  ;;  %v697_v21 = vsel %vm695_vm3, %v696_v33, %v687_v5  ;;  %vm7194_vm3 = vcmp.ge.s32.totalorder %v4627_v31, 0 }
 0x249   :  { %v694_v16 = vsel %vm692_vm9, %v679_v49, %v693_v15  ;;  %vm7193_vm9 = vcmp.ge.s32.totalorder %v4625_v28, 0 }
 0x24a   :  { %v698_v17 = vsel %vm691_vm8, %v694_v16, %v697_v21  ;;  %vm7196_vm8 = vcmask 228352  }
 0x24b   :  { %v699_v37 = vsel %vm688_vm2, nan, %v698_v17  ;;  %v286_v17 = vld [vmem:[%s7182_s28 + $0x8] sm:$0xff]  ;;  %vm7197_vm2 = vmmov %vm7196_vm8 }
 0x24c   :  { %v701_v38 = vmul.f32 %v699_v37, %v699_v37  ;;  %4233 = vmatmul.msk.f32.gmra.mxu0 %vm7196_vm8, %v286_v17  ;;  %4236 = vmatmul.msk.f32.gmra.mxu1 %vm7197_vm2, %v286_v17 }
 0x24e   :  { %v703_v47 = vadd.f32 %v701_v38, %v4734_v6 }
 0x250   :  { %v705_v18 = vmul.f32 0.1, %v703_v47 }
 0x252   :  { %v707_v34 = vmax.f32 %v705_v18, %v703_v47 }
 0x254   :  { %770 = vrot.lane.b32.xlu1 %v707_v34, %s4469_s2  ;;  %754 = vrot.lane.b32.xlu2 %v707_v34, %s4465_s25 }
 0x255   :  { %778 = vrot.lane.b32.xlu0 %v707_v34, %s4467_s1 }
 0x25c   :  { %861 = vperm.xlu2 %4413, %v829_v7  }
 0x25d   :  { %760 = vrot.lane.b32.xlu0 %v706_v63, %s4466_s5 }
 0x264   :  { %868 = vperm.xlu2 %4413, %v830_v50  }
 0x265   :  { %762 = vrot.lane.b32.xlu0 %v707_v34, %s4466_s5 }
 0x26d   :  { %752 = vrot.lane.b32.xlu0 %v706_v63, %s4465_s25 }
 0x29e   :  { %v769_v44 = vpop.permute.xlu2 %768 }
 0x2ae   :  { %v755_v62 = vpop.permute.xlu2 %754 }
 0x2b6   :  { %v777_v45 = vpop.permute.xlu0 %776  ;;  %v862_v21 = vpop.permute.xlu2 %861 }
 0x2c6   :  { %v771_v60 = vpop.permute.xlu1 %770 }
 0x2c7   :  { %v779_v61 = vpop.permute.xlu0 %778  ;;  %v772_v20 = vsel %vm215_vm13, %v769_v44, %v771_v60  ;;  %v773_v54 = vsel %vm215_vm13, %v771_v60, %v769_v44 }
 0x2c8   :  { %v780_v6 = vsel %vm233_vm1, %v777_v45, %v779_v61  ;;  %v781_v14 = vsel %vm233_vm1, %v779_v61, %v777_v45 }
 0x2c9   :  { %4243 = vmatpush.msk.msra.mxu2 %vm139_vm0, %v780_v6  ;;  %4248 = vmatpush.msk.msra.mxu3 %vm140_vm6, %v781_v14  ;;  %v869_v14 = vpop.permute.xlu2 %868 }
 0x2cb   :  { %4244 = vmatpush.msk.msra.mxu2 %vm131_vm14, %v772_v20  ;;  %4249 = vmatpush.msk.msra.mxu3 %vm7170_vm15, %v773_v54 }
 0x2cd   :  { %802 = vmatpush.msra.mxu2 %v706_v63  ;;  %822 = vmatpush.msra.mxu3 %v707_v34 }
 0x2cf   :  { %v761_v0 = vpop.permute.xlu0 %760 }
 0x2d7   :  { %v763_v55 = vpop.permute.xlu0 %762 }
 0x2d8   :  { %v765_v58 = vsel %vm7169_vm10, %v763_v55, %v761_v0  ;;  %v764_v9 = vsel %vm7169_vm10, %v761_v0, %v763_v55 }
 0x2d9   :  { %4245 = vmatpush.msk.msra.mxu2 %vm7168_vm11, %v765_v58  ;;  %4250 = vmatpush.msk.msra.mxu3 %vm7189_vm12, %v764_v9 }
 0x2df   :  { %v753_v30 = vpop.permute.xlu0 %752 }
 0x2e0   :  { %v757_v2 = vsel %vm7191_vm7, %v755_v62, %v753_v30  ;;  %v756_v35 = vsel %vm7192_vm4, %v753_v30, %v755_v62 }
 0x2e1   :  { %4246 = vmatpush.msk.msra.mxu2 %vm7193_vm9, %v757_v2  ;;  %4251 = vmatpush.msk.msra.mxu3 %vm7194_vm3, %v756_v35 }
 0x2e2   :  { %4247 = vmatmul.msk.f32.vlgmr.msra.gmra.mxu2 %vm785_vm5, %v784_v1  ;;  %4252 = vmatmul.msk.f32.vlgmr.msra.gmra.mxu3 %vm785_vm5, %v784_v1 }
 0x365   :  { %v806_v4 = vpop.f32.mrf.mxu2  ;;  %v826_v57 = vpop.f32.mrf.mxu3 }
 0x366   :  { %v831_v22 = vadd.f32 %v826_v57, %v806_v4  ;;  %v835_v8 = vmul.f32 %v806_v4, %v806_v4  ;;  %v836_v40 = vmul.f32 %v826_v57, %v826_v57 }
 0x368   :  { %832 = vadd.xlane.f32.xlu1 %v831_v22  ;;  %v837_v23 = vadd.f32 %v836_v40, %v835_v8 }
 0x36a   :  { %838 = vadd.xlane.f32.xlu0 %v837_v23 }
 0x3db   :  { %v833_v11 = vpop.xlane.xlu1 %832 }
 0x3dc   :  { %v834_v12 = vmul.f32 0.00390625, %v833_v11 }
 0x3dd   :  { %v839_v63 = vpop.xlane.xlu0 %838 }
 0x3de   :  { %v840_v3 = vmul.f32 0.00390625, %v839_v63  ;;  %v841_v10 = vmul.f32 %v834_v12, %v834_v12  ;;  %v844_v47 = vsub.f32 %v806_v4, %v834_v12  ;;  %v845_v18 = vsub.f32 %v826_v57, %v834_v12 }
 0x3e0   :  { %v842_v13 = vsub.f32 %v840_v3, %v841_v10 }
 0x3e2   :  { %v843_v49 = vmax.f32 %v842_v13, 0.0 }
 0x3e4   :  { %v846_v29 = vadd.f32 1e-05, %v843_v49 }
 0x3e6   :  { %4417 = vrsqrt.f32 %v846_v29  ;;  %vm853_vm5 = vweird.f32 %v846_v29 }
 0x3ec   :  { %v4418_v5 = vpop.eup %4417 }
 0x3ed   :  { %v848_v33 = vmul.f32 %v4418_v5, %v846_v29  ;;  %vm854_vm12 = vweird.f32 %v4418_v5 }
 0x3ee   :  { %vm855_vm7 = vmor %vm853_vm5, %vm854_vm12 }
 0x3ef   :  { %v849_v15 = vmul.f32 %v4418_v5, %v848_v33 }
 0x3f1   :  { %v850_v16 = vmul.f32 0.5, %v849_v15 }
 0x3f3   :  { %v851_v37 = vsub.f32 1.5, %v850_v16 }
 0x3f5   :  { %v852_v38 = vmul.f32 %v4418_v5, %v851_v37 }
 0x3f7   :  { %v856_v34 = vsel %vm855_vm7, %v4418_v5, %v852_v38 }
 0x3f8   :  { %v857_v45 = vmul.f32 %v856_v34, %v844_v47  ;;  %v858_v60 = vmul.f32 %v856_v34, %v845_v18 }
 0x3fa   :  { %v864_v61 = vmul.f32 %v862_v21, %v857_v45  ;;  %v865_v6 = vmul.f32 %v862_v21, %v858_v60 }
 0x3fc   :  { %v4978_v44 = vadd.f32 %v869_v14, %v864_v61  ;;  %v4980_v20 = vadd.f32 %v869_v14, %v865_v6 }
 0x3fe   :  { %v876_v54 = vand.u32 2139095040, %v4978_v44  ;;  %v1031_v0 = vand.u32 2139095040, %v4980_v20  ;;  %v1028_v55 = vand.u32 2147483647, %v4980_v20  ;;  %v873_v58 = vand.u32 2147483647, %v4978_v44 }
 0x400   :  { %v877_v9 = vshrl.u32 %v876_v54, 23  ;;  %v1032_v62 = vshrl.u32 %v1031_v0, 23  ;;  %v1035_v30 = vand.u32 8388607, %v1028_v55  ;;  %v880_v35 = vand.u32 8388607, %v873_v58 }
 0x402   :  { %v4253_v1 = vadd.s32 4294967169, %v877_v9  ;;  %v4256_v2 = vadd.s32 4294967169, %v1032_v62  ;;  %v1036_v7 = vor.u32 8388608, %v1035_v30  ;;  %v881_v57 = vor.u32 8388608, %v880_v35 }
 0x404   :  { %v883_v50 = vadd.s32 1, %v4253_v1  ;;  %v1038_v4 = vadd.s32 1, %v4256_v2  ;;  %v4990_v40 = vshll.u32 %v1036_v7, 8  ;;  %v4997_v63 = vshll.u32 %v881_v57, 8 }
 0x406   :  { %vm884_vm4 = vcmp.gt.s32.totalorder %v883_v50, 0  ;;  %vm1039_vm9 = vcmp.gt.s32.totalorder %v1038_v4, 0  ;;  %v1077_v13 = vand.u32 65535, %v4990_v40  ;;  %v1078_v49 = vshrl.u32 %v4990_v40, 16 }
 0x407   :  { %v885_v22 = vsel %vm884_vm4, %v883_v50, 0  ;;  %v1040_v8 = vsel %vm1039_vm9, %v1038_v4, 0 }
 0x408   :  { %v4992_v23 = vand.u32 31, %v885_v22  ;;  %v1042_v11 = vand.u32 31, %v1040_v8  ;;  %v4999_v3 = vshrl.u32 %v885_v22, 5  ;;  %v5005_v5 = vshrl.u32 %v1040_v8, 5 }
 0x40a   :  { %v4995_v12 = vsub.s32 32, %v4992_v23  ;;  %v1043_v10 = vsub.s32 32, %v1042_v11  ;;  %v1054_v33 = vshll.u32 %v4475_v52, %v1042_v11  ;;  %v1057_v15 = vshll.u32 %v4476_v56, %v1042_v11 }
 0x40b   :  { %v1045_v17 = vshll.u32 %v4472_v39, %v1042_v11  ;;  %v1048_v47 = vshll.u32 %v4473_v41, %v1042_v11  ;;  %v1051_v34 = vshll.u32 %v4474_v48, %v1042_v11  ;;  %v899_v14 = vshll.u32 %v4475_v52, %v4992_v23 }
 0x40c   :  { %v900_v29 = vshrl.u32 %v4476_v56, %v4995_v12  ;;  %v1055_v16 = vshrl.u32 %v4476_v56, %v1043_v10  ;;  %v1058_v21 = vshrl.u32 %v7171_v59, %v1043_v10  ;;  %v1046_v37 = vshrl.u32 %v4473_v41, %v1043_v10 }
 0x40d   :  { %v903_v38 = vshrl.u32 %v7171_v59, %v4995_v12  ;;  %v1049_v18 = vshrl.u32 %v4474_v48, %v1043_v10  ;;  %v1052_v6 = vshrl.u32 %v4475_v52, %v1043_v10  ;;  %v902_v54 = vshll.u32 %v4476_v56, %v4992_v23 }
 0x40e   :  { %v1056_v45 = vor.u32 %v1055_v16, %v1054_v33  ;;  %v1059_v60 = vor.u32 %v1058_v21, %v1057_v15  ;;  %v1047_v61 = vor.u32 %v1046_v37, %v1045_v17  ;;  %vm1063_vm3 = vcmp.lt.s32.totalorder %v5005_v5, 4 }
 0x40f   :  { %v1050_v0 = vor.u32 %v1049_v18, %v1048_v47  ;;  %v1053_v30 = vor.u32 %v1052_v6, %v1051_v34  ;;  %vm1060_vm8 = vcmp.lt.s32.totalorder %v5005_v5, 1  ;;  %v5025_v1 = vor.u32 %v900_v29, %v899_v14 }
 0x410   :  { %v1069_v9 = vsel %vm1063_vm3, %v1056_v45, 920167782  ;;  %v1073_v62 = vsel %vm1063_vm3, %v1059_v60, 1326507024  ;;  %v904_v2 = vor.u32 %v903_v38, %v902_v54  ;;  %vm1062_vm2 = vcmp.lt.s32.totalorder %v5005_v5, 3 }
 0x411   :  { %v1068_v35 = vsel %vm1060_vm8, %v1047_v61, %v1050_v0  ;;  %vm1061_vm12 = vcmp.lt.s32.totalorder %v5005_v5, 2  ;;  %v1070_v7 = vsel %vm1062_vm2, %v1053_v30, %v1069_v9  ;;  %v1072_v50 = vsel %vm1060_vm8, %v1050_v0, %v1053_v30 }
 0x412   :  { %v1074_v4 = vsel %vm1062_vm2, %v1056_v45, %v1073_v62  ;;  %v1044_v57 = vshrl.u32 %v4472_v39, %v1043_v10  ;;  %v1065_v22 = vsel %vm1063_vm3, %v1053_v30, 2102212464  ;;  %v1071_v8 = vsel %vm1061_vm12, %v1068_v35, %v1070_v7 }
 0x413   :  { %v1075_v11 = vsel %vm1061_vm12, %v1072_v50, %v1074_v4  ;;  %vm908_vm5 = vcmp.lt.s32.totalorder %v4999_v3, 4  ;;  %v1101_v15 = vand.u32 65535, %v1071_v8  ;;  %v1102_v17 = vshrl.u32 %v1071_v8, 16 }
 0x414   :  { %v1079_v29 = vand.u32 65535, %v1075_v11  ;;  %v1080_v33 = vshrl.u32 %v1075_v11, 16  ;;  %v914_v16 = vsel %vm908_vm5, %v5025_v1, 920167782  ;;  %v918_v21 = vsel %vm908_vm5, %v904_v2, 1326507024 }
 0x415   :  { %v1064_v10 = vsel %vm1060_vm8, %v1044_v57, %v1047_v61  ;;  %v1066_v37 = vsel %vm1062_vm2, %v1050_v0, %v1065_v22  ;;  %v890_v18 = vshll.u32 %v4472_v39, %v4992_v23  ;;  %v1104_v34 = vmul.u32 %v1102_v17, %v1077_v13 }
 0x416   :  { %v1082_v38 = vmul.u32 %v1080_v33, %v1077_v13  ;;  %v1083_v47 = vmul.u32 %v1079_v29, %v1078_v49  ;;  %v1105_v45 = vmul.u32 %v1101_v15, %v1078_v49  ;;  %v891_v60 = vshrl.u32 %v4473_v41, %v4995_v12 }
 0x417   :  { %v893_v6 = vshll.u32 %v4473_v41, %v4992_v23  ;;  %v1081_v14 = vmul.u32 %v1079_v29, %v1077_v13  ;;  %v1084_v54 = vmul.u32 %v1080_v33, %v1078_v49  ;;  %v1103_v9 = vmul.u32 %v1101_v15, %v1077_v13 }
 0x418   :  { %v1085_v61 = vshll.u32 %v1082_v38, 16  ;;  %v1086_v62 = vshrl.u32 %v1082_v38, 16  ;;  %v1087_v30 = vshll.u32 %v1083_v47, 16  ;;  %v1106_v0 = vmul.u32 %v1102_v17, %v1078_v49 }
 0x419   :  { %v1107_v2 = vshll.u32 %v1104_v34, 16  ;;  %v1109_v7 = vshll.u32 %v1105_v45, 16  ;;  %v894_v50 = vshrl.u32 %v4474_v48, %v4995_v12  ;;  %v5061_v22 = vor.u32 %v891_v60, %v890_v18 }
 0x41a   :  { %vm1089_vm7 = vc.u32 %v1081_v14, %v1085_v61  ;;  %v1091_v35 = vadd.s32 %v1085_v61, %v1081_v14  ;;  %v1088_v49 = vshrl.u32 %v1083_v47, 16  ;;  %v896_v38 = vshll.u32 %v4474_v48, %v4992_v23 }
 0x41b   :  { %v1090_v4 = vsel %vm1089_vm7, 1, %v4471_v32  ;;  %vm1111_vm4 = vc.u32 %v1103_v9, %v1107_v2  ;;  %v1113_v57 = vadd.s32 %v1107_v2, %v1103_v9  ;;  %v5064_v11 = vor.u32 %v894_v50, %v893_v6 }
 0x41c   :  { %v1092_v8 = vadd.s32 %v1090_v4, %v1084_v54  ;;  %vm1093_vm9 = vc.u32 %v1091_v35, %v1087_v30  ;;  %v1112_v13 = vsel %vm1111_vm4, 1, %v4471_v32  ;;  %v897_v18 = vshrl.u32 %v4475_v52, %v4995_v12 }
 0x41d   :  { %v1094_v29 = vsel %vm1093_vm9, 1, %v4471_v32  ;;  %v1114_v33 = vadd.s32 %v1112_v13, %v1106_v0  ;;  %vm1115_vm3 = vc.u32 %v1113_v57, %v1109_v7  ;;  %v1108_v60 = vshrl.u32 %v1104_v34, 16 }
 0x41e   :  { %v1096_v15 = vadd.s32 %v1094_v29, %v1092_v8  ;;  %v1116_v17 = vsel %vm1115_vm3, 1, %v4471_v32  ;;  %vm905_vm8 = vcmp.lt.s32.totalorder %v4999_v3, 1  ;;  %vm907_vm2 = vcmp.lt.s32.totalorder %v4999_v3, 3 }
 0x41f   :  { %v1118_v14 = vadd.s32 %v1116_v17, %v1114_v33  ;;  %v898_v6 = vor.u32 %v897_v18, %v896_v38  ;;  %v913_v54 = vsel %vm905_vm8, %v5061_v22, %v5064_v11  ;;  %v919_v23 = vsel %vm907_vm2, %v5025_v1, %v918_v21 }
 0x420   :  { %v1097_v47 = vadd.s32 %v1096_v15, %v1086_v62  ;;  %v1110_v61 = vshrl.u32 %v1105_v45, 16  ;;  %v5081_v9 = vadd.s32 %v1113_v57, %v1109_v7  ;;  %vm906_vm7 = vcmp.lt.s32.totalorder %v4999_v3, 2 }
 0x421   :  { %v1119_v34 = vadd.s32 %v1118_v14, %v1108_v60  ;;  %v915_v62 = vsel %vm907_vm2, %v898_v6, %v914_v16  ;;  %v917_v0 = vsel %vm905_vm8, %v5064_v11, %v898_v6  ;;  %v1067_v2 = vsel %vm1061_vm12, %v1064_v10, %v1066_v37 }
 0x422   :  { %v5083_v30 = vadd.s32 %v1097_v47, %v1088_v49  ;;  %v916_v1 = vsel %vm906_vm7, %v913_v54, %v915_v62  ;;  %v920_v21 = vsel %vm906_vm7, %v917_v0, %v919_v23  ;;  %v922_v45 = vand.u32 65535, %v4997_v63 }
 0x423   :  { %v1120_v35 = vadd.s32 %v1119_v34, %v1110_v61  ;;  %v923_v16 = vshrl.u32 %v4997_v63, 16  ;;  %v924_v7 = vand.u32 65535, %v920_v21  ;;  %v925_v4 = vshrl.u32 %v920_v21, 16 }
 0x424   :  { %vm1123_vm4 = vc.u32 %v5083_v30, %v5081_v9  ;;  %v946_v57 = vand.u32 65535, %v916_v1  ;;  %v947_v5 = vshrl.u32 %v916_v1, 16  ;;  %v1121_v10 = vmul.u32 %v4990_v40, %v1067_v2 }
 0x425   :  { %v1124_v50 = vadd.s32 1, %v1120_v35  ;;  %v927_v8 = vmul.u32 %v925_v4, %v922_v45  ;;  %v928_v13 = vmul.u32 %v924_v7, %v923_v16  ;;  %v926_v33 = vmul.u32 %v924_v7, %v922_v45 }
 0x426   :  { %v949_v29 = vmul.u32 %v947_v5, %v922_v45  ;;  %v950_v17 = vmul.u32 %v946_v57, %v923_v16  ;;  %v929_v18 = vmul.u32 %v925_v4, %v923_v16  ;;  %v948_v60 = vmul.u32 %v946_v57, %v922_v45 }
 0x427   :  { %v1125_v37 = vsel %vm1123_vm4, %v1124_v50, %v1120_v35  ;;  %v930_v15 = vshll.u32 %v927_v8, 16  ;;  %v932_v47 = vshll.u32 %v928_v13, 16  ;;  %v951_v23 = vmul.u32 %v947_v5, %v923_v16 }
 0x428   :  { %v1126_v49 = vadd.s32 %v1125_v37, %v1121_v10  ;;  %v952_v14 = vshll.u32 %v949_v29, 16  ;;  %v954_v0 = vshll.u32 %v950_v17, 16  ;;  %v910_v45 = vsel %vm908_vm5, %v898_v6, 2102212464 }
 0x429   :  { %vm934_vm12 = vc.u32 %v926_v33, %v930_v15  ;;  %v936_v54 = vadd.s32 %v930_v15, %v926_v33  ;;  %v931_v16 = vshrl.u32 %v927_v8, 16  ;;  %v889_v4 = vshrl.u32 %v4472_v39, %v4995_v12 }
 0x42a   :  { %v1127_v38 = vadd.s32 536870912, %v1126_v49  ;;  %v935_v40 = vsel %vm934_vm12, 1, %v4471_v32  ;;  %vm956_vm9 = vc.u32 %v948_v60, %v952_v14  ;;  %v958_v34 = vadd.s32 %v952_v14, %v948_v60 }
 0x42b   :  { %v937_v62 = vadd.s32 %v935_v40, %v929_v18  ;;  %vm938_vm3 = vc.u32 %v936_v54, %v932_v47  ;;  %v957_v2 = vsel %vm956_vm9, 1, %v4471_v32  ;;  %v933_v5 = vshrl.u32 %v928_v13, 16 }
 0x42c   :  { %v5102_v61 = vshrl.u32 %v1127_v38, 30  ;;  %v939_v1 = vsel %vm938_vm3, 1, %v4471_v32  ;;  %v959_v21 = vadd.s32 %v957_v2, %v951_v23  ;;  %vm960_vm4 = vc.u32 %v958_v34, %v954_v0 }
 0x42d   :  { %v941_v7 = vadd.s32 %v939_v1, %v937_v62  ;;  %v961_v57 = vsel %vm960_vm4, 1, %v4471_v32  ;;  %v953_v37 = vshrl.u32 %v949_v29, 16  ;;  %v909_v38 = vsel %vm905_vm8, %v889_v4, %v5061_v22 }
 0x42e   :  { %v1129_v35 = vshll.u32 %v5102_v61, 30  ;;  %v963_v33 = vadd.s32 %v961_v57, %v959_v21  ;;  %v911_v6 = vsel %vm907_vm2, %v5064_v11, %v910_v45  ;;  %v962_v60 = vadd.s32 %v958_v34, %v954_v0 }
 0x42f   :  { %v942_v10 = vadd.s32 %v941_v7, %v931_v16  ;;  %v912_v13 = vsel %vm906_vm7, %v909_v38, %v911_v6  ;;  %v1122_v11 = vadd.s32 %v5081_v9, %v5083_v30  ;;  %vm1030_vm7 = vcmp.lt.s32.totalorder %v4980_v20, 0 }
 0x430   :  { %v1130_v50 = vsub.s32 %v1126_v49, %v1129_v35  ;;  %v955_v49 = vshrl.u32 %v950_v17, 16  ;;  %v964_v18 = vadd.s32 %v963_v33, %v953_v37  ;;  %v966_v23 = vmul.u32 %v4997_v63, %v912_v13 }
 0x431   :  { %v943_v8 = vadd.s32 %v942_v10, %v933_v5  ;;  %vm5130_vm9 = vcmp.le.f32.partialorder %v1028_v55, 0.7853982  ;;  %v1152_v38 = vsub.s32 4, %v5102_v61  ;;  %vm875_vm4 = vcmp.lt.s32.totalorder %v4978_v44, 0 }
 0x432   :  { %vm1131_vm12 = vcmp.lt.s32.totalorder %v1130_v50, 0  ;;  %v1132_v15 = vsub.s32 0, %v1130_v50  ;;  %v965_v29 = vadd.s32 %v964_v18, %v955_v49 }
 0x433   :  { %vm968_vm5 = vc.u32 %v943_v8, %v962_v60  ;;  %v967_v13 = vadd.s32 %v962_v60, %v943_v8  ;;  %v1153_v55 = vsel %vm1030_vm7, %v1152_v38, %v5102_v61 }
 0x434   :  { %v1133_v12 = vsel %vm1131_vm12, %v1132_v15, %v1130_v50  ;;  %v969_v54 = vadd.s32 1, %v965_v29  ;;  %vm5144_vm12 = vcmp.le.f32.partialorder %v873_v58, 0.7853982 }
 0x435   :  { %v1134_v14 = vclz %v1133_v12 }
 0x436   :  { %v970_v22 = vsel %vm968_vm5, %v969_v54, %v965_v29 }
 0x437   :  { %v4257_v47 = vadd.s32 4294967294, %v1134_v14  ;;  %v971_v62 = vadd.s32 %v970_v22, %v966_v23 }
 0x439   :  { %vm4258_vm8 = vcmp.lt.s32.totalorder %v4257_v47, 0  ;;  %v972_v34 = vadd.s32 536870912, %v971_v62 }
 0x43a   :  { %v1137_v40 = vsel %vm4258_vm8, 0, %v4257_v47 }
 0x43b   :  { %v1138_v17 = vsub.s32 32, %v1137_v40  ;;  %v1142_v2 = vsub.s32 4294967266, %v1137_v40  ;;  %v1139_v0 = vshll.u32 %v1130_v50, %v1137_v40  ;;  %v5124_v1 = vshrl.u32 %v972_v34, 30 }
 0x43d   :  { %v1140_v35 = vshrl.u32 %v1122_v11, %v1138_v17  ;;  %v1143_v3 = vadd.s32 127, %v1142_v2  ;;  %v974_v16 = vshll.u32 %v5124_v1, 30  ;;  %v1155_v11 = vsel %vm5130_vm9, 0, %v1153_v55 }
 0x43e   :  { %v997_v38 = vsub.s32 4, %v5124_v1 }
 0x43f   :  { %v1141_v21 = vor.u32 %v1140_v35, %v1139_v0  ;;  %v1144_v45 = vshll.u32 %v1143_v3, 23  ;;  %v975_v7 = vsub.s32 %v971_v62, %v974_v16 }
 0x441   :  { %v1145_v63 = vor.u32 4788187, %v1144_v45  ;;  %v1148_v57 = vcvt.s32.f32 %v1141_v21  ;;  %vm976_vm2 = vcmp.lt.s32.totalorder %v975_v7, 0  ;;  %v977_v5 = vsub.s32 0, %v975_v7 }
 0x442   :  { %v1172_v21 = vadd.s32 3, %v1155_v11 }
 0x443   :  { %v1146_v4 = vand.u32 2147483647, %v1145_v63  ;;  %v978_v9 = vsel %vm976_vm2, %v977_v5, %v975_v7 }
 0x444   :  { %v979_v37 = vclz %v978_v9 }
 0x445   :  { %v1149_v10 = vmul.f32 %v1148_v57, %v1146_v4  ;;  %v1173_v57 = vand.u32 3, %v1172_v21 }
 0x446   :  { %v4254_v15 = vadd.s32 4294967294, %v979_v37 }
 0x447   :  { %v1150_v30 = vxor.u32 2147483648, %v1149_v10  ;;  %vm1174_vm5 = vcmp.lt.s32.totalorder %v1173_v57, 2  ;;  %vm1175_vm8 = vcmp.eq.s32.totalorder %v1173_v57, 0  ;;  %vm1178_vm2 = vcmp.eq.s32.totalorder %v1173_v57, 2 }
 0x448   :  { %vm4255_vm3 = vcmp.lt.s32.totalorder %v4254_v15, 0 }
 0x449   :  { %v1151_v33 = vsel %vm1030_vm7, %v1150_v30, %v1149_v10  ;;  %v982_v18 = vsel %vm4255_vm3, 0, %v4254_v15  ;;  %vm1171_vm7 = vweird.f32 %v4980_v20 }
 0x44a   :  { %v1154_v6 = vsel %vm5130_vm9, %v4980_v20, %v1151_v33  ;;  %v983_v29 = vsub.s32 32, %v982_v18  ;;  %v987_v47 = vsub.s32 4294967266, %v982_v18  ;;  %v984_v40 = vshll.u32 %v975_v7, %v982_v18 }
 0x44b   :  { %v1156_v49 = vmul.f32 %v1154_v6, %v1154_v6 }
 0x44c   :  { %v985_v22 = vshrl.u32 %v967_v13, %v983_v29  ;;  %v988_v62 = vadd.s32 127, %v987_v47  ;;  %v998_v29 = vsel %vm875_vm4, %v997_v38, %v5124_v1 }
 0x44d   :  { %v1157_v12 = vmul.f32 -0.001358992, %v1156_v49  ;;  %v1164_v14 = vmul.f32 -0.00019511016, %v1156_v49 }
 0x44e   :  { %v986_v34 = vor.u32 %v985_v22, %v984_v40  ;;  %v989_v0 = vshll.u32 %v988_v62, 23  ;;  %v1000_v22 = vsel %vm5144_vm12, 0, %v998_v29 }
 0x44f   :  { %v1158_v54 = vadd.f32 0.041655596, %v1157_v12  ;;  %v1165_v23 = vadd.f32 0.008332121, %v1164_v14 }
 0x450   :  { %v990_v8 = vor.u32 4788187, %v989_v0  ;;  %v993_v16 = vcvt.s32.f32 %v986_v34  ;;  %v1017_v34 = vadd.s32 3, %v1000_v22 }
 0x451   :  { %v1159_v17 = vmul.f32 %v1158_v54, %v1156_v49  ;;  %v1166_v2 = vmul.f32 %v1165_v23, %v1156_v49 }
 0x452   :  { %v991_v61 = vand.u32 2147483647, %v990_v8  ;;  %v1018_v21 = vand.u32 3, %v1017_v34 }
 0x453   :  { %v1160_v35 = vadd.f32 -0.4999988, %v1159_v17  ;;  %v1167_v3 = vadd.f32 -0.16666654, %v1166_v2 }
 0x454   :  { %v994_v7 = vmul.f32 %v993_v16, %v991_v61  ;;  %vm1020_vm9 = vcmp.eq.s32.totalorder %v1018_v21, 0  ;;  %vm1023_vm3 = vcmp.eq.s32.totalorder %v1018_v21, 2 }
 0x455   :  { %v1161_v60 = vmul.f32 %v1160_v35, %v1156_v49  ;;  %v1168_v45 = vmul.f32 %v1167_v3, %v1156_v49 }
 0x456   :  { %v995_v9 = vxor.u32 2147483648, %v994_v7 }
 0x457   :  { %v1162_v63 = vadd.f32 1.0, %v1161_v60  ;;  %v1169_v4 = vadd.f32 1.0, %v1168_v45 }
 0x458   :  { %v996_v50 = vsel %vm875_vm4, %v995_v9, %v994_v7  ;;  %vm1019_vm4 = vcmp.lt.s32.totalorder %v1018_v21, 2  ;;  %v5169_v9 = vpop.f32.mrf.mxu1 }
 0x459   :  { %v1170_v5 = vmul.f32 %v1169_v4, %v1154_v6  ;;  %v1179_v10 = vxor.u32 2147483648, %v1162_v63  ;;  %v999_v6 = vsel %vm5144_vm12, %v4978_v44, %v996_v50  ;;  %vm1016_vm12 = vweird.f32 %v4978_v44 }
 0x45a   :  { %v1001_v49 = vmul.f32 %v999_v6, %v999_v6 }
 0x45b   :  { %v1176_v30 = vxor.u32 2147483648, %v1170_v5  ;;  %v1180_v15 = vsel %vm1178_vm2, %v1179_v10, %v1170_v5  ;;  %v5167_v10 = vpop.f32.mrf.mxu0 }
 0x45c   :  { %v1002_v14 = vmul.f32 -0.001358992, %v1001_v49  ;;  %v1009_v13 = vmul.f32 -0.00019511016, %v1001_v49  ;;  %v714_v37 = vmul.f32 %v5167_v10, %v5167_v10 }
 0x45d   :  { %v1177_v33 = vsel %vm1175_vm8, %v1162_v63, %v1176_v30  ;;  %v710_v30 = vadd.f32 %v5169_v9, %v5167_v10  ;;  %vm7204_vm8 = vcmp.ge.s32.totalorder %v4648_v43, 0 }
 0x45e   :  { %v1181_v58 = vsel %vm1174_vm5, %v1177_v33, %v1180_v15  ;;  %v1003_v47 = vadd.f32 0.041655596, %v1002_v14  ;;  %v1010_v54 = vadd.f32 0.008332121, %v1009_v13  ;;  %v708_v33 = vld [vmem:[%s7202_s29] sm:$0xff]  ;;  %vm1208_vm5 = vcmask 195584  }
 0x45f   :  { %v1182_v18 = vsel %vm1171_vm7, nan, %v1181_v58  ;;  %v709_v15 = vld [vmem:[%s7203_s4] sm:$0xff] }
 0x460   :  { %v1184_v12 = vmul.f32 %v1182_v18, %v1182_v18  ;;  %v1004_v40 = vmul.f32 %v1003_v47, %v1001_v49  ;;  %v1011_v62 = vmul.f32 %v1010_v54, %v1001_v49  ;;  %v1207_v14 = vld [vmem:[%s7138_s9] sm:$0xff] }
 0x462   :  { %v1186_v55 = vadd.f32 %v1184_v12, %v4980_v20  ;;  %v1005_v17 = vadd.f32 -0.4999988, %v1004_v40  ;;  %v1012_v2 = vadd.f32 -0.16666654, %v1011_v62 }
 0x464   :  { %v1188_v23 = vmul.f32 0.1, %v1186_v55  ;;  %v1006_v0 = vmul.f32 %v1005_v17, %v1001_v49  ;;  %v1013_v35 = vmul.f32 %v1012_v2, %v1001_v49 }
 0x466   :  { %v1190_v11 = vmax.f32 %v1188_v23, %v1186_v55  ;;  %v1007_v3 = vadd.f32 1.0, %v1006_v0  ;;  %v1014_v1 = vadd.f32 1.0, %v1013_v35  ;;  %v1253_v55 = vld [vmem:[%s7140_s11] sm:$0xff] }
 0x468   :  { %1193 = vrot.lane.b32.xlu1 %v1190_v11, %s4466_s5  ;;  %v1015_v20 = vmul.f32 %v1014_v1, %v999_v6  ;;  %v1024_v8 = vxor.u32 2147483648, %v1007_v3 }
 0x46a   :  { %v1021_v60 = vxor.u32 2147483648, %v1015_v20  ;;  %v1025_v61 = vsel %vm1023_vm3, %v1024_v8, %v1015_v20 }
 0x46c   :  { %v1022_v45 = vsel %vm1020_vm9, %v1007_v3, %v1021_v60 }
 0x46d   :  { %v1026_v16 = vsel %vm1019_vm4, %v1022_v45, %v1025_v61 }
 0x46e   :  { %v1027_v63 = vsel %vm1016_vm12, nan, %v1026_v16 }
 0x46f   :  { %v1183_v4 = vmul.f32 %v1027_v63, %v1027_v63 }
 0x470   :  { %740 = vperm.xlu1 %4414, %v708_v33  }
 0x471   :  { %v1185_v57 = vadd.f32 %v1183_v4, %v4978_v44  ;;  %v715_v44 = vmul.f32 %v5169_v9, %v5169_v9 }
 0x473   :  { %v1187_v7 = vmul.f32 0.1, %v1185_v57  ;;  %v716_v50 = vadd.f32 %v715_v44, %v714_v37 }
 0x475   :  { %v1189_v5 = vmax.f32 %v1187_v7, %v1185_v57  ;;  %717 = vadd.xlane.f32.xlu0 %v716_v50 }
 0x477   :  { %1199 = vrot.lane.b32.xlu2 %v1189_v5, %s4469_s2 }
 0x478   :  { %747 = vperm.xlu1 %4414, %v709_v15  }
 0x47f   :  { %1201 = vrot.lane.b32.xlu2 %v1190_v11, %s4469_s2 }
 0x480   :  { %1291 = vperm.xlu1 %4414, %v1253_v55  }
 0x487   :  { %1191 = vrot.lane.b32.xlu2 %v1189_v5, %s4466_s5 }
 0x4b0   :  { %711 = vadd.xlane.f32.xlu2 %v710_v30 }
 0x4d1   :  { %v1200_v38 = vpop.permute.xlu2 %1199 }
 0x4d9   :  { %v1202_v6 = vpop.permute.xlu2 %1201 }
 0x4da   :  { %v1203_v58 = vsel %vm215_vm13, %v1200_v38, %v1202_v6  ;;  %v1204_v49 = vsel %vm215_vm13, %v1202_v6, %v1200_v38  ;;  %v1194_v18 = vpop.permute.xlu1 %1193 }
 0x4db   :  { %4259 = vmatpush.msk.msrb.mxu2 %vm131_vm14, %v1203_v58  ;;  %4262 = vmatpush.msk.msrb.mxu3 %vm7170_vm15, %v1204_v49 }
 0x4dd   :  { %1226 = vmatpush.msrb.mxu2 %v1189_v5  ;;  %1246 = vmatpush.msrb.mxu3 %v1190_v11  ;;  %v1252_v11 = vld [vmem:[%s7139_s10] sm:$0xff] }
 0x4e1   :  { %v1192_v12 = vpop.permute.xlu2 %1191 }
 0x4e2   :  { %v1196_v13 = vsel %vm7169_vm10, %v1194_v18, %v1192_v12  ;;  %v1195_v29 = vsel %vm7169_vm10, %v1192_v12, %v1194_v18  ;;  %v741_v44 = vpop.permute.xlu1 %740 }
 0x4e3   :  { %4260 = vmatpush.msk.msrb.mxu2 %vm7168_vm11, %v1196_v13  ;;  %4263 = vmatpush.msk.msrb.mxu3 %vm7204_vm8, %v1195_v29 }
 0x4e4   :  { %4261 = vmatmul.msk.f32.vlgmr.msrb.gmra.mxu2 %vm1208_vm5, %v1207_v14  ;;  %4264 = vmatmul.msk.f32.vlgmr.msrb.gmra.mxu3 %vm1208_vm5, %v1207_v14 }
 0x4e8   :  { %v718_v34 = vpop.xlane.xlu0 %717 }
 0x4e9   :  { %v719_v0 = vmul.f32 0.00390625, %v718_v34 }
 0x4ea   :  { %v748_v12 = vpop.permute.xlu1 %747 }
 0x523   :  { %v712_v17 = vpop.xlane.xlu2 %711 }
 0x524   :  { %v713_v2 = vmul.f32 0.00390625, %v712_v17 }
 0x526   :  { %v720_v35 = vmul.f32 %v713_v2, %v713_v2  ;;  %v723_v6 = vsub.f32 %v5167_v10, %v713_v2  ;;  %v724_v58 = vsub.f32 %v5169_v9, %v713_v2  ;;  %v1292_v2 = vpop.permute.xlu1 %1291 }
 0x528   :  { %v721_v3 = vsub.f32 %v719_v0, %v720_v35 }
 0x52a   :  { %v722_v1 = vmax.f32 %v721_v3, 0.0 }
 0x52c   :  { %v725_v21 = vadd.f32 1e-05, %v722_v1 }
 0x52e   :  { %4419 = vrsqrt.f32 %v725_v21  ;;  %vm732_vm2 = vweird.f32 %v725_v21 }
 0x534   :  { %v4420_v8 = vpop.eup %4419 }
 0x535   :  { %v727_v45 = vmul.f32 %v4420_v8, %v725_v21  ;;  %vm733_vm7 = vweird.f32 %v4420_v8 }
 0x536   :  { %vm734_vm9 = vmor %vm732_vm2, %vm733_vm7 }
 0x537   :  { %v728_v57 = vmul.f32 %v4420_v8, %v727_v45 }
 0x539   :  { %v729_v30 = vmul.f32 0.5, %v728_v57 }
 0x53b   :  { %v730_v37 = vsub.f32 1.5, %v729_v30 }
 0x53d   :  { %v731_v33 = vmul.f32 %v4420_v8, %v730_v37 }
 0x53f   :  { %v735_v49 = vsel %vm734_vm9, %v4420_v8, %v731_v33 }
 0x540   :  { %v736_v13 = vmul.f32 %v735_v49, %v723_v6  ;;  %v737_v29 = vmul.f32 %v735_v49, %v724_v58 }
 0x567   :  { %v1229_v47 = vpop.f32.mrf.mxu2  ;;  %v1249_v54 = vpop.f32.mrf.mxu3 }
 0x568   :  { %v1254_v23 = vadd.f32 %v1249_v54, %v1229_v47  ;;  %v1258_v22 = vmul.f32 %v1229_v47, %v1229_v47  ;;  %v1259_v40 = vmul.f32 %v1249_v54, %v1249_v54 }
 0x56a   :  { %1255 = vadd.xlane.f32.xlu0 %v1254_v23  ;;  %v1260_v62 = vadd.f32 %v1259_v40, %v1258_v22 }
 0x572   :  { %1261 = vadd.xlane.f32.xlu0 %v1260_v62  ;;  %v743_v62 = vmul.f32 %v741_v44, %v736_v13 }
 0x574   :  { %v750_v35 = vadd.f32 %v748_v12, %v743_v62 }
 0x586   :  { %1284 = vperm.xlu0 %4412, %v1252_v11   ;;  %v744_v11 = vmul.f32 %v741_v44, %v737_v29 }
 0x588   :  { %v751_v3 = vadd.f32 %v748_v12, %v744_v11 }
 0x5dd   :  { %v1256_v20 = vpop.xlane.xlu0 %1255 }
 0x5de   :  { %v1257_v60 = vmul.f32 0.00390625, %v1256_v20 }
 0x5e0   :  { %v1264_v16 = vmul.f32 %v1257_v60, %v1257_v60  ;;  %v1267_v23 = vsub.f32 %v1229_v47, %v1257_v60  ;;  %v1268_v22 = vsub.f32 %v1249_v54, %v1257_v60 }
 0x5e5   :  { %v1262_v61 = vpop.xlane.xlu0 %1261 }
 0x5e6   :  { %v1263_v63 = vmul.f32 0.00390625, %v1262_v61 }
 0x5e8   :  { %v1265_v4 = vsub.f32 %v1263_v63, %v1264_v16 }
 0x5ea   :  { %v1266_v7 = vmax.f32 %v1265_v4, 0.0 }
 0x5ec   :  { %v1269_v5 = vadd.f32 1e-05, %v1266_v7 }
 0x5ee   :  { %4421 = vrsqrt.f32 %v1269_v5  ;;  %vm1276_vm4 = vweird.f32 %v1269_v5 }
 0x5f4   :  { %v4422_v50 = vpop.eup %4421 }
 0x5f5   :  { %v1271_v15 = vmul.f32 %v4422_v50, %v1269_v5  ;;  %vm1277_vm3 = vweird.f32 %v4422_v50 }
 0x5f6   :  { %vm1278_vm12 = vmor %vm1276_vm4, %vm1277_vm3 }
 0x5f7   :  { %v1272_v38 = vmul.f32 %v4422_v50, %v1271_v15 }
 0x5f8   :  { %v1285_v10 = vpop.permute.xlu0 %1284 }
 0x5f9   :  { %v1273_v18 = vmul.f32 0.5, %v1272_v38 }
 0x5fb   :  { %v1274_v14 = vsub.f32 1.5, %v1273_v18 }
 0x5fd   :  { %v1275_v55 = vmul.f32 %v4422_v50, %v1274_v14 }
 0x5ff   :  { %v1279_v40 = vsel %vm1278_vm12, %v4422_v50, %v1275_v55 }
 0x600   :  { %v1280_v17 = vmul.f32 %v1279_v40, %v1267_v23  ;;  %v1281_v34 = vmul.f32 %v1279_v40, %v1268_v22 }
 0x602   :  { %v1287_v0 = vmul.f32 %v1285_v10, %v1280_v17  ;;  %v1288_v9 = vmul.f32 %v1285_v10, %v1281_v34 }
 0x604   :  { %v1294_v1 = vadd.f32 %v1292_v2, %v1287_v0  ;;  %v1295_v21 = vadd.f32 %v1292_v2, %v1288_v9 }
 0x606   :  { %v5210_v20 = vadd.f32 %v1294_v1, %v750_v35  ;;  %v5212_v8 = vadd.f32 %v1295_v21, %v751_v3 }
 0x608   :  { %v1298_v47 = vand.u32 2147483647, %v5210_v20  ;;  %v1301_v54 = vand.u32 2139095040, %v5210_v20  ;;  %v1453_v60 = vand.u32 2147483647, %v5212_v8  ;;  %v1456_v45 = vand.u32 2139095040, %v5212_v8 }
 0x60a   :  { %v1302_v61 = vshrl.u32 %v1301_v54, 23  ;;  %v1305_v16 = vand.u32 8388607, %v1298_v47  ;;  %v1457_v63 = vshrl.u32 %v1456_v45, 23  ;;  %v1460_v7 = vand.u32 8388607, %v1453_v60 }
 0x60c   :  { %v4265_v4 = vadd.s32 4294967169, %v1302_v61  ;;  %v1306_v57 = vor.u32 8388608, %v1305_v16  ;;  %v4268_v5 = vadd.s32 4294967169, %v1457_v63  ;;  %v1461_v50 = vor.u32 8388608, %v1460_v7 }
 0x60e   :  { %v1308_v30 = vadd.s32 1, %v4265_v4  ;;  %v1463_v37 = vadd.s32 1, %v4268_v5  ;;  %v5222_v44 = vshll.u32 %v1306_v57, 8  ;;  %v5227_v18 = vshll.u32 %v1461_v50, 8 }
 0x610   :  { %vm1309_vm5 = vcmp.gt.s32.totalorder %v1308_v30, 0  ;;  %vm1464_vm8 = vcmp.gt.s32.totalorder %v1463_v37, 0  ;;  %v1347_v58 = vand.u32 65535, %v5222_v44  ;;  %v1348_v29 = vshrl.u32 %v5222_v44, 16 }
 0x611   :  { %v1310_v33 = vsel %vm1309_vm5, %v1308_v30, 0  ;;  %v1465_v38 = vsel %vm1464_vm8, %v1463_v37, 0 }
 0x612   :  { %v1312_v15 = vand.u32 31, %v1310_v33  ;;  %v5225_v49 = vand.u32 31, %v1465_v38  ;;  %v5229_v12 = vshrl.u32 %v1310_v33, 5 }
 0x614   :  { %v1313_v6 = vsub.s32 32, %v1312_v15  ;;  %v1315_v14 = vshll.u32 %v4472_v39, %v1312_v15  ;;  %v1318_v13 = vshll.u32 %v4473_v41, %v1312_v15  ;;  %v1321_v22 = vshll.u32 %v4474_v48, %v1312_v15 }
 0x615   :  { %v1324_v62 = vshll.u32 %v4475_v52, %v1312_v15  ;;  %v1327_v17 = vshll.u32 %v4476_v56, %v1312_v15  ;;  %v5243_v2 = vsub.s32 32, %v5225_v49  ;;  %vm1330_vm2 = vcmp.lt.s32.totalorder %v5229_v12, 1 }
 0x616   :  { %v1316_v55 = vshrl.u32 %v4473_v41, %v1313_v6  ;;  %v1319_v23 = vshrl.u32 %v4474_v48, %v1313_v6  ;;  %v1322_v40 = vshrl.u32 %v4475_v52, %v1313_v6  ;;  %v1325_v11 = vshrl.u32 %v4476_v56, %v1313_v6 }
 0x617   :  { %v1328_v34 = vshrl.u32 %v7171_v59, %v1313_v6  ;;  %vm1331_vm7 = vcmp.lt.s32.totalorder %v5229_v12, 2  ;;  %v1314_v1 = vshrl.u32 %v4472_v39, %v1313_v6  ;;  %vm1333_vm9 = vcmp.lt.s32.totalorder %v5229_v12, 4 }
 0x618   :  { %v1317_v10 = vor.u32 %v1316_v55, %v1315_v14  ;;  %v1320_v0 = vor.u32 %v1319_v23, %v1318_v13  ;;  %v1323_v9 = vor.u32 %v1322_v40, %v1321_v22  ;;  %v1326_v35 = vor.u32 %v1325_v11, %v1324_v62 }
 0x619   :  { %v1329_v3 = vor.u32 %v1328_v34, %v1327_v17  ;;  %vm1332_vm3 = vcmp.lt.s32.totalorder %v5229_v12, 3  ;;  %v1470_v16 = vshll.u32 %v4472_v39, %v5225_v49  ;;  %v1471_v7 = vshrl.u32 %v4473_v41, %v5243_v2 }
 0x61a   :  { %v1338_v21 = vsel %vm1330_vm2, %v1317_v10, %v1320_v0  ;;  %v1342_v54 = vsel %vm1330_vm2, %v1320_v0, %v1323_v9  ;;  %v1339_v45 = vsel %vm1333_vm9, %v1326_v35, 920167782  ;;  %v1335_v63 = vsel %vm1333_vm9, %v1323_v9, 2102212464 }
 0x61b   :  { %v1343_v61 = vsel %vm1333_vm9, %v1329_v3, 1326507024  ;;  %v1340_v4 = vsel %vm1332_vm3, %v1323_v9, %v1339_v45  ;;  %v1473_v37 = vshll.u32 %v4473_v41, %v5225_v49  ;;  %v1474_v50 = vshrl.u32 %v4474_v48, %v5243_v2 }
 0x61c   :  { %v1344_v57 = vsel %vm1332_vm3, %v1326_v35, %v1343_v61  ;;  %v1341_v5 = vsel %vm1331_vm7, %v1338_v21, %v1340_v4  ;;  %v1334_v13 = vsel %vm1330_vm2, %v1314_v1, %v1317_v10  ;;  %v1336_v55 = vsel %vm1332_vm3, %v1320_v0, %v1335_v63 }
 0x61d   :  { %v1345_v30 = vsel %vm1331_vm7, %v1342_v54, %v1344_v57  ;;  %v1371_v6 = vand.u32 65535, %v1341_v5  ;;  %v1372_v14 = vshrl.u32 %v1341_v5, 16  ;;  %v5274_v23 = vshrl.u32 %v1465_v38, 5 }
 0x61e   :  { %v1349_v33 = vand.u32 65535, %v1345_v30  ;;  %v1350_v15 = vshrl.u32 %v1345_v30, 16  ;;  %v5276_v22 = vor.u32 %v1471_v7, %v1470_v16  ;;  %v5278_v11 = vor.u32 %v1474_v50, %v1473_v37 }
 0x61f   :  { %v1477_v17 = vshrl.u32 %v4475_v52, %v5243_v2  ;;  %v1374_v9 = vmul.u32 %v1372_v14, %v1347_v58  ;;  %v1375_v35 = vmul.u32 %v1371_v6, %v1348_v29  ;;  %v1476_v10 = vshll.u32 %v4474_v48, %v5225_v49 }
 0x620   :  { %v1352_v40 = vmul.u32 %v1350_v15, %v1347_v58  ;;  %v1353_v62 = vmul.u32 %v1349_v33, %v1348_v29  ;;  %v1351_v34 = vmul.u32 %v1349_v33, %v1347_v58  ;;  %v1354_v3 = vmul.u32 %v1350_v15, %v1348_v29 }
 0x621   :  { %v1373_v0 = vmul.u32 %v1371_v6, %v1347_v58  ;;  %v1376_v38 = vmul.u32 %v1372_v14, %v1348_v29  ;;  %v1377_v61 = vshll.u32 %v1374_v9, 16  ;;  %v1379_v63 = vshll.u32 %v1375_v35, 16 }
 0x622   :  { %v1355_v1 = vshll.u32 %v1352_v40, 16  ;;  %v1356_v21 = vshrl.u32 %v1352_v40, 16  ;;  %v1357_v54 = vshll.u32 %v1353_v62, 16  ;;  %v1358_v45 = vshrl.u32 %v1353_v62, 16 }
 0x623   :  { %v5284_v4 = vor.u32 %v1477_v17, %v1476_v10  ;;  %vm1381_vm12 = vc.u32 %v1373_v0, %v1377_v61  ;;  %v1383_v7 = vadd.s32 %v1377_v61, %v1373_v0  ;;  %v1480_v5 = vshrl.u32 %v4476_v56, %v5243_v2 }
 0x624   :  { %vm1359_vm4 = vc.u32 %v1351_v34, %v1355_v1  ;;  %v1361_v16 = vadd.s32 %v1355_v1, %v1351_v34  ;;  %v1382_v58 = vsel %vm1381_vm12, 1, %v4471_v32  ;;  %v1479_v29 = vshll.u32 %v4475_v52, %v5225_v49 }
 0x625   :  { %v1360_v57 = vsel %vm1359_vm4, 1, %v4471_v32  ;;  %v1384_v50 = vadd.s32 %v1382_v58, %v1376_v38  ;;  %vm1385_vm8 = vc.u32 %v1383_v7, %v1379_v63  ;;  %v1482_v33 = vshll.u32 %v4476_v56, %v5225_v49 }
 0x626   :  { %v1362_v30 = vadd.s32 %v1360_v57, %v1354_v3  ;;  %vm1363_vm5 = vc.u32 %v1361_v16, %v1357_v54  ;;  %v1386_v6 = vsel %vm1385_vm8, 1, %v4471_v32  ;;  %v1481_v14 = vor.u32 %v1480_v5, %v1479_v29 }
 0x627   :  { %v1364_v37 = vsel %vm1363_vm5, 1, %v4471_v32  ;;  %v1483_v40 = vshrl.u32 %v7171_v59, %v5243_v2  ;;  %v1378_v62 = vshrl.u32 %v1374_v9, 16  ;;  %v1380_v17 = vshrl.u32 %v1375_v35, 16 }
 0x628   :  { %v1366_v15 = vadd.s32 %v1364_v37, %v1362_v30  ;;  %v5298_v34 = vadd.s32 %v1383_v7, %v1379_v63  ;;  %v1388_v10 = vadd.s32 %v1386_v6, %v1384_v50  ;;  %vm1485_vm2 = vcmp.lt.s32.totalorder %v5274_v23, 1 }
 0x629   :  { %v1484_v1 = vor.u32 %v1483_v40, %v1482_v33  ;;  %vm1488_vm9 = vcmp.lt.s32.totalorder %v5274_v23, 4  ;;  %vm1487_vm3 = vcmp.lt.s32.totalorder %v5274_v23, 3  ;;  %v1493_v49 = vsel %vm1485_vm2, %v5276_v22, %v5278_v11 }
 0x62a   :  { %v1367_v3 = vadd.s32 %v1366_v15, %v1356_v21  ;;  %v1389_v0 = vadd.s32 %v1388_v10, %v1378_v62  ;;  %v1494_v9 = vsel %vm1488_vm9, %v1481_v14, 920167782  ;;  %vm1486_vm4 = vcmp.lt.s32.totalorder %v5274_v23, 2 }
 0x62b   :  { %v1495_v38 = vsel %vm1487_vm3, %v5284_v4, %v1494_v9  ;;  %v1497_v21 = vsel %vm1485_vm2, %v5278_v11, %v5284_v4  ;;  %v1337_v54 = vsel %vm1331_vm7, %v1334_v13, %v1336_v55  ;;  %v1502_v57 = vand.u32 65535, %v5227_v18 }
 0x62c   :  { %v5309_v35 = vadd.s32 %v1367_v3, %v1358_v45  ;;  %v1390_v61 = vadd.s32 %v1389_v0, %v1380_v17  ;;  %v1496_v16 = vsel %vm1486_vm4, %v1493_v49, %v1495_v38  ;;  %v1498_v45 = vsel %vm1488_vm9, %v1484_v1, 1326507024 }
 0x62d   :  { %v1499_v63 = vsel %vm1487_vm3, %v1481_v14, %v1498_v45  ;;  %v1526_v7 = vand.u32 65535, %v1496_v16  ;;  %v1503_v13 = vshrl.u32 %v5227_v18, 16  ;;  %v1527_v55 = vshrl.u32 %v1496_v16, 16 }
 0x62e   :  { %vm1393_vm12 = vc.u32 %v5309_v35, %v5298_v34  ;;  %v1394_v5 = vadd.s32 1, %v1390_v61  ;;  %v1500_v12 = vsel %vm1486_vm4, %v1497_v21, %v1499_v63  ;;  %v1391_v30 = vmul.u32 %v5222_v44, %v1337_v54 }
 0x62f   :  { %v1504_v58 = vand.u32 65535, %v1500_v12  ;;  %v1505_v29 = vshrl.u32 %v1500_v12, 16  ;;  %v1529_v50 = vmul.u32 %v1527_v55, %v1502_v57  ;;  %v1530_v33 = vmul.u32 %v1526_v7, %v1503_v13 }
 0x630   :  { %v1395_v37 = vsel %vm1393_vm12, %v1394_v5, %v1390_v61  ;;  %v1528_v40 = vmul.u32 %v1526_v7, %v1502_v57  ;;  %v1531_v62 = vmul.u32 %v1527_v55, %v1503_v13  ;;  %v1490_v63 = vsel %vm1488_vm9, %v5284_v4, 2102212464 }
 0x631   :  { %v1396_v15 = vadd.s32 %v1395_v37, %v1391_v30  ;;  %v1507_v6 = vmul.u32 %v1505_v29, %v1502_v57  ;;  %v1508_v14 = vmul.u32 %v1504_v58, %v1503_v13  ;;  %v1532_v17 = vshll.u32 %v1529_v50, 16 }
 0x632   :  { %v1506_v3 = vmul.u32 %v1504_v58, %v1502_v57  ;;  %v1509_v1 = vmul.u32 %v1505_v29, %v1503_v13  ;;  %v1534_v9 = vshll.u32 %v1530_v33, 16  ;;  %v1469_v7 = vshrl.u32 %v4472_v39, %v5243_v2 }
 0x633   :  { %v1397_v10 = vadd.s32 536870912, %v1396_v15  ;;  %v1510_v0 = vshll.u32 %v1507_v6, 16  ;;  %v1512_v49 = vshll.u32 %v1508_v14, 16  ;;  %vm1536_vm7 = vc.u32 %v1528_v40, %v1532_v17 }
 0x634   :  { %v1538_v38 = vadd.s32 %v1532_v17, %v1528_v40  ;;  %v1537_v54 = vsel %vm1536_vm7, 1, %v4471_v32  ;;  %v1511_v55 = vshrl.u32 %v1507_v6, 16  ;;  %v1489_v29 = vsel %vm1485_vm2, %v1469_v7, %v5276_v22 }
 0x635   :  { %v5334_v44 = vshrl.u32 %v1397_v10, 30  ;;  %vm1514_vm5 = vc.u32 %v1506_v3, %v1510_v0  ;;  %v1516_v21 = vadd.s32 %v1510_v0, %v1506_v3  ;;  %v1539_v16 = vadd.s32 %v1537_v54, %v1531_v62 }
 0x636   :  { %v1515_v61 = vsel %vm1514_vm5, 1, %v4471_v32  ;;  %vm1540_vm8 = vc.u32 %v1538_v38, %v1534_v9  ;;  %v1491_v4 = vsel %vm1487_vm3, %v5278_v11, %v1490_v63  ;;  %v1533_v37 = vshrl.u32 %v1529_v50, 16 }
 0x637   :  { %v1399_v45 = vshll.u32 %v5334_v44, 30  ;;  %v1517_v57 = vadd.s32 %v1515_v61, %v1509_v1  ;;  %vm1518_vm12 = vc.u32 %v1516_v21, %v1512_v49  ;;  %v1541_v12 = vsel %vm1540_vm8, 1, %v4471_v32 }
 0x638   :  { %v1519_v5 = vsel %vm1518_vm12, 1, %v4471_v32  ;;  %v1543_v58 = vadd.s32 %v1541_v12, %v1539_v16  ;;  %v1513_v2 = vshrl.u32 %v1508_v14, 16  ;;  %v1535_v17 = vshrl.u32 %v1530_v33, 16 }
 0x639   :  { %v1400_v13 = vsub.s32 %v1396_v15, %v1399_v45  ;;  %v1521_v30 = vadd.s32 %v1519_v5, %v1517_v57  ;;  %v1492_v1 = vsel %vm1486_vm4, %v1489_v29, %v1491_v4  ;;  %v1542_v0 = vadd.s32 %v1538_v38, %v1534_v9 }
 0x63a   :  { %v1544_v10 = vadd.s32 %v1543_v58, %v1533_v37  ;;  %v1546_v11 = vmul.u32 %v5227_v18, %v1492_v1  ;;  %v1392_v33 = vadd.s32 %v5298_v34, %v5309_v35  ;;  %vm1300_vm7 = vcmp.lt.s32.totalorder %v5210_v20, 0 }
 0x63b   :  { %vm1401_vm9 = vcmp.lt.s32.totalorder %v1400_v13, 0  ;;  %v1402_v40 = vsub.s32 0, %v1400_v13  ;;  %v1522_v62 = vadd.s32 %v1521_v30, %v1511_v55  ;;  %vm5363_vm5 = vcmp.le.f32.partialorder %v1298_v47, 0.7853982 }
 0x63c   :  { %v1545_v49 = vadd.s32 %v1544_v10, %v1535_v17  ;;  %vm5376_vm12 = vcmp.le.f32.partialorder %v1453_v60, 0.7853982 }
 0x63d   :  { %v1403_v3 = vsel %vm1401_vm9, %v1402_v40, %v1400_v13  ;;  %v1523_v15 = vadd.s32 %v1522_v62, %v1513_v2  ;;  %v1422_v2 = vsub.s32 4, %v5334_v44  ;;  %vm1455_vm9 = vcmp.lt.s32.totalorder %v5212_v8, 0 }
 0x63e   :  { %v1404_v6 = vclz %v1403_v3  ;;  %v1549_v21 = vadd.s32 1, %v1545_v49 }
 0x63f   :  { %vm1548_vm2 = vc.u32 %v1523_v15, %v1542_v0  ;;  %v1547_v1 = vadd.s32 %v1542_v0, %v1523_v15  ;;  %v1423_v47 = vsel %vm1300_vm7, %v1422_v2, %v5334_v44 }
 0x640   :  { %v4266_v22 = vadd.s32 4294967294, %v1404_v6  ;;  %v1550_v50 = vsel %vm1548_vm2, %v1549_v21, %v1545_v49 }
 0x641   :  { %v1551_v14 = vadd.s32 %v1550_v50, %v1546_v11 }
 0x642   :  { %vm4267_vm3 = vcmp.lt.s32.totalorder %v4266_v22, 0 }
 0x643   :  { %v1407_v54 = vsel %vm4267_vm3, 0, %v4266_v22  ;;  %v1552_v45 = vadd.s32 536870912, %v1551_v14 }
 0x644   :  { %v1408_v61 = vsub.s32 32, %v1407_v54  ;;  %v1412_v16 = vsub.s32 4294967266, %v1407_v54  ;;  %v1409_v63 = vshll.u32 %v1400_v13, %v1407_v54 }
 0x645   :  { %v5357_v9 = vshrl.u32 %v1552_v45, 30 }
 0x646   :  { %v1410_v23 = vshrl.u32 %v1392_v33, %v1408_v61  ;;  %v1413_v57 = vadd.s32 127, %v1412_v16  ;;  %v1425_v33 = vsel %vm5363_vm5, 0, %v1423_v47 }
 0x647   :  { %v1554_v5 = vshll.u32 %v5357_v9, 30  ;;  %v1577_v2 = vsub.s32 4, %v5357_v9 }
 0x648   :  { %v1411_v38 = vor.u32 %v1410_v23, %v1409_v63  ;;  %v1414_v7 = vshll.u32 %v1413_v57, 23 }
 0x649   :  { %v1555_v12 = vsub.s32 %v1551_v14, %v1554_v5 }
 0x64a   :  { %v1415_v18 = vor.u32 4788187, %v1414_v7  ;;  %v1418_v30 = vcvt.s32.f32 %v1411_v38  ;;  %v1442_v38 = vadd.s32 3, %v1425_v33 }
 0x64b   :  { %vm1556_vm4 = vcmp.lt.s32.totalorder %v1555_v12, 0  ;;  %v1557_v58 = vsub.s32 0, %v1555_v12 }
 0x64c   :  { %v1416_v55 = vand.u32 2147483647, %v1415_v18 }
 0x64d   :  { %v1558_v34 = vsel %vm1556_vm4, %v1557_v58, %v1555_v12 }
 0x64e   :  { %v1419_v29 = vmul.f32 %v1418_v30, %v1416_v55  ;;  %v1559_v4 = vclz %v1558_v34  ;;  %v1443_v30 = vand.u32 3, %v1442_v38 }
 0x650   :  { %v1420_v35 = vxor.u32 2147483648, %v1419_v29  ;;  %v4269_v40 = vadd.s32 4294967294, %v1559_v4  ;;  %vm1444_vm2 = vcmp.lt.s32.totalorder %v1443_v30, 2  ;;  %vm1445_vm3 = vcmp.eq.s32.totalorder %v1443_v30, 0 }
 0x651   :  { %vm1448_vm4 = vcmp.eq.s32.totalorder %v1443_v30, 2 }
 0x652   :  { %v1421_v37 = vsel %vm1300_vm7, %v1420_v35, %v1419_v29  ;;  %vm4270_vm8 = vcmp.lt.s32.totalorder %v4269_v40, 0  ;;  %vm1441_vm7 = vweird.f32 %v5210_v20 }
 0x653   :  { %v1424_v62 = vsel %vm5363_vm5, %v5210_v20, %v1421_v37  ;;  %v1562_v10 = vsel %vm4270_vm8, 0, %v4269_v40 }
 0x654   :  { %v1426_v17 = vmul.f32 %v1424_v62, %v1424_v62  ;;  %v1563_v49 = vsub.s32 32, %v1562_v10  ;;  %v1567_v22 = vsub.s32 4294967266, %v1562_v10  ;;  %v1564_v54 = vshll.u32 %v1555_v12, %v1562_v10 }
 0x656   :  { %v1427_v3 = vmul.f32 -0.001358992, %v1426_v17  ;;  %v1434_v6 = vmul.f32 -0.00019511016, %v1426_v17  ;;  %v1565_v50 = vshrl.u32 %v1547_v1, %v1563_v49  ;;  %v1568_v14 = vadd.s32 127, %v1567_v22 }
 0x657   :  { %v1578_v49 = vsel %vm1455_vm9, %v1577_v2, %v5357_v9 }
 0x658   :  { %v1428_v21 = vadd.f32 0.041655596, %v1427_v3  ;;  %v1435_v11 = vadd.f32 0.008332121, %v1434_v6  ;;  %v1566_v45 = vor.u32 %v1565_v50, %v1564_v54  ;;  %v1569_v63 = vshll.u32 %v1568_v14, 23 }
 0x65a   :  { %v1429_v61 = vmul.f32 %v1428_v21, %v1426_v17  ;;  %v1436_v16 = vmul.f32 %v1435_v11, %v1426_v17  ;;  %v1570_v15 = vor.u32 4788187, %v1569_v63  ;;  %v1573_v5 = vcvt.s32.f32 %v1566_v45 }
 0x65b   :  { %v1580_v11 = vsel %vm5376_vm12, 0, %v1578_v49 }
 0x65c   :  { %v1430_v23 = vadd.f32 -0.4999988, %v1429_v61  ;;  %v1437_v57 = vadd.f32 -0.16666654, %v1436_v16  ;;  %v1571_v44 = vand.u32 2147483647, %v1570_v15 }
 0x65d   :  { %v1597_v45 = vadd.s32 3, %v1580_v11 }
 0x65e   :  { %v1431_v0 = vmul.f32 %v1430_v23, %v1426_v17  ;;  %v1438_v7 = vmul.f32 %v1437_v57, %v1426_v17  ;;  %v1574_v12 = vmul.f32 %v1573_v5, %v1571_v44 }
 0x65f   :  { %v1598_v38 = vand.u32 3, %v1597_v45 }
 0x660   :  { %v1432_v18 = vadd.f32 1.0, %v1431_v0  ;;  %v1439_v55 = vadd.f32 1.0, %v1438_v7  ;;  %v1575_v34 = vxor.u32 2147483648, %v1574_v12 }
 0x661   :  { %vm1600_vm5 = vcmp.eq.s32.totalorder %v1598_v38, 0  ;;  %vm1603_vm8 = vcmp.eq.s32.totalorder %v1598_v38, 2 }
 0x662   :  { %v1440_v58 = vmul.f32 %v1439_v55, %v1424_v62  ;;  %v1449_v29 = vxor.u32 2147483648, %v1432_v18  ;;  %v1576_v13 = vsel %vm1455_vm9, %v1575_v34, %v1574_v12  ;;  %vm1596_vm9 = vweird.f32 %v5212_v8 }
 0x663   :  { %v1579_v62 = vsel %vm5376_vm12, %v5212_v8, %v1576_v13  ;;  %vm1599_vm12 = vcmp.lt.s32.totalorder %v1598_v38, 2 }
 0x664   :  { %v1446_v35 = vxor.u32 2147483648, %v1440_v58  ;;  %v1450_v40 = vsel %vm1448_vm4, %v1449_v29, %v1440_v58  ;;  %v1581_v17 = vmul.f32 %v1579_v62, %v1579_v62  ;;  %v1740_v29 = vld [vmem:[%s7142_s13 + $0x8] sm:$0xff]  ;;  %vm7211_vm4 = vcmp.lt.s32.totalorder %v4618_v25, 128 }
 0x666   :  { %v1447_v37 = vsel %vm1445_vm3, %v1432_v18, %v1446_v35  ;;  %v1582_v3 = vmul.f32 -0.001358992, %v1581_v17  ;;  %v1589_v6 = vmul.f32 -0.00019511016, %v1581_v17 }
 0x667   :  { %v1451_v60 = vsel %vm1444_vm2, %v1447_v37, %v1450_v40  ;;  %vm7209_vm2 = vcmp.lt.s32.totalorder %v4611_v19, 125 }
 0x668   :  { %v1452_v10 = vsel %vm1441_vm7, nan, %v1451_v60  ;;  %v1583_v47 = vadd.f32 0.041655596, %v1582_v3  ;;  %v1590_v22 = vadd.f32 0.008332121, %v1589_v6  ;;  %vm7210_vm3 = vmmov %vm7209_vm2  ;;  %vm7212_vm7 = vcmp.lt.s32.totalorder %v4620_v26, 128 }
 0x669   :  { %v1608_v1 = vmul.f32 %v1452_v10, %v1452_v10 }
 0x66a   :  { %v1584_v50 = vmul.f32 %v1583_v47, %v1581_v17  ;;  %v1591_v54 = vmul.f32 %v1590_v22, %v1581_v17 }
 0x66b   :  { %v1610_v21 = vadd.f32 %v1608_v1, %v5210_v20 }
 0x66c   :  { %v1585_v33 = vadd.f32 -0.4999988, %v1584_v50  ;;  %v1592_v61 = vadd.f32 -0.16666654, %v1591_v54  ;;  %v1664_v50 = vld [vmem:[%s7141_s12] sm:$0xff] }
 0x66d   :  { %v1612_v14 = vmul.f32 0.1, %v1610_v21 }
 0x66e   :  { %v1586_v63 = vmul.f32 %v1585_v33, %v1581_v17  ;;  %v1593_v23 = vmul.f32 %v1592_v61, %v1581_v17  ;;  %v1665_v33 = vld [vmem:[%s7141_s12 + $0x8] sm:$0xff] }
 0x66f   :  { %v1614_v16 = vmax.f32 %v1612_v14, %v1610_v21 }
 0x670   :  { %v1587_v9 = vadd.f32 1.0, %v1586_v63  ;;  %v1594_v57 = vadd.f32 1.0, %v1593_v23 }
 0x671   :  { %1648 = vrot.lane.b32.xlu1 %v1614_v16, %s4467_s1  ;;  %1656 = vrot.lane.b32.xlu2 %v1614_v16, %s4468_s26 }
 0x672   :  { %v1595_v20 = vmul.f32 %v1594_v57, %v1579_v62  ;;  %v1604_v15 = vxor.u32 2147483648, %v1587_v9 }
 0x674   :  { %v1601_v0 = vxor.u32 2147483648, %v1595_v20  ;;  %v1605_v44 = vsel %vm1603_vm8, %v1604_v15, %v1595_v20  ;;  %vm7214_vm8 = vcmp.lt.s32.totalorder %v4611_v19, 2 }
 0x676   :  { %v1602_v7 = vsel %vm1600_vm5, %v1587_v9, %v1601_v0  ;;  %vm7213_vm5 = vcmp.ge.s32.totalorder %v4648_v43, 0  ;;  %v1741_v0 = vld [vmem:[%s7143_s14] sm:$0xff] }
 0x677   :  { %v1606_v5 = vsel %vm1599_vm12, %v1602_v7, %v1605_v44  ;;  %vm7215_vm12 = vmmov %vm7214_vm8  ;;  %v1739_v7 = vld [vmem:[%s7142_s13] sm:$0xff]  ;;  %v1742_v44 = vld [vmem:[%s7143_s14 + $0x8] sm:$0xff] }
 0x678   :  { %v1607_v18 = vsel %vm1596_vm9, nan, %v1606_v5  ;;  %vm7216_vm9 = vcmp.ge.s32.totalorder %v4625_v28, 0 }
 0x679   :  { %1640 = vrot.lane.b32.xlu1 %v1614_v16, %s4469_s2  ;;  %v1609_v55 = vmul.f32 %v1607_v18, %v1607_v18 }
 0x67b   :  { %v1611_v30 = vadd.f32 %v1609_v55, %v5212_v8 }
 0x67d   :  { %v1613_v12 = vmul.f32 0.1, %v1611_v30 }
 0x67f   :  { %v1615_v58 = vmax.f32 %v1613_v12, %v1611_v30 }
 0x681   :  { %1632 = vrot.lane.b32.xlu1 %v1614_v16, %s4466_s5  ;;  %1658 = vrot.lane.b32.xlu0 %v1615_v58, %s4468_s26  ;;  %s4219_s26 = sshll.u32 %s7152_s23, 4  ;;  %s4220_s26 = int_to_ptr.hbm [resolvable:$true] %s4219_s26 }
 0x682   :  { %1634 = vrot.lane.b32.xlu2 %v1615_v58, %s4466_s5 }
 0x689   :  { %1626 = vrot.lane.b32.xlu1 %v1615_v58, %s4465_s25  ;;  %1650 = vrot.lane.b32.xlu0 %v1615_v58, %s4467_s1 }
 0x68a   :  { %1616 = vrot.lane.b32.xlu2 %v1614_v16, %s4470_s6 }
 0x691   :  { %1642 = vrot.lane.b32.xlu0 %v1615_v58, %s4469_s2 }
 0x692   :  { %1806 = vperm.xlu2 %4413, %v1740_v29  }
 0x699   :  { %1624 = vrot.lane.b32.xlu0 %v1614_v16, %s4465_s25 }
 0x6a1   :  { %1618 = vrot.lane.b32.xlu0 %v1615_v58, %s4470_s6  ;;  %s4479_s6 = smov 256  }
 0x6cb   :  { %v1657_v34 = vpop.permute.xlu2 %1656 }
 0x6dc   :  { %v1635_v10 = vpop.permute.xlu2 %1634 }
 0x6e3   :  { %v1649_v8 = vpop.permute.xlu1 %1648 }
 0x6e4   :  { %v1617_v21 = vpop.permute.xlu2 %1616 }
 0x6eb   :  { %v1641_v37 = vpop.permute.xlu1 %1640 }
 0x6ec   :  { %v5488_v5 = vpop.permute.xlu2 %1806 }
 0x6f3   :  { %v1659_v35 = vpop.permute.xlu0 %1658  ;;  %v1633_v60 = vpop.permute.xlu1 %1632 }
 0x6f4   :  { %v1660_v4 = vsel %vm7209_vm2, %v1657_v34, %v1659_v35  ;;  %v1661_v13 = vsel %vm7210_vm3, %v1659_v35, %v1657_v34  ;;  %v1637_v3 = vsel %vm7169_vm10, %v1635_v10, %v1633_v60  ;;  %v1636_v6 = vsel %vm7169_vm10, %v1633_v60, %v1635_v10 }
 0x6f5   :  { %4271 = vmatpush.msk.msrb.mxu0 %vm7211_vm4, %v1660_v4  ;;  %4281 = vmatpush.msk.msrb.mxu1 %vm7212_vm7, %v1661_v13  ;;  %vm7217_vm2 = vcmp.ge.s32.totalorder %v4627_v31, 0  ;;  %vm7167_vm3 = vcmask 457728   ;;  %vm7218_vm4 = vcmp.lt.s32.totalorder %v4611_v19, 3 }
 0x6f6   :  { %vm7219_vm7 = vmmov %vm7218_vm4 }
 0x6fb   :  { %v1651_v40 = vpop.permute.xlu0 %1650  ;;  %v1627_v1 = vpop.permute.xlu1 %1626 }
 0x6fc   :  { %v1652_v2 = vsel %vm233_vm1, %v1649_v8, %v1651_v40  ;;  %v1653_v62 = vsel %vm233_vm1, %v1651_v40, %v1649_v8 }
 0x6fd   :  { %4272 = vmatpush.msk.msrb.mxu0 %vm139_vm0, %v1652_v2  ;;  %4282 = vmatpush.msk.msrb.mxu1 %vm140_vm6, %v1653_v62 }
 0x703   :  { %v1643_v25 = vpop.permute.xlu0 %1642 }
 0x704   :  { %v1644_v26 = vsel %vm215_vm13, %v1641_v37, %v1643_v25  ;;  %v1645_v17 = vsel %vm215_vm13, %v1643_v25, %v1641_v37 }
 0x705   :  { %4273 = vmatpush.msk.msrb.mxu0 %vm131_vm14, %v1644_v26  ;;  %4283 = vmatpush.msk.msrb.mxu1 %vm7170_vm15, %v1645_v17 }
 0x707   :  { %1693 = vmatpush.msrb.mxu0 %v1614_v16  ;;  %1722 = vmatpush.msrb.mxu1 %v1615_v58 }
 0x709   :  { %4274 = vmatpush.msk.msrb.mxu0 %vm7168_vm11, %v1637_v3  ;;  %4284 = vmatpush.msk.msrb.mxu1 %vm7213_vm5, %v1636_v6  ;;  %vm7220_vm5 = vcmp.ge.s32.totalorder %v4668_v51, 0 }
 0x70b   :  { %v1625_v49 = vpop.permute.xlu0 %1624 }
 0x70c   :  { %v1629_v47 = vsel %vm7214_vm8, %v1627_v1, %v1625_v49  ;;  %v1628_v22 = vsel %vm7215_vm12, %v1625_v49, %v1627_v1  ;;  %vm7221_vm8 = vcmp.ge.s32.totalorder %v4672_v53, 0 }
 0x70d   :  { %4275 = vmatpush.msk.msrb.mxu0 %vm7216_vm9, %v1629_v47  ;;  %4285 = vmatpush.msk.msrb.mxu1 %vm7217_vm2, %v1628_v22 }
 0x713   :  { %v1619_v11 = vpop.permute.xlu0 %1618 }
 0x714   :  { %v1621_v54 = vsel %vm7218_vm4, %v1619_v11, %v1617_v21  ;;  %v1620_v14 = vsel %vm7219_vm7, %v1617_v21, %v1619_v11 }
 0x715   :  { %4276 = vmatpush.msk.msrb.mxu0 %vm7220_vm5, %v1621_v54  ;;  %4286 = vmatpush.msk.msrb.mxu1 %vm7221_vm8, %v1620_v14 }
 0x716   :  { %4277 = vmatmul.msk.f32.vlgmr.msrb.gmra.mxu0 %vm7167_vm3, %v1664_v50  ;;  %4287 = vmatmul.msk.f32.vlgmr.msrb.gmra.mxu1 %vm7167_vm3, %v1664_v50 }
 0x71e   :  { %4278 = vmatmul.msk.f32.gmra.mxu0 %vm7167_vm3, %v1665_v33  ;;  %4288 = vmatmul.msk.f32.gmra.mxu1 %vm7167_vm3, %v1665_v33 }
 0x793   :  { %v1698_v61 = vpop.f32.mrf.mxu0  ;;  %v1727_v16 = vpop.f32.mrf.mxu1 }
 0x794   :  { %v1743_v45 = vadd.f32 %v1727_v16, %v1698_v61  ;;  %v1751_v51 = vmul.f32 %v1698_v61, %v1698_v61  ;;  %v1752_v63 = vmul.f32 %v1727_v16, %v1727_v16 }
 0x796   :  { %1744 = vadd.xlane.f32.xlu2 %v1743_v45  ;;  %v1755_v53 = vadd.f32 %v1752_v63, %v1751_v51 }
 0x798   :  { %1756 = vadd.xlane.f32.xlu1 %v1755_v53 }
 0x79b   :  { %v5469_v23 = vpop.f32.mrf.mxu0  ;;  %v5471_v9 = vpop.f32.mrf.mxu1 }
 0x79c   :  { %v1753_v57 = vmul.f32 %v5469_v23, %v5469_v23  ;;  %v1754_v38 = vmul.f32 %v5471_v9, %v5471_v9  ;;  %v1746_v20 = vadd.f32 %v5471_v9, %v5469_v23 }
 0x79e   :  { %v1758_v15 = vadd.f32 %v1754_v38, %v1753_v57 }
 0x7a0   :  { %1759 = vadd.xlane.f32.xlu0 %v1758_v15  ;;  %1747 = vadd.xlane.f32.xlu1 %v1746_v20 }
 0x7ae   :  { %1815 = vperm.xlu2 %4413, %v1741_v0  }
 0x7b4   :  { %1801 = vperm.xlu0 %4412, %v1739_v7  }
 0x7b9   :  { %1820 = vperm.xlu1 %4414, %v1742_v44  }
 0x809   :  { %v1745_v18 = vpop.xlane.xlu2 %1744 }
 0x80a   :  { %v1749_v55 = vmul.f32 0.00390625, %v1745_v18 }
 0x80b   :  { %v1757_v30 = vpop.xlane.xlu1 %1756 }
 0x80c   :  { %v1761_v12 = vmul.f32 0.00390625, %v1757_v30  ;;  %v1763_v58 = vmul.f32 %v1749_v55, %v1749_v55  ;;  %v1769_v49 = vsub.f32 %v1698_v61, %v1749_v55  ;;  %v1770_v47 = vsub.f32 %v1727_v16, %v1749_v55 }
 0x80e   :  { %v1765_v29 = vsub.f32 %v1761_v12, %v1763_v58 }
 0x810   :  { %v1767_v8 = vmax.f32 %v1765_v29, 0.0 }
 0x811   :  { %v1816_v51 = vpop.permute.xlu2 %1815 }
 0x812   :  { %v1773_v34 = vadd.f32 1e-05, %v1767_v8 }
 0x813   :  { %v1748_v35 = vpop.xlane.xlu1 %1747  ;;  %v1760_v4 = vpop.xlane.xlu0 %1759 }
 0x814   :  { %4423 = vrsqrt.f32 %v1773_v34  ;;  %v5490_v13 = vmul.f32 0.00390625, %v1748_v35  ;;  %v1762_v37 = vmul.f32 0.00390625, %v1760_v4  ;;  %vm1781_vm9 = vweird.f32 %v1773_v34 }
 0x816   :  { %v1764_v40 = vmul.f32 %v5490_v13, %v5490_v13  ;;  %v1771_v29 = vsub.f32 %v5469_v23, %v5490_v13 }
 0x818   :  { %v1766_v2 = vsub.f32 %v1762_v37, %v1764_v40 }
 0x81a   :  { %v4424_v62 = vpop.eup %4423  ;;  %v1768_v60 = vmax.f32 %v1766_v2, 0.0 }
 0x81b   :  { %v1776_v25 = vmul.f32 %v4424_v62, %v1773_v34  ;;  %vm1782_vm12 = vweird.f32 %v4424_v62 }
 0x81c   :  { %v1774_v26 = vadd.f32 1e-05, %v1768_v60  ;;  %vm1783_vm2 = vmor %vm1781_vm9, %vm1782_vm12 }
 0x81d   :  { %v1777_v17 = vmul.f32 %v4424_v62, %v1776_v25  ;;  %v1772_v25 = vsub.f32 %v5471_v9, %v5490_v13 }
 0x81e   :  { %4425 = vrsqrt.f32 %v1774_v26  ;;  %vm1791_vm7 = vweird.f32 %v1774_v26 }
 0x81f   :  { %v1778_v10 = vmul.f32 0.5, %v1777_v17 }
 0x821   :  { %v1779_v3 = vsub.f32 1.5, %v1778_v10 }
 0x823   :  { %v1780_v6 = vmul.f32 %v4424_v62, %v1779_v3 }
 0x824   :  { %v4426_v1 = vpop.eup %4425 }
 0x825   :  { %v1786_v22 = vmul.f32 %v4426_v1, %v1774_v26  ;;  %v1784_v21 = vsel %vm1783_vm2, %v4424_v62, %v1780_v6  ;;  %vm1792_vm4 = vweird.f32 %v4426_v1 }
 0x826   :  { %v1802_v11 = vpop.permute.xlu0 %1801  ;;  %v1795_v50 = vmul.f32 %v1784_v21, %v1769_v49  ;;  %v1796_v54 = vmul.f32 %v1784_v21, %v1770_v47  ;;  %vm1793_vm5 = vmor %vm1791_vm7, %vm1792_vm4 }
 0x827   :  { %v1787_v14 = vmul.f32 %v4426_v1, %v1786_v22 }
 0x828   :  { %v1809_v33 = vmul.f32 %v1802_v11, %v1795_v50  ;;  %v1810_v45 = vmul.f32 %v1802_v11, %v1796_v54 }
 0x829   :  { %v1788_v63 = vmul.f32 0.5, %v1787_v14 }
 0x82a   :  { %v5494_v53 = vadd.f32 %v1816_v51, %v1809_v33  ;;  %v5496_v57 = vadd.f32 %v1816_v51, %v1810_v45 }
 0x82b   :  { %v1789_v38 = vsub.f32 1.5, %v1788_v63 }
 0x82c   :  { %v1827_v20 = vand.u32 2147483647, %v5494_v53  ;;  %v1830_v61 = vand.u32 2139095040, %v5494_v53  ;;  %v1982_v16 = vand.u32 2147483647, %v5496_v57  ;;  %v1985_v15 = vand.u32 2139095040, %v5496_v57 }
 0x82d   :  { %v1790_v0 = vmul.f32 %v4426_v1, %v1789_v38 }
 0x82e   :  { %v1831_v7 = vshrl.u32 %v1830_v61, 23  ;;  %v1834_v44 = vand.u32 8388607, %v1827_v20  ;;  %v1986_v18 = vshrl.u32 %v1985_v15, 23  ;;  %v1989_v12 = vand.u32 8388607, %v1982_v16 }
 0x82f   :  { %v5506_v58 = vsel %vm1793_vm5, %v4426_v1, %v1790_v0  ;;  %vm5832_vm3 = vcmp.le.f32.partialorder %v1982_v16, 0.7853982 }
 0x830   :  { %v4291_v55 = vadd.s32 4294967169, %v1831_v7  ;;  %v1835_v30 = vor.u32 8388608, %v1834_v44  ;;  %v4294_v8 = vadd.s32 4294967169, %v1986_v18  ;;  %v1797_v4 = vmul.f32 %v5506_v58, %v1771_v29 }
 0x831   :  { %v1990_v40 = vor.u32 8388608, %v1989_v12 }
 0x832   :  { %v1837_v34 = vadd.s32 1, %v4291_v55  ;;  %v1992_v35 = vadd.s32 1, %v4294_v8  ;;  %v5511_v37 = vshll.u32 %v1835_v30, 8  ;;  %v5516_v26 = vmul.f32 %v5488_v5, %v1797_v4 }
 0x833   :  { %v5521_v3 = vshll.u32 %v1990_v40, 8 }
 0x834   :  { %vm1838_vm8 = vcmp.gt.s32.totalorder %v1837_v34, 0  ;;  %vm1993_vm12 = vcmp.gt.s32.totalorder %v1992_v35, 0  ;;  %v1876_v17 = vand.u32 65535, %v5511_v37  ;;  %v1877_v47 = vshrl.u32 %v5511_v37, 16 }
 0x835   :  { %v1839_v2 = vsel %vm1838_vm8, %v1837_v34, 0  ;;  %v1994_v60 = vsel %vm1993_vm12, %v1992_v35, 0 }
 0x836   :  { %v1841_v62 = vand.u32 31, %v1839_v2  ;;  %v5519_v10 = vand.u32 31, %v1994_v60  ;;  %v5523_v6 = vshrl.u32 %v1839_v2, 5 }
 0x838   :  { %v1842_v23 = vsub.s32 32, %v1841_v62  ;;  %v1844_v1 = vshll.u32 %v4472_v39, %v1841_v62  ;;  %v1847_v49 = vshll.u32 %v4473_v41, %v1841_v62  ;;  %v1850_v11 = vshll.u32 %v4474_v48, %v1841_v62 }
 0x839   :  { %v1853_v54 = vshll.u32 %v4475_v52, %v1841_v62  ;;  %v1856_v33 = vshll.u32 %v4476_v56, %v1841_v62  ;;  %v5537_v61 = vsub.s32 32, %v5519_v10  ;;  %vm1859_vm9 = vcmp.lt.s32.totalorder %v5523_v6, 1 }
 0x83a   :  { %v1845_v22 = vshrl.u32 %v4473_v41, %v1842_v23  ;;  %v1848_v21 = vshrl.u32 %v4474_v48, %v1842_v23  ;;  %v1851_v50 = vshrl.u32 %v4475_v52, %v1842_v23  ;;  %v1854_v14 = vshrl.u32 %v4476_v56, %v1842_v23 }
 0x83b   :  { %v1857_v45 = vshrl.u32 %v7171_v59, %v1842_v23  ;;  %vm1860_vm2 = vcmp.lt.s32.totalorder %v5523_v6, 2  ;;  %v1843_v7 = vshrl.u32 %v4472_v39, %v1842_v23  ;;  %vm1862_vm4 = vcmp.lt.s32.totalorder %v5523_v6, 4 }
 0x83c   :  { %v1846_v51 = vor.u32 %v1845_v22, %v1844_v1  ;;  %v1849_v63 = vor.u32 %v1848_v21, %v1847_v49  ;;  %v1852_v38 = vor.u32 %v1851_v50, %v1850_v11  ;;  %v1855_v15 = vor.u32 %v1854_v14, %v1853_v54 }
 0x83d   :  { %v1858_v0 = vor.u32 %v1857_v45, %v1856_v33  ;;  %vm1861_vm7 = vcmp.lt.s32.totalorder %v5523_v6, 3  ;;  %v1999_v12 = vshll.u32 %v4472_v39, %v5519_v10  ;;  %v2000_v35 = vshrl.u32 %v4473_v41, %v5537_v61 }
 0x83e   :  { %v1867_v44 = vsel %vm1859_vm9, %v1846_v51, %v1849_v63  ;;  %v1871_v18 = vsel %vm1859_vm9, %v1849_v63, %v1852_v38  ;;  %v1868_v55 = vsel %vm1862_vm4, %v1855_v15, 920167782  ;;  %v1864_v29 = vsel %vm1862_vm4, %v1852_v38, 2102212464 }
 0x83f   :  { %v1872_v30 = vsel %vm1862_vm4, %v1858_v0, 1326507024  ;;  %v1869_v8 = vsel %vm1861_vm7, %v1852_v38, %v1868_v55  ;;  %v2002_v2 = vshll.u32 %v4473_v41, %v5519_v10  ;;  %v2003_v62 = vshrl.u32 %v4474_v48, %v5537_v61 }
 0x840   :  { %v1873_v34 = vsel %vm1861_vm7, %v1855_v15, %v1872_v30  ;;  %v1870_v4 = vsel %vm1860_vm2, %v1867_v44, %v1869_v8  ;;  %v1863_v21 = vsel %vm1859_vm9, %v1843_v7, %v1846_v51  ;;  %v1865_v11 = vsel %vm1861_vm7, %v1849_v63, %v1864_v29 }
 0x841   :  { %v1874_v40 = vsel %vm1860_vm2, %v1871_v18, %v1873_v34  ;;  %v1900_v49 = vand.u32 65535, %v1870_v4  ;;  %v1901_v22 = vshrl.u32 %v1870_v4, 16  ;;  %v5568_v50 = vshrl.u32 %v1994_v60, 5 }
 0x842   :  { %v1878_v23 = vand.u32 65535, %v1874_v40  ;;  %v1879_v1 = vshrl.u32 %v1874_v40, 16  ;;  %v5570_v54 = vor.u32 %v2000_v35, %v1999_v12  ;;  %v5572_v45 = vor.u32 %v2003_v62, %v2002_v2 }
 0x843   :  { %v2006_v38 = vshrl.u32 %v4475_v52, %v5537_v61  ;;  %v1903_v0 = vmul.u32 %v1901_v22, %v1876_v17  ;;  %v1904_v44 = vmul.u32 %v1900_v49, %v1877_v47  ;;  %v2005_v51 = vshll.u32 %v4474_v48, %v5519_v10 }
 0x844   :  { %v1881_v14 = vmul.u32 %v1879_v1, %v1876_v17  ;;  %v1882_v33 = vmul.u32 %v1878_v23, %v1877_v47  ;;  %v1880_v15 = vmul.u32 %v1878_v23, %v1876_v17  ;;  %v1883_v7 = vmul.u32 %v1879_v1, %v1877_v47 }
 0x845   :  { %v1902_v63 = vmul.u32 %v1900_v49, %v1876_v17  ;;  %v1905_v60 = vmul.u32 %v1901_v22, %v1877_v47  ;;  %v1906_v29 = vshll.u32 %v1903_v0, 16  ;;  %v1908_v34 = vshll.u32 %v1904_v44, 16 }
 0x846   :  { %v1884_v18 = vshll.u32 %v1881_v14, 16  ;;  %v1885_v55 = vshrl.u32 %v1881_v14, 16  ;;  %v1886_v30 = vshll.u32 %v1882_v33, 16  ;;  %v1887_v12 = vshrl.u32 %v1882_v33, 16 }
 0x847   :  { %v2007_v35 = vor.u32 %v2006_v38, %v2005_v51  ;;  %vm1910_vm8 = vc.u32 %v1902_v63, %v1906_v29  ;;  %v1912_v40 = vadd.s32 %v1906_v29, %v1902_v63  ;;  %v2009_v2 = vshrl.u32 %v4476_v56, %v5537_v61 }
 0x848   :  { %vm1888_vm5 = vc.u32 %v1880_v15, %v1884_v18  ;;  %v1890_v8 = vadd.s32 %v1884_v18, %v1880_v15  ;;  %v1911_v17 = vsel %vm1910_vm8, 1, %v4471_v32  ;;  %v2008_v47 = vshll.u32 %v4475_v52, %v5519_v10 }
 0x849   :  { %v1889_v4 = vsel %vm1888_vm5, 1, %v4471_v32  ;;  %v1913_v1 = vadd.s32 %v1911_v17, %v1905_v60  ;;  %vm1914_vm9 = vc.u32 %v1912_v40, %v1908_v34  ;;  %v2011_v49 = vshll.u32 %v4476_v56, %v5519_v10 }
 0x84a   :  { %v1891_v62 = vadd.s32 %v1889_v4, %v1883_v7  ;;  %vm1892_vm12 = vc.u32 %v1890_v8, %v1886_v30  ;;  %v1915_v14 = vsel %vm1914_vm9, 1, %v4471_v32  ;;  %v2010_v33 = vor.u32 %v2009_v2, %v2008_v47 }
 0x84b   :  { %v1893_v23 = vsel %vm1892_vm12, 1, %v4471_v32  ;;  %v2012_v38 = vshrl.u32 %v7171_v59, %v5537_v61  ;;  %v1907_v15 = vshrl.u32 %v1903_v0, 16  ;;  %v1909_v51 = vshrl.u32 %v1904_v44, 16 }
 0x84c   :  { %v1895_v22 = vadd.s32 %v1893_v23, %v1891_v62  ;;  %v5590_v7 = vadd.s32 %v1912_v40, %v1908_v34  ;;  %v1917_v18 = vadd.s32 %v1915_v14, %v1913_v1  ;;  %vm2014_vm4 = vcmp.lt.s32.totalorder %v5568_v50, 1 }
 0x84d   :  { %v2013_v30 = vor.u32 %v2012_v38, %v2011_v49  ;;  %vm2017_vm7 = vcmp.lt.s32.totalorder %v5568_v50, 4  ;;  %vm2016_vm5 = vcmp.lt.s32.totalorder %v5568_v50, 3  ;;  %v2022_v10 = vsel %vm2014_vm4, %v5570_v54, %v5572_v45 }
 0x84e   :  { %v1896_v63 = vadd.s32 %v1895_v22, %v1885_v55  ;;  %v1918_v60 = vadd.s32 %v1917_v18, %v1907_v15  ;;  %v2023_v0 = vsel %vm2017_vm7, %v2010_v33, 920167782  ;;  %vm2015_vm8 = vcmp.lt.s32.totalorder %v5568_v50, 2  ;;  %v5628_v22 = vpop.permute.xlu1 %1820 }
 0x84f   :  { %v2024_v55 = vsel %vm2016_vm5, %v2007_v35, %v2023_v0  ;;  %v2026_v29 = vsel %vm2014_vm4, %v5572_v45, %v2007_v35  ;;  %v1866_v8 = vsel %vm1860_vm2, %v1863_v21, %v1865_v11  ;;  %v2031_v2 = vand.u32 65535, %v5521_v3 }
 0x850   :  { %v5601_v44 = vadd.s32 %v1896_v63, %v1887_v12  ;;  %v1919_v34 = vadd.s32 %v1918_v60, %v1909_v51  ;;  %v2025_v4 = vsel %vm2015_vm8, %v2022_v10, %v2024_v55  ;;  %v2027_v12 = vsel %vm2017_vm7, %v2013_v30, 1326507024 }
 0x851   :  { %v2028_v40 = vsel %vm2016_vm5, %v2010_v33, %v2027_v12  ;;  %v2055_v62 = vand.u32 65535, %v2025_v4  ;;  %v2032_v21 = vshrl.u32 %v5521_v3, 16  ;;  %v2056_v11 = vshrl.u32 %v2025_v4, 16 }
 0x852   :  { %vm1922_vm12 = vc.u32 %v5601_v44, %v5590_v7  ;;  %v1923_v17 = vadd.s32 1, %v1919_v34  ;;  %v2029_v6 = vsel %vm2015_vm8, %v2026_v29, %v2028_v40  ;;  %v1920_v47 = vmul.u32 %v5511_v37, %v1866_v8 }
 0x853   :  { %v2033_v23 = vand.u32 65535, %v2029_v6  ;;  %v2034_v1 = vshrl.u32 %v2029_v6, 16  ;;  %v1798_v49 = vmul.f32 %v5506_v58, %v1772_v25  ;;  %v2058_v33 = vmul.u32 %v2056_v11, %v2031_v2 }
 0x854   :  { %v1924_v14 = vsel %vm1922_vm12, %v1923_v17, %v1919_v34  ;;  %v2059_v38 = vmul.u32 %v2055_v62, %v2032_v21  ;;  %v5632_v15 = vadd.f32 %v5628_v22, %v5516_v26  ;;  %v1998_v37 = vshrl.u32 %v4472_v39, %v5537_v61 }
 0x855   :  { %v1925_v51 = vadd.s32 %v1924_v14, %v1920_v47  ;;  %v2036_v18 = vmul.u32 %v2034_v1, %v2031_v2  ;;  %v2037_v63 = vmul.u32 %v2033_v23, %v2032_v21  ;;  %v2019_v9 = vsel %vm2017_vm7, %v2007_v35, 2102212464 }
 0x856   :  { %v2057_v13 = vmul.u32 %v2055_v62, %v2031_v2  ;;  %v2060_v58 = vmul.u32 %v2056_v11, %v2032_v21  ;;  %v2061_v25 = vshll.u32 %v2058_v33, 16  ;;  %v2035_v60 = vmul.u32 %v2033_v23, %v2031_v2 }
 0x857   :  { %v1926_v30 = vadd.s32 536870912, %v1925_v51  ;;  %v2038_v10 = vmul.u32 %v2034_v1, %v2032_v21  ;;  %v2039_v0 = vshll.u32 %v2036_v18, 16  ;;  %v2041_v55 = vshll.u32 %v2037_v63, 16 }
 0x858   :  { %v2063_v29 = vshll.u32 %v2059_v38, 16  ;;  %vm2065_vm2 = vc.u32 %v2057_v13, %v2061_v25  ;;  %v2067_v26 = vadd.s32 %v2061_v25, %v2057_v13  ;;  %v2018_v35 = vsel %vm2014_vm4, %v1998_v37, %v5570_v54 }
 0x859   :  { %v5638_v8 = vshrl.u32 %v1926_v30, 30  ;;  %vm2043_vm9 = vc.u32 %v2035_v60, %v2039_v0  ;;  %v2045_v61 = vadd.s32 %v2039_v0, %v2035_v60  ;;  %v2066_v34 = vsel %vm2065_vm2, 1, %v4471_v32 }
 0x85a   :  { %v2044_v4 = vsel %vm2043_vm9, 1, %v4471_v32  ;;  %v2068_v12 = vadd.s32 %v2066_v34, %v2060_v58  ;;  %vm2069_vm7 = vc.u32 %v2067_v26, %v2063_v29  ;;  %v2020_v2 = vsel %vm2016_vm5, %v5572_v45, %v2019_v9 }
 0x85b   :  { %v1928_v40 = vshll.u32 %v5638_v8, 30  ;;  %v2046_v62 = vadd.s32 %v2044_v4, %v2038_v10  ;;  %vm2047_vm12 = vc.u32 %v2045_v61, %v2041_v55  ;;  %v2062_v6 = vshrl.u32 %v2058_v33, 16 }
 0x85c   :  { %v2048_v17 = vsel %vm2047_vm12, 1, %v4471_v32  ;;  %v2070_v21 = vsel %vm2069_vm7, 1, %v4471_v32  ;;  %v2140_v11 = vand.u32 2139095040, %v5632_v15  ;;  %v2040_v47 = vshrl.u32 %v2036_v18, 16 }
 0x85d   :  { %v5652_v54 = vsub.s32 %v1925_v51, %v1928_v40  ;;  %v2050_v23 = vadd.s32 %v2048_v17, %v2046_v62  ;;  %v2072_v1 = vadd.s32 %v2070_v21, %v2068_v12  ;;  %v2042_v14 = vshrl.u32 %v2037_v63, 16 }
 0x85e   :  { %v2064_v37 = vshrl.u32 %v2059_v38, 16  ;;  %v2141_v13 = vshrl.u32 %v2140_v11, 23  ;;  %v2021_v33 = vsel %vm2015_vm8, %v2018_v35, %v2020_v2  ;;  %v1812_v25 = vmul.f32 %v5488_v5, %v1798_v49 }
 0x85f   :  { %vm1930_vm4 = vcmp.lt.s32.totalorder %v5652_v54, 0  ;;  %v1931_v45 = vsub.s32 0, %v5652_v54  ;;  %v2051_v9 = vadd.s32 %v2050_v23, %v2040_v47  ;;  %v2073_v58 = vadd.s32 %v2072_v1, %v2062_v6 }
 0x860   :  { %v4297_v30 = vadd.s32 4294967169, %v2141_v13  ;;  %v5662_v60 = vadd.s32 %v2067_v26, %v2063_v29  ;;  %v7166_v10 = vand.u32 2147483647, %v5632_v15  ;;  %v2075_v61 = vmul.u32 %v5521_v3, %v2021_v33 }
 0x861   :  { %v1932_v51 = vsel %vm1930_vm4, %v1931_v45, %v5652_v54  ;;  %v5660_v18 = vadd.s32 %v2051_v9, %v2042_v14  ;;  %v2074_v38 = vadd.s32 %v2073_v58, %v2064_v37  ;;  %v5669_v49 = vadd.f32 %v5628_v22, %v1812_v25 }
 0x862   :  { %v1933_v63 = vclz %v1932_v51  ;;  %v2147_v0 = vadd.s32 1, %v4297_v30  ;;  %v2144_v26 = vand.u32 8388607, %v7166_v10  ;;  %v1921_v62 = vadd.s32 %v5590_v7, %v5601_v44 }
 0x863   :  { %vm2077_vm5 = vc.u32 %v5660_v18, %v5662_v60  ;;  %v2078_v55 = vadd.s32 1, %v2074_v38  ;;  %v7165_v22 = vand.u32 2147483647, %v5669_v49  ;;  %v2295_v47 = vand.u32 2139095040, %v5669_v49 }
 0x864   :  { %v4292_v50 = vadd.s32 4294967294, %v1933_v63  ;;  %vm2148_vm8 = vcmp.gt.s32.totalorder %v2147_v0, 0  ;;  %v2145_v17 = vor.u32 8388608, %v2144_v26 }
 0x865   :  { %v2079_v5 = vsel %vm2077_vm5, %v2078_v55, %v2074_v38  ;;  %v2149_v34 = vsel %vm2148_vm8, %v2147_v0, 0 }
 0x866   :  { %vm4293_vm2 = vcmp.lt.s32.totalorder %v4292_v50, 0  ;;  %v2080_v29 = vadd.s32 %v2079_v5, %v2075_v61  ;;  %v2151_v35 = vand.u32 31, %v2149_v34  ;;  %v5685_v44 = vshrl.u32 %v2149_v34, 5 }
 0x867   :  { %v1936_v4 = vsel %vm4293_vm2, 0, %v4292_v50  ;;  %v5696_v50 = vshll.u32 %v2145_v17, 8  ;;  %v2296_v34 = vshrl.u32 %v2295_v47, 23  ;;  %v5720_v47 = vand.u32 8388607, %v7165_v22 }
 0x868   :  { %v1941_v12 = vsub.s32 4294967266, %v1936_v4  ;;  %v2081_v40 = vadd.s32 536870912, %v2080_v29  ;;  %v2152_v2 = vsub.s32 32, %v2151_v35  ;;  %v2154_v14 = vshll.u32 %v4472_v39, %v2151_v35 }
 0x869   :  { %v2157_v7 = vshll.u32 %v4473_v41, %v2151_v35  ;;  %v2160_v37 = vshll.u32 %v4474_v48, %v2151_v35  ;;  %v2163_v13 = vshll.u32 %v4475_v52, %v2151_v35  ;;  %v1937_v9 = vsub.s32 32, %v1936_v4 }
 0x86a   :  { %v5675_v3 = vshrl.u32 %v2081_v40, 30  ;;  %v2155_v6 = vshrl.u32 %v4473_v41, %v2152_v2  ;;  %v2158_v21 = vshrl.u32 %v4474_v48, %v2152_v2  ;;  %v2161_v11 = vshrl.u32 %v4475_v52, %v2152_v2 }
 0x86b   :  { %v1942_v23 = vadd.s32 127, %v1941_v12  ;;  %v2164_v45 = vshrl.u32 %v4476_v56, %v2152_v2  ;;  %v2166_v38 = vshll.u32 %v4476_v56, %v2151_v35  ;;  %v2167_v63 = vshrl.u32 %v7171_v59, %v2152_v2 }
 0x86c   :  { %v2083_v1 = vshll.u32 %v5675_v3, 30  ;;  %v2156_v33 = vor.u32 %v2155_v6, %v2154_v14  ;;  %v2159_v25 = vor.u32 %v2158_v21, %v2157_v7  ;;  %v2162_v30 = vor.u32 %v2161_v11, %v2160_v37 }
 0x86d   :  { %v2165_v51 = vor.u32 %v2164_v45, %v2163_v13  ;;  %v1943_v0 = vshll.u32 %v1942_v23, 23  ;;  %v1938_v61 = vshll.u32 %v5652_v54, %v1936_v4  ;;  %v2168_v5 = vor.u32 %v2167_v63, %v2166_v38 }
 0x86e   :  { %v5690_v58 = vsub.s32 %v2080_v29, %v2083_v1  ;;  %vm2169_vm7 = vcmp.lt.s32.totalorder %v5685_v44, 1  ;;  %v1939_v29 = vshrl.u32 %v1921_v62, %v1937_v9  ;;  %vm2172_vm12 = vcmp.lt.s32.totalorder %v5685_v44, 4 }
 0x86f   :  { %v2177_v35 = vsel %vm2169_vm7, %v2156_v33, %v2159_v25  ;;  %vm2171_vm4 = vcmp.lt.s32.totalorder %v5685_v44, 3  ;;  %v2178_v40 = vsel %vm2172_vm12, %v2165_v51, 920167782  ;;  %v2181_v54 = vsel %vm2169_vm7, %v2159_v25, %v2162_v30 }
 0x870   :  { %vm2085_vm9 = vcmp.lt.s32.totalorder %v5690_v58, 0  ;;  %v2086_v55 = vsub.s32 0, %v5690_v58  ;;  %v1944_v4 = vor.u32 4788187, %v1943_v0  ;;  %vm2170_vm5 = vcmp.lt.s32.totalorder %v5685_v44, 2 }
 0x871   :  { %v2179_v62 = vsel %vm2171_vm4, %v2162_v30, %v2178_v40  ;;  %v2182_v17 = vsel %vm2172_vm12, %v2168_v5, 1326507024  ;;  %v1940_v23 = vor.u32 %v1939_v29, %v1938_v61  ;;  %v2186_v14 = vand.u32 65535, %v5696_v50 }
 0x872   :  { %v2087_v26 = vsel %vm2085_vm9, %v2086_v55, %v5690_v58  ;;  %v2180_v21 = vsel %vm2170_vm5, %v2177_v35, %v2179_v62  ;;  %v2183_v11 = vsel %vm2171_vm4, %v2165_v51, %v2182_v17  ;;  %v4300_v45 = vadd.s32 4294967169, %v2296_v34 }
 0x873   :  { %v2088_v12 = vclz %v2087_v26  ;;  %v2184_v1 = vsel %vm2170_vm5, %v2181_v54, %v2183_v11  ;;  %v2211_v7 = vshrl.u32 %v2180_v21, 16  ;;  %v1945_v9 = vand.u32 2147483647, %v1944_v4 }
 0x874   :  { %v2188_v37 = vand.u32 65535, %v2184_v1  ;;  %v2189_v13 = vshrl.u32 %v2184_v1, 16  ;;  %v2153_v63 = vshrl.u32 %v4472_v39, %v2152_v2  ;;  %v2187_v51 = vshrl.u32 %v5696_v50, 16 }
 0x875   :  { %v4295_v6 = vadd.s32 4294967294, %v2088_v12  ;;  %v2174_v55 = vsel %vm2172_vm12, %v2162_v30, 2102212464  ;;  %v2210_v61 = vand.u32 65535, %v2180_v21  ;;  %v2213_v5 = vmul.u32 %v2211_v7, %v2186_v14 }
 0x876   :  { %v1947_v29 = vcvt.s32.f32 %v1940_v23  ;;  %v2191_v35 = vmul.u32 %v2189_v13, %v2186_v14  ;;  %v2192_v12 = vmul.u32 %v2188_v37, %v2187_v51  ;;  %v2076_v40 = vadd.s32 %v5662_v60, %v5660_v18 }
 0x877   :  { %vm4296_vm8 = vcmp.lt.s32.totalorder %v4295_v6, 0  ;;  %v2173_v54 = vsel %vm2169_vm7, %v2153_v63, %v2156_v33  ;;  %v2302_v2 = vadd.s32 1, %v4300_v45  ;;  %v2175_v62 = vsel %vm2171_vm4, %v2159_v25, %v2174_v55 }
 0x878   :  { %v2091_v38 = vsel %vm4296_vm8, 0, %v4295_v6  ;;  %v1948_v4 = vmul.f32 %v1947_v29, %v1945_v9  ;;  %v2190_v17 = vmul.u32 %v2188_v37, %v2186_v14  ;;  %v2194_v30 = vshll.u32 %v2191_v35, 16 }
 0x879   :  { %v2096_v0 = vsub.s32 4294967266, %v2091_v38  ;;  %v2092_v26 = vsub.s32 32, %v2091_v38  ;;  %v2193_v21 = vmul.u32 %v2189_v13, %v2187_v51  ;;  %v2214_v11 = vmul.u32 %v2210_v61, %v2187_v51 }
 0x87a   :  { %v2216_v23 = vshll.u32 %v2213_v5, 16  ;;  %v2196_v22 = vshll.u32 %v2192_v12, 16  ;;  %vm2198_vm2 = vc.u32 %v2190_v17, %v2194_v30  ;;  %v2200_v10 = vadd.s32 %v2194_v30, %v2190_v17 }
 0x87b   :  { %v2097_v34 = vadd.s32 127, %v2096_v0  ;;  %v2094_v1 = vshrl.u32 %v2076_v40, %v2092_v26  ;;  %v2093_v18 = vshll.u32 %v5690_v58, %v2091_v38  ;;  %v2199_v60 = vsel %vm2198_vm2, 1, %v4471_v32 }
 0x87c   :  { %v2212_v33 = vmul.u32 %v2210_v61, %v2186_v14  ;;  %v2215_v45 = vmul.u32 %v2211_v7, %v2187_v51  ;;  %v2195_v63 = vshrl.u32 %v2191_v35, 16  ;;  %v2201_v0 = vadd.s32 %v2199_v60, %v2193_v21 }
 0x87d   :  { %v2098_v6 = vshll.u32 %v2097_v34, 23  ;;  %vm2202_vm9 = vc.u32 %v2200_v10, %v2196_v22  ;;  %v2218_v37 = vshll.u32 %v2214_v11, 16  ;;  %v2095_v55 = vor.u32 %v2094_v1, %v2093_v18 }
 0x87e   :  { %v2203_v25 = vsel %vm2202_vm9, 1, %v4471_v32  ;;  %vm2220_vm7 = vc.u32 %v2212_v33, %v2216_v23  ;;  %v2222_v13 = vadd.s32 %v2216_v23, %v2212_v33  ;;  %vm2303_vm12 = vcmp.gt.s32.totalorder %v2302_v2, 0 }
 0x87f   :  { %v2099_v9 = vor.u32 4788187, %v2098_v6  ;;  %v2205_v29 = vadd.s32 %v2203_v25, %v2201_v0  ;;  %v2221_v26 = vsel %vm2220_vm7, 1, %v4471_v32  ;;  %v1949_v40 = vxor.u32 2147483648, %v1948_v4 }
 0x880   :  { %v2197_v58 = vshrl.u32 %v2192_v12, 16  ;;  %v2223_v38 = vadd.s32 %v2221_v26, %v2215_v45  ;;  %vm2224_vm4 = vc.u32 %v2222_v13, %v2218_v37  ;;  %v2304_v61 = vsel %vm2303_vm12, %v2302_v2, 0 }
 0x881   :  { %v2100_v14 = vand.u32 2147483647, %v2099_v9  ;;  %v2206_v7 = vadd.s32 %v2205_v29, %v2195_v63  ;;  %v2225_v51 = vsel %vm2224_vm4, 1, %v4471_v32  ;;  %v2176_v10 = vsel %vm2170_vm5, %v2173_v54, %v2175_v62 }
 0x882   :  { %v2217_v22 = vshrl.u32 %v2213_v5, 16  ;;  %v2227_v35 = vadd.s32 %v2225_v51, %v2223_v38  ;;  %v2306_v34 = vand.u32 31, %v2304_v61  ;;  %vm1829_vm8 = vcmp.lt.s32.totalorder %v5494_v53, 0 }
 0x883   :  { %v2102_v17 = vcvt.s32.f32 %v2095_v55  ;;  %v5743_v30 = vadd.s32 %v2206_v7, %v2197_v58  ;;  %v2300_v12 = vor.u32 8388608, %v5720_v47  ;;  %v2219_v6 = vshrl.u32 %v2214_v11, 16 }
 0x884   :  { %v5746_v21 = vadd.s32 %v2222_v13, %v2218_v37  ;;  %v2228_v23 = vadd.s32 %v2227_v35, %v2217_v22  ;;  %v5748_v1 = vsub.s32 32, %v2306_v34  ;;  %v1950_v44 = vsel %vm1829_vm8, %v1949_v40, %v1948_v4 }
 0x885   :  { %v2103_v54 = vmul.f32 %v2102_v17, %v2100_v14  ;;  %v2230_v5 = vmul.u32 %v5696_v50, %v2176_v10  ;;  %v5753_v2 = vshrl.u32 %v2304_v61, 5  ;;  %v2309_v47 = vshll.u32 %v4472_v39, %v2306_v34 }
 0x886   :  { %v2229_v62 = vadd.s32 %v2228_v23, %v2219_v6  ;;  %vm2232_vm5 = vc.u32 %v5743_v30, %v5746_v21  ;;  %v2310_v11 = vshrl.u32 %v4473_v41, %v5748_v1  ;;  %v2312_v18 = vshll.u32 %v4473_v41, %v2306_v34 }
 0x887   :  { %v2313_v60 = vshrl.u32 %v4474_v48, %v5748_v1  ;;  %v2315_v4 = vshll.u32 %v4474_v48, %v2306_v34  ;;  %v2316_v50 = vshrl.u32 %v4475_v52, %v5748_v1  ;;  %v2318_v9 = vshll.u32 %v4475_v52, %v2306_v34 }
 0x888   :  { %v2233_v33 = vadd.s32 1, %v2229_v62  ;;  %v5766_v45 = vor.u32 %v2310_v11, %v2309_v47  ;;  %v2319_v63 = vshrl.u32 %v4476_v56, %v5748_v1  ;;  %v2321_v37 = vshll.u32 %v4476_v56, %v2306_v34 }
 0x889   :  { %v5771_v0 = vor.u32 %v2313_v60, %v2312_v18  ;;  %v5773_v25 = vor.u32 %v2316_v50, %v2315_v4  ;;  %v2322_v13 = vshrl.u32 %v7171_v59, %v5748_v1  ;;  %vm5780_vm2 = vcmp.le.f32.partialorder %v1827_v20, 0.7853982 }
 0x88a   :  { %v2234_v29 = vsel %vm2232_vm5, %v2233_v33, %v2229_v62  ;;  %v2320_v26 = vor.u32 %v2319_v63, %v2318_v9  ;;  %v5790_v40 = vsel %vm5780_vm2, %v5494_v53, %v1950_v44  ;;  %v2104_v58 = vxor.u32 2147483648, %v2103_v54 }
 0x88b   :  { %v2235_v38 = vadd.s32 %v2234_v29, %v2230_v5  ;;  %v2323_v14 = vor.u32 %v2322_v13, %v2321_v37  ;;  %vm2324_vm9 = vcmp.lt.s32.totalorder %v5753_v2, 1  ;;  %vm2326_vm7 = vcmp.lt.s32.totalorder %v5753_v2, 3 }
 0x88c   :  { %vm2327_vm12 = vcmp.lt.s32.totalorder %v5753_v2, 4  ;;  %v5795_v20 = vshll.u32 %v2300_v12, 8  ;;  %v2332_v51 = vsel %vm2324_vm9, %v5766_v45, %v5771_v0  ;;  %v2336_v10 = vsel %vm2324_vm9, %v5771_v0, %v5773_v25 }
 0x88d   :  { %v2236_v7 = vadd.s32 536870912, %v2235_v38  ;;  %v2333_v61 = vsel %vm2327_vm12, %v2320_v26, 920167782  ;;  %v2337_v35 = vsel %vm2327_vm12, %v2323_v14, 1326507024  ;;  %vm1984_vm4 = vcmp.lt.s32.totalorder %v5496_v57, 0 }
 0x88e   :  { %v2334_v22 = vsel %vm2326_vm7, %v5773_v25, %v2333_v61  ;;  %vm2325_vm5 = vcmp.lt.s32.totalorder %v5753_v2, 2  ;;  %v2338_v17 = vsel %vm2326_vm7, %v2320_v26, %v2337_v35  ;;  %v5820_v12 = vmul.f32 %v5790_v40, %v5790_v40 }
 0x88f   :  { %v5813_v34 = vshrl.u32 %v2236_v7, 30  ;;  %v2105_v6 = vsel %vm1984_vm4, %v2104_v58, %v2103_v54  ;;  %v2335_v23 = vsel %vm2325_vm5, %v2332_v51, %v2334_v22  ;;  %v2339_v44 = vsel %vm2325_vm5, %v2336_v10, %v2338_v17 }
 0x890   :  { %v2341_v62 = vand.u32 65535, %v5795_v20  ;;  %v2343_v47 = vand.u32 65535, %v2339_v44  ;;  %v2344_v11 = vshrl.u32 %v2339_v44, 16  ;;  %v2342_v54 = vshrl.u32 %v5795_v20, 16 }
 0x891   :  { %v2238_v5 = vshll.u32 %v5813_v34, 30  ;;  %v5840_v60 = vsel %vm5832_vm3, %v5496_v57, %v2105_v6  ;;  %v1963_v33 = vmul.f32 -0.00019511016, %v5820_v12  ;;  %v2365_v63 = vand.u32 65535, %v2335_v23 }
 0x892   :  { %v2346_v50 = vmul.u32 %v2344_v11, %v2341_v62  ;;  %v2347_v9 = vmul.u32 %v2343_v47, %v2342_v54  ;;  %v2366_v37 = vshrl.u32 %v2335_v23, 16  ;;  %v2345_v16 = vmul.u32 %v2343_v47, %v2341_v62 }
 0x893   :  { %v2239_v4 = vsub.s32 %v2235_v38, %v2238_v5  ;;  %v5845_v26 = vmul.f32 %v5840_v60, %v5840_v60  ;;  %v2348_v58 = vmul.u32 %v2344_v11, %v2342_v54  ;;  %v1964_v22 = vadd.f32 0.008332121, %v1963_v33 }
 0x894   :  { %v2349_v29 = vshll.u32 %v2346_v50, 16  ;;  %v2351_v7 = vshll.u32 %v2347_v9, 16  ;;  %v2368_v10 = vmul.u32 %v2366_v37, %v2341_v62  ;;  %v2369_v17 = vmul.u32 %v2365_v63, %v2342_v54 }
 0x895   :  { %vm2240_vm11 = vcmp.lt.s32.totalorder %v2239_v4, 0  ;;  %v2241_v13 = vsub.s32 0, %v2239_v4  ;;  %v2367_v44 = vmul.u32 %v2365_v63, %v2341_v62  ;;  %v2118_v47 = vmul.f32 -0.00019511016, %v5845_v26 }
 0x896   :  { %vm2353_vm10 = vc.u32 %v2345_v16, %v2349_v29  ;;  %v2355_v51 = vadd.s32 %v2349_v29, %v2345_v16  ;;  %v2371_v5 = vshll.u32 %v2368_v10, 16  ;;  %v2231_v11 = vadd.s32 %v5746_v21, %v5743_v30 }
 0x897   :  { %v2242_v14 = vsel %vm2240_vm11, %v2241_v13, %v2239_v4  ;;  %v2354_v61 = vsel %vm2353_vm10, 1, %v4471_v32  ;;  %v2350_v13 = vshrl.u32 %v2346_v50, 16  ;;  %v2370_v29 = vmul.u32 %v2366_v37, %v2342_v54 }
 0x898   :  { %v2243_v38 = vclz %v2242_v14  ;;  %v2356_v35 = vadd.s32 %v2354_v61, %v2348_v58  ;;  %vm2357_vm15 = vc.u32 %v2355_v51, %v2351_v7  ;;  %vm2375_vm10 = vc.u32 %v2367_v44, %v2371_v5 }
 0x899   :  { %v2358_v23 = vsel %vm2357_vm15, 1, %v4471_v32  ;;  %v2377_v14 = vadd.s32 %v2371_v5, %v2367_v44  ;;  %v2308_v58 = vshrl.u32 %v4472_v39, %v5748_v1  ;;  %v2373_v7 = vshll.u32 %v2369_v17, 16 }
 0x89a   :  { %v4298_v6 = vadd.s32 4294967294, %v2243_v38  ;;  %v2360_v16 = vadd.s32 %v2358_v23, %v2356_v35  ;;  %v2376_v51 = vsel %vm2375_vm10, 1, %v4471_v32  ;;  %v2119_v59 = vadd.f32 0.008332121, %v2118_v47 }
 0x89b   :  { %v2378_v61 = vadd.s32 %v2376_v51, %v2370_v29  ;;  %v2329_v30 = vsel %vm2327_vm12, %v5773_v25, 2102212464  ;;  %v2352_v21 = vshrl.u32 %v2347_v9, 16  ;;  %vm2379_vm15 = vc.u32 %v2377_v14, %v2373_v7 }
 0x89c   :  { %vm4299_vm11 = vcmp.lt.s32.totalorder %v4298_v6, 0  ;;  %v2361_v38 = vadd.s32 %v2360_v16, %v2350_v13  ;;  %v2380_v35 = vsel %vm2379_vm15, 1, %v4471_v32  ;;  %v2328_v1 = vsel %vm2324_vm9, %v2308_v58, %v5766_v45 }
 0x89d   :  { %v2246_v33 = vsel %vm4299_vm11, 0, %v4298_v6  ;;  %v2372_v6 = vshrl.u32 %v2368_v10, 16  ;;  %v2382_v23 = vadd.s32 %v2380_v35, %v2378_v61  ;;  %v2330_v47 = vsel %vm2326_vm7, %v5771_v0, %v2329_v30 }
 0x89e   :  { %v2247_v62 = vsub.s32 32, %v2246_v33  ;;  %v2251_v63 = vsub.s32 4294967266, %v2246_v33  ;;  %v2248_v54 = vshll.u32 %v2239_v4, %v2246_v33  ;;  %v5865_v25 = vadd.s32 %v2361_v38, %v2352_v21 }
 0x89f   :  { %v1965_v4 = vmul.f32 %v1964_v22, %v5820_v12  ;;  %v2374_v9 = vshrl.u32 %v2369_v17, 16  ;;  %v2120_v13 = vmul.f32 %v2119_v59, %v5845_v26  ;;  %v5869_v29 = vadd.s32 %v2377_v14, %v2373_v7 }
 0x8a0   :  { %v2249_v50 = vshrl.u32 %v2231_v11, %v2247_v62  ;;  %v2252_v37 = vadd.s32 127, %v2251_v63  ;;  %v2383_v11 = vadd.s32 %v2382_v23, %v2372_v6  ;;  %v2106_v45 = vsub.s32 4, %v5675_v3 }
 0x8a1   :  { %v2331_v10 = vsel %vm2325_vm5, %v2328_v1, %v2330_v47  ;;  %v1951_v58 = vsub.s32 4, %v5638_v8  ;;  %vm2387_vm9 = vc.u32 %v5865_v25, %v5869_v29  ;;  %v1966_v22 = vadd.f32 -0.16666654, %v1965_v4 }
 0x8a2   :  { %v2250_v44 = vor.u32 %v2249_v50, %v2248_v54  ;;  %v2253_v5 = vshll.u32 %v2252_v37, 23  ;;  %v2384_v33 = vadd.s32 %v2383_v11, %v2374_v9  ;;  %v2121_v62 = vadd.f32 -0.16666654, %v2120_v13 }
 0x8a3   :  { %v2385_v14 = vmul.u32 %v5795_v20, %v2331_v10  ;;  %v2107_v7 = vsel %vm1984_vm4, %v2106_v45, %v5675_v3  ;;  %v1952_v63 = vsel %vm1829_vm8, %v1951_v58, %v5638_v8  ;;  %vm2139_vm7 = vcmp.lt.s32.totalorder %v5632_v15, 0 }
 0x8a4   :  { %v2254_v16 = vor.u32 4788187, %v2253_v5  ;;  %v2257_v51 = vcvt.s32.f32 %v2250_v44  ;;  %v2388_v17 = vadd.s32 1, %v2384_v33  ;;  %v1967_v30 = vmul.f32 %v1966_v22, %v5820_v12 }
 0x8a5   :  { %v7226_v21 = vand.u32 2147483647, %v5632_v15  ;;  %v2111_v20 = vmul.f32 -0.001358992, %v5845_v26  ;;  %v1956_v3 = vmul.f32 -0.001358992, %v5820_v12  ;;  %v2122_v50 = vmul.f32 %v2121_v62, %v5845_v26 }
 0x8a6   :  { %v2255_v0 = vand.u32 2147483647, %v2254_v16  ;;  %v2389_v2 = vsel %vm2387_vm9, %v2388_v17, %v2384_v33  ;;  %v2109_v35 = vsel %vm5832_vm3, 0, %v2107_v7  ;;  %v1954_v23 = vsel %vm5780_vm2, 0, %v1952_v63 }
 0x8a7   :  { %v2390_v61 = vadd.s32 %v2389_v2, %v2385_v14  ;;  %vm5888_vm12 = vcmp.le.f32.partialorder %v7226_v21, 0.7853982  ;;  %v2112_v6 = vadd.f32 0.041655596, %v2111_v20  ;;  %v1957_v44 = vadd.f32 0.041655596, %v1956_v3 }
 0x8a8   :  { %v2258_v59 = vmul.f32 %v2257_v51, %v2255_v0  ;;  %v1968_v4 = vadd.f32 1.0, %v1967_v30  ;;  %v2126_v9 = vadd.s32 3, %v2109_v35  ;;  %v1971_v45 = vadd.s32 3, %v1954_v23 }
 0x8a9   :  { %v2391_v37 = vadd.s32 536870912, %v2390_v61  ;;  %v2113_v18 = vmul.f32 %v2112_v6, %v5845_v26  ;;  %v1958_v11 = vmul.f32 %v1957_v44, %v5820_v12  ;;  %v2123_v55 = vadd.f32 1.0, %v2122_v50 }
 0x8aa   :  { %v2259_v38 = vxor.u32 2147483648, %v2258_v59  ;;  %v2261_v58 = vsub.s32 4, %v5813_v34  ;;  %v1969_v22 = vmul.f32 %v1968_v4, %v5790_v40  ;;  %v2127_v62 = vand.u32 3, %v2126_v9 }
 0x8ab   :  { %v5910_v47 = vshrl.u32 %v2391_v37, 30  ;;  %v2114_v10 = vadd.f32 -0.4999988, %v2113_v18  ;;  %v1959_v33 = vadd.f32 -0.4999988, %v1958_v11  ;;  %vm2125_vm8 = vweird.f32 %v5496_v57 }
 0x8ac   :  { %v2260_v8 = vsel %vm2139_vm7, %v2259_v38, %v2258_v59  ;;  %v1972_v2 = vand.u32 3, %v1971_v45  ;;  %v2124_v63 = vmul.f32 %v2123_v55, %v5840_v60  ;;  %v2262_v40 = vsel %vm2139_vm7, %v2261_v58, %v5813_v34 }
 0x8ad   :  { %v5902_v1 = vsel %vm5888_vm12, %v5632_v15, %v2260_v8  ;;  %v2393_v16 = vshll.u32 %v5910_v47, 30  ;;  %v2115_v17 = vmul.f32 %v2114_v10, %v5845_v26  ;;  %v1960_v59 = vmul.f32 %v1959_v33, %v5820_v12 }
 0x8ae   :  { %v5908_v5 = vmul.f32 %v5902_v1, %v5902_v1  ;;  %vm1970_vm2 = vweird.f32 %v5494_v53  ;;  %vm2128_vm4 = vcmp.lt.s32.totalorder %v2127_v62, 2  ;;  %vm2129_vm5 = vcmp.eq.s32.totalorder %v2127_v62, 0 }
 0x8af   :  { %v2394_v51 = vsub.s32 %v2390_v61, %v2393_v16  ;;  %v2116_v38 = vadd.f32 1.0, %v2115_v17  ;;  %v1961_v30 = vadd.f32 1.0, %v1960_v59  ;;  %vm2132_vm11 = vcmp.eq.s32.totalorder %v2127_v62, 2 }
 0x8b0   :  { %v2273_v13 = vmul.f32 -0.00019511016, %v5908_v5  ;;  %v2266_v61 = vmul.f32 -0.001358992, %v5908_v5  ;;  %vm1973_vm10 = vcmp.lt.s32.totalorder %v1972_v2, 2  ;;  %v2130_v8 = vxor.u32 2147483648, %v2124_v63 }
 0x8b1   :  { %vm2395_vm3 = vcmp.lt.s32.totalorder %v2394_v51, 0  ;;  %v2396_v7 = vsub.s32 0, %v2394_v51  ;;  %v2133_v20 = vxor.u32 2147483648, %v2116_v38  ;;  %v1978_v3 = vxor.u32 2147483648, %v1961_v30 }
 0x8b2   :  { %v2274_v0 = vadd.f32 0.008332121, %v2273_v13  ;;  %v2267_v50 = vadd.f32 0.041655596, %v2266_v61  ;;  %vm1974_vm15 = vcmp.eq.s32.totalorder %v1972_v2, 0  ;;  %v1975_v37 = vxor.u32 2147483648, %v1969_v22 }
 0x8b3   :  { %v2397_v21 = vsel %vm2395_vm3, %v2396_v7, %v2394_v51  ;;  %v2134_v6 = vsel %vm2132_vm11, %v2133_v20, %v2124_v63  ;;  %vm1977_vm9 = vcmp.eq.s32.totalorder %v1972_v2, 2  ;;  %v2131_v23 = vsel %vm2129_vm5, %v2116_v38, %v2130_v8 }
 0x8b4   :  { %v2275_v14 = vmul.f32 %v2274_v0, %v5908_v5  ;;  %v2398_v12 = vclz %v2397_v21  ;;  %v2268_v34 = vmul.f32 %v2267_v50, %v5908_v5  ;;  %v1976_v44 = vsel %vm1974_vm15, %v1961_v30, %v1975_v37 }
 0x8b5   :  { %v1979_v4 = vsel %vm1977_vm9, %v1978_v3, %v1969_v22  ;;  %v2264_v18 = vsel %vm5888_vm12, 0, %v2262_v40  ;;  %v2135_v11 = vsel %vm2128_vm4, %v2131_v23, %v2134_v6  ;;  %v2386_v16 = vadd.s32 %v5869_v29, %v5865_v25 }
 0x8b6   :  { %v2276_v26 = vadd.f32 -0.16666654, %v2275_v14  ;;  %v4301_v60 = vadd.s32 4294967294, %v2398_v12  ;;  %v1980_v13 = vsel %vm1973_vm10, %v1976_v44, %v1979_v4  ;;  %v2136_v10 = vsel %vm2125_vm8, nan, %v2135_v11 }
 0x8b7   :  { %v2448_v58 = vmul.f32 %v2136_v10, %v2136_v10  ;;  %v1981_v0 = vsel %vm1970_vm2, nan, %v1980_v13  ;;  %v2269_v54 = vadd.f32 -0.4999988, %v2268_v34  ;;  %v2281_v7 = vadd.s32 3, %v2264_v18 }
 0x8b8   :  { %v2277_v35 = vmul.f32 %v2276_v26, %v5908_v5  ;;  %vm4302_vm7 = vcmp.lt.s32.totalorder %v4301_v60, 0  ;;  %v2447_v59 = vmul.f32 %v1981_v0, %v1981_v0  ;;  %vm2294_vm3 = vcmp.lt.s32.totalorder %v5669_v49, 0 }
 0x8b9   :  { %v2401_v9 = vsel %vm4302_vm7, 0, %v4301_v60  ;;  %v2452_v14 = vadd.f32 %v2448_v58, %v5496_v57  ;;  %v2270_v30 = vmul.f32 %v2269_v54, %v5908_v5  ;;  %v7229_v60 = vand.u32 2147483647, %v5669_v49 }
 0x8ba   :  { %v2402_v45 = vsub.s32 32, %v2401_v9  ;;  %v2406_v55 = vsub.s32 4294967266, %v2401_v9  ;;  %v2278_v33 = vadd.f32 1.0, %v2277_v35  ;;  %v2403_v22 = vshll.u32 %v2394_v51, %v2401_v9 }
 0x8bb   :  { %v2451_v29 = vadd.f32 %v2447_v59, %v5494_v53  ;;  %v2456_v38 = vmul.f32 0.1, %v2452_v14  ;;  %v2282_v51 = vand.u32 3, %v2281_v7  ;;  %v2271_v53 = vadd.f32 1.0, %v2270_v30 }
 0x8bc   :  { %v2404_v17 = vshrl.u32 %v2386_v16, %v2402_v45  ;;  %v2407_v62 = vadd.s32 127, %v2406_v55  ;;  %v2279_v63 = vmul.f32 %v2278_v33, %v5902_v1  ;;  %vm5957_vm8 = vcmp.le.f32.partialorder %v7229_v60, 0.7853982 }
 0x8bd   :  { %v2455_v40 = vmul.f32 0.1, %v2451_v29  ;;  %v5944_v26 = vmax.f32 %v2456_v38, %v2452_v14  ;;  %vm2284_vm12 = vcmp.eq.s32.totalorder %v2282_v51, 0  ;;  %v2288_v50 = vxor.u32 2147483648, %v2271_v53 }
 0x8be   :  { %v2405_v2 = vor.u32 %v2404_v17, %v2403_v22  ;;  %v2408_v25 = vshll.u32 %v2407_v62, 23  ;;  %v2285_v57 = vxor.u32 2147483648, %v2279_v63  ;;  %vm2287_vm2 = vcmp.eq.s32.totalorder %v2282_v51, 2 }
 0x8bf   :  { %v5946_v20 = vmax.f32 %v2455_v40, %v2451_v29  ;;  %2587 = vrot.lane.b32.xlu1 %v5944_v26, %s4469_s2  ;;  %2603 = vrot.lane.b32.xlu0 %v5944_v26, %s4467_s1  ;;  %v2416_v35 = vsub.s32 4, %v5910_v47  ;;  %vm2283_vm4 = vcmp.lt.s32.totalorder %v2282_v51, 2  ;;  %v2289_v34 = vsel %vm2287_vm2, %v2288_v50, %v2279_v63 }
 0x8c0   :  { %v2409_v61 = vor.u32 4788187, %v2408_v25  ;;  %v2412_v12 = vcvt.s32.f32 %v2405_v2  ;;  %v2286_v3 = vsel %vm2284_vm12, %v2271_v53, %v2285_v57  ;;  %vm2280_vm5 = vweird.f32 %v5632_v15 }
 0x8c1   :  { %2599 = vrot.lane.b32.xlu2 %v5946_v20, %s4467_s1  ;;  %v2290_v44 = vsel %vm2283_vm4, %v2286_v3, %v2289_v34  ;;  %v2417_v13 = vsel %vm2294_vm3, %v2416_v35, %v5910_v47  ;;  %vm2435_vm9 = vweird.f32 %v5669_v49  ;;  %vm7232_vm7 = vcmp.lt.s32.totalorder %v4654_v46, 128 }
 0x8c2   :  { %v2410_v21 = vand.u32 2147483647, %v2409_v61  ;;  %v2291_v4 = vsel %vm2280_vm5, nan, %v2290_v44  ;;  %v2419_v10 = vsel %vm5957_vm8, 0, %v2417_v13  ;;  %vm7236_vm12 = vcmp.ge.s32.totalorder %v4646_v42, 0 }
 0x8c3   :  { %v2449_v11 = vmul.f32 %v2291_v4, %v2291_v4  ;;  %v2436_v62 = vadd.s32 3, %v2419_v10  ;;  %vm7240_vm4 = vmmov %vm7236_vm12 }
 0x8c4   :  { %v2413_v1 = vmul.f32 %v2412_v12, %v2410_v21 }
 0x8c5   :  { %v2453_v55 = vadd.f32 %v2449_v11, %v5632_v15  ;;  %v2437_v2 = vand.u32 3, %v2436_v62  ;;  %v2616_v62 = vld [vmem:[%s7146_s17 + $0x8] sm:$0xff] }
 0x8c6   :  { %v2414_v5 = vxor.u32 2147483648, %v2413_v1 }
 0x8c7   :  { %2583 = vrot.lane.b32.xlu0 %v5946_v20, %s4469_s2  ;;  %v2457_v0 = vmul.f32 0.1, %v2453_v55  ;;  %vm2439_vm11 = vcmp.eq.s32.totalorder %v2437_v2, 0  ;;  %vm2442_vm10 = vcmp.eq.s32.totalorder %v2437_v2, 2  ;;  %vm2438_vm15 = vcmp.lt.s32.totalorder %v2437_v2, 2 }
 0x8c8   :  { %v2415_v37 = vsel %vm2294_vm3, %v2414_v5, %v2413_v1  ;;  %vm7237_vm3 = vcmp.ge.s32.totalorder %v4648_v43, 0 }
 0x8c9   :  { %v2418_v6 = vsel %vm5957_vm8, %v5669_v49, %v2415_v37  ;;  %2571 = vrot.lane.b32.xlu2 %v5944_v26, %s4466_s5  ;;  %v2461_v17 = vmax.f32 %v2457_v0, %v2453_v55  ;;  %vm7241_vm5 = vmmov %vm7237_vm3 }
 0x8ca   :  { %v2420_v23 = vmul.f32 %v2418_v6, %v2418_v6 }
 0x8cc   :  { %v2428_v18 = vmul.f32 -0.00019511016, %v2420_v23  ;;  %v2421_v9 = vmul.f32 -0.001358992, %v2420_v23 }
 0x8ce   :  { %v2429_v16 = vadd.f32 0.008332121, %v2428_v18  ;;  %v2422_v45 = vadd.f32 0.041655596, %v2421_v9 }
 0x8cf   :  { %2601 = vrot.lane.b32.xlu0 %v2461_v17, %s4467_s1 }
 0x8d0   :  { %v2430_v33 = vmul.f32 %v2429_v16, %v2420_v23  ;;  %v2423_v58 = vmul.f32 %v2422_v45, %v2420_v23 }
 0x8d2   :  { %v2431_v54 = vadd.f32 -0.16666654, %v2430_v33  ;;  %v2424_v22 = vadd.f32 -0.4999988, %v2423_v58 }
 0x8d4   :  { %v2432_v59 = vmul.f32 %v2431_v54, %v2420_v23  ;;  %v2425_v14 = vmul.f32 %v2424_v22, %v2420_v23 }
 0x8d6   :  { %v2433_v7 = vadd.f32 1.0, %v2432_v59  ;;  %v2426_v47 = vadd.f32 1.0, %v2425_v14 }
 0x8d8   :  { %v2434_v25 = vmul.f32 %v2433_v7, %v2418_v6  ;;  %v2443_v29 = vxor.u32 2147483648, %v2426_v47 }
 0x8da   :  { %v2440_v15 = vxor.u32 2147483648, %v2434_v25  ;;  %v2444_v38 = vsel %vm2442_vm10, %v2443_v29, %v2434_v25 }
 0x8dc   :  { %v2441_v63 = vsel %vm2439_vm11, %v2426_v47, %v2440_v15  ;;  %vm7242_vm11 = vcmp.lt.s32.totalorder %v4611_v19, 2 }
 0x8dd   :  { %v2445_v30 = vsel %vm2438_vm15, %v2441_v63, %v2444_v38  ;;  %vm7243_vm10 = vmmov %vm7242_vm11 }
 0x8de   :  { %v2446_v61 = vsel %vm2435_vm9, nan, %v2445_v30  ;;  %vm7244_vm15 = vmmov %vm7243_vm10  ;;  %v2671_v30 = vld [vmem:[%s7147_s18 + $0x8] sm:$0xff] }
 0x8df   :  { %v2450_v40 = vmul.f32 %v2446_v61, %v2446_v61  ;;  %vm7245_vm9 = vmmov %vm7243_vm10  ;;  %v2672_v61 = vld [vmem:[%s7148_s19] sm:$0xff] }
 0x8e1   :  { %v2454_v51 = vadd.f32 %v2450_v40, %v5669_v49  ;;  %v2670_v49 = vld [vmem:[%s7147_s18] sm:$0xff]  ;;  %v2673_v40 = vld [vmem:[%s7148_s19 + $0x8] sm:$0xff]  ;;  %s4480_s18 = smov 16  }
 0x8e3   :  { %v2458_v21 = vmul.f32 0.1, %v2454_v51 }
 0x8e5   :  { %v2462_v12 = vmax.f32 %v2458_v21, %v2454_v51 }
 0x8e7   :  { %2605 = vrot.lane.b32.xlu1 %v2462_v12, %s4467_s1  ;;  %2589 = vrot.lane.b32.xlu2 %v2462_v12, %s4469_s2 }
 0x8e8   :  { %2573 = vrot.lane.b32.xlu0 %v2462_v12, %s4466_s5 }
 0x8ef   :  { %2585 = vrot.lane.b32.xlu1 %v2461_v17, %s4469_s2  ;;  %2569 = vrot.lane.b32.xlu2 %v2461_v17, %s4466_s5 }
 0x8f0   :  { %2553 = vrot.lane.b32.xlu0 %v2461_v17, %s4465_s25 }
 0x8f7   :  { %2567 = vrot.lane.b32.xlu1 %v5946_v20, %s4466_s5  ;;  %2551 = vrot.lane.b32.xlu2 %v5946_v20, %s4465_s25 }
 0x8f8   :  { %2555 = vrot.lane.b32.xlu0 %v5944_v26, %s4465_s25 }
 0x8ff   :  { %2557 = vrot.lane.b32.xlu1 %v2462_v12, %s4465_s25 }
 0x900   :  { %2732 = vperm.xlu0 %4412, %v2670_v49  }
 0x91b   :  { %v2600_v1 = vpop.permute.xlu2 %2599 }
 0x923   :  { %v2572_v50 = vpop.permute.xlu2 %2571 }
 0x931   :  { %v2604_v57 = vpop.permute.xlu0 %2603  ;;  %v2588_v5 = vpop.permute.xlu1 %2587 }
 0x932   :  { %v2607_v6 = vsel %vm233_vm1, %v2600_v1, %v2604_v57  ;;  %v2609_v34 = vsel %vm233_vm1, %v2604_v57, %v2600_v1 }
 0x939   :  { %v2584_v53 = vpop.permute.xlu0 %2583 }
 0x93a   :  { %v2591_v24 = vsel %vm215_vm13, %v2584_v53, %v2588_v5  ;;  %v2593_v27 = vsel %vm215_vm13, %v2588_v5, %v2584_v53 }
 0x941   :  { %v2602_v3 = vpop.permute.xlu0 %2601  ;;  %v2590_v23 = vpop.permute.xlu2 %2589 }
 0x949   :  { %v2570_v11 = vpop.permute.xlu2 %2569 }
 0x951   :  { %v2552_v10 = vpop.permute.xlu2 %2551 }
 0x959   :  { %v2606_v60 = vpop.permute.xlu1 %2605 }
 0x95a   :  { %v2608_v8 = vsel %vm233_vm1, %v2602_v3, %v2606_v60  ;;  %v2610_v37 = vsel %vm233_vm1, %v2606_v60, %v2602_v3  ;;  %v2574_v35 = vpop.permute.xlu0 %2573  ;;  %vm7234_vm1 = vcmp.lt.s32.totalorder %v4611_v19, 1 }
 0x95b   :  { %4303 = vmatpush.msk.msra.mxu2 %vm139_vm0, %v2608_v8  ;;  %4313 = vmatpush.msk.msra.mxu3 %vm140_vm6, %v2610_v37  ;;  %v2576_v16 = vsel %vm7234_vm1, %v2570_v11, %v2574_v35  ;;  %vm7238_vm8 = vmmov %vm7234_vm1 }
 0x95c   :  { %vm7239_vm2 = vmmov %vm7234_vm1 }
 0x95d   :  { %4304 = vmatpush.msk.msra.mxu2 %vm139_vm0, %v2607_v6  ;;  %4314 = vmatpush.msk.msra.mxu3 %vm140_vm6, %v2609_v34  ;;  %vm7233_vm0 = vmmov %vm7232_vm7 }
 0x95e   :  { %vm7235_vm6 = vmmov %vm7234_vm1  ;;  %vm2617_vm1 = vcmask 654336  }
 0x95f   :  { %v2578_v45 = vsel %vm7235_vm6, %v2574_v35, %v2570_v11 }
 0x961   :  { %v2586_v44 = vpop.permute.xlu1 %2585 }
 0x962   :  { %v2592_v4 = vsel %vm215_vm13, %v2586_v44, %v2590_v23  ;;  %v2594_v18 = vsel %vm215_vm13, %v2590_v23, %v2586_v44  ;;  %v2554_v9 = vpop.permute.xlu0 %2553 }
 0x963   :  { %4305 = vmatpush.msk.msra.mxu2 %vm131_vm14, %v2592_v4  ;;  %4315 = vmatpush.msk.msra.mxu3 %vm7232_vm7, %v2594_v18  ;;  %vm7246_vm7 = vcmp.ge.s32.totalorder %v4625_v28, 0 }
 0x964   :  { %vm7248_vm6 = vmmov %vm7246_vm7 }
 0x965   :  { %4306 = vmatpush.msk.msra.mxu2 %vm131_vm14, %v2591_v24  ;;  %4316 = vmatpush.msk.msra.mxu3 %vm7233_vm0, %v2593_v27  ;;  %vm7247_vm0 = vcmp.ge.s32.totalorder %v4627_v31, 0 }
 0x967   :  { %2634 = vmatpush.msra.mxu2 %v2461_v17  ;;  %2657 = vmatpush.msra.mxu3 %v2462_v12  ;;  %v2615_v17 = vld [vmem:[%s7146_s17] sm:$0xff] }
 0x969   :  { %v2568_v13 = vpop.permute.xlu1 %2567  ;;  %2635 = vmatpush.msra.mxu2 %v5946_v20  ;;  %2658 = vmatpush.msra.mxu3 %v5944_v26 }
 0x96a   :  { %v2575_v55 = vsel %vm7238_vm8, %v2568_v13, %v2572_v50  ;;  %v2577_v20 = vsel %vm7239_vm2, %v2572_v50, %v2568_v13  ;;  %v2556_v26 = vpop.permute.xlu0 %2555 }
 0x96b   :  { %4307 = vmatpush.msk.msra.mxu2 %vm7236_vm12, %v2578_v45  ;;  %4317 = vmatpush.msk.msra.mxu3 %vm7237_vm3, %v2576_v16  ;;  %v2559_v54 = vsel %vm7244_vm15, %v2552_v10, %v2556_v26  ;;  %v2561_v22 = vsel %vm7245_vm9, %v2556_v26, %v2552_v10  ;;  %vm7249_vm12 = vmmov %vm7247_vm0 }
 0x96d   :  { %4308 = vmatpush.msk.msra.mxu2 %vm7240_vm4, %v2577_v20  ;;  %4318 = vmatpush.msk.msra.mxu3 %vm7241_vm5, %v2575_v55 }
 0x971   :  { %v2558_v33 = vpop.permute.xlu1 %2557 }
 0x972   :  { %v2560_v58 = vsel %vm7242_vm11, %v2554_v9, %v2558_v33  ;;  %v2562_v0 = vsel %vm7243_vm10, %v2558_v33, %v2554_v9  ;;  %v2733_v12 = vpop.permute.xlu0 %2732 }
 0x973   :  { %4309 = vmatpush.msk.msra.mxu2 %vm7246_vm7, %v2562_v0  ;;  %4319 = vmatpush.msk.msra.mxu3 %vm7247_vm0, %v2560_v58 }
 0x975   :  { %4310 = vmatpush.msk.msra.mxu2 %vm7248_vm6, %v2561_v22  ;;  %4320 = vmatpush.msk.msra.mxu3 %vm7249_vm12, %v2559_v54 }
 0x976   :  { %4311 = vmatmul.msk.f32.vlgmr.msra.gmra.mxu2 %vm2617_vm1, %v2615_v17  ;;  %4321 = vmatmul.msk.f32.vlgmr.msra.gmra.mxu3 %vm2617_vm1, %v2615_v17 }
 0x97e   :  { %4312 = vmatmul.msk.f32.gmra.mxu2 %vm2617_vm1, %v2616_v62  ;;  %4322 = vmatmul.msk.f32.gmra.mxu3 %vm2617_vm1, %v2616_v62 }
 0x9f9   :  { %v2641_v59 = vpop.f32.mrf.mxu2  ;;  %v2664_v14 = vpop.f32.mrf.mxu3 }
 0x9fa   :  { %v2674_v7 = vadd.f32 %v2664_v14, %v2641_v59  ;;  %v2682_v47 = vmul.f32 %v2641_v59, %v2641_v59  ;;  %v2683_v2 = vmul.f32 %v2664_v14, %v2664_v14 }
 0x9fc   :  { %2675 = vadd.xlane.f32.xlu2 %v2674_v7  ;;  %v2686_v25 = vadd.f32 %v2683_v2, %v2682_v47 }
 0x9fe   :  { %2687 = vadd.xlane.f32.xlu1 %v2686_v25 }
 0xa01   :  { %v6069_v28 = vpop.f32.mrf.mxu2  ;;  %v6071_v31 = vpop.f32.mrf.mxu3 }
 0xa02   :  { %v2684_v29 = vmul.f32 %v6069_v28, %v6069_v28  ;;  %v2685_v15 = vmul.f32 %v6071_v31, %v6071_v31  ;;  %v2677_v63 = vadd.f32 %v6071_v31, %v6069_v28 }
 0xa04   :  { %v2689_v38 = vadd.f32 %v2685_v15, %v2684_v29 }
 0xa06   :  { %2690 = vadd.xlane.f32.xlu0 %v2689_v38  ;;  %2678 = vadd.xlane.f32.xlu1 %v2677_v63 }
 0xa14   :  { %2737 = vperm.xlu2 %4413, %v2671_v30  }
 0xa1a   :  { %2746 = vperm.xlu0 %4412, %v2672_v61  }
 0xa1f   :  { %2751 = vperm.xlu1 %4414, %v2673_v40  }
 0xa6f   :  { %v2676_v51 = vpop.xlane.xlu2 %2675 }
 0xa70   :  { %v2680_v21 = vmul.f32 0.00390625, %v2676_v51 }
 0xa71   :  { %v2688_v49 = vpop.xlane.xlu1 %2687 }
 0xa72   :  { %v2692_v57 = vmul.f32 0.00390625, %v2688_v49  ;;  %v2694_v53 = vmul.f32 %v2680_v21, %v2680_v21  ;;  %v2700_v13 = vsub.f32 %v2641_v59, %v2680_v21  ;;  %v2701_v16 = vsub.f32 %v2664_v14, %v2680_v21 }
 0xa74   :  { %v2696_v1 = vsub.f32 %v2692_v57, %v2694_v53 }
 0xa76   :  { %v2698_v5 = vmax.f32 %v2696_v1, 0.0 }
 0xa78   :  { %v2704_v3 = vadd.f32 1e-05, %v2698_v5 }
 0xa79   :  { %v2679_v50 = vpop.xlane.xlu1 %2678  ;;  %v2691_v60 = vpop.xlane.xlu0 %2690 }
 0xa7a   :  { %4427 = vrsqrt.f32 %v2704_v3  ;;  %v6088_v8 = vmul.f32 0.00390625, %v2679_v50  ;;  %v2693_v37 = vmul.f32 0.00390625, %v2691_v60  ;;  %vm2712_vm8 = vweird.f32 %v2704_v3 }
 0xa7c   :  { %v2695_v35 = vmul.f32 %v6088_v8, %v6088_v8  ;;  %v2703_v57 = vsub.f32 %v6071_v31, %v6088_v8 }
 0xa7e   :  { %v2697_v6 = vsub.f32 %v2693_v37, %v2695_v35 }
 0xa80   :  { %v4428_v34 = vpop.eup %4427  ;;  %v2699_v23 = vmax.f32 %v2697_v6, 0.0 }
 0xa81   :  { %v2707_v44 = vmul.f32 %v4428_v34, %v2704_v3  ;;  %vm2713_vm3 = vweird.f32 %v4428_v34 }
 0xa82   :  { %v2705_v4 = vadd.f32 1e-05, %v2699_v23  ;;  %vm2714_vm2 = vmor %vm2712_vm8, %vm2713_vm3 }
 0xa83   :  { %v2708_v18 = vmul.f32 %v4428_v34, %v2707_v44 }
 0xa84   :  { %4429 = vrsqrt.f32 %v2705_v4  ;;  %vm2722_vm5 = vweird.f32 %v2705_v4 }
 0xa85   :  { %v2709_v24 = vmul.f32 0.5, %v2708_v18 }
 0xa87   :  { %v2710_v27 = vsub.f32 1.5, %v2709_v24 }
 0xa89   :  { %v2711_v9 = vmul.f32 %v4428_v34, %v2710_v27  ;;  %v7250_v27 = vmov 1326507024  }
 0xa8a   :  { %v4430_v11 = vpop.eup %4429 }
 0xa8b   :  { %v2717_v45 = vmul.f32 %v4430_v11, %v2705_v4  ;;  %v2715_v55 = vsel %vm2714_vm2, %v4428_v34, %v2711_v9  ;;  %vm2723_vm4 = vweird.f32 %v4430_v11 }
 0xa8c   :  { %v2726_v20 = vmul.f32 %v2715_v55, %v2700_v13  ;;  %v2727_v26 = vmul.f32 %v2715_v55, %v2701_v16  ;;  %v2747_v54 = vpop.permute.xlu0 %2746  ;;  %vm2724_vm10 = vmor %vm2722_vm5, %vm2723_vm4 }
 0xa8d   :  { %v2718_v10 = vmul.f32 %v4430_v11, %v2717_v45 }
 0xa8e   :  { %v2740_v33 = vmul.f32 %v2733_v12, %v2726_v20  ;;  %v2741_v58 = vmul.f32 %v2733_v12, %v2727_v26  ;;  %v2702_v12 = vsub.f32 %v6069_v28, %v6088_v8 }
 0xa8f   :  { %v2719_v0 = vmul.f32 0.5, %v2718_v10 }
 0xa90   :  { %v6092_v22 = vadd.f32 %v2747_v54, %v2740_v33  ;;  %v6094_v17 = vadd.f32 %v2747_v54, %v2741_v58 }
 0xa91   :  { %v2720_v59 = vsub.f32 1.5, %v2719_v0 }
 0xa92   :  { %v2758_v62 = vand.u32 2147483647, %v6092_v22  ;;  %v2761_v7 = vand.u32 2139095040, %v6092_v22  ;;  %v2913_v25 = vand.u32 2147483647, %v6094_v17  ;;  %v2916_v29 = vand.u32 2139095040, %v6094_v17 }
 0xa93   :  { %v2721_v15 = vmul.f32 %v4430_v11, %v2720_v59 }
 0xa94   :  { %v2762_v14 = vshrl.u32 %v2761_v7, 23  ;;  %v2765_v47 = vand.u32 8388607, %v2758_v62  ;;  %v2917_v30 = vshrl.u32 %v2916_v29, 23  ;;  %v2920_v61 = vand.u32 8388607, %v2913_v25 }
 0xa95   :  { %v6104_v21 = vsel %vm2724_vm10, %v4430_v11, %v2721_v15 }
 0xa96   :  { %v4323_v2 = vadd.s32 4294967169, %v2762_v14  ;;  %v2766_v38 = vor.u32 8388608, %v2765_v47  ;;  %v4326_v51 = vadd.s32 4294967169, %v2917_v30  ;;  %v2921_v3 = vor.u32 8388608, %v2920_v61 }
 0xa97   :  { %v2728_v60 = vmul.f32 %v6104_v21, %v2702_v12 }
 0xa98   :  { %v2768_v63 = vadd.s32 1, %v4323_v2  ;;  %v6110_v1 = vshll.u32 %v2766_v38, 8  ;;  %v2923_v50 = vadd.s32 1, %v4326_v51  ;;  %v6128_v38 = vpop.permute.xlu2 %2737 }
 0xa9a   :  { %vm2769_vm11 = vcmp.gt.s32.totalorder %v2768_v63, 0  ;;  %vm2924_vm9 = vcmp.gt.s32.totalorder %v2923_v50, 0  ;;  %v2807_v15 = vand.u32 65535, %v6110_v1 }
 0xa9b   :  { %v2770_v40 = vsel %vm2769_vm11, %v2768_v63, 0  ;;  %v2925_v20 = vsel %vm2924_vm9, %v2923_v50, 0  ;;  %v2808_v63 = vshrl.u32 %v6110_v1, 16  ;;  %v6138_v50 = vmul.f32 %v6128_v38, %v2728_v60 }
 0xa9c   :  { %v2772_v49 = vand.u32 31, %v2770_v40  ;;  %v2771_v53 = vshrl.u32 %v2770_v40, 5  ;;  %v2927_v47 = vand.u32 31, %v2925_v20 }
 0xa9e   :  { %v2773_v5 = vsub.s32 32, %v2772_v49  ;;  %v2775_v37 = vshll.u32 %v4472_v39, %v2772_v49  ;;  %v2778_v35 = vshll.u32 %v4473_v41, %v2772_v49  ;;  %v2781_v6 = vshll.u32 %v4474_v48, %v2772_v49 }
 0xa9f   :  { %v2784_v28 = vshll.u32 %v4475_v52, %v2772_v49  ;;  %v2787_v4 = vshll.u32 %v4476_v56, %v2772_v49  ;;  %vm2790_vm15 = vcmp.lt.s32.totalorder %v2771_v53, 1  ;;  %vm2793_vm7 = vcmp.lt.s32.totalorder %v2771_v53, 4 }
 0xaa0   :  { %v2776_v34 = vshrl.u32 %v4473_v41, %v2773_v5  ;;  %v2779_v23 = vshrl.u32 %v4474_v48, %v2773_v5  ;;  %v2782_v44 = vshrl.u32 %v4475_v52, %v2773_v5  ;;  %v2774_v18 = vshrl.u32 %v4472_v39, %v2773_v5 }
 0xaa1   :  { %v2785_v24 = vshrl.u32 %v4476_v56, %v2773_v5  ;;  %v2788_v9 = vshrl.u32 %v7250_v27, %v2773_v5  ;;  %vm2791_vm0 = vcmp.lt.s32.totalorder %v2771_v53, 2  ;;  %vm2792_vm1 = vcmp.lt.s32.totalorder %v2771_v53, 3 }
 0xaa2   :  { %v2777_v11 = vor.u32 %v2776_v34, %v2775_v37  ;;  %v2780_v13 = vor.u32 %v2779_v23, %v2778_v35  ;;  %v2783_v16 = vor.u32 %v2782_v44, %v2781_v6  ;;  %v6133_v49 = vshrl.u32 %v2925_v20, 5 }
 0xaa3   :  { %v2786_v45 = vor.u32 %v2785_v24, %v2784_v28  ;;  %v2789_v55 = vor.u32 %v2788_v9, %v2787_v4  ;;  %v6135_v5 = vshll.u32 %v2921_v3, 8  ;;  %v6140_v6 = vsub.s32 32, %v2927_v47 }
 0xaa4   :  { %v2795_v26 = vsel %vm2793_vm7, %v2783_v16, 2102212464  ;;  %v2798_v10 = vsel %vm2790_vm15, %v2777_v11, %v2780_v13  ;;  %v2802_v33 = vsel %vm2790_vm15, %v2780_v13, %v2783_v16  ;;  %v2794_v58 = vsel %vm2790_vm15, %v2774_v18, %v2777_v11 }
 0xaa5   :  { %v2799_v0 = vsel %vm2793_vm7, %v2786_v45, 920167782  ;;  %v2803_v54 = vsel %vm2793_vm7, %v2789_v55, 1326507024  ;;  %v2796_v7 = vsel %vm2792_vm1, %v2780_v13, %v2795_v26  ;;  %v2930_v28 = vshll.u32 %v4472_v39, %v2927_v47 }
 0xaa6   :  { %v2800_v59 = vsel %vm2792_vm1, %v2783_v16, %v2799_v0  ;;  %v2804_v14 = vsel %vm2792_vm1, %v2786_v45, %v2803_v54  ;;  %v6131_v12 = vsel %vm2791_vm0, %v2794_v58, %v2796_v7  ;;  %v2933_v44 = vshll.u32 %v4473_v41, %v2927_v47 }
 0xaa7   :  { %v2801_v2 = vsel %vm2791_vm0, %v2798_v10, %v2800_v59  ;;  %v2805_v29 = vsel %vm2791_vm0, %v2802_v33, %v2804_v14  ;;  %v2936_v53 = vshll.u32 %v4474_v48, %v2927_v47  ;;  %v2931_v55 = vshrl.u32 %v4473_v41, %v6140_v6 }
 0xaa8   :  { %v2809_v30 = vand.u32 65535, %v2805_v29  ;;  %v2810_v61 = vshrl.u32 %v2805_v29, 16  ;;  %v2831_v40 = vand.u32 65535, %v2801_v2  ;;  %v2832_v51 = vshrl.u32 %v2801_v2, 16 }
 0xaa9   :  { %v2934_v10 = vshrl.u32 %v4474_v48, %v6140_v6  ;;  %v2932_v29 = vor.u32 %v2931_v55, %v2930_v28  ;;  %vm2945_vm2 = vcmp.lt.s32.totalorder %v6133_v49, 1  ;;  %vm2948_vm4 = vcmp.lt.s32.totalorder %v6133_v49, 4 }
 0xaaa   :  { %v2812_v37 = vmul.u32 %v2810_v61, %v2807_v15  ;;  %v2813_v35 = vmul.u32 %v2809_v30, %v2808_v63  ;;  %v2834_v34 = vmul.u32 %v2832_v51, %v2807_v15  ;;  %v2835_v23 = vmul.u32 %v2831_v40, %v2808_v63 }
 0xaab   :  { %v2811_v4 = vmul.u32 %v2809_v30, %v2807_v15  ;;  %v2814_v18 = vmul.u32 %v2810_v61, %v2808_v63  ;;  %v2833_v3 = vmul.u32 %v2831_v40, %v2807_v15  ;;  %v2836_v60 = vmul.u32 %v2832_v51, %v2808_v63 }
 0xaac   :  { %v2815_v24 = vshll.u32 %v2812_v37, 16  ;;  %v2816_v9 = vshrl.u32 %v2812_v37, 16  ;;  %v2817_v11 = vshll.u32 %v2813_v35, 16  ;;  %v2837_v13 = vshll.u32 %v2834_v34, 16 }
 0xaad   :  { %v2839_v45 = vshll.u32 %v2835_v23, 16  ;;  %v2818_v33 = vshrl.u32 %v2813_v35, 16  ;;  %v2838_v7 = vshrl.u32 %v2834_v34, 16  ;;  %v2937_v15 = vshrl.u32 %v4475_v52, %v6140_v6 }
 0xaae   :  { %vm2819_vm6 = vc.u32 %v2811_v4, %v2815_v24  ;;  %v2821_v16 = vadd.s32 %v2815_v24, %v2811_v4  ;;  %vm2841_vm12 = vc.u32 %v2833_v3, %v2837_v13  ;;  %v2843_v26 = vadd.s32 %v2837_v13, %v2833_v3 }
 0xaaf   :  { %v2820_v20 = vsel %vm2819_vm6, 1, %v4471_v32  ;;  %v2842_v0 = vsel %vm2841_vm12, 1, %v4471_v32  ;;  %v6155_v30 = vor.u32 %v2934_v10, %v2933_v44  ;;  %v2939_v61 = vshll.u32 %v4475_v52, %v2927_v47 }
 0xab0   :  { %v2822_v58 = vadd.s32 %v2820_v20, %v2814_v18  ;;  %vm2823_vm3 = vc.u32 %v2821_v16, %v2817_v11  ;;  %v2844_v59 = vadd.s32 %v2842_v0, %v2836_v60  ;;  %vm2845_vm8 = vc.u32 %v2843_v26, %v2839_v45 }
 0xab1   :  { %v2824_v54 = vsel %vm2823_vm3, 1, %v4471_v32  ;;  %v2846_v2 = vsel %vm2845_vm8, 1, %v4471_v32  ;;  %v2940_v40 = vshrl.u32 %v4476_v56, %v6140_v6  ;;  %v2938_v37 = vor.u32 %v2937_v15, %v2936_v53 }
 0xab2   :  { %v2826_v14 = vadd.s32 %v2824_v54, %v2822_v58  ;;  %v2848_v63 = vadd.s32 %v2846_v2, %v2844_v59  ;;  %v2942_v35 = vshll.u32 %v4476_v56, %v2927_v47  ;;  %v2943_v34 = vshrl.u32 %v7250_v27, %v6140_v6 }
 0xab3   :  { %v2840_v4 = vshrl.u32 %v2835_v23, 16  ;;  %v2941_v18 = vor.u32 %v2940_v40, %v2939_v61  ;;  %v6166_v44 = vadd.s32 %v2843_v26, %v2839_v45  ;;  %vm2947_vm5 = vcmp.lt.s32.totalorder %v6133_v49, 3 }
 0xab4   :  { %v2827_v51 = vadd.s32 %v2826_v14, %v2816_v9  ;;  %v2849_v28 = vadd.s32 %v2848_v63, %v2838_v7  ;;  %v2944_v3 = vor.u32 %v2943_v34, %v2942_v35  ;;  %v2953_v47 = vsel %vm2945_vm2, %v2932_v29, %v6155_v30 }
 0xab5   :  { %v2954_v23 = vsel %vm2948_vm4, %v2941_v18, 920167782  ;;  %vm2946_vm10 = vcmp.lt.s32.totalorder %v6133_v49, 2  ;;  %v2962_v9 = vand.u32 65535, %v6135_v5  ;;  %v2957_v16 = vsel %vm2945_vm2, %v6155_v30, %v2938_v37 }
 0xab6   :  { %v6164_v24 = vadd.s32 %v2827_v51, %v2818_v33  ;;  %v2850_v11 = vadd.s32 %v2849_v28, %v2840_v4  ;;  %v2955_v53 = vsel %vm2947_vm5, %v2938_v37, %v2954_v23  ;;  %v2958_v45 = vsel %vm2948_vm4, %v2944_v3, 1326507024  ;;  %v2752_v51 = vpop.permute.xlu1 %2751 }
 0xab7   :  { %v2956_v13 = vsel %vm2946_vm10, %v2953_v47, %v2955_v53  ;;  %v2851_v55 = vmul.u32 %v6110_v1, %v6131_v12  ;;  %v2959_v20 = vsel %vm2947_vm5, %v2941_v18, %v2958_v45  ;;  %v2929_v58 = vshrl.u32 %v4472_v39, %v6140_v6 }
 0xab8   :  { %vm2853_vm11 = vc.u32 %v6164_v24, %v6166_v44  ;;  %v2854_v60 = vadd.s32 1, %v2850_v11  ;;  %v2986_v26 = vand.u32 65535, %v2956_v13  ;;  %v2987_v10 = vshrl.u32 %v2956_v13, 16 }
 0xab9   :  { %v2960_v0 = vsel %vm2946_vm10, %v2957_v16, %v2959_v20  ;;  %v2963_v54 = vshrl.u32 %v6135_v5, 16  ;;  %v2949_v1 = vsel %vm2945_vm2, %v2929_v58, %v2932_v29  ;;  %v2729_v15 = vmul.f32 %v6104_v21, %v2703_v57 }
 0xaba   :  { %v2855_v33 = vsel %vm2853_vm11, %v2854_v60, %v2850_v11  ;;  %v2964_v59 = vand.u32 65535, %v2960_v0  ;;  %v2965_v14 = vshrl.u32 %v2960_v0, 16  ;;  %v2989_v12 = vmul.u32 %v2987_v10, %v2962_v9 }
 0xabb   :  { %v2856_v7 = vadd.s32 %v2855_v33, %v2851_v55  ;;  %v2990_v2 = vmul.u32 %v2986_v26, %v2963_v54  ;;  %v2950_v6 = vsel %vm2948_vm4, %v2938_v37, 2102212464  ;;  %v2988_v35 = vmul.u32 %v2986_v26, %v2962_v9 }
 0xabc   :  { %v2967_v61 = vmul.u32 %v2965_v14, %v2962_v9  ;;  %v2968_v40 = vmul.u32 %v2964_v59, %v2963_v54  ;;  %v2991_v34 = vmul.u32 %v2987_v10, %v2963_v54  ;;  %v2992_v4 = vshll.u32 %v2989_v12, 16 }
 0xabd   :  { %v2857_v63 = vadd.s32 536870912, %v2856_v7  ;;  %v6206_v28 = vadd.f32 %v2752_v51, %v6138_v50  ;;  %v2966_v18 = vmul.u32 %v2964_v59, %v2962_v9  ;;  %v2969_v3 = vmul.u32 %v2965_v14, %v2963_v54 }
 0xabe   :  { %v2970_v31 = vshll.u32 %v2967_v61, 16  ;;  %v2972_v8 = vshll.u32 %v2968_v40, 16  ;;  %v2994_v21 = vshll.u32 %v2990_v2, 16  ;;  %vm2996_vm15 = vc.u32 %v2988_v35, %v2992_v4 }
 0xabf   :  { %v6208_v29 = vshrl.u32 %v2857_v63, 30  ;;  %v2998_v57 = vadd.s32 %v2992_v4, %v2988_v35  ;;  %v2997_v47 = vsel %vm2996_vm15, 1, %v4471_v32  ;;  %v2951_v50 = vsel %vm2947_vm5, %v6155_v30, %v2950_v6 }
 0xac0   :  { %vm2974_vm9 = vc.u32 %v2966_v18, %v2970_v31  ;;  %v2976_v11 = vadd.s32 %v2970_v31, %v2966_v18  ;;  %v2999_v53 = vadd.s32 %v2997_v47, %v2991_v34  ;;  %v2971_v16 = vshrl.u32 %v2967_v61, 16 }
 0xac1   :  { %v2859_v37 = vshll.u32 %v6208_v29, 30  ;;  %v2975_v23 = vsel %vm2974_vm9, 1, %v4471_v32  ;;  %vm3000_vm7 = vc.u32 %v2998_v57, %v2994_v21  ;;  %v2993_v55 = vshrl.u32 %v2989_v12, 16 }
 0xac2   :  { %v2977_v60 = vadd.s32 %v2975_v23, %v2969_v3  ;;  %vm2978_vm0 = vc.u32 %v2976_v11, %v2972_v8  ;;  %v3001_v13 = vsel %vm3000_vm7, 1, %v4471_v32  ;;  %v3071_v10 = vand.u32 2139095040, %v6206_v28 }
 0xac3   :  { %v6216_v9 = vsub.s32 %v2856_v7, %v2859_v37  ;;  %v2979_v45 = vsel %vm2978_vm0, 1, %v4471_v32  ;;  %v3003_v20 = vadd.s32 %v3001_v13, %v2999_v53  ;;  %v2995_v33 = vshrl.u32 %v2990_v2, 16 }
 0xac4   :  { %v2981_v30 = vadd.s32 %v2979_v45, %v2977_v60  ;;  %v3068_v0 = vand.u32 2147483647, %v6206_v28  ;;  %v2973_v7 = vshrl.u32 %v2968_v40, 16  ;;  %v3072_v14 = vshrl.u32 %v3071_v10, 23 }
 0xac5   :  { %vm2861_vm1 = vcmp.lt.s32.totalorder %v6216_v9, 0  ;;  %v2862_v26 = vsub.s32 0, %v6216_v9  ;;  %v3004_v58 = vadd.s32 %v3003_v20, %v2993_v55  ;;  %v2952_v12 = vsel %vm2946_vm10, %v2949_v1, %v2951_v50 }
 0xac6   :  { %v2982_v59 = vadd.s32 %v2981_v30, %v2971_v16  ;;  %v6229_v35 = vadd.s32 %v2998_v57, %v2994_v21  ;;  %v2743_v34 = vmul.f32 %v6128_v38, %v2729_v15  ;;  %v4329_v2 = vadd.s32 4294967169, %v3072_v14 }
 0xac7   :  { %v2863_v54 = vsel %vm2861_vm1, %v2862_v26, %v6216_v9  ;;  %v3005_v6 = vadd.s32 %v3004_v58, %v2995_v33  ;;  %v3075_v3 = vand.u32 8388607, %v3068_v0  ;;  %v3006_v40 = vmul.u32 %v6135_v5, %v2952_v12 }
 0xac8   :  { %v2864_v63 = vclz %v2863_v54  ;;  %v6227_v61 = vadd.s32 %v2982_v59, %v2973_v7  ;;  %v3078_v49 = vadd.s32 1, %v4329_v2  ;;  %v6237_v21 = vadd.f32 %v2752_v51, %v2743_v34 }
 0xac9   :  { %v3009_v18 = vadd.s32 1, %v3005_v6  ;;  %v3076_v15 = vor.u32 8388608, %v3075_v3  ;;  %v2852_v47 = vadd.s32 %v6166_v44, %v6164_v24  ;;  %vm7251_vm11 = vcmask 457728  }
 0xaca   :  { %v4324_v4 = vadd.s32 4294967294, %v2864_v63  ;;  %vm3008_vm6 = vc.u32 %v6227_v61, %v6229_v35  ;;  %vm3079_vm3 = vcmp.gt.s32.totalorder %v3078_v49, 0  ;;  %v3223_v23 = vand.u32 2147483647, %v6237_v21  ;;  %vm7252_vm10 = vmmov %vm7251_vm11 }
 0xacb   :  { %v3010_v1 = vsel %vm3008_vm6, %v3009_v18, %v3005_v6  ;;  %v3080_v57 = vsel %vm3079_vm3, %v3078_v49, 0  ;;  %v3226_v53 = vand.u32 2139095040, %v6237_v21  ;;  %v6246_v16 = vshll.u32 %v3076_v15, 8  ;;  %vm7253_vm3 = vmmov %vm7252_vm10 }
 0xacc   :  { %vm4325_vm12 = vcmp.lt.s32.totalorder %v4324_v4, 0  ;;  %v3011_v8 = vadd.s32 %v3010_v1, %v3006_v40  ;;  %v3082_v11 = vand.u32 31, %v3080_v57  ;;  %v6252_v44 = vshrl.u32 %v3080_v57, 5 }
 0xacd   :  { %v2867_v31 = vsel %vm4325_vm12, 0, %v4324_v4  ;;  %v3227_v2 = vshrl.u32 %v3226_v53, 23  ;;  %v3117_v3 = vand.u32 65535, %v6246_v16  ;;  %vm2760_vm7 = vcmp.lt.s32.totalorder %v6092_v22, 0 }
 0xace   :  { %v2872_v38 = vsub.s32 4294967266, %v2867_v31  ;;  %v3012_v37 = vadd.s32 536870912, %v3011_v8  ;;  %v3083_v50 = vsub.s32 32, %v3082_v11  ;;  %v2868_v60 = vsub.s32 32, %v2867_v31 }
 0xacf   :  { %v3085_v51 = vshll.u32 %v4472_v39, %v3082_v11  ;;  %v3088_v20 = vshll.u32 %v4473_v41, %v3082_v11  ;;  %v3094_v30 = vshll.u32 %v4475_v52, %v3082_v11  ;;  %v3091_v7 = vshll.u32 %v4474_v48, %v3082_v11 }
 0xad0   :  { %v6241_v5 = vshrl.u32 %v3012_v37, 30  ;;  %v2873_v13 = vadd.s32 127, %v2872_v38  ;;  %v3086_v55 = vshrl.u32 %v4473_v41, %v3083_v50  ;;  %v3089_v24 = vshrl.u32 %v4474_v48, %v3083_v50 }
 0xad1   :  { %v3092_v26 = vshrl.u32 %v4475_v52, %v3083_v50  ;;  %v3095_v10 = vshrl.u32 %v4476_v56, %v3083_v50  ;;  %v3097_v63 = vshll.u32 %v4476_v56, %v3082_v11  ;;  %v3098_v12 = vshrl.u32 %v7250_v27, %v3083_v50 }
 0xad2   :  { %v3014_v45 = vshll.u32 %v6241_v5, 30  ;;  %v3087_v58 = vor.u32 %v3086_v55, %v3085_v51  ;;  %v3090_v54 = vor.u32 %v3089_v24, %v3088_v20  ;;  %v2874_v59 = vshll.u32 %v2873_v13, 23 }
 0xad3   :  { %v3096_v14 = vor.u32 %v3095_v10, %v3094_v30  ;;  %v3093_v34 = vor.u32 %v3092_v26, %v3091_v7  ;;  %v2870_v4 = vshrl.u32 %v2852_v47, %v2868_v60  ;;  %v3099_v18 = vor.u32 %v3098_v12, %v3097_v63 }
 0xad4   :  { %v6257_v33 = vsub.s32 %v3011_v8, %v3014_v45  ;;  %vm3100_vm2 = vcmp.lt.s32.totalorder %v6252_v44, 1  ;;  %v2869_v40 = vshll.u32 %v6216_v9, %v2867_v31  ;;  %vm3103_vm4 = vcmp.lt.s32.totalorder %v6252_v44, 4  ;;  %v1666_v8 = vld [vmem:[%s7141_s12 + $0x10] sm:$0xff] }
 0xad5   :  { %v3108_v1 = vsel %vm3100_vm2, %v3087_v58, %v3090_v54  ;;  %v2875_v38 = vor.u32 4788187, %v2874_v59  ;;  %vm3102_vm5 = vcmp.lt.s32.totalorder %v6252_v44, 3  ;;  %v3109_v57 = vsel %vm3103_vm4, %v3096_v14, 920167782  ;;  %4279 = vmatmul.msk.f32.gmra.mxu0 %vm7251_vm11, %v1666_v8  ;;  %4289 = vmatmul.msk.f32.gmra.mxu1 %vm7252_vm10, %v1666_v8 }
 0xad6   :  { %vm3016_vm8 = vcmp.lt.s32.totalorder %v6257_v33, 0  ;;  %v3017_v6 = vsub.s32 0, %v6257_v33  ;;  %vm3101_vm15 = vcmp.lt.s32.totalorder %v6252_v44, 2  ;;  %v3110_v9 = vsel %vm3102_vm5, %v3093_v34, %v3109_v57 }
 0xad7   :  { %v3112_v31 = vsel %vm3100_vm2, %v3090_v54, %v3093_v34  ;;  %v3113_v37 = vsel %vm3103_vm4, %v3099_v18, 1326507024  ;;  %v2871_v11 = vor.u32 %v2870_v4, %v2869_v40  ;;  %v3111_v53 = vsel %vm3101_vm15, %v3108_v1, %v3110_v9 }
 0xad8   :  { %v3018_v49 = vsel %vm3016_vm8, %v3017_v6, %v6257_v33  ;;  %v3114_v60 = vsel %vm3102_vm5, %v3096_v14, %v3113_v37  ;;  %v3141_v51 = vand.u32 65535, %v3111_v53  ;;  %v3142_v45 = vshrl.u32 %v3111_v53, 16  ;;  %vm7254_vm8 = vmmov %vm7253_vm3 }
 0xad9   :  { %v3019_v15 = vclz %v3018_v49  ;;  %v3115_v13 = vsel %vm3101_vm15, %v3112_v31, %v3114_v60  ;;  %v4332_v55 = vadd.s32 4294967169, %v3227_v2  ;;  %v2876_v20 = vand.u32 2147483647, %v2875_v38 }
 0xada   :  { %v3118_v24 = vshrl.u32 %v6246_v16, 16  ;;  %v3119_v26 = vand.u32 65535, %v3115_v13  ;;  %v3120_v30 = vshrl.u32 %v3115_v13, 16  ;;  %v3105_v10 = vsel %vm3103_vm4, %v3093_v34, 2102212464 }
 0xadb   :  { %v4327_v47 = vadd.s32 4294967294, %v3019_v15  ;;  %v3144_v7 = vmul.u32 %v3142_v45, %v3117_v3  ;;  %v2878_v59 = vcvt.s32.f32 %v2871_v11  ;;  %v3084_v63 = vshrl.u32 %v4472_v39, %v3083_v50 }
 0xadc   :  { %v3145_v14 = vmul.u32 %v3141_v51, %v3118_v24  ;;  %v3122_v12 = vmul.u32 %v3120_v30, %v3117_v3  ;;  %v3123_v6 = vmul.u32 %v3119_v26, %v3118_v24  ;;  %v6298_v4 = vand.u32 8388607, %v3223_v23 }
 0xadd   :  { %vm4328_vm9 = vcmp.lt.s32.totalorder %v4327_v47, 0  ;;  %v3233_v2 = vadd.s32 1, %v4332_v55  ;;  %v2879_v18 = vmul.f32 %v2878_v59, %v2876_v20  ;;  %v3104_v40 = vsel %vm3100_vm2, %v3084_v63, %v3087_v58 }
 0xade   :  { %v3106_v34 = vsel %vm3102_vm5, %v3090_v54, %v3105_v10  ;;  %v3147_v49 = vshll.u32 %v3144_v7, 16  ;;  %v6305_v1 = vsel %vm4328_vm9, 0, %v4327_v47  ;;  %v3121_v50 = vmul.u32 %v3119_v26, %v3117_v3 }
 0xadf   :  { %v3125_v8 = vshll.u32 %v3122_v12, 16  ;;  %v3143_v38 = vmul.u32 %v3141_v51, %v3117_v3  ;;  %v3124_v15 = vmul.u32 %v3120_v30, %v3118_v24  ;;  %v3127_v57 = vshll.u32 %v3123_v6, 16  ;;  %v1667_v3 = vld [vmem:[%s7141_s12 + $0x18] sm:$0xff] }
 0xae0   :  { %v3146_v9 = vmul.u32 %v3142_v45, %v3118_v24  ;;  %v3149_v31 = vshll.u32 %v3145_v14, 16  ;;  %v2880_v58 = vxor.u32 2147483648, %v2879_v18  ;;  %v3027_v53 = vsub.s32 4294967266, %v6305_v1  ;;  %4280 = vmatmul.msk.f32.gmra.mxu0 %vm7253_vm3, %v1667_v3  ;;  %4290 = vmatmul.msk.f32.gmra.mxu1 %vm7254_vm8, %v1667_v3 }
 0xae1   :  { %vm3129_vm0 = vc.u32 %v3121_v50, %v3125_v8  ;;  %v3131_v37 = vadd.s32 %v3125_v8, %v3121_v50  ;;  %vm3151_vm1 = vc.u32 %v3143_v38, %v3147_v49  ;;  %v3153_v11 = vadd.s32 %v3147_v49, %v3143_v38 }
 0xae2   :  { %v3130_v54 = vsel %vm3129_vm0, 1, %v4471_v32  ;;  %v3152_v60 = vsel %vm3151_vm1, 1, %v4471_v32  ;;  %v3107_v51 = vsel %vm3101_vm15, %v3104_v40, %v3106_v34  ;;  %v3148_v55 = vshrl.u32 %v3144_v7, 16 }
 0xae3   :  { %v3132_v47 = vadd.s32 %v3130_v54, %v3124_v15  ;;  %vm3133_vm6 = vc.u32 %v3131_v37, %v3127_v57  ;;  %v3154_v13 = vadd.s32 %v3152_v60, %v3146_v9  ;;  %vm3155_vm12 = vc.u32 %v3153_v11, %v3149_v31 }
 0xae4   :  { %v3134_v45 = vsel %vm3133_vm6, 1, %v4471_v32  ;;  %v3156_v20 = vsel %vm3155_vm12, 1, %v4471_v32  ;;  %v3126_v24 = vshrl.u32 %v3122_v12, 16  ;;  %vm3234_vm2 = vcmp.gt.s32.totalorder %v3233_v2, 0 }
 0xae5   :  { %v3136_v26 = vadd.s32 %v3134_v45, %v3132_v47  ;;  %v3158_v30 = vadd.s32 %v3156_v20, %v3154_v13  ;;  %v3023_v10 = vsub.s32 32, %v6305_v1  ;;  %v3028_v59 = vadd.s32 127, %v3027_v53 }
 0xae6   :  { %v3128_v63 = vshrl.u32 %v3123_v6, 16  ;;  %v3235_v49 = vsel %vm3234_vm2, %v3233_v2, 0  ;;  %v3150_v40 = vshrl.u32 %v3145_v14, 16  ;;  %v2881_v7 = vsel %vm2760_vm7, %v2880_v58, %v2879_v18 }
 0xae7   :  { %v3137_v44 = vadd.s32 %v3136_v26, %v3126_v24  ;;  %v3159_v34 = vadd.s32 %v3158_v30, %v3148_v55  ;;  %v3237_v50 = vand.u32 31, %v3235_v49  ;;  %v3007_v8 = vadd.s32 %v6229_v35, %v6227_v61 }
 0xae8   :  { %v3024_v12 = vshll.u32 %v6257_v33, %v6305_v1  ;;  %v3231_v38 = vor.u32 8388608, %v6298_v4  ;;  %v3157_v57 = vadd.s32 %v3153_v11, %v3149_v31  ;;  %vm6329_vm4 = vcmp.le.f32.partialorder %v2758_v62, 0.7853982 }
 0xae9   :  { %v3138_v15 = vadd.s32 %v3137_v44, %v3128_v63  ;;  %v3160_v9 = vadd.s32 %v3159_v34, %v3150_v40  ;;  %v3238_v6 = vsub.s32 32, %v3237_v50  ;;  %v3025_v2 = vshrl.u32 %v3007_v8, %v3023_v10 }
 0xaea   :  { %v3029_v18 = vshll.u32 %v3028_v59, 23  ;;  %v3161_v37 = vmul.u32 %v6246_v16, %v3107_v51  ;;  %v6334_v61 = vshrl.u32 %v3235_v49, 5  ;;  %v3240_v33 = vshll.u32 %v4472_v39, %v3237_v50 }
 0xaeb   :  { %vm3163_vm5 = vc.u32 %v3138_v15, %v3157_v57  ;;  %v3164_v35 = vadd.s32 1, %v3160_v9  ;;  %v3243_v4 = vshll.u32 %v4473_v41, %v3237_v50  ;;  %v3241_v1 = vshrl.u32 %v4473_v41, %v3238_v6 }
 0xaec   :  { %v3244_v31 = vshrl.u32 %v4474_v48, %v3238_v6  ;;  %v3246_v62 = vshll.u32 %v4474_v48, %v3237_v50  ;;  %v3249_v11 = vshll.u32 %v4475_v52, %v3237_v50  ;;  %v3247_v53 = vshrl.u32 %v4475_v52, %v3238_v6 }
 0xaed   :  { %v3165_v58 = vsel %vm3163_vm5, %v3164_v35, %v3160_v9  ;;  %v3250_v16 = vshrl.u32 %v4476_v56, %v3238_v6  ;;  %v3252_v54 = vshll.u32 %v4476_v56, %v3237_v50  ;;  %v6345_v47 = vor.u32 %v3241_v1, %v3240_v33 }
 0xaee   :  { %v3166_v60 = vadd.s32 %v3165_v58, %v3161_v37  ;;  %v6347_v13 = vor.u32 %v3244_v31, %v3243_v4  ;;  %v3253_v3 = vshrl.u32 %v7250_v27, %v3238_v6  ;;  %v3026_v51 = vor.u32 %v3025_v2, %v3024_v12 }
 0xaef   :  { %v3030_v45 = vor.u32 4788187, %v3029_v18  ;;  %v3248_v55 = vor.u32 %v3247_v53, %v3246_v62  ;;  %v3251_v20 = vor.u32 %v3250_v16, %v3249_v11  ;;  %vm3255_vm11 = vcmp.lt.s32.totalorder %v6334_v61, 1 }
 0xaf0   :  { %v3167_v24 = vadd.s32 536870912, %v3166_v60  ;;  %v3254_v26 = vor.u32 %v3253_v3, %v3252_v54  ;;  %vm3258_vm10 = vcmp.lt.s32.totalorder %v6334_v61, 4  ;;  %vm3257_vm15 = vcmp.lt.s32.totalorder %v6334_v61, 3 }
 0xaf1   :  { %v3263_v30 = vsel %vm3255_vm11, %v6345_v47, %v6347_v13  ;;  %v3264_v10 = vsel %vm3258_vm10, %v3251_v20, 920167782  ;;  %v6359_v59 = vshll.u32 %v3231_v38, 8  ;;  %vm3256_vm9 = vcmp.lt.s32.totalorder %v6334_v61, 2 }
 0xaf2   :  { %v6361_v63 = vshrl.u32 %v3167_v24, 30  ;;  %v3265_v49 = vsel %vm3257_vm15, %v3248_v55, %v3264_v10  ;;  %v3267_v44 = vsel %vm3255_vm11, %v6347_v13, %v3248_v55  ;;  %v6372_v40 = vsel %vm6329_vm4, %v6092_v22, %v2881_v7 }
 0xaf3   :  { %v3031_v34 = vand.u32 2147483647, %v3030_v45  ;;  %v3266_v50 = vsel %vm3256_vm9, %v3263_v30, %v3265_v49  ;;  %v3268_v8 = vsel %vm3258_vm10, %v3254_v26, 1326507024  ;;  %v3033_v18 = vcvt.s32.f32 %v3026_v51 }
 0xaf4   :  { %v3169_v12 = vshll.u32 %v6361_v63, 30  ;;  %v3269_v38 = vsel %vm3257_vm15, %v3251_v20, %v3268_v8  ;;  %v3296_v9 = vand.u32 65535, %v3266_v50  ;;  %v3297_v2 = vshrl.u32 %v3266_v50, 16 }
 0xaf5   :  { %v3270_v37 = vsel %vm3256_vm9, %v3267_v44, %v3269_v38  ;;  %v3272_v7 = vand.u32 65535, %v6359_v59  ;;  %v3273_v35 = vshrl.u32 %v6359_v59, 16  ;;  %v6387_v33 = vmul.f32 %v6372_v40, %v6372_v40 }
 0xaf6   :  { %v3170_v4 = vsub.s32 %v3166_v60, %v3169_v12  ;;  %v3274_v1 = vand.u32 65535, %v3270_v37  ;;  %v3275_v31 = vshrl.u32 %v3270_v37, 16  ;;  %v6389_v62 = vmul.f32 %v3033_v18, %v3031_v34 }
 0xaf7   :  { %v3299_v11 = vmul.u32 %v3297_v2, %v3272_v7  ;;  %v3300_v58 = vmul.u32 %v3296_v9, %v3273_v35  ;;  %v2882_v53 = vsub.s32 4, %v6208_v29  ;;  %v3162_v16 = vadd.s32 %v3157_v57, %v3138_v15 }
 0xaf8   :  { %vm3171_vm0 = vcmp.lt.s32.totalorder %v3170_v4, 0  ;;  %v3172_v54 = vsub.s32 0, %v3170_v4  ;;  %v3277_v3 = vmul.u32 %v3275_v31, %v3272_v7  ;;  %v3239_v51 = vshrl.u32 %v4472_v39, %v3238_v6 }
 0xaf9   :  { %v3278_v45 = vmul.u32 %v3274_v1, %v3273_v35  ;;  %v3298_v20 = vmul.u32 %v3296_v9, %v3272_v7  ;;  %v3302_v24 = vshll.u32 %v3299_v11, 16  ;;  %v3276_v30 = vmul.u32 %v3274_v1, %v3272_v7 }
 0xafa   :  { %v3173_v26 = vsel %vm3171_vm0, %v3172_v54, %v3170_v4  ;;  %v3280_v60 = vshll.u32 %v3277_v3, 16  ;;  %v3301_v10 = vmul.u32 %v3297_v2, %v3273_v35  ;;  %v3279_v44 = vmul.u32 %v3275_v31, %v3273_v35 }
 0xafb   :  { %v3174_v49 = vclz %v3173_v26  ;;  %v3282_v34 = vshll.u32 %v3278_v45, 16  ;;  %v3304_v50 = vshll.u32 %v3300_v58, 16  ;;  %vm3306_vm6 = vc.u32 %v3298_v20, %v3302_v24 }
 0xafc   :  { %vm3284_vm1 = vc.u32 %v3276_v30, %v3280_v60  ;;  %v3286_v8 = vadd.s32 %v3280_v60, %v3276_v30  ;;  %v3308_v15 = vadd.s32 %v3302_v24, %v3298_v20  ;;  %v3260_v12 = vsel %vm3258_vm10, %v3248_v55, 2102212464 }
 0xafd   :  { %v4330_v57 = vadd.s32 4294967294, %v3174_v49  ;;  %v3285_v6 = vsel %vm3284_vm1, 1, %v4471_v32  ;;  %v3307_v38 = vsel %vm3306_vm6, 1, %v4471_v32  ;;  %v3303_v37 = vshrl.u32 %v3299_v11, 16 }
 0xafe   :  { %v3287_v9 = vadd.s32 %v3285_v6, %v3279_v44  ;;  %vm3288_vm12 = vc.u32 %v3286_v8, %v3282_v34  ;;  %v3309_v18 = vadd.s32 %v3307_v38, %v3301_v10  ;;  %vm3310_vm3 = vc.u32 %v3308_v15, %v3304_v50 }
 0xaff   :  { %vm4331_vm8 = vcmp.lt.s32.totalorder %v4330_v57, 0  ;;  %v3289_v2 = vsel %vm3288_vm12, 1, %v4471_v32  ;;  %v3311_v7 = vsel %vm3310_vm3, 1, %v4471_v32  ;;  %v3281_v1 = vshrl.u32 %v3277_v3, 16 }
 0xb00   :  { %v3177_v35 = vsel %vm4331_vm8, 0, %v4330_v57  ;;  %v3291_v31 = vadd.s32 %v3289_v2, %v3287_v9  ;;  %v3313_v54 = vadd.s32 %v3311_v7, %v3309_v18  ;;  %v3259_v24 = vsel %vm3255_vm11, %v3239_v51, %v6345_v47 }
 0xb01   :  { %v3178_v20 = vsub.s32 32, %v3177_v35  ;;  %v3182_v55 = vsub.s32 4294967266, %v3177_v35  ;;  %v3261_v26 = vsel %vm3257_vm15, %v6347_v13, %v3260_v12  ;;  %v3283_v30 = vshrl.u32 %v3278_v45, 16 }
 0xb02   :  { %v3292_v60 = vadd.s32 %v3291_v31, %v3281_v1  ;;  %v3305_v10 = vshrl.u32 %v3300_v58, 16  ;;  %v3314_v11 = vadd.s32 %v3313_v54, %v3303_v37  ;;  %v3035_v49 = vxor.u32 2147483648, %v6389_v62 }
 0xb03   :  { %v3179_v44 = vshll.u32 %v3170_v4, %v3177_v35  ;;  %v3180_v3 = vshrl.u32 %v3162_v16, %v3178_v20  ;;  %v3183_v34 = vadd.s32 127, %v3182_v55  ;;  %v3262_v8 = vsel %vm3256_vm9, %v3259_v24, %v3261_v26 }
 0xb04   :  { %v6408_v57 = vadd.s32 %v3292_v60, %v3283_v30  ;;  %v6410_v6 = vadd.s32 %v3308_v15, %v3304_v50  ;;  %v3315_v47 = vadd.s32 %v3314_v11, %v3305_v10  ;;  %v2883_v13 = vsel %vm2760_vm7, %v2882_v53, %v6208_v29 }
 0xb05   :  { %v3181_v51 = vor.u32 %v3180_v3, %v3179_v44  ;;  %v3184_v38 = vshll.u32 %v3183_v34, 23  ;;  %vm2915_vm2 = vcmp.lt.s32.totalorder %v6094_v17, 0  ;;  %v3316_v61 = vmul.u32 %v6359_v59, %v3262_v8 }
 0xb06   :  { %vm3318_vm5 = vc.u32 %v6408_v57, %v6410_v6  ;;  %v3319_v4 = vadd.s32 1, %v3315_v47  ;;  %v2887_v16 = vmul.f32 -0.001358992, %v6387_v33  ;;  %v2894_v45 = vmul.f32 -0.00019511016, %v6387_v33 }
 0xb07   :  { %v3185_v58 = vor.u32 4788187, %v3184_v38  ;;  %v3036_v50 = vsel %vm2915_vm2, %v3035_v49, %v6389_v62  ;;  %v3188_v15 = vcvt.s32.f32 %v3181_v51  ;;  %v2885_v29 = vsel %vm6329_vm4, 0, %v2883_v13 }
 0xb08   :  { %v3320_v12 = vsel %vm3318_vm5, %v3319_v4, %v3315_v47  ;;  %v2888_v18 = vadd.f32 0.041655596, %v2887_v16  ;;  %v2895_v2 = vadd.f32 0.008332121, %v2894_v45  ;;  %vm6428_vm7 = vcmp.le.f32.partialorder %v2913_v25, 0.7853982 }
 0xb09   :  { %v3186_v53 = vand.u32 2147483647, %v3185_v58  ;;  %v3321_v9 = vadd.s32 %v3320_v12, %v3316_v61  ;;  %v6437_v14 = vsel %vm6428_vm7, %v6094_v17, %v3036_v50  ;;  %v2902_v1 = vadd.s32 3, %v2885_v29 }
 0xb0a   :  { %v2889_v35 = vmul.f32 %v2888_v18, %v6387_v33  ;;  %v2896_v62 = vmul.f32 %v2895_v2, %v6387_v33  ;;  %vm6443_vm4 = vcmp.le.f32.partialorder %v3068_v0, 0.7853982  ;;  %vm3070_vm11 = vcmp.lt.s32.totalorder %v6206_v28, 0 }
 0xb0b   :  { %v3189_v37 = vmul.f32 %v3188_v15, %v3186_v53  ;;  %v3322_v7 = vadd.s32 536870912, %v3321_v9  ;;  %v6455_v10 = vmul.f32 %v6437_v14, %v6437_v14  ;;  %v2903_v11 = vand.u32 3, %v2902_v1 }
 0xb0c   :  { %v2890_v20 = vadd.f32 -0.4999988, %v2889_v35  ;;  %v2897_v25 = vadd.f32 -0.16666654, %v2896_v62  ;;  %v3192_v49 = vsub.s32 4, %v6361_v63  ;;  %vm2901_vm15 = vweird.f32 %v6092_v22 }
 0xb0d   :  { %v3190_v31 = vxor.u32 2147483648, %v3189_v37  ;;  %v6439_v54 = vshrl.u32 %v3322_v7, 30  ;;  %vm2905_vm9 = vcmp.eq.s32.totalorder %v2903_v11, 0  ;;  %v3049_v16 = vmul.f32 -0.00019511016, %v6455_v10 }
 0xb0e   :  { %v2891_v30 = vmul.f32 %v2890_v20, %v6387_v33  ;;  %v2898_v60 = vmul.f32 %v2897_v25, %v6387_v33  ;;  %v3193_v38 = vsel %vm3070_vm11, %v3192_v49, %v6361_v63  ;;  %vm2908_vm0 = vcmp.eq.s32.totalorder %v2903_v11, 2 }
 0xb0f   :  { %v3191_v24 = vsel %vm3070_vm11, %v3190_v31, %v3189_v37  ;;  %v3324_v26 = vshll.u32 %v6439_v54, 30  ;;  %vm2904_vm1 = vcmp.lt.s32.totalorder %v2903_v11, 2  ;;  %v3195_v29 = vsel %vm6443_vm4, 0, %v3193_v38 }
 0xb10   :  { %v3194_v0 = vsel %vm6443_vm4, %v6206_v28, %v3191_v24  ;;  %v2892_v34 = vadd.f32 1.0, %v2891_v30  ;;  %v2899_v8 = vadd.f32 1.0, %v2898_v60  ;;  %v3042_v37 = vmul.f32 -0.001358992, %v6455_v10 }
 0xb11   :  { %v3196_v44 = vmul.f32 %v3194_v0, %v3194_v0  ;;  %v3325_v3 = vsub.s32 %v3321_v9, %v3324_v26  ;;  %v3050_v7 = vadd.f32 0.008332121, %v3049_v16  ;;  %v3212_v20 = vadd.s32 3, %v3195_v29 }
 0xb12   :  { %v2900_v51 = vmul.f32 %v2899_v8, %v6372_v40  ;;  %v2909_v33 = vxor.u32 2147483648, %v2892_v34  ;;  %v3317_v25 = vadd.s32 %v6410_v6, %v6408_v57  ;;  %v3043_v11 = vadd.f32 0.041655596, %v3042_v37 }
 0xb13   :  { %vm3326_vm10 = vcmp.lt.s32.totalorder %v3325_v3, 0  ;;  %v3327_v47 = vsub.s32 0, %v3325_v3  ;;  %v3197_v13 = vmul.f32 -0.001358992, %v3196_v44  ;;  %v3204_v4 = vmul.f32 -0.00019511016, %v3196_v44 }
 0xb14   :  { %v2906_v61 = vxor.u32 2147483648, %v2900_v51  ;;  %v2910_v12 = vsel %vm2908_vm0, %v2909_v33, %v2900_v51  ;;  %v3051_v49 = vmul.f32 %v3050_v7, %v6455_v10  ;;  %vm3211_vm5 = vweird.f32 %v6206_v28 }
 0xb15   :  { %v3328_v58 = vsel %vm3326_vm10, %v3327_v47, %v3325_v3  ;;  %v3198_v50 = vadd.f32 0.041655596, %v3197_v13  ;;  %v3205_v15 = vadd.f32 0.008332121, %v3204_v4  ;;  %v3213_v13 = vand.u32 3, %v3212_v20 }
 0xb16   :  { %v3329_v45 = vclz %v3328_v58  ;;  %v2907_v40 = vsel %vm2905_vm9, %v2892_v34, %v2906_v61  ;;  %v3037_v4 = vsub.s32 4, %v6241_v5  ;;  %v3052_v16 = vadd.f32 -0.16666654, %v3051_v49 }
 0xb17   :  { %v2911_v9 = vsel %vm2904_vm1, %v2907_v40, %v2910_v12  ;;  %v3199_v63 = vmul.f32 %v3198_v50, %v3196_v44  ;;  %v3206_v18 = vmul.f32 %v3205_v15, %v3196_v44  ;;  %vm3214_vm12 = vcmp.lt.s32.totalorder %v3213_v13, 2 }
 0xb18   :  { %v4333_v53 = vadd.s32 4294967294, %v3329_v45  ;;  %v2912_v2 = vsel %vm2901_vm15, nan, %v2911_v9  ;;  %v3038_v50 = vsel %vm2915_vm2, %v3037_v4, %v6241_v5  ;;  %vm3215_vm3 = vcmp.eq.s32.totalorder %v3213_v13, 0 }
 0xb19   :  { %v3378_v35 = vmul.f32 %v2912_v2, %v2912_v2  ;;  %v3200_v62 = vadd.f32 -0.4999988, %v3199_v63  ;;  %v3207_v1 = vadd.f32 -0.16666654, %v3206_v18  ;;  %vm3218_vm8 = vcmp.eq.s32.totalorder %v3213_v13, 2 }
 0xb1a   :  { %vm4334_vm6 = vcmp.lt.s32.totalorder %v4333_v53, 0  ;;  %v3040_v2 = vsel %vm6428_vm7, 0, %v3038_v50  ;;  %vm3225_vm2 = vcmp.lt.s32.totalorder %v6237_v21, 0  ;;  %v3347_v5 = vsub.s32 4, %v6439_v54 }
 0xb1b   :  { %v3332_v31 = vsel %vm4334_vm6, 0, %v4333_v53  ;;  %v3382_v26 = vadd.f32 %v3378_v35, %v6092_v22  ;;  %v3201_v30 = vmul.f32 %v3200_v62, %v3196_v44  ;;  %v3208_v60 = vmul.f32 %v3207_v1, %v3196_v44 }
 0xb1c   :  { %v3333_v55 = vsub.s32 32, %v3332_v31  ;;  %v3337_v24 = vsub.s32 4294967266, %v3332_v31  ;;  %v3334_v34 = vshll.u32 %v3325_v3, %v3332_v31  ;;  %v3044_v44 = vmul.f32 %v3043_v11, %v6455_v10 }
 0xb1d   :  { %v3386_v51 = vmul.f32 0.1, %v3382_v26  ;;  %v3202_v33 = vadd.f32 1.0, %v3201_v30  ;;  %v3209_v38 = vadd.f32 1.0, %v3208_v60  ;;  %v3053_v53 = vmul.f32 %v3052_v16, %v6455_v10 }
 0xb1e   :  { %v3335_v8 = vshrl.u32 %v3317_v25, %v3333_v55  ;;  %v3338_v47 = vadd.s32 127, %v3337_v24  ;;  %v3045_v29 = vadd.f32 -0.4999988, %v3044_v44  ;;  %vm6494_vm4 = vcmp.le.f32.partialorder %v3223_v23, 0.7853982 }
 0xb1f   :  { %v6477_v6 = vmax.f32 %v3386_v51, %v3382_v26  ;;  %v3210_v61 = vmul.f32 %v3209_v38, %v3194_v0  ;;  %v3219_v22 = vxor.u32 2147483648, %v3202_v33  ;;  %v3054_v62 = vadd.f32 1.0, %v3053_v53 }
 0xb20   :  { %v3336_v58 = vor.u32 %v3335_v8, %v3334_v34  ;;  %v3339_v57 = vshll.u32 %v3338_v47, 23  ;;  %v3046_v35 = vmul.f32 %v3045_v29, %v6455_v10  ;;  %v3057_v59 = vadd.s32 3, %v3040_v2 }
 0xb21   :  { %3410 = vrot.lane.b32.xlu1 %v6477_v6, %s4469_s2  ;;  %v3216_v3 = vxor.u32 2147483648, %v3210_v61  ;;  %v3220_v0 = vsel %vm3218_vm8, %v3219_v22, %v3210_v61  ;;  %v3348_v26 = vsel %vm3225_vm2, %v3347_v5, %v6439_v54  ;;  %v3055_v30 = vmul.f32 %v3054_v62, %v6437_v14 }
 0xb22   :  { %v3340_v45 = vor.u32 4788187, %v3339_v57  ;;  %v3343_v40 = vcvt.s32.f32 %v3336_v58  ;;  %v3047_v10 = vadd.f32 1.0, %v3046_v35  ;;  %v3058_v49 = vand.u32 3, %v3057_v59 }
 0xb23   :  { %v3217_v12 = vsel %vm3215_vm3, %v3202_v33, %v3216_v3  ;;  %v3061_v47 = vxor.u32 2147483648, %v3055_v30  ;;  %vm3056_vm15 = vweird.f32 %v6094_v17  ;;  %vm3366_vm6 = vweird.f32 %v6237_v21 }
 0xb24   :  { %v3341_v15 = vand.u32 2147483647, %v3340_v45  ;;  %v3221_v63 = vsel %vm3214_vm12, %v3217_v12, %v3220_v0  ;;  %v3064_v51 = vxor.u32 2147483648, %v3047_v10  ;;  %vm3060_vm7 = vcmp.eq.s32.totalorder %v3058_v49, 0 }
 0xb25   :  { %v3222_v18 = vsel %vm3211_vm5, nan, %v3221_v63  ;;  %vm3063_vm11 = vcmp.eq.s32.totalorder %v3058_v49, 2  ;;  %vm3059_vm10 = vcmp.lt.s32.totalorder %v3058_v49, 2  ;;  %v3062_v14 = vsel %vm3060_vm7, %v3047_v10, %v3061_v47  ;;  %v2463_v49 = vld [vmem:[%s7144_s15] sm:$0xff] }
 0xb26   :  { %v3344_v9 = vmul.f32 %v3343_v40, %v3341_v15  ;;  %v3380_v7 = vmul.f32 %v3222_v18, %v3222_v18  ;;  %v3065_v38 = vsel %vm3063_vm11, %v3064_v51, %v3055_v30  ;;  %v2464_v30 = vld [vmem:[%s7144_s15 + $0x8] sm:$0xff]  ;;  %vm7263_vm12 = vcmp.lt.s32.totalorder %v4654_v46, 128 }
 0xb27   :  { %v3066_v58 = vsel %vm3059_vm10, %v3062_v14, %v3065_v38  ;;  %vm7264_vm3 = vmmov %vm7263_vm12  ;;  %vm7271_vm7 = vcmp.ge.s32.totalorder %v4648_v43, 0 }
 0xb28   :  { %v3345_v37 = vxor.u32 2147483648, %v3344_v9  ;;  %v3384_v20 = vadd.f32 %v3380_v7, %v6206_v28  ;;  %v3350_v28 = vsel %vm6494_vm4, 0, %v3348_v26  ;;  %v3067_v61 = vsel %vm3056_vm15, nan, %v3066_v58  ;;  %vm7265_vm8 = vmmov %vm7264_vm3 }
 0xb29   :  { %v3367_v57 = vadd.s32 3, %v3350_v28  ;;  %v3379_v16 = vmul.f32 %v3067_v61, %v3067_v61  ;;  %vm7266_vm5 = vmmov %vm7264_vm3  ;;  %v3426_v61 = vld [vmem:[%s7149_s20] sm:$0xff] }
 0xb2a   :  { %v3346_v31 = vsel %vm3225_vm2, %v3345_v37, %v3344_v9  ;;  %v3388_v24 = vmul.f32 0.1, %v3384_v20  ;;  %vm7269_vm2 = vcmp.ge.s32.totalorder %v4646_v42, 0  ;;  %vm7272_vm11 = vmmov %vm7271_vm7 }
 0xb2b   :  { %v3349_v25 = vsel %vm6494_vm4, %v6237_v21, %v3346_v31  ;;  %v3383_v50 = vadd.f32 %v3379_v16, %v6094_v17  ;;  %v3368_v15 = vand.u32 3, %v3367_v57  ;;  %vm7270_vm4 = vmmov %vm7269_vm2 }
 0xb2c   :  { %v3351_v55 = vmul.f32 %v3349_v25, %v3349_v25  ;;  %v6504_v11 = vmax.f32 %v3388_v24, %v3384_v20 }
 0xb2d   :  { %v3387_v0 = vmul.f32 0.1, %v3383_v50  ;;  %vm3370_vm9 = vcmp.eq.s32.totalorder %v3368_v15, 0  ;;  %vm3373_vm0 = vcmp.eq.s32.totalorder %v3368_v15, 2  ;;  %vm3369_vm1 = vcmp.lt.s32.totalorder %v3368_v15, 2 }
 0xb2e   :  { %v3352_v60 = vmul.f32 -0.001358992, %v3351_v55  ;;  %v3359_v23 = vmul.f32 -0.00019511016, %v3351_v55  ;;  %3412 = vrot.lane.b32.xlu2 %v6504_v11, %s4469_s2 }
 0xb2f   :  { %v6512_v53 = vmax.f32 %v3387_v0, %v3383_v50 }
 0xb30   :  { %v3353_v34 = vadd.f32 0.041655596, %v3352_v60  ;;  %v3360_v8 = vadd.f32 0.008332121, %v3359_v23  ;;  %v2465_v60 = vld [vmem:[%s7145_s16] sm:$0xff] }
 0xb31   :  { %v3481_v23 = vld [vmem:[%s7150_s21] sm:$0xff] }
 0xb32   :  { %v3354_v33 = vmul.f32 %v3353_v34, %v3351_v55  ;;  %v3361_v54 = vmul.f32 %v3360_v8, %v3351_v55  ;;  %v3482_v34 = vld [vmem:[%s7150_s21 + $0x8] sm:$0xff] }
 0xb34   :  { %v3355_v13 = vadd.f32 -0.4999988, %v3354_v33  ;;  %v3362_v4 = vadd.f32 -0.16666654, %v3361_v54 }
 0xb36   :  { %v3356_v22 = vmul.f32 %v3355_v13, %v3351_v55  ;;  %v3363_v44 = vmul.f32 %v3362_v4, %v3351_v55  ;;  %3414 = vrot.lane.b32.xlu2 %v6512_v53, %s4469_s2 }
 0xb38   :  { %v3357_v45 = vadd.f32 1.0, %v3356_v22  ;;  %v3364_v3 = vadd.f32 1.0, %v3363_v44  ;;  %v3427_v22 = vld [vmem:[%s7149_s20 + $0x8] sm:$0xff] }
 0xb3a   :  { %v3365_v40 = vmul.f32 %v3364_v3, %v3349_v25  ;;  %v3374_v12 = vxor.u32 2147483648, %v3357_v45 }
 0xb3c   :  { %v3371_v29 = vxor.u32 2147483648, %v3365_v40  ;;  %v3375_v63 = vsel %vm3373_vm0, %v3374_v12, %v3365_v40  ;;  %vm7275_vm0 = vmmov %vm7269_vm2 }
 0xb3e   :  { %v3372_v9 = vsel %vm3370_vm9, %v3357_v45, %v3371_v29  ;;  %3394 = vrot.lane.b32.xlu2 %v6477_v6, %s4466_s5  ;;  %vm3428_vm9 = vcmask 392192   ;;  %v3483_v29 = vld [vmem:[%s7151_s22] sm:$0xff] }
 0xb3f   :  { %v3376_v18 = vsel %vm3369_vm1, %v3372_v9, %v3375_v63  ;;  %vm7276_vm1 = vmmov %vm7275_vm0  ;;  %v3484_v9 = vld [vmem:[%s7151_s22 + $0x8] sm:$0xff] }
 0xb40   :  { %v3377_v2 = vsel %vm3366_vm6, nan, %v3376_v18  ;;  %vm7277_vm6 = vmmov %vm7271_vm7 }
 0xb41   :  { %v3381_v17 = vmul.f32 %v3377_v2, %v3377_v2 }
 0xb43   :  { %v3385_v37 = vadd.f32 %v3381_v17, %v6237_v21 }
 0xb45   :  { %v3389_v7 = vmul.f32 0.1, %v3385_v37 }
 0xb47   :  { %v3393_v5 = vmax.f32 %v3389_v7, %v3385_v37 }
 0xb49   :  { %3400 = vrot.lane.b32.xlu1 %v3393_v5, %s4466_s5  ;;  %3416 = vrot.lane.b32.xlu0 %v3393_v5, %s4469_s2 }
 0xb51   :  { %3396 = vrot.lane.b32.xlu0 %v6504_v11, %s4466_s5 }
 0xb52   :  { %v6526_v35 = vpop.f32.mrf.mxu0  ;;  %v6528_v62 = vpop.f32.mrf.mxu1 }
 0xb53   :  { %v2467_v20 = vadd.f32 %v6528_v62, %v6526_v35  ;;  %v2475_v59 = vmul.f32 %v6526_v35, %v6526_v35  ;;  %v2476_v25 = vmul.f32 %v6528_v62, %v6528_v62 }
 0xb55   :  { %v2479_v55 = vadd.f32 %v2476_v25, %v2475_v59 }
 0xb59   :  { %3398 = vrot.lane.b32.xlu0 %v6512_v53, %s4466_s5 }
 0xb5d   :  { %v6530_v21 = vpop.f32.mrf.mxu0  ;;  %v6532_v1 = vpop.f32.mrf.mxu1 }
 0xb5e   :  { %v2470_v31 = vadd.f32 %v6532_v1, %v6530_v21  ;;  %v2477_v24 = vmul.f32 %v6530_v21, %v6530_v21  ;;  %v2478_v26 = vmul.f32 %v6532_v1, %v6532_v1 }
 0xb60   :  { %v2482_v10 = vadd.f32 %v2478_v26, %v2477_v24 }
 0xb67   :  { %2471 = vadd.xlane.f32.xlu2 %v2470_v31 }
 0xb73   :  { %2468 = vadd.xlane.f32.xlu1 %v2467_v20 }
 0xb7b   :  { %2480 = vadd.xlane.f32.xlu1 %v2479_v55 }
 0xb7f   :  { %2530 = vperm.xlu2 %4413, %v2464_v30  }
 0xb83   :  { %2483 = vadd.xlane.f32.xlu0 %v2482_v10 }
 0xb87   :  { %2539 = vperm.xlu2 %4413, %v2465_v60  }
 0xb88   :  { %v3413_v8 = vpop.permute.xlu2 %3412 }
 0xb90   :  { %v3415_v54 = vpop.permute.xlu2 %3414 }
 0xb93   :  { %v3411_v28 = vpop.permute.xlu1 %3410 }
 0xb94   :  { %3543 = vperm.xlu1 %4414, %v3481_v23   ;;  %v3418_v14 = vsel %vm215_vm13, %v3411_v28, %v3415_v54  ;;  %v3420_v38 = vsel %vm215_vm13, %v3415_v54, %v3411_v28 }
 0xb97   :  { %2525 = vperm.xlu0 %4412, %v2463_v49  }
 0xb98   :  { %v3395_v46 = vpop.permute.xlu2 %3394 }
 0xb9f   :  { %3548 = vperm.xlu0 %4412, %v3482_v34  }
 0xbbb   :  { %v3417_v47 = vpop.permute.xlu0 %3416  ;;  %v3401_v13 = vpop.permute.xlu1 %3400 }
 0xbbc   :  { %v3419_v51 = vsel %vm215_vm13, %v3413_v8, %v3417_v47  ;;  %v3421_v33 = vsel %vm215_vm13, %v3417_v47, %v3413_v8  ;;  %vm7267_vm13 = vcmp.lt.s32.totalorder %v4611_v19, 1 }
 0xbbd   :  { %4335 = vmatpush.msk.msra.mxu0 %vm131_vm14, %v3419_v51  ;;  %4359 = vmatpush.msk.msrb.mxu2 %vm131_vm14, %v3419_v51  ;;  %vm7273_vm10 = vmmov %vm7267_vm13 }
 0xbbe   :  { %4341 = vmatpush.msk.msra.mxu1 %vm7263_vm12, %v3421_v33  ;;  %4365 = vmatpush.msk.msrb.mxu3 %vm7264_vm3, %v3421_v33  ;;  %vm7274_vm15 = vmmov %vm7273_vm10 }
 0xbbf   :  { %4336 = vmatpush.msk.msra.mxu0 %vm131_vm14, %v3418_v14  ;;  %4360 = vmatpush.msk.msrb.mxu2 %vm131_vm14, %v3418_v14  ;;  %vm7268_vm14 = vmmov %vm7267_vm13 }
 0xbc0   :  { %4342 = vmatpush.msk.msra.mxu1 %vm7265_vm8, %v3420_v38  ;;  %4366 = vmatpush.msk.msrb.mxu3 %vm7266_vm5, %v3420_v38  ;;  %vm7278_vm12 = vmmov %vm7277_vm6 }
 0xbc1   :  { %3447 = vmatpush.msra.mxu0 %v6504_v11  ;;  %4361 = vmatpush.msrb.mxu2 %v6504_v11 }
 0xbc2   :  { %3470 = vmatpush.msra.mxu1 %v3393_v5  ;;  %4367 = vmatpush.msrb.mxu3 %v3393_v5 }
 0xbc3   :  { %v3397_v4 = vpop.permute.xlu0 %3396  ;;  %3448 = vmatpush.msra.mxu0 %v6477_v6  ;;  %4362 = vmatpush.msrb.mxu2 %v6477_v6 }
 0xbc4   :  { %v3403_v36 = vsel %vm7267_vm13, %v3397_v4, %v3401_v13  ;;  %v3405_v58 = vsel %vm7268_vm14, %v3401_v13, %v3397_v4  ;;  %3471 = vmatpush.msra.mxu1 %v6512_v53  ;;  %4368 = vmatpush.msrb.mxu3 %v6512_v53  ;;  %v2466_v53 = vld [vmem:[%s7145_s16 + $0x8] sm:$0xff]  ;;  %s4478_s16 = smov [#allocation2]  }
 0xbc5   :  { %4337 = vmatpush.msk.msra.mxu0 %vm7269_vm2, %v3405_v58  ;;  %4363 = vmatpush.msk.msrb.mxu2 %vm7270_vm4, %v3405_v58  ;;  %s4217_s22 = sshll.u32 %s4478_s16, 4  ;;  %s4218_s22 = int_to_ptr.vmem [resolvable:$true] %s4217_s22 }
 0xbc6   :  { %4343 = vmatpush.msk.msra.mxu1 %vm7271_vm7, %v3403_v36  ;;  %4369 = vmatpush.msk.msrb.mxu3 %vm7272_vm11, %v3403_v36 }
 0xbcb   :  { %v3399_v6 = vpop.permute.xlu0 %3398 }
 0xbcc   :  { %v3402_v11 = vsel %vm7273_vm10, %v3395_v46, %v3399_v6  ;;  %v3404_v57 = vsel %vm7274_vm15, %v3399_v6, %v3395_v46 }
 0xbcd   :  { %4338 = vmatpush.msk.msra.mxu0 %vm7275_vm0, %v3404_v57  ;;  %4364 = vmatpush.msk.msrb.mxu2 %vm7276_vm1, %v3404_v57 }
 0xbce   :  { %4344 = vmatpush.msk.msra.mxu1 %vm7277_vm6, %v3402_v11  ;;  %4370 = vmatpush.msk.msrb.mxu3 %vm7278_vm12, %v3402_v11 }
 0xbcf   :  { %4339 = vmatmul.msk.f32.vlgmr.msra.gmra.mxu0 %vm3428_vm9, %v3426_v61  ;;  %4340 = vmatmul.msk.f32.vlgmr.msrb.gmra.mxu2 %vm3428_vm9, %v3427_v22 }
 0xbd0   :  { %4345 = vmatmul.msk.f32.vlgmr.msra.gmra.mxu1 %vm3428_vm9, %v3426_v61  ;;  %4346 = vmatmul.msk.f32.vlgmr.msrb.gmra.mxu3 %vm3428_vm9, %v3427_v22 }
 0xbda   :  { %v2472_v2 = vpop.xlane.xlu2 %2471 }
 0xbdb   :  { %v6658_v24 = vmul.f32 0.00390625, %v2472_v2 }
 0xbdd   :  { %v2488_v30 = vmul.f32 %v6658_v24, %v6658_v24 }
 0xbe2   :  { %v6656_v59 = vpop.permute.xlu2 %2530 }
 0xbe6   :  { %v2469_v63 = vpop.xlane.xlu1 %2468 }
 0xbe7   :  { %v6650_v18 = vmul.f32 0.00390625, %v2469_v63 }
 0xbe9   :  { %v2487_v7 = vmul.f32 %v6650_v18, %v6650_v18  ;;  %v2493_v2 = vsub.f32 %v6526_v35, %v6650_v18 }
 0xbea   :  { %v6664_v60 = vpop.permute.xlu2 %2539 }
 0xbee   :  { %v2481_v17 = vpop.xlane.xlu1 %2480 }
 0xbef   :  { %v2485_v5 = vmul.f32 0.00390625, %v2481_v17 }
 0xbf1   :  { %v2489_v31 = vsub.f32 %v2485_v5, %v2487_v7 }
 0xbf3   :  { %v2491_v25 = vmax.f32 %v2489_v31, 0.0 }
 0xbf5   :  { %v2497_v55 = vadd.f32 1e-05, %v2491_v25 }
 0xbf6   :  { %v2484_v37 = vpop.xlane.xlu0 %2483 }
 0xbf7   :  { %4431 = vrsqrt.f32 %v2497_v55  ;;  %v2486_v10 = vmul.f32 0.00390625, %v2484_v37  ;;  %vm2505_vm3 = vweird.f32 %v2497_v55 }
 0xbf9   :  { %v2490_v23 = vsub.f32 %v2486_v10, %v2488_v30 }
 0xbfb   :  { %v2492_v51 = vmax.f32 %v2490_v23, 0.0 }
 0xbfd   :  { %v4432_v49 = vpop.eup %4431  ;;  %v2498_v4 = vadd.f32 1e-05, %v2492_v51 }
 0xbfe   :  { %v2500_v47 = vmul.f32 %v4432_v49, %v2497_v55  ;;  %vm2506_vm8 = vweird.f32 %v4432_v49 }
 0xbff   :  { %4433 = vrsqrt.f32 %v2498_v4  ;;  %vm2507_vm5 = vmor %vm2505_vm3, %vm2506_vm8  ;;  %vm2515_vm4 = vweird.f32 %v2498_v4 }
 0xc00   :  { %v2501_v13 = vmul.f32 %v4432_v49, %v2500_v47 }
 0xc02   :  { %v2502_v6 = vmul.f32 0.5, %v2501_v13 }
 0xc06   :  { %v6666_v34 = vpop.permute.xlu1 %3543 }
 0xc09   :  { %v6654_v20 = vpop.permute.xlu0 %2525 }
 0xc11   :  { %v6660_v26 = vpop.permute.xlu0 %3548 }
 0xc4c   :  { %v6621_v19 = vpop.f32.mrf.mxu0 }
 0xc4d   :  { %v3493_v44 = vmul.f32 %v6621_v19, %v6621_v19  ;;  %v6625_v16 = vpop.f32.mrf.mxu1 }
 0xc4e   :  { %v3494_v42 = vmul.f32 %v6625_v16, %v6625_v16  ;;  %v3485_v45 = vadd.f32 %v6625_v16, %v6621_v19 }
 0xc50   :  { %3486 = vadd.xlane.f32.xlu0 %v3485_v45  ;;  %v3497_v43 = vadd.f32 %v3494_v42, %v3493_v44  ;;  %v2503_v44 = vsub.f32 1.5, %v2502_v6  ;;  %v4434_v45 = vpop.eup %4433 }
 0xc51   :  { %vm2516_vm7 = vweird.f32 %v4434_v45 }
 0xc52   :  { %3498 = vadd.xlane.f32.xlu2 %v3497_v43  ;;  %v6631_v3 = vpop.f32.mrf.mxu2  ;;  %vm2517_vm11 = vmor %vm2515_vm4, %vm2516_vm7 }
 0xc53   :  { %v3495_v50 = vmul.f32 %v6631_v3, %v6631_v3  ;;  %v6635_v15 = vpop.f32.mrf.mxu3 }
 0xc54   :  { %v3496_v40 = vmul.f32 %v6635_v15, %v6635_v15  ;;  %v3488_v0 = vadd.f32 %v6635_v15, %v6631_v3 }
 0xc56   :  { %v3500_v12 = vadd.f32 %v3496_v40, %v3495_v50  ;;  %v2504_v40 = vmul.f32 %v4432_v49, %v2503_v44 }
 0xc58   :  { %3501 = vadd.xlane.f32.xlu1 %v3500_v12 }
 0xc5a   :  { %3489 = vadd.xlane.f32.xlu2 %v3488_v0 }
 0xc64   :  { %3557 = vperm.xlu0 %4412, %v3483_v29   ;;  %v2510_v29 = vmul.f32 %v4434_v45, %v2498_v4 }
 0xc66   :  { %v2511_v17 = vmul.f32 %v4434_v45, %v2510_v29 }
 0xc68   :  { %v2512_v55 = vmul.f32 0.5, %v2511_v17 }
 0xc6a   :  { %v2513_v47 = vsub.f32 1.5, %v2512_v55 }
 0xc71   :  { %2544 = vperm.xlu1 %4414, %v2466_v53  }
 0xc72   :  { %3562 = vperm.xlu2 %4413, %v3484_v9   ;;  %v2508_v9 = vsel %vm2507_vm5, %v4432_v49, %v2504_v40 }
 0xc73   :  { %v2519_v7 = vmul.f32 %v2508_v9, %v2493_v2 }
 0xc75   :  { %v2533_v23 = vmul.f32 %v6654_v20, %v2519_v7 }
 0xcc3   :  { %v3487_v8 = vpop.xlane.xlu0 %3486 }
 0xcc4   :  { %v3491_v28 = vmul.f32 0.00390625, %v3487_v8 }
 0xcc5   :  { %v3499_v33 = vpop.xlane.xlu2 %3498 }
 0xcc6   :  { %v3503_v54 = vmul.f32 0.00390625, %v3499_v33  ;;  %v3505_v14 = vmul.f32 %v3491_v28, %v3491_v28  ;;  %v3511_v25 = vsub.f32 %v6621_v19, %v3491_v28  ;;  %v3512_v8 = vsub.f32 %v6625_v16, %v3491_v28 }
 0xcc8   :  { %v3507_v38 = vsub.f32 %v3503_v54, %v3505_v14  ;;  %v2494_v54 = vsub.f32 %v6528_v62, %v6650_v18  ;;  %v2547_v14 = vadd.f32 %v6664_v60, %v2533_v23 }
 0xcca   :  { %v3509_v36 = vmax.f32 %v3507_v38, 0.0  ;;  %v2520_v13 = vmul.f32 %v2508_v9, %v2494_v54 }
 0xccb   :  { %v3502_v58 = vpop.xlane.xlu1 %3501 }
 0xccc   :  { %v3515_v46 = vadd.f32 1e-05, %v3509_v36  ;;  %v3504_v61 = vmul.f32 0.00390625, %v3502_v58  ;;  %v2514_v58 = vmul.f32 %v4434_v45, %v2513_v47  ;;  %v2534_v62 = vmul.f32 %v6654_v20, %v2520_v13 }
 0xccd   :  { %v3490_v11 = vpop.xlane.xlu2 %3489  ;;  %v2496_v20 = vsub.f32 %v6532_v1, %v6658_v24 }
 0xcce   :  { %4435 = vrsqrt.f32 %v3515_v46  ;;  %v6668_v57 = vmul.f32 0.00390625, %v3490_v11  ;;  %vm3523_vm14 = vweird.f32 %v3515_v46  ;;  %v2518_v11 = vsel %vm2517_vm11, %v4434_v45, %v2514_v58 }
 0xcd0   :  { %v3506_v22 = vmul.f32 %v6668_v57, %v6668_v57  ;;  %v3514_v2 = vsub.f32 %v6635_v15, %v6668_v57 }
 0xcd2   :  { %v3508_v42 = vsub.f32 %v3504_v61, %v3506_v22  ;;  %v2495_v22 = vsub.f32 %v6530_v21, %v6658_v24  ;;  %v2522_v21 = vmul.f32 %v2518_v11, %v2496_v20 }
 0xcd4   :  { %v4436_v43 = vpop.eup %4435  ;;  %v3510_v50 = vmax.f32 %v3508_v42, 0.0 }
 0xcd5   :  { %v3518_v12 = vmul.f32 %v4436_v43, %v3515_v46  ;;  %vm3524_vm13 = vweird.f32 %v4436_v43 }
 0xcd6   :  { %v3516_v0 = vadd.f32 1e-05, %v3510_v50  ;;  %vm3525_vm2 = vmor %vm3523_vm14, %vm3524_vm13  ;;  %v3558_v33 = vpop.permute.xlu0 %3557  ;;  %v2521_v50 = vmul.f32 %v2518_v11, %v2495_v22 }
 0xcd7   :  { %v3519_v53 = vmul.f32 %v4436_v43, %v3518_v12 }
 0xcd8   :  { %4437 = vrsqrt.f32 %v3516_v0  ;;  %vm3533_vm9 = vweird.f32 %v3516_v0  ;;  %v6699_v9 = vmul.f32 %v6656_v59, %v2521_v50 }
 0xcd9   :  { %v3520_v63 = vmul.f32 0.5, %v3519_v53 }
 0xcdb   :  { %v3521_v37 = vsub.f32 1.5, %v3520_v63 }
 0xcdd   :  { %v3522_v5 = vmul.f32 %v4436_v43, %v3521_v37 }
 0xcde   :  { %v4438_v31 = vpop.eup %4437 }
 0xcdf   :  { %v3528_v10 = vmul.f32 %v4438_v31, %v3516_v0  ;;  %v3526_v30 = vsel %vm3525_vm2, %v4436_v43, %v3522_v5  ;;  %vm3534_vm10 = vweird.f32 %v4438_v31 }
 0xce0   :  { %v3537_v49 = vmul.f32 %v3526_v30, %v3511_v25  ;;  %v3538_v19 = vmul.f32 %v3526_v30, %v3512_v8  ;;  %vm3535_vm0 = vmor %vm3533_vm9, %vm3534_vm10 }
 0xce1   :  { %v3529_v51 = vmul.f32 %v4438_v31, %v3528_v10 }
 0xce2   :  { %v3551_v35 = vmul.f32 %v6666_v34, %v3537_v49  ;;  %v3552_v16 = vmul.f32 %v6666_v34, %v3538_v19  ;;  %v2548_v34 = vadd.f32 %v6664_v60, %v2534_v62  ;;  %v3513_v60 = vsub.f32 %v6631_v3, %v6668_v57 }
 0xce3   :  { %v3530_v46 = vmul.f32 0.5, %v3529_v51 }
 0xce4   :  { %v3565_v38 = vadd.f32 %v3558_v33, %v3551_v35  ;;  %v3566_v44 = vadd.f32 %v3558_v33, %v3552_v16 }
 0xce5   :  { %v3531_v61 = vsub.f32 1.5, %v3530_v46 }
 0xce6   :  { %v6681_v36 = vadd.f32 %v3565_v38, %v2547_v14  ;;  %v6694_v45 = vadd.f32 %v3566_v44, %v2548_v34 }
 0xce7   :  { %v3532_v12 = vmul.f32 %v4438_v31, %v3531_v61 }
 0xce8   :  { %v3573_v28 = vand.u32 2147483647, %v6681_v36  ;;  %v3576_v6 = vand.u32 2139095040, %v6681_v36  ;;  %v3728_v0 = vand.u32 2147483647, %v6694_v45  ;;  %v3731_v7 = vand.u32 2139095040, %v6694_v45 }
 0xce9   :  { %v3536_v1 = vsel %vm3535_vm0, %v4438_v31, %v3532_v12 }
 0xcea   :  { %v3577_v18 = vshrl.u32 %v3576_v6, 23  ;;  %v3580_v4 = vand.u32 8388607, %v3573_v28  ;;  %v3732_v54 = vshrl.u32 %v3731_v7, 23  ;;  %v6723_v13 = vand.u32 8388607, %v3728_v0 }
 0xceb   :  { %v3539_v12 = vmul.f32 %v3536_v1, %v3513_v60  ;;  %v3540_v20 = vmul.f32 %v3536_v1, %v3514_v2 }
 0xcec   :  { %v4347_v42 = vadd.s32 4294967169, %v3577_v18  ;;  %v3581_v43 = vor.u32 8388608, %v3580_v4  ;;  %v4350_v16 = vadd.s32 4294967169, %v3732_v54  ;;  %v3736_v7 = vor.u32 8388608, %v6723_v13 }
 0xcee   :  { %v3583_v40 = vadd.s32 1, %v4347_v42  ;;  %v6696_v29 = vshll.u32 %v3581_v43, 8  ;;  %v3738_v44 = vadd.s32 1, %v4350_v16 }
 0xcf0   :  { %vm3584_vm15 = vcmp.gt.s32.totalorder %v3583_v40, 0  ;;  %v3622_v37 = vand.u32 65535, %v6696_v29  ;;  %v3623_v22 = vshrl.u32 %v6696_v29, 16  ;;  %vm3739_vm8 = vcmp.gt.s32.totalorder %v3738_v44, 0 }
 0xcf1   :  { %v3585_v53 = vsel %vm3584_vm15, %v3583_v40, 0  ;;  %v6730_v40 = vmul.f32 %v6656_v59, %v2522_v21 }
 0xcf2   :  { %v3587_v63 = vand.u32 31, %v3585_v53  ;;  %v3586_v24 = vshrl.u32 %v3585_v53, 5 }
 0xcf4   :  { %v3588_v17 = vsub.s32 32, %v3587_v63  ;;  %v3590_v5 = vshll.u32 %v4472_v39, %v3587_v63  ;;  %v3593_v25 = vshll.u32 %v4473_v41, %v3587_v63  ;;  %v3596_v55 = vshll.u32 %v4474_v48, %v3587_v63 }
 0xcf5   :  { %v3599_v3 = vshll.u32 %v4475_v52, %v3587_v63  ;;  %v3602_v31 = vshll.u32 %v4476_v56, %v3587_v63  ;;  %vm3605_vm1 = vcmp.lt.s32.totalorder %v3586_v24, 1  ;;  %vm3606_vm6 = vcmp.lt.s32.totalorder %v3586_v24, 2 }
 0xcf6   :  { %v3591_v10 = vshrl.u32 %v4473_v41, %v3588_v17  ;;  %v3594_v15 = vshrl.u32 %v4474_v48, %v3588_v17  ;;  %v3597_v57 = vshrl.u32 %v4475_v52, %v3588_v17  ;;  %v3600_v30 = vshrl.u32 %v4476_v56, %v3588_v17 }
 0xcf7   :  { %v3603_v23 = vshrl.u32 %v7250_v27, %v3588_v17  ;;  %v3589_v49 = vshrl.u32 %v4472_v39, %v3588_v17  ;;  %vm3608_vm12 = vcmp.lt.s32.totalorder %v3586_v24, 4  ;;  %vm3607_vm3 = vcmp.lt.s32.totalorder %v3586_v24, 3 }
 0xcf8   :  { %v3592_v8 = vor.u32 %v3591_v10, %v3590_v5  ;;  %v3595_v35 = vor.u32 %v3594_v15, %v3593_v25  ;;  %v3598_v47 = vor.u32 %v3597_v57, %v3596_v55  ;;  %v3601_v51 = vor.u32 %v3600_v30, %v3599_v3 }
 0xcf9   :  { %v3604_v33 = vor.u32 %v3603_v23, %v3602_v31  ;;  %v3740_v30 = vsel %vm3739_vm8, %v3738_v44, 0 }
 0xcfa   :  { %v3610_v14 = vsel %vm3608_vm12, %v3598_v47, 2102212464  ;;  %v3613_v19 = vsel %vm3605_vm1, %v3592_v8, %v3595_v35  ;;  %v3617_v38 = vsel %vm3605_vm1, %v3595_v35, %v3598_v47  ;;  %v3614_v58 = vsel %vm3608_vm12, %v3601_v51, 920167782 }
 0xcfb   :  { %v3618_v46 = vsel %vm3608_vm12, %v3604_v33, 1326507024  ;;  %v3609_v6 = vsel %vm3605_vm1, %v3589_v49, %v3592_v8  ;;  %v3611_v62 = vsel %vm3607_vm3, %v3595_v35, %v3610_v14  ;;  %v3615_v18 = vsel %vm3607_vm3, %v3598_v47, %v3614_v58 }
 0xcfc   :  { %v3619_v11 = vsel %vm3607_vm3, %v3601_v51, %v3618_v46  ;;  %v3616_v61 = vsel %vm3606_vm6, %v3613_v19, %v3615_v18  ;;  %v6733_v53 = vsel %vm3606_vm6, %v3609_v6, %v3611_v62  ;;  %v6740_v54 = vshrl.u32 %v3740_v30, 5 }
 0xcfd   :  { %v3620_v4 = vsel %vm3606_vm6, %v3617_v38, %v3619_v11  ;;  %v3646_v50 = vand.u32 65535, %v3616_v61  ;;  %v3647_v34 = vshrl.u32 %v3616_v61, 16 }
 0xcfe   :  { %v3624_v42 = vand.u32 65535, %v3620_v4  ;;  %v3625_v43 = vshrl.u32 %v3620_v4, 16  ;;  %vm3760_vm7 = vcmp.lt.s32.totalorder %v6740_v54, 1  ;;  %vm3763_vm11 = vcmp.lt.s32.totalorder %v6740_v54, 4 }
 0xcff   :  { %v3649_v55 = vmul.u32 %v3647_v34, %v3622_v37  ;;  %v3650_v3 = vmul.u32 %v3646_v50, %v3623_v22  ;;  %v3648_v57 = vmul.u32 %v3646_v50, %v3622_v37  ;;  %v3651_v31 = vmul.u32 %v3647_v34, %v3623_v22 }
 0xd00   :  { %v3627_v63 = vmul.u32 %v3625_v43, %v3622_v37  ;;  %v3628_v17 = vmul.u32 %v3624_v42, %v3623_v22  ;;  %v3626_v5 = vmul.u32 %v3624_v42, %v3622_v37  ;;  %v3629_v25 = vmul.u32 %v3625_v43, %v3623_v22 }
 0xd01   :  { %v3652_v60 = vshll.u32 %v3649_v55, 16  ;;  %v3653_v2 = vshrl.u32 %v3649_v55, 16  ;;  %v3654_v24 = vshll.u32 %v3650_v3, 16  ;;  %v3655_v49 = vshrl.u32 %v3650_v3, 16 }
 0xd02   :  { %v3630_v10 = vshll.u32 %v3627_v63, 16  ;;  %v3631_v15 = vshrl.u32 %v3627_v63, 16  ;;  %v3632_v59 = vshll.u32 %v3628_v17, 16  ;;  %v3633_v21 = vshrl.u32 %v3628_v17, 16 }
 0xd03   :  { %vm3656_vm13 = vc.u32 %v3648_v57, %v3652_v60  ;;  %v3658_v8 = vadd.s32 %v3652_v60, %v3648_v57  ;;  %v3742_v37 = vand.u32 31, %v3740_v30  ;;  %v3553_v17 = vmul.f32 %v6660_v26, %v3539_v12 }
 0xd04   :  { %vm3634_vm5 = vc.u32 %v3626_v5, %v3630_v10  ;;  %v3636_v1 = vadd.s32 %v3630_v10, %v3626_v5  ;;  %v3657_v47 = vsel %vm3656_vm13, 1, %v4471_v32  ;;  %v3554_v3 = vmul.f32 %v6660_v26, %v3540_v20  ;;  %v3563_v20 = vpop.permute.xlu2 %3562 }
 0xd05   :  { %v3635_v23 = vsel %vm3634_vm5, 1, %v4471_v32  ;;  %v3659_v33 = vadd.s32 %v3657_v47, %v3651_v31  ;;  %vm3660_vm2 = vc.u32 %v3658_v8, %v3654_v24  ;;  %v6743_v38 = vadd.s32 %v3658_v8, %v3654_v24  ;;  %v2545_v24 = vpop.permute.xlu1 %2544 }
 0xd06   :  { %v3637_v35 = vadd.s32 %v3635_v23, %v3629_v25  ;;  %vm3638_vm14 = vc.u32 %v3636_v1, %v3632_v59  ;;  %v3661_v19 = vsel %vm3660_vm2, 1, %v4471_v32  ;;  %v6745_v13 = vsub.s32 32, %v3742_v37 }
 0xd07   :  { %v3639_v51 = vsel %vm3638_vm14, 1, %v4471_v32  ;;  %v3663_v58 = vadd.s32 %v3661_v19, %v3659_v33  ;;  %v3745_v46 = vshll.u32 %v4472_v39, %v3742_v37  ;;  %v3748_v16 = vshll.u32 %v4473_v41, %v3742_v37 }
 0xd08   :  { %v3641_v14 = vadd.s32 %v3639_v51, %v3637_v35  ;;  %v3751_v6 = vshll.u32 %v4474_v48, %v3742_v37  ;;  %v3746_v18 = vshrl.u32 %v4473_v41, %v6745_v13  ;;  %v3749_v11 = vshrl.u32 %v4474_v48, %v6745_v13 }
 0xd09   :  { %v3754_v61 = vshll.u32 %v4475_v52, %v3742_v37  ;;  %v3664_v4 = vadd.s32 %v3663_v58, %v3653_v2  ;;  %v3752_v22 = vshrl.u32 %v4475_v52, %v6745_v13  ;;  %v3755_v44 = vshrl.u32 %v4476_v56, %v6745_v13 }
 0xd0a   :  { %v3642_v62 = vadd.s32 %v3641_v14, %v3631_v15  ;;  %v3757_v42 = vshll.u32 %v4476_v56, %v3742_v37  ;;  %v6762_v50 = vor.u32 %v3746_v18, %v3745_v46  ;;  %v6764_v34 = vor.u32 %v3749_v11, %v3748_v16 }
 0xd0b   :  { %v3758_v63 = vshrl.u32 %v7250_v27, %v6745_v13  ;;  %v3665_v5 = vadd.s32 %v3664_v4, %v3655_v49  ;;  %v3753_v25 = vor.u32 %v3752_v22, %v3751_v6  ;;  %v3756_v55 = vor.u32 %v3755_v44, %v3754_v61 }
 0xd0c   :  { %v6760_v43 = vadd.s32 %v3642_v62, %v3633_v21  ;;  %v3666_v10 = vmul.u32 %v6696_v29, %v6733_v53  ;;  %v6776_v31 = vshll.u32 %v3736_v7, 8  ;;  %vm3762_vm10 = vcmp.lt.s32.totalorder %v6740_v54, 3 }
 0xd0d   :  { %v3759_v15 = vor.u32 %v3758_v63, %v3757_v42  ;;  %v3669_v57 = vadd.s32 1, %v3665_v5  ;;  %v3768_v26 = vsel %vm3760_vm7, %v6762_v50, %v6764_v34  ;;  %v3769_v29 = vsel %vm3763_vm11, %v3756_v55, 920167782 }
 0xd0e   :  { %vm3668_vm4 = vc.u32 %v6760_v43, %v6743_v38  ;;  %v3772_v12 = vsel %vm3760_vm7, %v6764_v34, %v3753_v25  ;;  %vm3761_vm15 = vcmp.lt.s32.totalorder %v6740_v54, 2  ;;  %v3770_v7 = vsel %vm3762_vm10, %v3753_v25, %v3769_v29 }
 0xd0f   :  { %v3670_v53 = vsel %vm3668_vm4, %v3669_v57, %v3665_v5  ;;  %v3773_v59 = vsel %vm3763_vm11, %v3759_v15, 1326507024  ;;  %v3567_v21 = vadd.f32 %v3563_v20, %v3553_v17  ;;  %v3771_v2 = vsel %vm3761_vm15, %v3768_v26, %v3770_v7 }
 0xd10   :  { %v3671_v60 = vadd.s32 %v3670_v53, %v3666_v10  ;;  %v3774_v1 = vsel %vm3762_vm10, %v3756_v55, %v3773_v59  ;;  %v3777_v23 = vand.u32 65535, %v6776_v31  ;;  %v3801_v49 = vand.u32 65535, %v3771_v2 }
 0xd11   :  { %v3775_v30 = vsel %vm3761_vm15, %v3772_v12, %v3774_v1  ;;  %v3802_v8 = vshrl.u32 %v3771_v2, 16  ;;  %v3778_v47 = vshrl.u32 %v6776_v31, 16  ;;  %v3568_v33 = vadd.f32 %v3563_v20, %v3554_v3 }
 0xd12   :  { %v3672_v35 = vadd.s32 536870912, %v3671_v60  ;;  %v3779_v37 = vand.u32 65535, %v3775_v30  ;;  %v3780_v51 = vshrl.u32 %v3775_v30, 16  ;;  %v2549_v19 = vadd.f32 %v2545_v24, %v6699_v9 }
 0xd13   :  { %v3804_v14 = vmul.u32 %v3802_v8, %v3777_v23  ;;  %v2550_v6 = vadd.f32 %v2545_v24, %v6730_v40  ;;  %v3803_v62 = vmul.u32 %v3801_v49, %v3777_v23  ;;  %v3805_v18 = vmul.u32 %v3801_v49, %v3778_v47 }
 0xd14   :  { %v6802_v58 = vshrl.u32 %v3672_v35, 30  ;;  %v3782_v46 = vmul.u32 %v3780_v51, %v3777_v23  ;;  %v3783_v16 = vmul.u32 %v3779_v37, %v3778_v47  ;;  %v6805_v61 = vadd.f32 %v3567_v21, %v2549_v19 }
 0xd15   :  { %v3807_v11 = vshll.u32 %v3804_v14, 16  ;;  %v3744_v22 = vshrl.u32 %v4472_v39, %v6745_v13  ;;  %v3781_v44 = vmul.u32 %v3779_v37, %v3777_v23  ;;  %v3765_v9 = vsel %vm3763_vm11, %v3753_v25, 2102212464 }
 0xd16   :  { %v3674_v4 = vshll.u32 %v6802_v58, 30  ;;  %v3785_v42 = vshll.u32 %v3782_v46, 16  ;;  %v3784_v63 = vmul.u32 %v3780_v51, %v3778_v47  ;;  %v3806_v17 = vmul.u32 %v3802_v8, %v3778_v47 }
 0xd17   :  { %vm3811_vm9 = vc.u32 %v3803_v62, %v3807_v11  ;;  %v3787_v40 = vshll.u32 %v3783_v16, 16  ;;  %v3809_v10 = vshll.u32 %v3805_v18, 16  ;;  %v3813_v57 = vadd.s32 %v3807_v11, %v3803_v62 }
 0xd18   :  { %v6812_v5 = vsub.s32 %v3671_v60, %v3674_v4  ;;  %vm3789_vm0 = vc.u32 %v3781_v44, %v3785_v42  ;;  %v3791_v55 = vadd.s32 %v3785_v42, %v3781_v44  ;;  %v3812_v15 = vsel %vm3811_vm9, 1, %v4471_v32 }
 0xd19   :  { %v3790_v3 = vsel %vm3789_vm0, 1, %v4471_v32  ;;  %v3786_v25 = vshrl.u32 %v3782_v46, 16  ;;  %v3814_v12 = vadd.s32 %v3812_v15, %v3806_v17  ;;  %vm3815_vm12 = vc.u32 %v3813_v57, %v3809_v10 }
 0xd1a   :  { %vm3676_vm1 = vcmp.lt.s32.totalorder %v6812_v5, 0  ;;  %v3677_v13 = vsub.s32 0, %v6812_v5  ;;  %v3792_v26 = vadd.s32 %v3790_v3, %v3784_v63  ;;  %vm3793_vm6 = vc.u32 %v3791_v55, %v3787_v40 }
 0xd1b   :  { %v3794_v29 = vsel %vm3793_vm6, 1, %v4471_v32  ;;  %v3816_v7 = vsel %vm3815_vm12, 1, %v4471_v32  ;;  %v6821_v59 = vadd.f32 %v3568_v33, %v2550_v6  ;;  %v3808_v60 = vshrl.u32 %v3804_v14, 16 }
 0xd1c   :  { %v3678_v20 = vsel %vm3676_vm1, %v3677_v13, %v6812_v5  ;;  %v3796_v53 = vadd.s32 %v3794_v29, %v3792_v26  ;;  %v3818_v2 = vadd.s32 %v3816_v7, %v3814_v12  ;;  %v3764_v1 = vsel %vm3760_vm7, %v3744_v22, %v6762_v50 }
 0xd1d   :  { %v3679_v21 = vclz %v3678_v20  ;;  %v3788_v24 = vshrl.u32 %v3783_v16, 16  ;;  %v3886_v23 = vand.u32 2139095040, %v6805_v61  ;;  %v3766_v8 = vsel %vm3762_vm10, %v6764_v34, %v3765_v9 }
 0xd1e   :  { %v3797_v30 = vadd.s32 %v3796_v53, %v3786_v25  ;;  %v3810_v35 = vshrl.u32 %v3805_v18, 16  ;;  %v3819_v47 = vadd.s32 %v3818_v2, %v3808_v60  ;;  %v6832_v33 = vadd.s32 %v3813_v57, %v3809_v10 }
 0xd1f   :  { %v4348_v49 = vadd.s32 4294967294, %v3679_v21  ;;  %v3887_v51 = vshrl.u32 %v3886_v23, 23  ;;  %v3767_v50 = vsel %vm3761_vm15, %v3764_v1, %v3766_v8  ;;  %v3883_v42 = vand.u32 2147483647, %v6805_v61 }
 0xd20   :  { %v6830_v37 = vadd.s32 %v3797_v30, %v3788_v24  ;;  %v3820_v14 = vadd.s32 %v3819_v47, %v3810_v35  ;;  %v3821_v18 = vmul.u32 %v6776_v31, %v3767_v50  ;;  %v3667_v54 = vadd.s32 %v6743_v38, %v6760_v43 }
 0xd21   :  { %vm4349_vm3 = vcmp.lt.s32.totalorder %v4348_v49, 0  ;;  %v4353_v46 = vadd.s32 4294967169, %v3887_v51  ;;  %v3890_v31 = vand.u32 8388607, %v3883_v42  ;;  %vm3575_vm7 = vcmp.lt.s32.totalorder %v6681_v36, 0 }
 0xd22   :  { %v3682_v19 = vsel %vm4349_vm3, 0, %v4348_v49  ;;  %vm3823_vm8 = vc.u32 %v6830_v37, %v6832_v33  ;;  %v3824_v6 = vadd.s32 1, %v3820_v14  ;;  %vm6909_vm15 = vcmp.le.f32.partialorder %v3573_v28, 0.7853982 }
 0xd23   :  { %v3687_v16 = vsub.s32 4294967266, %v3682_v19  ;;  %v3893_v34 = vadd.s32 1, %v4353_v46  ;;  %v3683_v4 = vsub.s32 32, %v3682_v19  ;;  %v3684_v10 = vshll.u32 %v6812_v5, %v3682_v19 }
 0xd24   :  { %v3825_v11 = vsel %vm3823_vm8, %v3824_v6, %v3820_v14  ;;  %v3891_v47 = vor.u32 8388608, %v3890_v31  ;;  %vm3730_vm6 = vcmp.lt.s32.totalorder %v6694_v45, 0  ;;  %vm6939_vm3 = vcmp.le.f32.partialorder %v3728_v0, 0.7853982 }
 0xd25   :  { %v3688_v62 = vadd.s32 127, %v3687_v16  ;;  %vm3894_vm5 = vcmp.gt.s32.totalorder %v3893_v34, 0  ;;  %v3826_v22 = vadd.s32 %v3825_v11, %v3821_v18  ;;  %v3685_v55 = vshrl.u32 %v3667_v54, %v3683_v4 }
 0xd26   :  { %v3895_v44 = vsel %vm3894_vm5, %v3893_v34, 0 }
 0xd27   :  { %v3897_v9 = vand.u32 31, %v3895_v44  ;;  %v3689_v63 = vshll.u32 %v3688_v62, 23  ;;  %v3827_v17 = vadd.s32 536870912, %v3826_v22  ;;  %v3686_v29 = vor.u32 %v3685_v55, %v3684_v10 }
 0xd28   :  { %v6859_v5 = vshrl.u32 %v3895_v44, 5  ;;  %v6889_v62 = vshll.u32 %v3891_v47, 8 }
 0xd29   :  { %v6842_v40 = vsub.s32 32, %v3897_v9  ;;  %v6844_v3 = vshrl.u32 %v3827_v17, 30  ;;  %v3690_v15 = vor.u32 4788187, %v3689_v63  ;;  %v3909_v25 = vshll.u32 %v4475_v52, %v3897_v9 }
 0xd2a   :  { %v3900_v20 = vshll.u32 %v4472_v39, %v3897_v9  ;;  %v3903_v53 = vshll.u32 %v4473_v41, %v3897_v9  ;;  %v3906_v7 = vshll.u32 %v4474_v48, %v3897_v9  ;;  %v3912_v49 = vshll.u32 %v4476_v56, %v3897_v9 }
 0xd2b   :  { %v3829_v57 = vshll.u32 %v6844_v3, 30  ;;  %v3910_v13 = vshrl.u32 %v4476_v56, %v6842_v40  ;;  %v3901_v38 = vshrl.u32 %v4473_v41, %v6842_v40  ;;  %v3904_v43 = vshrl.u32 %v4474_v48, %v6842_v40 }
 0xd2c   :  { %v3907_v26 = vshrl.u32 %v4475_v52, %v6842_v40  ;;  %v3913_v60 = vshrl.u32 %v7250_v27, %v6842_v40  ;;  %v3691_v2 = vand.u32 2147483647, %v3690_v15  ;;  %v3693_v8 = vcvt.s32.f32 %v3686_v29 }
 0xd2d   :  { %v3830_v12 = vsub.s32 %v3826_v22, %v3829_v57  ;;  %v3911_v21 = vor.u32 %v3910_v13, %v3909_v25  ;;  %v6866_v24 = vor.u32 %v3901_v38, %v3900_v20  ;;  %v6868_v30 = vor.u32 %v3904_v43, %v3903_v53 }
 0xd2e   :  { %v6870_v23 = vor.u32 %v3907_v26, %v3906_v7  ;;  %vm3918_vm14 = vcmp.lt.s32.totalorder %v6859_v5, 4  ;;  %v3914_v14 = vor.u32 %v3913_v60, %v3912_v49  ;;  %v3694_v50 = vmul.f32 %v3693_v8, %v3691_v2 }
 0xd2f   :  { %vm3831_vm13 = vcmp.lt.s32.totalorder %v3830_v12, 0  ;;  %v3832_v1 = vsub.s32 0, %v3830_v12  ;;  %v3924_v19 = vsel %vm3918_vm14, %v3911_v21, 920167782  ;;  %vm3915_vm2 = vcmp.lt.s32.totalorder %v6859_v5, 1 }
 0xd30   :  { %vm3917_vm4 = vcmp.lt.s32.totalorder %v6859_v5, 3  ;;  %v3923_v16 = vsel %vm3915_vm2, %v6866_v24, %v6868_v30  ;;  %v3927_v34 = vsel %vm3915_vm2, %v6868_v30, %v6870_v23  ;;  %vm3916_vm10 = vcmp.lt.s32.totalorder %v6859_v5, 2 }
 0xd31   :  { %v3833_v35 = vsel %vm3831_vm13, %v3832_v1, %v3830_v12  ;;  %v3925_v6 = vsel %vm3917_vm4, %v6870_v23, %v3924_v19  ;;  %v3928_v18 = vsel %vm3918_vm14, %v3914_v14, 1326507024  ;;  %v3695_v11 = vxor.u32 2147483648, %v3694_v50 }
 0xd32   :  { %v3834_v51 = vclz %v3833_v35  ;;  %v3926_v22 = vsel %vm3916_vm10, %v3923_v16, %v3925_v6  ;;  %v3929_v44 = vsel %vm3917_vm4, %v3911_v21, %v3928_v18  ;;  %v3822_v9 = vadd.s32 %v6832_v33, %v6830_v37 }
 0xd33   :  { %v3930_v17 = vsel %vm3916_vm10, %v3927_v34, %v3929_v44  ;;  %v3932_v55 = vand.u32 65535, %v6889_v62  ;;  %v3933_v31 = vshrl.u32 %v6889_v62, 16  ;;  %v3957_v43 = vshrl.u32 %v3926_v22, 16 }
 0xd34   :  { %v4351_v46 = vadd.s32 4294967294, %v3834_v51  ;;  %v3934_v10 = vand.u32 65535, %v3930_v17  ;;  %v3935_v15 = vshrl.u32 %v3930_v17, 16  ;;  %v3696_v26 = vsel %vm3575_vm7, %v3695_v11, %v3694_v50 }
 0xd35   :  { %v3956_v20 = vand.u32 65535, %v3926_v22  ;;  %v6917_v60 = vsel %vm6909_vm15, %v6681_v36, %v3696_v26  ;;  %v3959_v1 = vmul.u32 %v3957_v43, %v3932_v55  ;;  %v3961_v22 = vmul.u32 %v3957_v43, %v3933_v31 }
 0xd36   :  { %vm4352_vm11 = vcmp.lt.s32.totalorder %v4351_v46, 0  ;;  %v3937_v25 = vmul.u32 %v3935_v15, %v3932_v55  ;;  %v3938_v29 = vmul.u32 %v3934_v10, %v3933_v31  ;;  %v3936_v7 = vmul.u32 %v3934_v10, %v3932_v55 }
 0xd37   :  { %v3837_v4 = vsel %vm4352_vm11, 0, %v4351_v46  ;;  %v3939_v49 = vmul.u32 %v3935_v15, %v3933_v31  ;;  %v3960_v14 = vmul.u32 %v3956_v20, %v3933_v31  ;;  %v3958_v6 = vmul.u32 %v3956_v20, %v3932_v55 }
 0xd38   :  { %v3838_v54 = vsub.s32 32, %v3837_v4  ;;  %v3842_v63 = vsub.s32 4294967266, %v3837_v4  ;;  %v3839_v57 = vshll.u32 %v3830_v12, %v3837_v4  ;;  %v3940_v21 = vshll.u32 %v3937_v25, 16 }
 0xd39   :  { %v4041_v12 = vand.u32 2139095040, %v6821_v59  ;;  %v3942_v8 = vshll.u32 %v3938_v29, 16  ;;  %v3962_v34 = vshll.u32 %v3959_v1, 16  ;;  %v6923_v18 = vmul.f32 %v6917_v60, %v6917_v60 }
 0xd3a   :  { %v3840_v13 = vshrl.u32 %v3822_v9, %v3838_v54  ;;  %v3843_v38 = vadd.s32 127, %v3842_v63  ;;  %vm3944_vm9 = vc.u32 %v3936_v7, %v3940_v21  ;;  %v3946_v35 = vadd.s32 %v3940_v21, %v3936_v7 }
 0xd3b   :  { %v3945_v51 = vsel %vm3944_vm9, 1, %v4471_v32  ;;  %v4042_v50 = vshrl.u32 %v4041_v12, 23  ;;  %v3941_v11 = vshrl.u32 %v3937_v25, 16  ;;  %v3964_v9 = vshll.u32 %v3960_v14, 16 }
 0xd3c   :  { %v3841_v37 = vor.u32 %v3840_v13, %v3839_v57  ;;  %v3844_v33 = vshll.u32 %v3843_v38, 23  ;;  %v3947_v19 = vadd.s32 %v3945_v51, %v3939_v49  ;;  %vm3948_vm0 = vc.u32 %v3946_v35, %v3942_v8 }
 0xd3d   :  { %v3949_v16 = vsel %vm3948_vm0, 1, %v4471_v32  ;;  %vm3966_vm1 = vc.u32 %v3958_v6, %v3962_v34  ;;  %v3968_v54 = vadd.s32 %v3962_v34, %v3958_v6  ;;  %v3697_v10 = vsub.s32 4, %v6802_v58 }
 0xd3e   :  { %v3845_v2 = vor.u32 4788187, %v3844_v33  ;;  %v3848_v28 = vcvt.s32.f32 %v3841_v37  ;;  %v3951_v4 = vadd.s32 %v3949_v16, %v3947_v19  ;;  %v3967_v17 = vsel %vm3966_vm1, 1, %v4471_v32 }
 0xd3f   :  { %v3920_v55 = vsel %vm3918_vm14, %v6870_v23, 2102212464  ;;  %v3969_v15 = vadd.s32 %v3967_v17, %v3961_v22  ;;  %vm3970_vm12 = vc.u32 %v3968_v54, %v3964_v9  ;;  %v3899_v57 = vshrl.u32 %v4472_v39, %v6842_v40 }
 0xd40   :  { %v3846_v47 = vand.u32 2147483647, %v3845_v2  ;;  %v3952_v63 = vadd.s32 %v3951_v4, %v3941_v11  ;;  %v3943_v13 = vshrl.u32 %v3938_v29, 16  ;;  %v3971_v38 = vsel %vm3970_vm12, 1, %v4471_v32 }
 0xd41   :  { %v3709_v43 = vmul.f32 -0.00019511016, %v6923_v18  ;;  %v3963_v26 = vshrl.u32 %v3959_v1, 16  ;;  %v3973_v25 = vadd.s32 %v3971_v38, %v3969_v15  ;;  %v4356_v37 = vadd.s32 4294967169, %v4042_v50 }
 0xd42   :  { %v3849_v46 = vmul.f32 %v3848_v28, %v3846_v47  ;;  %v3919_v33 = vsel %vm3915_vm2, %v3899_v57, %v6866_v24  ;;  %v3921_v40 = vsel %vm3917_vm4, %v6868_v30, %v3920_v55  ;;  %v6949_v29 = vadd.s32 %v3952_v63, %v3943_v13 }
 0xd43   :  { %v3965_v7 = vshrl.u32 %v3960_v14, 16  ;;  %v3974_v0 = vadd.s32 %v3973_v25, %v3963_v26  ;;  %v4048_v21 = vadd.s32 1, %v4356_v37  ;;  %v3698_v12 = vsel %vm3575_vm7, %v3697_v10, %v6802_v58 }
 0xd44   :  { %v3850_v44 = vxor.u32 2147483648, %v3849_v46  ;;  %v3702_v24 = vmul.f32 -0.001358992, %v6923_v18  ;;  %v6960_v2 = vadd.s32 %v3968_v54, %v3964_v9  ;;  %v3710_v1 = vadd.f32 0.008332121, %v3709_v43 }
 0xd45   :  { %v3922_v30 = vsel %vm3916_vm10, %v3919_v33, %v3921_v40  ;;  %v3975_v49 = vadd.s32 %v3974_v0, %v3965_v7  ;;  %vm4049_vm8 = vcmp.gt.s32.totalorder %v4048_v21, 0  ;;  %v3852_v8 = vsub.s32 4, %v6844_v3 }
 0xd46   :  { %v3851_v31 = vsel %vm3730_vm6, %v3850_v44, %v3849_v46  ;;  %vm3978_vm5 = vc.u32 %v6949_v29, %v6960_v2  ;;  %v4050_v58 = vsel %vm4049_vm8, %v4048_v21, 0  ;;  %v3976_v28 = vmul.u32 %v6889_v62, %v3922_v30 }
 0xd47   :  { %v6954_v20 = vsel %vm6939_vm3, %v6694_v45, %v3851_v31  ;;  %v3979_v47 = vadd.s32 1, %v3975_v49  ;;  %v4038_v51 = vand.u32 2147483647, %v6821_v59  ;;  %v4052_v14 = vand.u32 31, %v4050_v58 }
 0xd48   :  { %v6967_v35 = vmul.f32 %v6954_v20, %v6954_v20  ;;  %v3700_v5 = vsel %vm6909_vm15, 0, %v3698_v12  ;;  %v3703_v19 = vadd.f32 0.041655596, %v3702_v24  ;;  %v3711_v50 = vmul.f32 %v3710_v1, %v6923_v18 }
 0xd49   :  { %v3980_v46 = vsel %vm3978_vm5, %v3979_v47, %v3975_v49  ;;  %v3853_v16 = vsel %vm3730_vm6, %v3852_v8, %v6844_v3  ;;  %v6980_v11 = vsub.s32 32, %v4052_v14  ;;  %v6982_v62 = vadd.s32 3, %v3700_v5 }
 0xd4a   :  { %v3864_v6 = vmul.f32 -0.00019511016, %v6967_v35  ;;  %v3981_v34 = vadd.s32 %v3980_v46, %v3976_v28  ;;  %v4045_v53 = vand.u32 8388607, %v4038_v51  ;;  %v3704_v22 = vmul.f32 %v3703_v19, %v6923_v18 }
 0xd4b   :  { %v3712_v44 = vadd.f32 -0.16666654, %v3711_v50  ;;  %v3855_v9 = vsel %vm6939_vm3, 0, %v3853_v16  ;;  %v4065_v3 = vshrl.u32 %v4476_v56, %v6980_v11  ;;  %v4056_v17 = vshrl.u32 %v4473_v41, %v6980_v11 }
 0xd4c   :  { %v3982_v4 = vadd.s32 536870912, %v3981_v34  ;;  %v3865_v54 = vadd.f32 0.008332121, %v3864_v6  ;;  %v4059_v10 = vshrl.u32 %v4474_v48, %v6980_v11  ;;  %v3857_v55 = vmul.f32 -0.001358992, %v6967_v35 }
 0xd4d   :  { %v6998_v15 = vshrl.u32 %v4050_v58, 5  ;;  %v4062_v31 = vshrl.u32 %v4475_v52, %v6980_v11  ;;  %v4064_v57 = vshll.u32 %v4475_v52, %v4052_v14  ;;  %v4055_v38 = vshll.u32 %v4472_v39, %v4052_v14 }
 0xd4e   :  { %v6991_v63 = vshrl.u32 %v3982_v4, 30  ;;  %v4058_v43 = vshll.u32 %v4473_v41, %v4052_v14  ;;  %v4068_v26 = vshrl.u32 %v7250_v27, %v6980_v11  ;;  %v4046_v25 = vor.u32 8388608, %v4045_v53 }
 0xd4f   :  { %v4061_v37 = vshll.u32 %v4474_v48, %v4052_v14  ;;  %v4066_v23 = vor.u32 %v4065_v3, %v4064_v57  ;;  %v4067_v33 = vshll.u32 %v4476_v56, %v4052_v14  ;;  %v3866_v40 = vmul.f32 %v3865_v54, %v6967_v35 }
 0xd50   :  { %v3984_v13 = vshll.u32 %v6991_v63, 30  ;;  %v7011_v0 = vor.u32 %v4056_v17, %v4055_v38  ;;  %v7013_v52 = vor.u32 %v4059_v10, %v4058_v43  ;;  %v3705_v21 = vadd.f32 -0.4999988, %v3704_v22 }
 0xd51   :  { %v3713_v12 = vmul.f32 %v3712_v44, %v6923_v18  ;;  %v7016_v41 = vor.u32 %v4062_v31, %v4061_v37  ;;  %v4069_v24 = vor.u32 %v4068_v26, %v4067_v33  ;;  %v3858_v27 = vadd.f32 0.041655596, %v3857_v55 }
 0xd52   :  { %v3985_v7 = vsub.s32 %v3981_v34, %v3984_v13  ;;  %vm4073_vm14 = vcmp.lt.s32.totalorder %v6998_v15, 4  ;;  %v7019_v48 = vadd.s32 3, %v3855_v9  ;;  %vm4070_vm2 = vcmp.lt.s32.totalorder %v6998_v15, 1 }
 0xd53   :  { %v4079_v56 = vsel %vm4073_vm14, %v4066_v23, 920167782  ;;  %v7024_v30 = vshll.u32 %v4046_v25, 8  ;;  %v3867_v49 = vadd.f32 -0.16666654, %v3866_v40  ;;  %vm4072_vm4 = vcmp.lt.s32.totalorder %v6998_v15, 3 }
 0xd54   :  { %vm3986_vm13 = vcmp.lt.s32.totalorder %v3985_v7, 0  ;;  %v3987_v1 = vsub.s32 0, %v3985_v7  ;;  %v4078_v58 = vsel %vm4070_vm2, %v7011_v0, %v7013_v52  ;;  %v4080_v28 = vsel %vm4072_vm4, %v7016_v41, %v4079_v56 }
 0xd55   :  { %v4082_v14 = vsel %vm4070_vm2, %v7013_v52, %v7016_v41  ;;  %v4083_v5 = vsel %vm4073_vm14, %v4069_v24, 1326507024  ;;  %v7041_v19 = vmul.f32 %v3705_v21, %v6923_v18  ;;  %v7043_v50 = vadd.f32 1.0, %v3713_v12 }
 0xd56   :  { %v3988_v8 = vsel %vm3986_vm13, %v3987_v1, %v3985_v7  ;;  %v3859_v46 = vmul.f32 %v3858_v27, %v6967_v35  ;;  %vm4071_vm7 = vcmp.lt.s32.totalorder %v6998_v15, 2  ;;  %v4084_v34 = vsel %vm4072_vm4, %v4066_v23, %v4083_v5 }
 0xd57   :  { %v3989_v47 = vclz %v3988_v8  ;;  %v4081_v6 = vsel %vm4071_vm7, %v4078_v58, %v4080_v28  ;;  %v4087_v4 = vand.u32 65535, %v7024_v30  ;;  %v3868_v53 = vmul.f32 %v3867_v49, %v6967_v35 }
 0xd58   :  { %v4085_v18 = vsel %vm4071_vm7, %v4082_v14, %v4084_v34  ;;  %v4111_v22 = vand.u32 65535, %v4081_v6  ;;  %v4112_v44 = vshrl.u32 %v4081_v6, 16  ;;  %v4088_v9 = vshrl.u32 %v7024_v30, 16 }
 0xd59   :  { %v4354_v16 = vadd.s32 4294967294, %v3989_v47  ;;  %v4089_v3 = vand.u32 65535, %v4085_v18  ;;  %v4090_v54 = vshrl.u32 %v4085_v18, 16  ;;  %v3860_v17 = vadd.f32 -0.4999988, %v3859_v46 }
 0xd5a   :  { %v3977_v10 = vadd.s32 %v6960_v2, %v6949_v29  ;;  %v4114_v31 = vmul.u32 %v4112_v44, %v4087_v4  ;;  %v4054_v38 = vshrl.u32 %v4472_v39, %v6980_v11  ;;  %v4115_v43 = vmul.u32 %v4111_v22, %v4088_v9 }
 0xd5b   :  { %vm4355_vm11 = vcmp.lt.s32.totalorder %v4354_v16, 0  ;;  %v3869_v26 = vadd.f32 1.0, %v3868_v53  ;;  %v4092_v25 = vmul.u32 %v4090_v54, %v4087_v4  ;;  %v4093_v37 = vmul.u32 %v4089_v3, %v4088_v9 }
 0xd5c   :  { %v3992_v55 = vsel %vm4355_vm11, 0, %v4354_v16  ;;  %v4113_v23 = vmul.u32 %v4111_v22, %v4087_v4  ;;  %v4117_v12 = vshll.u32 %v4114_v31, 16  ;;  %v4091_v24 = vmul.u32 %v4089_v3, %v4087_v4 }
 0xd5d   :  { %v3993_v57 = vsub.s32 32, %v3992_v55  ;;  %v3997_v13 = vsub.s32 4294967266, %v3992_v55  ;;  %v3994_v33 = vshll.u32 %v3985_v7, %v3992_v55  ;;  %v4094_v27 = vmul.u32 %v4090_v54, %v4088_v9 }
 0xd5e   :  { %v4095_v1 = vshll.u32 %v4092_v25, 16  ;;  %v4116_v29 = vmul.u32 %v4112_v44, %v4088_v9  ;;  %v4097_v49 = vshll.u32 %v4093_v37, 16  ;;  %v4119_v8 = vshll.u32 %v4115_v43, 16 }
 0xd5f   :  { %v3995_v40 = vshrl.u32 %v3977_v10, %v3993_v57  ;;  %v3998_v21 = vadd.s32 127, %v3997_v13  ;;  %vm3885_vm10 = vcmp.lt.s32.totalorder %v6805_v61, 0  ;;  %vm4121_vm9 = vc.u32 %v4113_v23, %v4117_v12 }
 0xd60   :  { %vm4099_vm15 = vc.u32 %v4091_v24, %v4095_v1  ;;  %v4101_v39 = vadd.s32 %v4095_v1, %v4091_v24  ;;  %v4123_v11 = vadd.s32 %v4117_v12, %v4113_v23  ;;  %vm7063_vm0 = vcmp.le.f32.partialorder %v3883_v42, 0.7853982 }
 0xd61   :  { %v3996_v2 = vor.u32 %v3995_v40, %v3994_v33  ;;  %v3999_v56 = vshll.u32 %v3998_v21, 23  ;;  %v4075_v47 = vsel %vm4073_vm14, %v7016_v41, 2102212464  ;;  %v4100_v28 = vsel %vm4099_vm15, 1, %v4471_v32 }
 0xd62   :  { %v4122_v14 = vsel %vm4121_vm9, 1, %v4471_v32  ;;  %v4102_v5 = vadd.s32 %v4100_v28, %v4094_v27  ;;  %vm4103_vm1 = vc.u32 %v4101_v39, %v4097_v49  ;;  %vm4125_vm6 = vc.u32 %v4123_v11, %v4119_v8 }
 0xd63   :  { %v4000_v58 = vor.u32 4788187, %v3999_v56  ;;  %v4124_v46 = vadd.s32 %v4122_v14, %v4116_v29  ;;  %v4003_v6 = vcvt.s32.f32 %v3996_v2  ;;  %v4104_v42 = vsel %vm4103_vm1, 1, %v4471_v32 }
 0xd64   :  { %v4126_v34 = vsel %vm4125_vm6, 1, %v4471_v32  ;;  %v4096_v4 = vshrl.u32 %v4092_v25, 16  ;;  %v4106_v53 = vadd.s32 %v4104_v42, %v4102_v5  ;;  %v4118_v18 = vshrl.u32 %v4114_v31, 16 }
 0xd65   :  { %v4001_v16 = vand.u32 2147483647, %v4000_v58  ;;  %v4128_v22 = vadd.s32 %v4126_v34, %v4124_v46  ;;  %v3861_v41 = vmul.f32 %v3860_v17, %v6967_v35  ;;  %v4074_v9 = vsel %vm4070_vm2, %v4054_v38, %v7011_v0 }
 0xd66   :  { %v4076_v3 = vsel %vm4072_vm4, %v7013_v52, %v4075_v47  ;;  %v4098_v54 = vshrl.u32 %v4093_v37, 16  ;;  %v4107_v10 = vadd.s32 %v4106_v53, %v4096_v4  ;;  %v4120_v55 = vshrl.u32 %v4115_v43, 16 }
 0xd67   :  { %v4004_v44 = vmul.f32 %v4003_v6, %v4001_v16  ;;  %v4129_v57 = vadd.s32 %v4128_v22, %v4118_v18  ;;  %v3707_v32 = vadd.f32 1.0, %v7041_v19  ;;  %v3715_v31 = vmul.f32 %v7043_v50, %v6917_v60 }
 0xd68   :  { %v3870_v35 = vmul.f32 %v3869_v26, %v6954_v20  ;;  %v4077_v13 = vsel %vm4071_vm7, %v4074_v9, %v4076_v3  ;;  %v7087_v0 = vadd.s32 %v4107_v10, %v4098_v54  ;;  %v7089_v38 = vadd.s32 %v4123_v11, %v4119_v8 }
 0xd69   :  { %v4005_v17 = vxor.u32 2147483648, %v4004_v44  ;;  %v4130_v52 = vadd.s32 %v4129_v57, %v4120_v55  ;;  %v3718_v25 = vand.u32 3, %v6982_v62  ;;  %v3862_v43 = vadd.f32 1.0, %v3861_v41 }
 0xd6a   :  { %v3873_v37 = vand.u32 3, %v7019_v48  ;;  %v4007_v60 = vsub.s32 4, %v6991_v63  ;;  %vm4133_vm12 = vc.u32 %v7087_v0, %v7089_v38  ;;  %v3721_v50 = vxor.u32 2147483648, %v3715_v31 }
 0xd6b   :  { %v4006_v19 = vsel %vm3885_vm10, %v4005_v17, %v4004_v44  ;;  %v4134_v15 = vadd.s32 1, %v4130_v52  ;;  %v4131_v62 = vmul.u32 %v7024_v30, %v4077_v13  ;;  %v3724_v23 = vxor.u32 2147483648, %v3707_v32 }
 0xd6c   :  { %v4009_v20 = vsel %vm7063_vm0, %v6805_v61, %v4006_v19  ;;  %v3876_v33 = vxor.u32 2147483648, %v3870_v35  ;;  %vm3720_vm3 = vcmp.eq.s32.totalorder %v3718_v25, 0  ;;  %vm3723_vm8 = vcmp.eq.s32.totalorder %v3718_v25, 2 }
 0xd6d   :  { %v4011_v26 = vmul.f32 %v4009_v20, %v4009_v20  ;;  %v4135_v48 = vsel %vm4133_vm12, %v4134_v15, %v4130_v52  ;;  %vm3875_vm5 = vcmp.eq.s32.totalorder %v3873_v37, 0  ;;  %v3879_v24 = vxor.u32 2147483648, %v3862_v43 }
 0xd6e   :  { %v4136_v12 = vadd.s32 %v4135_v48, %v4131_v62  ;;  %v4008_v27 = vsel %vm3885_vm10, %v4007_v60, %v6991_v63  ;;  %v3722_v1 = vsel %vm3720_vm3, %v3707_v32, %v3721_v50  ;;  %vm3719_vm13 = vcmp.lt.s32.totalorder %v3718_v25, 2 }
 0xd6f   :  { %v4012_v40 = vmul.f32 -0.001358992, %v4011_v26  ;;  %v4019_v21 = vmul.f32 -0.00019511016, %v4011_v26  ;;  %v3725_v30 = vsel %vm3723_vm8, %v3724_v23, %v3715_v31  ;;  %v3877_v49 = vsel %vm3875_vm5, %v3862_v43, %v3876_v33 }
 0xd70   :  { %v4137_v56 = vadd.s32 536870912, %v4136_v12  ;;  %vm3878_vm14 = vcmp.eq.s32.totalorder %v3873_v37, 2  ;;  %v4010_v8 = vsel %vm7063_vm0, 0, %v4008_v27  ;;  %v3726_v47 = vsel %vm3719_vm13, %v3722_v1, %v3725_v30 }
 0xd71   :  { %v4013_v29 = vadd.f32 0.041655596, %v4012_v40  ;;  %v4020_v2 = vadd.f32 0.008332121, %v4019_v21  ;;  %vm3874_vm2 = vcmp.lt.s32.totalorder %v3873_v37, 2  ;;  %v3880_v28 = vsel %vm3878_vm14, %v3879_v24, %v3870_v35 }
 0xd72   :  { %v7107_v58 = vshrl.u32 %v4137_v56, 30  ;;  %v3881_v14 = vsel %vm3874_vm2, %v3877_v49, %v3880_v28  ;;  %vm3716_vm4 = vweird.f32 %v6681_v36  ;;  %vm3871_vm7 = vweird.f32 %v6694_v45 }
 0xd73   :  { %v4014_v39 = vmul.f32 %v4013_v29, %v4011_v26  ;;  %v4021_v11 = vmul.f32 %v4020_v2, %v4011_v26  ;;  %v4027_v16 = vadd.s32 3, %v4010_v8  ;;  %v3727_v6 = vsel %vm3716_vm4, nan, %v3726_v47 }
 0xd74   :  { %v4139_v46 = vshll.u32 %v7107_v58, 30  ;;  %v3882_v4 = vsel %vm3871_vm7, nan, %v3881_v14  ;;  %v4193_v41 = vmul.f32 %v3727_v6, %v3727_v6  ;;  %vm4026_vm1 = vweird.f32 %v6805_v61 }
 0xd75   :  { %v4015_v63 = vadd.f32 -0.4999988, %v4014_v39  ;;  %v4022_v5 = vadd.f32 -0.16666654, %v4021_v11  ;;  %v4028_v44 = vand.u32 3, %v4027_v16  ;;  %v4194_v9 = vmul.f32 %v3882_v4, %v3882_v4 }
 0xd76   :  { %v4140_v34 = vsub.s32 %v4136_v12, %v4139_v46  ;;  %v4197_v32 = vadd.f32 %v4193_v41, %v6681_v36  ;;  %v4132_v43 = vadd.s32 %v7089_v38, %v7087_v0  ;;  %vm4040_vm6 = vcmp.lt.s32.totalorder %v6821_v59, 0 }
 0xd77   :  { %v4016_v7 = vmul.f32 %v4015_v63, %v4011_v26  ;;  %v4023_v42 = vmul.f32 %v4022_v5, %v4011_v26  ;;  %vm4030_vm10 = vcmp.eq.s32.totalorder %v4028_v44, 0  ;;  %vm4033_vm15 = vcmp.eq.s32.totalorder %v4028_v44, 2 }
 0xd78   :  { %vm4141_vm11 = vcmp.lt.s32.totalorder %v4140_v34, 0  ;;  %v4142_v22 = vsub.s32 0, %v4140_v34  ;;  %v4198_v35 = vadd.f32 %v4194_v9, %v6694_v45  ;;  %vm4029_vm9 = vcmp.lt.s32.totalorder %v4028_v44, 2 }
 0xd79   :  { %v4017_v53 = vadd.f32 1.0, %v4016_v7  ;;  %v4024_v18 = vadd.f32 1.0, %v4023_v42  ;;  %v4201_v60 = vmul.f32 0.1, %v4197_v32  ;;  %vm4039_vm12 = vcmp.le.f32.partialorder %v4038_v51, 0.7853982 }
 0xd7a   :  { %v4143_v10 = vsel %vm4141_vm11, %v4142_v22, %v4140_v34  ;;  %v4162_v2 = vsub.s32 4, %v7107_v58  ;;  %vm4181_vm13 = vweird.f32 %v6821_v59 }
 0xd7b   :  { %v4025_v3 = vmul.f32 %v4024_v18, %v4009_v20  ;;  %v4034_v54 = vxor.u32 2147483648, %v4017_v53  ;;  %v4144_v55 = vclz %v4143_v10  ;;  %v4202_v20 = vmul.f32 0.1, %v4198_v35 }
 0xd7c   :  { %v4205_v45 = vmax.f32 %v4201_v60, %v4197_v32  ;;  %v4163_v8 = vsel %vm4040_vm6, %v4162_v2, %v7107_v58 }
 0xd7d   :  { %v4031_v57 = vxor.u32 2147483648, %v4025_v3  ;;  %v4357_v31 = vadd.s32 4294967294, %v4144_v55  ;;  %v4035_v13 = vsel %vm4033_vm15, %v4034_v54, %v4025_v3  ;;  %v4206_v62 = vmax.f32 %v4202_v20, %v4198_v35 }
 0xd7e   :  { %4209 = vst [vmem:[#allocation2] sm:$0xff] %v4205_v45  ;;  %v4165_v47 = vsel %vm4039_vm12, 0, %v4163_v8 }
 0xd7f   :  { %v4032_v17 = vsel %vm4030_vm10, %v4017_v53, %v4031_v57  ;;  %vm4358_vm0 = vcmp.lt.s32.totalorder %v4357_v31, 0  ;;  %4210 = vst [vmem:[#allocation2 + $0x8] sm:$0xff] %v4206_v62  ;;  %v4182_v46 = vadd.s32 3, %v4165_v47 }
 0xd80   :  { %v4036_v52 = vsel %vm4029_vm9, %v4032_v17, %v4035_v13  ;;  %v4147_v25 = vsel %vm4358_vm0, 0, %v4357_v31 }
 0xd81   :  { %v4148_v37 = vsub.s32 32, %v4147_v25  ;;  %v4152_v19 = vsub.s32 4294967266, %v4147_v25  ;;  %v4037_v36 = vsel %vm4026_vm1, nan, %v4036_v52  ;;  %v4149_v15 = vshll.u32 %v4140_v34, %v4147_v25 }
 0xd82   :  { %v4195_v48 = vmul.f32 %v4037_v36, %v4037_v36  ;;  %v4183_v42 = vand.u32 3, %v4182_v46 }
 0xd83   :  { %v4150_v50 = vshrl.u32 %v4132_v43, %v4148_v37  ;;  %v4153_v26 = vadd.s32 127, %v4152_v19 }
 0xd84   :  { %v4199_v21 = vadd.f32 %v4195_v48, %v6805_v61  ;;  %vm4185_vm3 = vcmp.eq.s32.totalorder %v4183_v42, 0  ;;  %vm4188_vm8 = vcmp.eq.s32.totalorder %v4183_v42, 2  ;;  %vm4184_vm5 = vcmp.lt.s32.totalorder %v4183_v42, 2 }
 0xd85   :  { %v4151_v23 = vor.u32 %v4150_v50, %v4149_v15  ;;  %v4154_v33 = vshll.u32 %v4153_v26, 23 }
 0xd86   :  { %v4203_v38 = vmul.f32 0.1, %v4199_v21 }
 0xd87   :  { %v4155_v40 = vor.u32 4788187, %v4154_v33  ;;  %v4158_v0 = vcvt.s32.f32 %v4151_v23 }
 0xd88   :  { %v4207_v27 = vmax.f32 %v4203_v38, %v4199_v21 }
 0xd89   :  { %v4156_v12 = vand.u32 2147483647, %v4155_v40 }
 0xd8a   :  { %4211 = vst [vmem:[#allocation2 + $0x10] sm:$0xff] %v4207_v27 }
 0xd8b   :  { %v4159_v24 = vmul.f32 %v4158_v0, %v4156_v12 }
 0xd8d   :  { %v4160_v1 = vxor.u32 2147483648, %v4159_v24 }
 0xd8f   :  { %v4161_v29 = vsel %vm4040_vm6, %v4160_v1, %v4159_v24 }
 0xd90   :  { %v4164_v56 = vsel %vm4039_vm12, %v6821_v59, %v4161_v29 }
 0xd91   :  { %v4166_v30 = vmul.f32 %v4164_v56, %v4164_v56 }
 0xd93   :  { %v4167_v49 = vmul.f32 -0.001358992, %v4166_v30  ;;  %v4174_v61 = vmul.f32 -0.00019511016, %v4166_v30 }
 0xd95   :  { %v4168_v39 = vadd.f32 0.041655596, %v4167_v49  ;;  %v4175_v11 = vadd.f32 0.008332121, %v4174_v61 }
 0xd97   :  { %v4169_v28 = vmul.f32 %v4168_v39, %v4166_v30  ;;  %v4176_v14 = vmul.f32 %v4175_v11, %v4166_v30 }
 0xd99   :  { %v4170_v63 = vadd.f32 -0.4999988, %v4169_v28  ;;  %v4177_v5 = vadd.f32 -0.16666654, %v4176_v14 }
 0xd9b   :  { %v4171_v16 = vmul.f32 %v4170_v63, %v4166_v30  ;;  %v4178_v51 = vmul.f32 %v4177_v5, %v4166_v30 }
 0xd9d   :  { %v4172_v6 = vadd.f32 1.0, %v4171_v16  ;;  %v4179_v7 = vadd.f32 1.0, %v4178_v51 }
 0xd9f   :  { %v4180_v34 = vmul.f32 %v4179_v7, %v4164_v56  ;;  %v4189_v4 = vxor.u32 2147483648, %v4172_v6 }
 0xda1   :  { %v4186_v53 = vxor.u32 2147483648, %v4180_v34  ;;  %v4190_v18 = vsel %vm4188_vm8, %v4189_v4, %v4180_v34 }
 0xda3   :  { %v4187_v58 = vsel %vm4185_vm3, %v4172_v6, %v4186_v53 }
 0xda4   :  { %v4191_v22 = vsel %vm4184_vm5, %v4187_v58, %v4190_v18 }
 0xda5   :  { %v4192_v41 = vsel %vm4181_vm13, nan, %v4191_v22 }
 0xda6   :  { %v4196_v44 = vmul.f32 %v4192_v41, %v4192_v41 }
 0xda8   :  { %v4200_v9 = vadd.f32 %v4196_v44, %v6821_v59 }
 0xdaa   :  { %v4204_v3 = vmul.f32 0.1, %v4200_v9 }
 0xdac   :  { %v4208_v54 = vmax.f32 %v4204_v3, %v4200_v9 }
 0xdae   :  { %4212 = vst [vmem:[#allocation2 + $0x18] sm:$0xff] %v4208_v54 }
 0xdaf   :  { %4225 = dma.vmem_to_hbm [thread:$0]  %s4218_s22, 512, %s4220_s26, [#allocation3], %s4479_s6, %s4479_s6, %s4480_s18  }
 0xdb0   :  { %4463 = dma.done.wait [#allocation3], 512  }
 0xdb1   :  { %4464 = vsyncadd [#allocation3], 4294966784 }
 0xdb2   :  { %4230 = vsyncpa [#allocation3], 1 }

</bundles_post_ra>
